<compile_context>
chip_gen: v7x
topology: tpu7x:2x2x1
jax: 0.10.0
libtpu: 0.0.40
codegen_flags: <defaults>
</compile_context>

<pallas_src>
import functools
import math

import jax
import jax.numpy as jnp
from jax.experimental import pallas as pl
from jax.experimental.pallas import tpu as pltpu


# ----------------------------- in-kernel building blocks -----------------------------

def _gn_silu(x2, gm, gamma, beta, eps):
    """x2: (P, C) f32.  gm: (C, C) group-average matrix (1/(P*Cg) on same-group entries).
    Two-pass GroupNorm (mean, then variance of centered values) followed by exact SiLU."""
    s = jnp.sum(x2, axis=0, keepdims=True)                               # (1, C)
    mu = jnp.dot(s, gm, preferred_element_type=jnp.float32)              # per-channel group mean
    d = x2 - mu
    var = jnp.dot(jnp.sum(d * d, axis=0, keepdims=True), gm,
                  preferred_element_type=jnp.float32)                    # per-channel group var
    y = d * jax.lax.rsqrt(var + eps) * gamma + beta
    return y * (1.0 / (1.0 + jnp.exp(-y)))                               # exact x * sigmoid(x)


def _zero_conv_ring(pad_ref, H, W):
    """Zero only the 1-pixel halo (rows 0 / H+1, cols 7 / W+8) of the pad scratch.
    The interior (rows 1..H, cols 8..W+7) is fully rewritten for every sample, and
    columns 0..6 are never read, so no full-scratch memset is needed."""
    C = pad_ref.shape[-1]
    z_row = jnp.zeros((1, W + 2, C), pad_ref.dtype)
    z_col = jnp.zeros((H, 1, C), pad_ref.dtype)
    pad_ref[0:1, 7:W + 9, :] = z_row
    pad_ref[H + 1:H + 2, 7:W + 9, :] = z_row
    pad_ref[1:H + 1, 7:8, :] = z_col
    pad_ref[1:H + 1, W + 8:W + 9, :] = z_col


def _conv3x3_accum(y2, pad_ref, w_ref, H, W, C, Cout, mxu_dtype):
    """y2: (H*W, C) f32 activation.  Returns the (H*W, Cout) f32 3x3 SAME conv (no bias).

    pad_ref: f32 VMEM (H+2, W+9, C) with a zero halo ring; the interior store lands at
    aligned offsets (row 1, sublane column 8, full lanes).  The conv is 9 per-tap matmuls
    accumulated straight from pad_ref — no materialized im2col patch, no K lane padding.
    w_ref: (9, C, Cout) per-tap weights."""
    pad_ref[1:H + 1, 8:8 + W, :] = y2.reshape(H, W, C)
    acc = None
    for ky in range(3):
        for kx in range(3):
            win = pad_ref[ky:ky + H, 7 + kx:7 + kx + W, :].reshape(H * W, C)
            part = jnp.dot(win.astype(mxu_dtype), w_ref[ky * 3 + kx],
                           preferred_element_type=jnp.float32)
            acc = part if acc is None else acc + part
    return acc


# ----------------------------- fused kernel -----------------------------

def _resblock_kernel(*refs, Nb, H, W, Cin, Cout, eps, has_temb, use_nin,
                     rescale, mxu_dtype):
    it = iter(refs)
    x_ref = next(it)
    g0_ref = next(it); b0_ref = next(it); gm0_ref = next(it)
    w0_ref = next(it); cb0_ref = next(it)
    tb_ref = next(it) if has_temb else None
    g1_ref = next(it); b1_ref = next(it); gm1_ref = next(it)
    w1_ref = next(it); cb1_ref = next(it)
    nw_ref = next(it) if use_nin else None
    nbias_ref = next(it) if use_nin else None
    o_ref = next(it)
    pad0_ref = next(it)
    pad1_ref = next(it)

    # Halo-only zeroing, every grid step (megacore-safe; interior rewritten per sample).
    _zero_conv_ring(pad0_ref, H, W)
    _zero_conv_ring(pad1_ref, H, W)

    # Hoist constant loads out of the per-sample loop.
    g0 = g0_ref[...]; b0 = b0_ref[...]; gm0 = gm0_ref[...]; cb0 = cb0_ref[...]
    g1 = g1_ref[...]; b1 = b1_ref[...]; gm1 = gm1_ref[...]; cb1 = cb1_ref[...]
    tb = tb_ref[...] if has_temb else None                               # (Nb, 1, Cout)
    nw = nw_ref[...] if use_nin else None
    nbias = nbias_ref[...] if use_nin else None

    for i in range(Nb):
        x2 = x_ref[i].astype(jnp.float32).reshape(H * W, Cin)

        # GroupNorm_0 -> SiLU -> Conv_0 -> + Dense_0(SiLU(temb)) per-sample bias.
        y0 = _gn_silu(x2, gm0, g0, b0, eps)
        h2 = _conv3x3_accum(y0, pad0_ref, w0_ref, H, W, Cin, Cout, mxu_dtype) + cb0
        if has_temb:
            h2 = h2 + tb[i]                                              # (1, Cout) broadcast

        # GroupNorm_1 -> SiLU -> [Dropout_0 = eval-mode identity] -> Conv_1.
        y1 = _gn_silu(h2, gm1, g1, b1, eps)
        hh = _conv3x3_accum(y1, pad1_ref, w1_ref, H, W, Cout, Cout, mxu_dtype) + cb1

        # Shortcut (NIN_0 or identity) + residual (+ optional 1/sqrt(2)).
        if use_nin:
            sc = jnp.dot(x2.astype(mxu_dtype), nw,
                         preferred_element_type=jnp.float32) + nbias
        else:
            sc = x2
        out = sc + hh
        if rescale:
            out = out * (1.0 / math.sqrt(2.0))
        o_ref[i] = out.reshape(H, W, Cout).astype(o_ref.dtype)


# ----------------------------- host-side helpers -----------------------------

def _group_avg_matrix(C, G, hw):
    cg = C // G
    gid = jnp.arange(C, dtype=jnp.int32) // cg
    same = (gid[:, None] == gid[None, :]).astype(jnp.float32)
    return same / float(hw * cg)                                         # (C, C)


# ----------------------------- module forward -----------------------------

def resnet_block_ddpmpp(x_nchw, temb, params, *, out_ch, skip_rescale=False,
                        eps=1e-6, mxu_dtype=jnp.float32, batch_block=None):
    """Forward pass of ResnetBlockDDPMpp (act = SiLU, eval-mode dropout)."""
    x = jnp.transpose(x_nchw, (0, 2, 3, 1))                              # NCHW -> NHWC
    N, H, W, in_ch = x.shape
    G0 = min(in_ch // 4, 32)
    G1 = min(out_ch // 4, 32)
    assert in_ch % G0 == 0 and out_ch % G1 == 0, "channels must divide the group count"
    assert W % 8 == 0, "W must be a multiple of 8 (sublane tiling of row-flattened views)"
    has_temb = temb is not None
    use_nin = in_ch != out_ch

    # Several samples per grid step when the per-sample work is small.
    nb = batch_block
    if nb is None:
        nb = 2 if (N % 2 == 0 and H * W * max(in_ch, out_ch) <= (1 << 20)) else 1
    assert N % nb == 0

    gm0 = _group_avg_matrix(in_ch, G0, H * W)
    gm1 = _group_avg_matrix(out_ch, G1, H * W)
    w0 = params["conv0_w"].reshape(9, in_ch, out_ch).astype(mxu_dtype)   # per-tap (Cin, Cout)
    w1 = params["conv1_w"].reshape(9, out_ch, out_ch).astype(mxu_dtype)

    def full(shape):
        return pl.BlockSpec(tuple(shape), lambda n: tuple(0 for _ in shape))

    in_specs = [pl.BlockSpec((nb, H, W, in_ch), lambda n: (n, 0, 0, 0)),
                full((1, in_ch)), full((1, in_ch)), full((in_ch, in_ch)),
                full((9, in_ch, out_ch)), full((1, out_ch))]
    args = [x, params["gn0_g"], params["gn0_b"], gm0, w0, params["conv0_b"]]
    if has_temb:
        # Dense_0 hoisted out of the kernel: an M=1 matmul badly underutilizes the MXU, so
        # compute the per-sample bias in plain XLA and stream it in as (N, 1, out_ch).
        tbias = (jax.nn.silu(temb) @ params["dense_w"] + params["dense_b"])
        in_specs.append(pl.BlockSpec((nb, 1, out_ch), lambda n: (n, 0, 0)))
        args.append(tbias.reshape(N, 1, out_ch))
    in_specs += [full((1, out_ch)), full((1, out_ch)), full((out_ch, out_ch)),
                 full((9, out_ch, out_ch)), full((1, out_ch))]
    args += [params["gn1_g"], params["gn1_b"], gm1, w1, params["conv1_b"]]
    if use_nin:
        in_specs += [full((in_ch, out_ch)), full((1, out_ch))]
        args += [params["nin_w"].astype(mxu_dtype), params["nin_b"]]

    # VMEM budget: physical capacity minus headroom, capped (v5e/v6e: 128 MiB, v7x: 64 MiB).
    try:
        vmem_cap = int(pltpu.get_tpu_info().vmem_capacity_bytes)
    except Exception:
        vmem_cap = 64 * 1024 * 1024
    vmem_limit = max(32 * 1024 * 1024,
                     min(100 * 1024 * 1024, vmem_cap - 8 * 1024 * 1024))

    out = pl.pallas_call(
        functools.partial(_resblock_kernel, Nb=nb, H=H, W=W, Cin=in_ch, Cout=out_ch,
                          eps=eps, has_temb=has_temb, use_nin=use_nin,
                          rescale=skip_rescale, mxu_dtype=mxu_dtype),
        out_shape=jax.ShapeDtypeStruct((N, H, W, out_ch), x_nchw.dtype),
        grid=(N // nb,),
        in_specs=in_specs,
        out_specs=pl.BlockSpec((nb, H, W, out_ch), lambda n: (n, 0, 0, 0)),
        scratch_shapes=[pltpu.VMEM((H + 2, W + 9, in_ch), jnp.float32),
                        pltpu.VMEM((H + 2, W + 9, out_ch), jnp.float32)],
        compiler_params=pltpu.CompilerParams(dimension_semantics=("parallel",),
                                             vmem_limit_bytes=vmem_limit),
    )(*args)

    return jnp.transpose(out, (0, 3, 1, 2))                              # NHWC -> NCHW


# ----------------------------- params / pure-JAX reference -----------------------------

def _vs_uniform(key, shape, fan_in, fan_out, scale=1.0):
    # default_init = variance_scaling(scale, 'fan_avg', 'uniform')
    scale = max(scale, 1e-10)
    limit = math.sqrt(3.0 * scale / ((fan_in + fan_out) / 2.0))
    return jax.random.uniform(key, shape, jnp.float32, -limit, limit)


def _reference(x_nchw, temb, params, *, out_ch, skip_rescale=False, eps=1e-6):
    x = jnp.transpose(x_nchw, (0, 2, 3, 1))
    silu = lambda v: v * jax.nn.sigmoid(v)
    in_ch = x.shape[-1]

    def gn(v, g, b, G):
        N, H, W, C = v.shape
        vr = v.reshape(N, H * W, G, C // G)
        mu = vr.mean(axis=(1, 3), keepdims=True)
        var = ((vr - mu) ** 2).mean(axis=(1, 3), keepdims=True)
        vn = ((vr - mu) * jax.lax.rsqrt(var + eps)).reshape(N, H, W, C)
        return vn * g.reshape(1, 1, 1, C) + b.reshape(1, 1, 1, C)

    def conv(v, w, b):
        y = jax.lax.conv_general_dilated(v, w, (1, 1), "SAME",
                                         dimension_numbers=("NHWC", "HWIO", "NHWC"))
        return y + b.reshape(1, 1, 1, -1)

    h = silu(gn(x, params["gn0_g"], params["gn0_b"], min(in_ch // 4, 32)))
    h = conv(h, params["conv0_w"], params["conv0_b"])
    if temb is not None:
        h = h + (silu(temb) @ params["dense_w"] + params["dense_b"])[:, None, None, :]
    h = silu(gn(h, params["gn1_g"], params["gn1_b"], min(out_ch // 4, 32)))
    h = conv(h, params["conv1_w"], params["conv1_b"])
    if in_ch != out_ch:
        xs = x @ params["nin_w"] + params["nin_b"].reshape(1, 1, 1, -1)
    else:
        xs = x
    out = xs + h
    if skip_rescale:
        out = out / jnp.sqrt(2.0)
    return jnp.transpose(out, (0, 3, 1, 2))


if __name__ == "__main__":
    key = jax.random.PRNGKey(0)
    ks = jax.random.split(key, 12)

    # -------- config 1: temb present, NIN_0 shortcut (in_ch != out_ch), Nb=2 batching ----
    N, in_ch, H, W = 2, 8, 16, 16
    out_ch, temb_dim = 16, 32
    x = jax.random.normal(ks[0], (N, in_ch, H, W), jnp.float32)          # NCHW like PyTorch
    temb = jax.random.normal(ks[1], (N, temb_dim), jnp.float32)

    params = {
        "gn0_g": 1.0 + 0.1 * jax.random.normal(ks[2], (1, in_ch), jnp.float32),
        "gn0_b": 0.1 * jax.random.normal(ks[3], (1, in_ch), jnp.float32),
        "gn1_g": 1.0 + 0.1 * jax.random.normal(ks[4], (1, out_ch), jnp.float32),
        "gn1_b": 0.1 * jax.random.normal(ks[5], (1, out_ch), jnp.float32),
        "conv0_w": _vs_uniform(ks[6], (3, 3, in_ch, out_ch), 9 * in_ch, 9 * out_ch, 1.0),
        "conv0_b": jnp.zeros((1, out_ch), jnp.float32),
        "dense_w": _vs_uniform(ks[7], (temb_dim, out_ch), temb_dim, out_ch, 1.0),
        "dense_b": jnp.zeros((1, out_ch), jnp.float32),
        "conv1_w": _vs_uniform(ks[8], (3, 3, out_ch, out_ch), 9 * out_ch, 9 * out_ch, 0.1),
        "conv1_b": jnp.zeros((1, out_ch), jnp.float32),
        "nin_w": _vs_uniform(ks[9], (in_ch, out_ch), in_ch, out_ch, 0.1),
        "nin_b": jnp.zeros((1, out_ch), jnp.float32),
    }

    fwd_f32 = jax.jit(functools.partial(resnet_block_ddpmpp, out_ch=out_ch,
                                        skip_rescale=False))
    out = jax.block_until_ready(fwd_f32(x, temb, params))
    assert out.shape == (N, out_ch, H, W)
    ref = _reference(x, temb, params, out_ch=out_ch, skip_rescale=False)
    assert jnp.allclose(out, ref, atol=1e-2, rtol=1e-2), "mismatch (f32, temb+NIN path)"

    # Same block with the bf16 MXU path (pad scratch stays f32; matmul operands cast bf16).
    fwd_bf16 = jax.jit(functools.partial(resnet_block_ddpmpp, out_ch=out_ch,
                                         skip_rescale=False, mxu_dtype=jnp.bfloat16))
    out_bf16 = jax.block_until_ready(fwd_bf16(x, temb, params))
    assert jnp.allclose(out_bf16, ref, atol=1e-1, rtol=1e-1), "mismatch (bf16 path)"

    # -------- config 2: no temb, identity shortcut, skip_rescale, per-sample grid --------
    C2 = 16
    x2 = jax.random.normal(ks[10], (N, C2, H, W), jnp.float32)
    params2 = {
        "gn0_g": jnp.ones((1, C2), jnp.float32),
        "gn0_b": jnp.zeros((1, C2), jnp.float32),
        "gn1_g": jnp.ones((1, C2), jnp.float32),
        "gn1_b": jnp.zeros((1, C2), jnp.float32),
        "conv0_w": _vs_uniform(ks[11], (3, 3, C2, C2), 9 * C2, 9 * C2, 1.0),
        "conv0_b": jnp.zeros((1, C2), jnp.float32),
        "conv1_w": _vs_uniform(ks[2], (3, 3, C2, C2), 9 * C2, 9 * C2, 0.1),
        "conv1_b": jnp.zeros((1, C2), jnp.float32),
    }
    fwd2 = jax.jit(functools.partial(resnet_block_ddpmpp, out_ch=C2, skip_rescale=True,
                                     batch_block=1))
    out2 = jax.block_until_ready(fwd2(x2, None, params2))
    ref2 = _reference(x2, None, params2, out_ch=C2, skip_rescale=True)
    assert jnp.allclose(out2, ref2, atol=1e-2, rtol=1e-2), "mismatch (no-temb, identity path)"

    print("KERNEL_OK")
</pallas_src>

<mosaic_0001>
module attributes {stable_mosaic.version = 11 : i64} {
  func.func @_resblock_kernel(%arg0: i32, %arg1: memref<2x16x16x8xf32, #tpu.memory_space<vmem>>, %arg2: memref<1x8xf32, #tpu.memory_space<vmem>>, %arg3: memref<1x8xf32, #tpu.memory_space<vmem>>, %arg4: memref<8x8xf32, #tpu.memory_space<vmem>>, %arg5: memref<9x8x16xf32, #tpu.memory_space<vmem>>, %arg6: memref<1x16xf32, #tpu.memory_space<vmem>>, %arg7: memref<2x1x16xf32, #tpu.memory_space<vmem>>, %arg8: memref<1x16xf32, #tpu.memory_space<vmem>>, %arg9: memref<1x16xf32, #tpu.memory_space<vmem>>, %arg10: memref<16x16xf32, #tpu.memory_space<vmem>>, %arg11: memref<9x16x16xf32, #tpu.memory_space<vmem>>, %arg12: memref<1x16xf32, #tpu.memory_space<vmem>>, %arg13: memref<8x16xf32, #tpu.memory_space<vmem>>, %arg14: memref<1x16xf32, #tpu.memory_space<vmem>>, %arg15: memref<2x16x16x16xf32, #tpu.memory_space<vmem>>, %arg16: memref<18x25x8xf32, #tpu.memory_space<vmem>>, %arg17: memref<18x25x16xf32, #tpu.memory_space<vmem>>) attributes {dimension_semantics = [#tpu.dimension_semantics<parallel>], iteration_bounds = array<i64: 1>, scalar_prefetch = 0 : i64, scratch_operands = 2 : i64, tpu.core_type = #tpu.core_type<tc>, window_params = [{transform_indices = @transform_0, window_bounds = array<i64: 2, 16, 16, 8>}, {pipeline_mode = #tpu.pipeline_mode<synchronous>, transform_indices = @transform_1, window_bounds = array<i64: 1, 8>}, {pipeline_mode = #tpu.pipeline_mode<synchronous>, transform_indices = @transform_2, window_bounds = array<i64: 1, 8>}, {pipeline_mode = #tpu.pipeline_mode<synchronous>, transform_indices = @transform_3, window_bounds = array<i64: 8, 8>}, {pipeline_mode = #tpu.pipeline_mode<synchronous>, transform_indices = @transform_4, window_bounds = array<i64: 9, 8, 16>}, {pipeline_mode = #tpu.pipeline_mode<synchronous>, transform_indices = @transform_5, window_bounds = array<i64: 1, 16>}, {transform_indices = @transform_6, window_bounds = array<i64: 2, 1, 16>}, {pipeline_mode = #tpu.pipeline_mode<synchronous>, transform_indices = @transform_7, window_bounds = array<i64: 1, 16>}, {pipeline_mode = #tpu.pipeline_mode<synchronous>, transform_indices = @transform_8, window_bounds = array<i64: 1, 16>}, {pipeline_mode = #tpu.pipeline_mode<synchronous>, transform_indices = @transform_9, window_bounds = array<i64: 16, 16>}, {pipeline_mode = #tpu.pipeline_mode<synchronous>, transform_indices = @transform_10, window_bounds = array<i64: 9, 16, 16>}, {pipeline_mode = #tpu.pipeline_mode<synchronous>, transform_indices = @transform_11, window_bounds = array<i64: 1, 16>}, {pipeline_mode = #tpu.pipeline_mode<synchronous>, transform_indices = @transform_12, window_bounds = array<i64: 8, 16>}, {pipeline_mode = #tpu.pipeline_mode<synchronous>, transform_indices = @transform_13, window_bounds = array<i64: 1, 16>}, {transform_indices = @transform_14, window_bounds = array<i64: 2, 16, 16, 16>}]} {
    %cst = arith.constant 0.000000e+00 : f32
    %0 = vector.broadcast %cst : f32 to vector<1x18x8xf32>
    %cst_0 = arith.constant 0.000000e+00 : f32
    %1 = vector.broadcast %cst_0 : f32 to vector<16x1x8xf32>
    %c0 = arith.constant 0 : index
    %c7 = arith.constant 7 : index
    %c0_1 = arith.constant 0 : index
    %2 = vector.load %arg16[%c0, %c7, %c0_1] : memref<18x25x8xf32, #tpu.memory_space<vmem>>, vector<1x18x8xf32>
    tpu.vector_store %arg16[%c0, %c7, %c0_1], %0 {strides = array<i32>} : memref<18x25x8xf32, #tpu.memory_space<vmem>>, vector<1x18x8xf32>,
    %c17 = arith.constant 17 : index
    %c7_2 = arith.constant 7 : index
    %c0_3 = arith.constant 0 : index
    %3 = vector.load %arg16[%c17, %c7_2, %c0_3] : memref<18x25x8xf32, #tpu.memory_space<vmem>>, vector<1x18x8xf32>
    tpu.vector_store %arg16[%c17, %c7_2, %c0_3], %0 {strides = array<i32>} : memref<18x25x8xf32, #tpu.memory_space<vmem>>, vector<1x18x8xf32>,
    %c1 = arith.constant 1 : index
    %c7_4 = arith.constant 7 : index
    %c0_5 = arith.constant 0 : index
    %4 = vector.load %arg16[%c1, %c7_4, %c0_5] : memref<18x25x8xf32, #tpu.memory_space<vmem>>, vector<16x1x8xf32>
    tpu.vector_store %arg16[%c1, %c7_4, %c0_5], %1 {strides = array<i32>} : memref<18x25x8xf32, #tpu.memory_space<vmem>>, vector<16x1x8xf32>,
    %c1_6 = arith.constant 1 : index
    %c24 = arith.constant 24 : index
    %c0_7 = arith.constant 0 : index
    %5 = vector.load %arg16[%c1_6, %c24, %c0_7] : memref<18x25x8xf32, #tpu.memory_space<vmem>>, vector<16x1x8xf32>
    tpu.vector_store %arg16[%c1_6, %c24, %c0_7], %1 {strides = array<i32>} : memref<18x25x8xf32, #tpu.memory_space<vmem>>, vector<16x1x8xf32>,
    %cst_8 = arith.constant 0.000000e+00 : f32
    %6 = vector.broadcast %cst_8 : f32 to vector<1x18x16xf32>
    %cst_9 = arith.constant 0.000000e+00 : f32
    %7 = vector.broadcast %cst_9 : f32 to vector<16x1x16xf32>
    %c0_10 = arith.constant 0 : index
    %c7_11 = arith.constant 7 : index
    %c0_12 = arith.constant 0 : index
    %8 = vector.load %arg17[%c0_10, %c7_11, %c0_12] : memref<18x25x16xf32, #tpu.memory_space<vmem>>, vector<1x18x16xf32>
    tpu.vector_store %arg17[%c0_10, %c7_11, %c0_12], %6 {strides = array<i32>} : memref<18x25x16xf32, #tpu.memory_space<vmem>>, vector<1x18x16xf32>,
    %c17_13 = arith.constant 17 : index
    %c7_14 = arith.constant 7 : index
    %c0_15 = arith.constant 0 : index
    %9 = vector.load %arg17[%c17_13, %c7_14, %c0_15] : memref<18x25x16xf32, #tpu.memory_space<vmem>>, vector<1x18x16xf32>
    tpu.vector_store %arg17[%c17_13, %c7_14, %c0_15], %6 {strides = array<i32>} : memref<18x25x16xf32, #tpu.memory_space<vmem>>, vector<1x18x16xf32>,
    %c1_16 = arith.constant 1 : index
    %c7_17 = arith.constant 7 : index
    %c0_18 = arith.constant 0 : index
    %10 = vector.load %arg17[%c1_16, %c7_17, %c0_18] : memref<18x25x16xf32, #tpu.memory_space<vmem>>, vector<16x1x16xf32>
    tpu.vector_store %arg17[%c1_16, %c7_17, %c0_18], %7 {strides = array<i32>} : memref<18x25x16xf32, #tpu.memory_space<vmem>>, vector<16x1x16xf32>,
    %c1_19 = arith.constant 1 : index
    %c24_20 = arith.constant 24 : index
    %c0_21 = arith.constant 0 : index
    %11 = vector.load %arg17[%c1_19, %c24_20, %c0_21] : memref<18x25x16xf32, #tpu.memory_space<vmem>>, vector<16x1x16xf32>
    tpu.vector_store %arg17[%c1_19, %c24_20, %c0_21], %7 {strides = array<i32>} : memref<18x25x16xf32, #tpu.memory_space<vmem>>, vector<16x1x16xf32>,
    %c0_22 = arith.constant 0 : index
    %c0_23 = arith.constant 0 : index
    %12 = vector.load %arg2[%c0_22, %c0_23] : memref<1x8xf32, #tpu.memory_space<vmem>>, vector<1x8xf32>
    %c0_24 = arith.constant 0 : index
    %c0_25 = arith.constant 0 : index
    %13 = vector.load %arg3[%c0_24, %c0_25] : memref<1x8xf32, #tpu.memory_space<vmem>>, vector<1x8xf32>
    %c0_26 = arith.constant 0 : index
    %c0_27 = arith.constant 0 : index
    %14 = vector.load %arg4[%c0_26, %c0_27] : memref<8x8xf32, #tpu.memory_space<vmem>>, vector<8x8xf32>
    %c0_28 = arith.constant 0 : index
    %c0_29 = arith.constant 0 : index
    %15 = vector.load %arg6[%c0_28, %c0_29] : memref<1x16xf32, #tpu.memory_space<vmem>>, vector<1x16xf32>
    %c0_30 = arith.constant 0 : index
    %c0_31 = arith.constant 0 : index
    %16 = vector.load %arg8[%c0_30, %c0_31] : memref<1x16xf32, #tpu.memory_space<vmem>>, vector<1x16xf32>
    %c0_32 = arith.constant 0 : index
    %c0_33 = arith.constant 0 : index
    %17 = vector.load %arg9[%c0_32, %c0_33] : memref<1x16xf32, #tpu.memory_space<vmem>>, vector<1x16xf32>
    %c0_34 = arith.constant 0 : index
    %c0_35 = arith.constant 0 : index
    %18 = vector.load %arg10[%c0_34, %c0_35] : memref<16x16xf32, #tpu.memory_space<vmem>>, vector<16x16xf32>
    %c0_36 = arith.constant 0 : index
    %c0_37 = arith.constant 0 : index
    %19 = vector.load %arg12[%c0_36, %c0_37] : memref<1x16xf32, #tpu.memory_space<vmem>>, vector<1x16xf32>
    %c0_38 = arith.constant 0 : index
    %c0_39 = arith.constant 0 : index
    %c0_40 = arith.constant 0 : index
    %20 = vector.load %arg7[%c0_38, %c0_39, %c0_40] : memref<2x1x16xf32, #tpu.memory_space<vmem>>, vector<2x1x16xf32>
    %c0_41 = arith.constant 0 : index
    %c0_42 = arith.constant 0 : index
    %21 = vector.load %arg13[%c0_41, %c0_42] : memref<8x16xf32, #tpu.memory_space<vmem>>, vector<8x16xf32>
    %c0_43 = arith.constant 0 : index
    %c0_44 = arith.constant 0 : index
    %22 = vector.load %arg14[%c0_43, %c0_44] : memref<1x16xf32, #tpu.memory_space<vmem>>, vector<1x16xf32>
    %c0_45 = arith.constant 0 : index
    %c0_46 = arith.constant 0 : index
    %c0_47 = arith.constant 0 : index
    %c0_48 = arith.constant 0 : index
    %23 = vector.load %arg1[%c0_45, %c0_46, %c0_47, %c0_48] : memref<2x16x16x8xf32, #tpu.memory_space<vmem>>, vector<1x16x16x8xf32>
    %24 = vector.shape_cast %23 : vector<1x16x16x8xf32> to vector<16x16x8xf32>
    %25 = vector.shape_cast %24 : vector<16x16x8xf32> to vector<256x8xf32>
    %cst_49 = arith.constant dense<0.000000e+00> : vector<8xf32>
    %26 = vector.multi_reduction <add>, %25, %cst_49 [0] : vector<256x8xf32> to vector<8xf32>
    %27 = vector.shape_cast %26 : vector<8xf32> to vector<1x8xf32>
    %cst_50 = arith.constant dense<0.000000e+00> : vector<1x8xf32>
    %28 = tpu.matmul %27, %14, %cst_50 {dimension_numbers = #tpu.dot_dimension_numbers<[1], [0], [0], [1], [0, 0, 1, 1], [], []>} : vector<1x8xf32>, vector<8x8xf32>, vector<1x8xf32> -> vector<1x8xf32>
    %29 = vector.broadcast %28 : vector<1x8xf32> to vector<256x8xf32>
    %30 = arith.subf %25, %29 : vector<256x8xf32>
    %31 = arith.mulf %30, %30 : vector<256x8xf32>
    %cst_51 = arith.constant dense<0.000000e+00> : vector<8xf32>
    %32 = vector.multi_reduction <add>, %31, %cst_51 [0] : vector<256x8xf32> to vector<8xf32>
    %33 = vector.shape_cast %32 : vector<8xf32> to vector<1x8xf32>
    %cst_52 = arith.constant dense<0.000000e+00> : vector<1x8xf32>
    %34 = tpu.matmul %33, %14, %cst_52 {dimension_numbers = #tpu.dot_dimension_numbers<[1], [0], [0], [1], [0, 0, 1, 1], [], []>} : vector<1x8xf32>, vector<8x8xf32>, vector<1x8xf32> -> vector<1x8xf32>
    %cst_53 = arith.constant 9.99999997E-7 : f32
    %35 = vector.broadcast %cst_53 : f32 to vector<1x8xf32>
    %36 = arith.addf %34, %35 : vector<1x8xf32>
    %37 = math.rsqrt %36 : vector<1x8xf32>
    %38 = vector.broadcast %37 : vector<1x8xf32> to vector<256x8xf32>
    %39 = arith.mulf %30, %38 : vector<256x8xf32>
    %40 = vector.broadcast %12 : vector<1x8xf32> to vector<256x8xf32>
    %41 = arith.mulf %39, %40 : vector<256x8xf32>
    %42 = vector.broadcast %13 : vector<1x8xf32> to vector<256x8xf32>
    %43 = arith.addf %41, %42 : vector<256x8xf32>
    %cst_54 = arith.constant 0.000000e+00 : f32
    %44 = vector.broadcast %cst_54 : f32 to vector<256x8xf32>
    %45 = arith.subf %44, %43 : vector<256x8xf32>
    %46 = math.exp %45 : vector<256x8xf32>
    %cst_55 = arith.constant 1.000000e+00 : f32
    %47 = vector.broadcast %cst_55 : f32 to vector<256x8xf32>
    %48 = arith.addf %47, %46 : vector<256x8xf32>
    %cst_56 = arith.constant 1.000000e+00 : f32
    %49 = vector.broadcast %cst_56 : f32 to vector<256x8xf32>
    %50 = arith.divf %49, %48 : vector<256x8xf32>
    %51 = arith.mulf %43, %50 : vector<256x8xf32>
    %52 = vector.shape_cast %51 : vector<256x8xf32> to vector<16x16x8xf32>
    %c1_57 = arith.constant 1 : index
    %c8 = arith.constant 8 : index
    %c0_58 = arith.constant 0 : index
    %53 = vector.load %arg16[%c1_57, %c8, %c0_58] : memref<18x25x8xf32, #tpu.memory_space<vmem>>, vector<16x16x8xf32>
    tpu.vector_store %arg16[%c1_57, %c8, %c0_58], %52 {strides = array<i32>} : memref<18x25x8xf32, #tpu.memory_space<vmem>>, vector<16x16x8xf32>,
    %c0_59 = arith.constant 0 : index
    %c7_60 = arith.constant 7 : index
    %c0_61 = arith.constant 0 : index
    %54 = vector.load %arg16[%c0_59, %c7_60, %c0_61] : memref<18x25x8xf32, #tpu.memory_space<vmem>>, vector<16x16x8xf32>
    %55 = vector.shape_cast %54 : vector<16x16x8xf32> to vector<256x8xf32>
    %c0_62 = arith.constant 0 : index
    %c0_63 = arith.constant 0 : index
    %c0_64 = arith.constant 0 : index
    %56 = vector.load %arg5[%c0_62, %c0_63, %c0_64] : memref<9x8x16xf32, #tpu.memory_space<vmem>>, vector<1x8x16xf32>
    %57 = vector.shape_cast %56 : vector<1x8x16xf32> to vector<8x16xf32>
    %cst_65 = arith.constant dense<0.000000e+00> : vector<256x16xf32>
    %58 = tpu.matmul %55, %57, %cst_65 {dimension_numbers = #tpu.dot_dimension_numbers<[1], [0], [0], [1], [0, 0, 1, 1], [], []>} : vector<256x8xf32>, vector<8x16xf32>, vector<256x16xf32> -> vector<256x16xf32>
    %c0_66 = arith.constant 0 : index
    %c8_67 = arith.constant 8 : index
    %c0_68 = arith.constant 0 : index
    %59 = vector.load %arg16[%c0_66, %c8_67, %c0_68] : memref<18x25x8xf32, #tpu.memory_space<vmem>>, vector<16x16x8xf32>
    %60 = vector.shape_cast %59 : vector<16x16x8xf32> to vector<256x8xf32>
    %c1_69 = arith.constant 1 : index
    %c0_70 = arith.constant 0 : index
    %c0_71 = arith.constant 0 : index
    %61 = vector.load %arg5[%c1_69, %c0_70, %c0_71] : memref<9x8x16xf32, #tpu.memory_space<vmem>>, vector<1x8x16xf32>
    %62 = vector.shape_cast %61 : vector<1x8x16xf32> to vector<8x16xf32>
    %cst_72 = arith.constant dense<0.000000e+00> : vector<256x16xf32>
    %63 = tpu.matmul %60, %62, %cst_72 {dimension_numbers = #tpu.dot_dimension_numbers<[1], [0], [0], [1], [0, 0, 1, 1], [], []>} : vector<256x8xf32>, vector<8x16xf32>, vector<256x16xf32> -> vector<256x16xf32>
    %64 = arith.addf %58, %63 : vector<256x16xf32>
    %c0_73 = arith.constant 0 : index
    %c9 = arith.constant 9 : index
    %c0_74 = arith.constant 0 : index
    %65 = vector.load %arg16[%c0_73, %c9, %c0_74] : memref<18x25x8xf32, #tpu.memory_space<vmem>>, vector<16x16x8xf32>
    %66 = vector.shape_cast %65 : vector<16x16x8xf32> to vector<256x8xf32>
    %c2 = arith.constant 2 : index
    %c0_75 = arith.constant 0 : index
    %c0_76 = arith.constant 0 : index
    %67 = vector.load %arg5[%c2, %c0_75, %c0_76] : memref<9x8x16xf32, #tpu.memory_space<vmem>>, vector<1x8x16xf32>
    %68 = vector.shape_cast %67 : vector<1x8x16xf32> to vector<8x16xf32>
    %cst_77 = arith.constant dense<0.000000e+00> : vector<256x16xf32>
    %69 = tpu.matmul %66, %68, %cst_77 {dimension_numbers = #tpu.dot_dimension_numbers<[1], [0], [0], [1], [0, 0, 1, 1], [], []>} : vector<256x8xf32>, vector<8x16xf32>, vector<256x16xf32> -> vector<256x16xf32>
    %70 = arith.addf %64, %69 : vector<256x16xf32>
    %c1_78 = arith.constant 1 : index
    %c7_79 = arith.constant 7 : index
    %c0_80 = arith.constant 0 : index
    %71 = vector.load %arg16[%c1_78, %c7_79, %c0_80] : memref<18x25x8xf32, #tpu.memory_space<vmem>>, vector<16x16x8xf32>
    %72 = vector.shape_cast %71 : vector<16x16x8xf32> to vector<256x8xf32>
    %c3 = arith.constant 3 : index
    %c0_81 = arith.constant 0 : index
    %c0_82 = arith.constant 0 : index
    %73 = vector.load %arg5[%c3, %c0_81, %c0_82] : memref<9x8x16xf32, #tpu.memory_space<vmem>>, vector<1x8x16xf32>
    %74 = vector.shape_cast %73 : vector<1x8x16xf32> to vector<8x16xf32>
    %cst_83 = arith.constant dense<0.000000e+00> : vector<256x16xf32>
    %75 = tpu.matmul %72, %74, %cst_83 {dimension_numbers = #tpu.dot_dimension_numbers<[1], [0], [0], [1], [0, 0, 1, 1], [], []>} : vector<256x8xf32>, vector<8x16xf32>, vector<256x16xf32> -> vector<256x16xf32>
    %76 = arith.addf %70, %75 : vector<256x16xf32>
    %c1_84 = arith.constant 1 : index
    %c8_85 = arith.constant 8 : index
    %c0_86 = arith.constant 0 : index
    %77 = vector.load %arg16[%c1_84, %c8_85, %c0_86] : memref<18x25x8xf32, #tpu.memory_space<vmem>>, vector<16x16x8xf32>
    %78 = vector.shape_cast %77 : vector<16x16x8xf32> to vector<256x8xf32>
    %c4 = arith.constant 4 : index
    %c0_87 = arith.constant 0 : index
    %c0_88 = arith.constant 0 : index
    %79 = vector.load %arg5[%c4, %c0_87, %c0_88] : memref<9x8x16xf32, #tpu.memory_space<vmem>>, vector<1x8x16xf32>
    %80 = vector.shape_cast %79 : vector<1x8x16xf32> to vector<8x16xf32>
    %cst_89 = arith.constant dense<0.000000e+00> : vector<256x16xf32>
    %81 = tpu.matmul %78, %80, %cst_89 {dimension_numbers = #tpu.dot_dimension_numbers<[1], [0], [0], [1], [0, 0, 1, 1], [], []>} : vector<256x8xf32>, vector<8x16xf32>, vector<256x16xf32> -> vector<256x16xf32>
    %82 = arith.addf %76, %81 : vector<256x16xf32>
    %c1_90 = arith.constant 1 : index
    %c9_91 = arith.constant 9 : index
    %c0_92 = arith.constant 0 : index
    %83 = vector.load %arg16[%c1_90, %c9_91, %c0_92] : memref<18x25x8xf32, #tpu.memory_space<vmem>>, vector<16x16x8xf32>
    %84 = vector.shape_cast %83 : vector<16x16x8xf32> to vector<256x8xf32>
    %c5 = arith.constant 5 : index
    %c0_93 = arith.constant 0 : index
    %c0_94 = arith.constant 0 : index
    %85 = vector.load %arg5[%c5, %c0_93, %c0_94] : memref<9x8x16xf32, #tpu.memory_space<vmem>>, vector<1x8x16xf32>
    %86 = vector.shape_cast %85 : vector<1x8x16xf32> to vector<8x16xf32>
    %cst_95 = arith.constant dense<0.000000e+00> : vector<256x16xf32>
    %87 = tpu.matmul %84, %86, %cst_95 {dimension_numbers = #tpu.dot_dimension_numbers<[1], [0], [0], [1], [0, 0, 1, 1], [], []>} : vector<256x8xf32>, vector<8x16xf32>, vector<256x16xf32> -> vector<256x16xf32>
    %88 = arith.addf %82, %87 : vector<256x16xf32>
    %c2_96 = arith.constant 2 : index
    %c7_97 = arith.constant 7 : index
    %c0_98 = arith.constant 0 : index
    %89 = vector.load %arg16[%c2_96, %c7_97, %c0_98] : memref<18x25x8xf32, #tpu.memory_space<vmem>>, vector<16x16x8xf32>
    %90 = vector.shape_cast %89 : vector<16x16x8xf32> to vector<256x8xf32>
    %c6 = arith.constant 6 : index
    %c0_99 = arith.constant 0 : index
    %c0_100 = arith.constant 0 : index
    %91 = vector.load %arg5[%c6, %c0_99, %c0_100] : memref<9x8x16xf32, #tpu.memory_space<vmem>>, vector<1x8x16xf32>
    %92 = vector.shape_cast %91 : vector<1x8x16xf32> to vector<8x16xf32>
    %cst_101 = arith.constant dense<0.000000e+00> : vector<256x16xf32>
    %93 = tpu.matmul %90, %92, %cst_101 {dimension_numbers = #tpu.dot_dimension_numbers<[1], [0], [0], [1], [0, 0, 1, 1], [], []>} : vector<256x8xf32>, vector<8x16xf32>, vector<256x16xf32> -> vector<256x16xf32>
    %94 = arith.addf %88, %93 : vector<256x16xf32>
    %c2_102 = arith.constant 2 : index
    %c8_103 = arith.constant 8 : index
    %c0_104 = arith.constant 0 : index
    %95 = vector.load %arg16[%c2_102, %c8_103, %c0_104] : memref<18x25x8xf32, #tpu.memory_space<vmem>>, vector<16x16x8xf32>
    %96 = vector.shape_cast %95 : vector<16x16x8xf32> to vector<256x8xf32>
    %c7_105 = arith.constant 7 : index
    %c0_106 = arith.constant 0 : index
    %c0_107 = arith.constant 0 : index
    %97 = vector.load %arg5[%c7_105, %c0_106, %c0_107] : memref<9x8x16xf32, #tpu.memory_space<vmem>>, vector<1x8x16xf32>
    %98 = vector.shape_cast %97 : vector<1x8x16xf32> to vector<8x16xf32>
    %cst_108 = arith.constant dense<0.000000e+00> : vector<256x16xf32>
    %99 = tpu.matmul %96, %98, %cst_108 {dimension_numbers = #tpu.dot_dimension_numbers<[1], [0], [0], [1], [0, 0, 1, 1], [], []>} : vector<256x8xf32>, vector<8x16xf32>, vector<256x16xf32> -> vector<256x16xf32>
    %100 = arith.addf %94, %99 : vector<256x16xf32>
    %c2_109 = arith.constant 2 : index
    %c9_110 = arith.constant 9 : index
    %c0_111 = arith.constant 0 : index
    %101 = vector.load %arg16[%c2_109, %c9_110, %c0_111] : memref<18x25x8xf32, #tpu.memory_space<vmem>>, vector<16x16x8xf32>
    %102 = vector.shape_cast %101 : vector<16x16x8xf32> to vector<256x8xf32>
    %c8_112 = arith.constant 8 : index
    %c0_113 = arith.constant 0 : index
    %c0_114 = arith.constant 0 : index
    %103 = vector.load %arg5[%c8_112, %c0_113, %c0_114] : memref<9x8x16xf32, #tpu.memory_space<vmem>>, vector<1x8x16xf32>
    %104 = vector.shape_cast %103 : vector<1x8x16xf32> to vector<8x16xf32>
    %cst_115 = arith.constant dense<0.000000e+00> : vector<256x16xf32>
    %105 = tpu.matmul %102, %104, %cst_115 {dimension_numbers = #tpu.dot_dimension_numbers<[1], [0], [0], [1], [0, 0, 1, 1], [], []>} : vector<256x8xf32>, vector<8x16xf32>, vector<256x16xf32> -> vector<256x16xf32>
    %106 = arith.addf %100, %105 : vector<256x16xf32>
    %107 = vector.broadcast %15 : vector<1x16xf32> to vector<256x16xf32>
    %108 = arith.addf %106, %107 : vector<256x16xf32>
    %109 = vector.extract_strided_slice %20 {offsets = [0, 0, 0], sizes = [1, 1, 16], strides = [1, 1, 1]} : vector<2x1x16xf32> to vector<1x1x16xf32>
    %110 = vector.shape_cast %109 : vector<1x1x16xf32> to vector<1x16xf32>
    %111 = vector.broadcast %110 : vector<1x16xf32> to vector<256x16xf32>
    %112 = arith.addf %108, %111 : vector<256x16xf32>
    %cst_116 = arith.constant dense<0.000000e+00> : vector<16xf32>
    %113 = vector.multi_reduction <add>, %112, %cst_116 [0] : vector<256x16xf32> to vector<16xf32>
    %114 = vector.shape_cast %113 : vector<16xf32> to vector<1x16xf32>
    %cst_117 = arith.constant dense<0.000000e+00> : vector<1x16xf32>
    %115 = tpu.matmul %114, %18, %cst_117 {dimension_numbers = #tpu.dot_dimension_numbers<[1], [0], [0], [1], [0, 0, 1, 1], [], []>} : vector<1x16xf32>, vector<16x16xf32>, vector<1x16xf32> -> vector<1x16xf32>
    %116 = vector.broadcast %115 : vector<1x16xf32> to vector<256x16xf32>
    %117 = arith.subf %112, %116 : vector<256x16xf32>
    %118 = arith.mulf %117, %117 : vector<256x16xf32>
    %cst_118 = arith.constant dense<0.000000e+00> : vector<16xf32>
    %119 = vector.multi_reduction <add>, %118, %cst_118 [0] : vector<256x16xf32> to vector<16xf32>
    %120 = vector.shape_cast %119 : vector<16xf32> to vector<1x16xf32>
    %cst_119 = arith.constant dense<0.000000e+00> : vector<1x16xf32>
    %121 = tpu.matmul %120, %18, %cst_119 {dimension_numbers = #tpu.dot_dimension_numbers<[1], [0], [0], [1], [0, 0, 1, 1], [], []>} : vector<1x16xf32>, vector<16x16xf32>, vector<1x16xf32> -> vector<1x16xf32>
    %cst_120 = arith.constant 9.99999997E-7 : f32
    %122 = vector.broadcast %cst_120 : f32 to vector<1x16xf32>
    %123 = arith.addf %121, %122 : vector<1x16xf32>
    %124 = math.rsqrt %123 : vector<1x16xf32>
    %125 = vector.broadcast %124 : vector<1x16xf32> to vector<256x16xf32>
    %126 = arith.mulf %117, %125 : vector<256x16xf32>
    %127 = vector.broadcast %16 : vector<1x16xf32> to vector<256x16xf32>
    %128 = arith.mulf %126, %127 : vector<256x16xf32>
    %129 = vector.broadcast %17 : vector<1x16xf32> to vector<256x16xf32>
    %130 = arith.addf %128, %129 : vector<256x16xf32>
    %cst_121 = arith.constant 0.000000e+00 : f32
    %131 = vector.broadcast %cst_121 : f32 to vector<256x16xf32>
    %132 = arith.subf %131, %130 : vector<256x16xf32>
    %133 = math.exp %132 : vector<256x16xf32>
    %cst_122 = arith.constant 1.000000e+00 : f32
    %134 = vector.broadcast %cst_122 : f32 to vector<256x16xf32>
    %135 = arith.addf %134, %133 : vector<256x16xf32>
    %cst_123 = arith.constant 1.000000e+00 : f32
    %136 = vector.broadcast %cst_123 : f32 to vector<256x16xf32>
    %137 = arith.divf %136, %135 : vector<256x16xf32>
    %138 = arith.mulf %130, %137 : vector<256x16xf32>
    %139 = vector.shape_cast %138 : vector<256x16xf32> to vector<16x16x16xf32>
    %c1_124 = arith.constant 1 : index
    %c8_125 = arith.constant 8 : index
    %c0_126 = arith.constant 0 : index
    %140 = vector.load %arg17[%c1_124, %c8_125, %c0_126] : memref<18x25x16xf32, #tpu.memory_space<vmem>>, vector<16x16x16xf32>
    tpu.vector_store %arg17[%c1_124, %c8_125, %c0_126], %139 {strides = array<i32>} : memref<18x25x16xf32, #tpu.memory_space<vmem>>, vector<16x16x16xf32>,
    %c0_127 = arith.constant 0 : index
    %c7_128 = arith.constant 7 : index
    %c0_129 = arith.constant 0 : index
    %141 = vector.load %arg17[%c0_127, %c7_128, %c0_129] : memref<18x25x16xf32, #tpu.memory_space<vmem>>, vector<16x16x16xf32>
    %142 = vector.shape_cast %141 : vector<16x16x16xf32> to vector<256x16xf32>
    %c0_130 = arith.constant 0 : index
    %c0_131 = arith.constant 0 : index
    %c0_132 = arith.constant 0 : index
    %143 = vector.load %arg11[%c0_130, %c0_131, %c0_132] : memref<9x16x16xf32, #tpu.memory_space<vmem>>, vector<1x16x16xf32>
    %144 = vector.shape_cast %143 : vector<1x16x16xf32> to vector<16x16xf32>
    %cst_133 = arith.constant dense<0.000000e+00> : vector<256x16xf32>
    %145 = tpu.matmul %142, %144, %cst_133 {dimension_numbers = #tpu.dot_dimension_numbers<[1], [0], [0], [1], [0, 0, 1, 1], [], []>} : vector<256x16xf32>, vector<16x16xf32>, vector<256x16xf32> -> vector<256x16xf32>
    %c0_134 = arith.constant 0 : index
    %c8_135 = arith.constant 8 : index
    %c0_136 = arith.constant 0 : index
    %146 = vector.load %arg17[%c0_134, %c8_135, %c0_136] : memref<18x25x16xf32, #tpu.memory_space<vmem>>, vector<16x16x16xf32>
    %147 = vector.shape_cast %146 : vector<16x16x16xf32> to vector<256x16xf32>
    %c1_137 = arith.constant 1 : index
    %c0_138 = arith.constant 0 : index
    %c0_139 = arith.constant 0 : index
    %148 = vector.load %arg11[%c1_137, %c0_138, %c0_139] : memref<9x16x16xf32, #tpu.memory_space<vmem>>, vector<1x16x16xf32>
    %149 = vector.shape_cast %148 : vector<1x16x16xf32> to vector<16x16xf32>
    %cst_140 = arith.constant dense<0.000000e+00> : vector<256x16xf32>
    %150 = tpu.matmul %147, %149, %cst_140 {dimension_numbers = #tpu.dot_dimension_numbers<[1], [0], [0], [1], [0, 0, 1, 1], [], []>} : vector<256x16xf32>, vector<16x16xf32>, vector<256x16xf32> -> vector<256x16xf32>
    %151 = arith.addf %145, %150 : vector<256x16xf32>
    %c0_141 = arith.constant 0 : index
    %c9_142 = arith.constant 9 : index
    %c0_143 = arith.constant 0 : index
    %152 = vector.load %arg17[%c0_141, %c9_142, %c0_143] : memref<18x25x16xf32, #tpu.memory_space<vmem>>, vector<16x16x16xf32>
    %153 = vector.shape_cast %152 : vector<16x16x16xf32> to vector<256x16xf32>
    %c2_144 = arith.constant 2 : index
    %c0_145 = arith.constant 0 : index
    %c0_146 = arith.constant 0 : index
    %154 = vector.load %arg11[%c2_144, %c0_145, %c0_146] : memref<9x16x16xf32, #tpu.memory_space<vmem>>, vector<1x16x16xf32>
    %155 = vector.shape_cast %154 : vector<1x16x16xf32> to vector<16x16xf32>
    %cst_147 = arith.constant dense<0.000000e+00> : vector<256x16xf32>
    %156 = tpu.matmul %153, %155, %cst_147 {dimension_numbers = #tpu.dot_dimension_numbers<[1], [0], [0], [1], [0, 0, 1, 1], [], []>} : vector<256x16xf32>, vector<16x16xf32>, vector<256x16xf32> -> vector<256x16xf32>
    %157 = arith.addf %151, %156 : vector<256x16xf32>
    %c1_148 = arith.constant 1 : index
    %c7_149 = arith.constant 7 : index
    %c0_150 = arith.constant 0 : index
    %158 = vector.load %arg17[%c1_148, %c7_149, %c0_150] : memref<18x25x16xf32, #tpu.memory_space<vmem>>, vector<16x16x16xf32>
    %159 = vector.shape_cast %158 : vector<16x16x16xf32> to vector<256x16xf32>
    %c3_151 = arith.constant 3 : index
    %c0_152 = arith.constant 0 : index
    %c0_153 = arith.constant 0 : index
    %160 = vector.load %arg11[%c3_151, %c0_152, %c0_153] : memref<9x16x16xf32, #tpu.memory_space<vmem>>, vector<1x16x16xf32>
    %161 = vector.shape_cast %160 : vector<1x16x16xf32> to vector<16x16xf32>
    %cst_154 = arith.constant dense<0.000000e+00> : vector<256x16xf32>
    %162 = tpu.matmul %159, %161, %cst_154 {dimension_numbers = #tpu.dot_dimension_numbers<[1], [0], [0], [1], [0, 0, 1, 1], [], []>} : vector<256x16xf32>, vector<16x16xf32>, vector<256x16xf32> -> vector<256x16xf32>
    %163 = arith.addf %157, %162 : vector<256x16xf32>
    %c1_155 = arith.constant 1 : index
    %c8_156 = arith.constant 8 : index
    %c0_157 = arith.constant 0 : index
    %164 = vector.load %arg17[%c1_155, %c8_156, %c0_157] : memref<18x25x16xf32, #tpu.memory_space<vmem>>, vector<16x16x16xf32>
    %165 = vector.shape_cast %164 : vector<16x16x16xf32> to vector<256x16xf32>
    %c4_158 = arith.constant 4 : index
    %c0_159 = arith.constant 0 : index
    %c0_160 = arith.constant 0 : index
    %166 = vector.load %arg11[%c4_158, %c0_159, %c0_160] : memref<9x16x16xf32, #tpu.memory_space<vmem>>, vector<1x16x16xf32>
    %167 = vector.shape_cast %166 : vector<1x16x16xf32> to vector<16x16xf32>
    %cst_161 = arith.constant dense<0.000000e+00> : vector<256x16xf32>
    %168 = tpu.matmul %165, %167, %cst_161 {dimension_numbers = #tpu.dot_dimension_numbers<[1], [0], [0], [1], [0, 0, 1, 1], [], []>} : vector<256x16xf32>, vector<16x16xf32>, vector<256x16xf32> -> vector<256x16xf32>
    %169 = arith.addf %163, %168 : vector<256x16xf32>
    %c1_162 = arith.constant 1 : index
    %c9_163 = arith.constant 9 : index
    %c0_164 = arith.constant 0 : index
    %170 = vector.load %arg17[%c1_162, %c9_163, %c0_164] : memref<18x25x16xf32, #tpu.memory_space<vmem>>, vector<16x16x16xf32>
    %171 = vector.shape_cast %170 : vector<16x16x16xf32> to vector<256x16xf32>
    %c5_165 = arith.constant 5 : index
    %c0_166 = arith.constant 0 : index
    %c0_167 = arith.constant 0 : index
    %172 = vector.load %arg11[%c5_165, %c0_166, %c0_167] : memref<9x16x16xf32, #tpu.memory_space<vmem>>, vector<1x16x16xf32>
    %173 = vector.shape_cast %172 : vector<1x16x16xf32> to vector<16x16xf32>
    %cst_168 = arith.constant dense<0.000000e+00> : vector<256x16xf32>
    %174 = tpu.matmul %171, %173, %cst_168 {dimension_numbers = #tpu.dot_dimension_numbers<[1], [0], [0], [1], [0, 0, 1, 1], [], []>} : vector<256x16xf32>, vector<16x16xf32>, vector<256x16xf32> -> vector<256x16xf32>
    %175 = arith.addf %169, %174 : vector<256x16xf32>
    %c2_169 = arith.constant 2 : index
    %c7_170 = arith.constant 7 : index
    %c0_171 = arith.constant 0 : index
    %176 = vector.load %arg17[%c2_169, %c7_170, %c0_171] : memref<18x25x16xf32, #tpu.memory_space<vmem>>, vector<16x16x16xf32>
    %177 = vector.shape_cast %176 : vector<16x16x16xf32> to vector<256x16xf32>
    %c6_172 = arith.constant 6 : index
    %c0_173 = arith.constant 0 : index
    %c0_174 = arith.constant 0 : index
    %178 = vector.load %arg11[%c6_172, %c0_173, %c0_174] : memref<9x16x16xf32, #tpu.memory_space<vmem>>, vector<1x16x16xf32>
    %179 = vector.shape_cast %178 : vector<1x16x16xf32> to vector<16x16xf32>
    %cst_175 = arith.constant dense<0.000000e+00> : vector<256x16xf32>
    %180 = tpu.matmul %177, %179, %cst_175 {dimension_numbers = #tpu.dot_dimension_numbers<[1], [0], [0], [1], [0, 0, 1, 1], [], []>} : vector<256x16xf32>, vector<16x16xf32>, vector<256x16xf32> -> vector<256x16xf32>
    %181 = arith.addf %175, %180 : vector<256x16xf32>
    %c2_176 = arith.constant 2 : index
    %c8_177 = arith.constant 8 : index
    %c0_178 = arith.constant 0 : index
    %182 = vector.load %arg17[%c2_176, %c8_177, %c0_178] : memref<18x25x16xf32, #tpu.memory_space<vmem>>, vector<16x16x16xf32>
    %183 = vector.shape_cast %182 : vector<16x16x16xf32> to vector<256x16xf32>
    %c7_179 = arith.constant 7 : index
    %c0_180 = arith.constant 0 : index
    %c0_181 = arith.constant 0 : index
    %184 = vector.load %arg11[%c7_179, %c0_180, %c0_181] : memref<9x16x16xf32, #tpu.memory_space<vmem>>, vector<1x16x16xf32>
    %185 = vector.shape_cast %184 : vector<1x16x16xf32> to vector<16x16xf32>
    %cst_182 = arith.constant dense<0.000000e+00> : vector<256x16xf32>
    %186 = tpu.matmul %183, %185, %cst_182 {dimension_numbers = #tpu.dot_dimension_numbers<[1], [0], [0], [1], [0, 0, 1, 1], [], []>} : vector<256x16xf32>, vector<16x16xf32>, vector<256x16xf32> -> vector<256x16xf32>
    %187 = arith.addf %181, %186 : vector<256x16xf32>
    %c2_183 = arith.constant 2 : index
    %c9_184 = arith.constant 9 : index
    %c0_185 = arith.constant 0 : index
    %188 = vector.load %arg17[%c2_183, %c9_184, %c0_185] : memref<18x25x16xf32, #tpu.memory_space<vmem>>, vector<16x16x16xf32>
    %189 = vector.shape_cast %188 : vector<16x16x16xf32> to vector<256x16xf32>
    %c8_186 = arith.constant 8 : index
    %c0_187 = arith.constant 0 : index
    %c0_188 = arith.constant 0 : index
    %190 = vector.load %arg11[%c8_186, %c0_187, %c0_188] : memref<9x16x16xf32, #tpu.memory_space<vmem>>, vector<1x16x16xf32>
    %191 = vector.shape_cast %190 : vector<1x16x16xf32> to vector<16x16xf32>
    %cst_189 = arith.constant dense<0.000000e+00> : vector<256x16xf32>
    %192 = tpu.matmul %189, %191, %cst_189 {dimension_numbers = #tpu.dot_dimension_numbers<[1], [0], [0], [1], [0, 0, 1, 1], [], []>} : vector<256x16xf32>, vector<16x16xf32>, vector<256x16xf32> -> vector<256x16xf32>
    %193 = arith.addf %187, %192 : vector<256x16xf32>
    %194 = vector.broadcast %19 : vector<1x16xf32> to vector<256x16xf32>
    %195 = arith.addf %193, %194 : vector<256x16xf32>
    %cst_190 = arith.constant dense<0.000000e+00> : vector<256x16xf32>
    %196 = tpu.matmul %25, %21, %cst_190 {dimension_numbers = #tpu.dot_dimension_numbers<[1], [0], [0], [1], [0, 0, 1, 1], [], []>} : vector<256x8xf32>, vector<8x16xf32>, vector<256x16xf32> -> vector<256x16xf32>
    %197 = vector.broadcast %22 : vector<1x16xf32> to vector<256x16xf32>
    %198 = arith.addf %196, %197 : vector<256x16xf32>
    %199 = arith.addf %198, %195 : vector<256x16xf32>
    %200 = vector.shape_cast %199 : vector<256x16xf32> to vector<16x16x16xf32>
    %c0_191 = arith.constant 0 : index
    %c0_192 = arith.constant 0 : index
    %c0_193 = arith.constant 0 : index
    %c0_194 = arith.constant 0 : index
    %201 = vector.load %arg15[%c0_191, %c0_192, %c0_193, %c0_194] : memref<2x16x16x16xf32, #tpu.memory_space<vmem>>, vector<1x16x16x16xf32>
    %202 = vector.shape_cast %201 : vector<1x16x16x16xf32> to vector<16x16x16xf32>
    %203 = vector.shape_cast %200 : vector<16x16x16xf32> to vector<1x16x16x16xf32>
    tpu.vector_store %arg15[%c0_191, %c0_192, %c0_193, %c0_194], %203 {strides = array<i32>} : memref<2x16x16x16xf32, #tpu.memory_space<vmem>>, vector<1x16x16x16xf32>,
    %c1_195 = arith.constant 1 : index
    %c0_196 = arith.constant 0 : index
    %c0_197 = arith.constant 0 : index
    %c0_198 = arith.constant 0 : index
    %204 = vector.load %arg1[%c1_195, %c0_196, %c0_197, %c0_198] : memref<2x16x16x8xf32, #tpu.memory_space<vmem>>, vector<1x16x16x8xf32>
    %205 = vector.shape_cast %204 : vector<1x16x16x8xf32> to vector<16x16x8xf32>
    %206 = vector.shape_cast %205 : vector<16x16x8xf32> to vector<256x8xf32>
    %cst_199 = arith.constant dense<0.000000e+00> : vector<8xf32>
    %207 = vector.multi_reduction <add>, %206, %cst_199 [0] : vector<256x8xf32> to vector<8xf32>
    %208 = vector.shape_cast %207 : vector<8xf32> to vector<1x8xf32>
    %cst_200 = arith.constant dense<0.000000e+00> : vector<1x8xf32>
    %209 = tpu.matmul %208, %14, %cst_200 {dimension_numbers = #tpu.dot_dimension_numbers<[1], [0], [0], [1], [0, 0, 1, 1], [], []>} : vector<1x8xf32>, vector<8x8xf32>, vector<1x8xf32> -> vector<1x8xf32>
    %210 = vector.broadcast %209 : vector<1x8xf32> to vector<256x8xf32>
    %211 = arith.subf %206, %210 : vector<256x8xf32>
    %212 = arith.mulf %211, %211 : vector<256x8xf32>
    %cst_201 = arith.constant dense<0.000000e+00> : vector<8xf32>
    %213 = vector.multi_reduction <add>, %212, %cst_201 [0] : vector<256x8xf32> to vector<8xf32>
    %214 = vector.shape_cast %213 : vector<8xf32> to vector<1x8xf32>
    %cst_202 = arith.constant dense<0.000000e+00> : vector<1x8xf32>
    %215 = tpu.matmul %214, %14, %cst_202 {dimension_numbers = #tpu.dot_dimension_numbers<[1], [0], [0], [1], [0, 0, 1, 1], [], []>} : vector<1x8xf32>, vector<8x8xf32>, vector<1x8xf32> -> vector<1x8xf32>
    %cst_203 = arith.constant 9.99999997E-7 : f32
    %216 = vector.broadcast %cst_203 : f32 to vector<1x8xf32>
    %217 = arith.addf %215, %216 : vector<1x8xf32>
    %218 = math.rsqrt %217 : vector<1x8xf32>
    %219 = vector.broadcast %218 : vector<1x8xf32> to vector<256x8xf32>
    %220 = arith.mulf %211, %219 : vector<256x8xf32>
    %221 = vector.broadcast %12 : vector<1x8xf32> to vector<256x8xf32>
    %222 = arith.mulf %220, %221 : vector<256x8xf32>
    %223 = vector.broadcast %13 : vector<1x8xf32> to vector<256x8xf32>
    %224 = arith.addf %222, %223 : vector<256x8xf32>
    %cst_204 = arith.constant 0.000000e+00 : f32
    %225 = vector.broadcast %cst_204 : f32 to vector<256x8xf32>
    %226 = arith.subf %225, %224 : vector<256x8xf32>
    %227 = math.exp %226 : vector<256x8xf32>
    %cst_205 = arith.constant 1.000000e+00 : f32
    %228 = vector.broadcast %cst_205 : f32 to vector<256x8xf32>
    %229 = arith.addf %228, %227 : vector<256x8xf32>
    %cst_206 = arith.constant 1.000000e+00 : f32
    %230 = vector.broadcast %cst_206 : f32 to vector<256x8xf32>
    %231 = arith.divf %230, %229 : vector<256x8xf32>
    %232 = arith.mulf %224, %231 : vector<256x8xf32>
    %233 = vector.shape_cast %232 : vector<256x8xf32> to vector<16x16x8xf32>
    %c1_207 = arith.constant 1 : index
    %c8_208 = arith.constant 8 : index
    %c0_209 = arith.constant 0 : index
    %234 = vector.load %arg16[%c1_207, %c8_208, %c0_209] : memref<18x25x8xf32, #tpu.memory_space<vmem>>, vector<16x16x8xf32>
    tpu.vector_store %arg16[%c1_207, %c8_208, %c0_209], %233 {strides = array<i32>} : memref<18x25x8xf32, #tpu.memory_space<vmem>>, vector<16x16x8xf32>,
    %c0_210 = arith.constant 0 : index
    %c7_211 = arith.constant 7 : index
    %c0_212 = arith.constant 0 : index
    %235 = vector.load %arg16[%c0_210, %c7_211, %c0_212] : memref<18x25x8xf32, #tpu.memory_space<vmem>>, vector<16x16x8xf32>
    %236 = vector.shape_cast %235 : vector<16x16x8xf32> to vector<256x8xf32>
    %c0_213 = arith.constant 0 : index
    %c0_214 = arith.constant 0 : index
    %c0_215 = arith.constant 0 : index
    %237 = vector.load %arg5[%c0_213, %c0_214, %c0_215] : memref<9x8x16xf32, #tpu.memory_space<vmem>>, vector<1x8x16xf32>
    %238 = vector.shape_cast %237 : vector<1x8x16xf32> to vector<8x16xf32>
    %cst_216 = arith.constant dense<0.000000e+00> : vector<256x16xf32>
    %239 = tpu.matmul %236, %238, %cst_216 {dimension_numbers = #tpu.dot_dimension_numbers<[1], [0], [0], [1], [0, 0, 1, 1], [], []>} : vector<256x8xf32>, vector<8x16xf32>, vector<256x16xf32> -> vector<256x16xf32>
    %c0_217 = arith.constant 0 : index
    %c8_218 = arith.constant 8 : index
    %c0_219 = arith.constant 0 : index
    %240 = vector.load %arg16[%c0_217, %c8_218, %c0_219] : memref<18x25x8xf32, #tpu.memory_space<vmem>>, vector<16x16x8xf32>
    %241 = vector.shape_cast %240 : vector<16x16x8xf32> to vector<256x8xf32>
    %c1_220 = arith.constant 1 : index
    %c0_221 = arith.constant 0 : index
    %c0_222 = arith.constant 0 : index
    %242 = vector.load %arg5[%c1_220, %c0_221, %c0_222] : memref<9x8x16xf32, #tpu.memory_space<vmem>>, vector<1x8x16xf32>
    %243 = vector.shape_cast %242 : vector<1x8x16xf32> to vector<8x16xf32>
    %cst_223 = arith.constant dense<0.000000e+00> : vector<256x16xf32>
    %244 = tpu.matmul %241, %243, %cst_223 {dimension_numbers = #tpu.dot_dimension_numbers<[1], [0], [0], [1], [0, 0, 1, 1], [], []>} : vector<256x8xf32>, vector<8x16xf32>, vector<256x16xf32> -> vector<256x16xf32>
    %245 = arith.addf %239, %244 : vector<256x16xf32>
    %c0_224 = arith.constant 0 : index
    %c9_225 = arith.constant 9 : index
    %c0_226 = arith.constant 0 : index
    %246 = vector.load %arg16[%c0_224, %c9_225, %c0_226] : memref<18x25x8xf32, #tpu.memory_space<vmem>>, vector<16x16x8xf32>
    %247 = vector.shape_cast %246 : vector<16x16x8xf32> to vector<256x8xf32>
    %c2_227 = arith.constant 2 : index
    %c0_228 = arith.constant 0 : index
    %c0_229 = arith.constant 0 : index
    %248 = vector.load %arg5[%c2_227, %c0_228, %c0_229] : memref<9x8x16xf32, #tpu.memory_space<vmem>>, vector<1x8x16xf32>
    %249 = vector.shape_cast %248 : vector<1x8x16xf32> to vector<8x16xf32>
    %cst_230 = arith.constant dense<0.000000e+00> : vector<256x16xf32>
    %250 = tpu.matmul %247, %249, %cst_230 {dimension_numbers = #tpu.dot_dimension_numbers<[1], [0], [0], [1], [0, 0, 1, 1], [], []>} : vector<256x8xf32>, vector<8x16xf32>, vector<256x16xf32> -> vector<256x16xf32>
    %251 = arith.addf %245, %250 : vector<256x16xf32>
    %c1_231 = arith.constant 1 : index
    %c7_232 = arith.constant 7 : index
    %c0_233 = arith.constant 0 : index
    %252 = vector.load %arg16[%c1_231, %c7_232, %c0_233] : memref<18x25x8xf32, #tpu.memory_space<vmem>>, vector<16x16x8xf32>
    %253 = vector.shape_cast %252 : vector<16x16x8xf32> to vector<256x8xf32>
    %c3_234 = arith.constant 3 : index
    %c0_235 = arith.constant 0 : index
    %c0_236 = arith.constant 0 : index
    %254 = vector.load %arg5[%c3_234, %c0_235, %c0_236] : memref<9x8x16xf32, #tpu.memory_space<vmem>>, vector<1x8x16xf32>
    %255 = vector.shape_cast %254 : vector<1x8x16xf32> to vector<8x16xf32>
    %cst_237 = arith.constant dense<0.000000e+00> : vector<256x16xf32>
    %256 = tpu.matmul %253, %255, %cst_237 {dimension_numbers = #tpu.dot_dimension_numbers<[1], [0], [0], [1], [0, 0, 1, 1], [], []>} : vector<256x8xf32>, vector<8x16xf32>, vector<256x16xf32> -> vector<256x16xf32>
    %257 = arith.addf %251, %256 : vector<256x16xf32>
    %c1_238 = arith.constant 1 : index
    %c8_239 = arith.constant 8 : index
    %c0_240 = arith.constant 0 : index
    %258 = vector.load %arg16[%c1_238, %c8_239, %c0_240] : memref<18x25x8xf32, #tpu.memory_space<vmem>>, vector<16x16x8xf32>
    %259 = vector.shape_cast %258 : vector<16x16x8xf32> to vector<256x8xf32>
    %c4_241 = arith.constant 4 : index
    %c0_242 = arith.constant 0 : index
    %c0_243 = arith.constant 0 : index
    %260 = vector.load %arg5[%c4_241, %c0_242, %c0_243] : memref<9x8x16xf32, #tpu.memory_space<vmem>>, vector<1x8x16xf32>
    %261 = vector.shape_cast %260 : vector<1x8x16xf32> to vector<8x16xf32>
    %cst_244 = arith.constant dense<0.000000e+00> : vector<256x16xf32>
    %262 = tpu.matmul %259, %261, %cst_244 {dimension_numbers = #tpu.dot_dimension_numbers<[1], [0], [0], [1], [0, 0, 1, 1], [], []>} : vector<256x8xf32>, vector<8x16xf32>, vector<256x16xf32> -> vector<256x16xf32>
    %263 = arith.addf %257, %262 : vector<256x16xf32>
    %c1_245 = arith.constant 1 : index
    %c9_246 = arith.constant 9 : index
    %c0_247 = arith.constant 0 : index
    %264 = vector.load %arg16[%c1_245, %c9_246, %c0_247] : memref<18x25x8xf32, #tpu.memory_space<vmem>>, vector<16x16x8xf32>
    %265 = vector.shape_cast %264 : vector<16x16x8xf32> to vector<256x8xf32>
    %c5_248 = arith.constant 5 : index
    %c0_249 = arith.constant 0 : index
    %c0_250 = arith.constant 0 : index
    %266 = vector.load %arg5[%c5_248, %c0_249, %c0_250] : memref<9x8x16xf32, #tpu.memory_space<vmem>>, vector<1x8x16xf32>
    %267 = vector.shape_cast %266 : vector<1x8x16xf32> to vector<8x16xf32>
    %cst_251 = arith.constant dense<0.000000e+00> : vector<256x16xf32>
    %268 = tpu.matmul %265, %267, %cst_251 {dimension_numbers = #tpu.dot_dimension_numbers<[1], [0], [0], [1], [0, 0, 1, 1], [], []>} : vector<256x8xf32>, vector<8x16xf32>, vector<256x16xf32> -> vector<256x16xf32>
    %269 = arith.addf %263, %268 : vector<256x16xf32>
    %c2_252 = arith.constant 2 : index
    %c7_253 = arith.constant 7 : index
    %c0_254 = arith.constant 0 : index
    %270 = vector.load %arg16[%c2_252, %c7_253, %c0_254] : memref<18x25x8xf32, #tpu.memory_space<vmem>>, vector<16x16x8xf32>
    %271 = vector.shape_cast %270 : vector<16x16x8xf32> to vector<256x8xf32>
    %c6_255 = arith.constant 6 : index
    %c0_256 = arith.constant 0 : index
    %c0_257 = arith.constant 0 : index
    %272 = vector.load %arg5[%c6_255, %c0_256, %c0_257] : memref<9x8x16xf32, #tpu.memory_space<vmem>>, vector<1x8x16xf32>
    %273 = vector.shape_cast %272 : vector<1x8x16xf32> to vector<8x16xf32>
    %cst_258 = arith.constant dense<0.000000e+00> : vector<256x16xf32>
    %274 = tpu.matmul %271, %273, %cst_258 {dimension_numbers = #tpu.dot_dimension_numbers<[1], [0], [0], [1], [0, 0, 1, 1], [], []>} : vector<256x8xf32>, vector<8x16xf32>, vector<256x16xf32> -> vector<256x16xf32>
    %275 = arith.addf %269, %274 : vector<256x16xf32>
    %c2_259 = arith.constant 2 : index
    %c8_260 = arith.constant 8 : index
    %c0_261 = arith.constant 0 : index
    %276 = vector.load %arg16[%c2_259, %c8_260, %c0_261] : memref<18x25x8xf32, #tpu.memory_space<vmem>>, vector<16x16x8xf32>
    %277 = vector.shape_cast %276 : vector<16x16x8xf32> to vector<256x8xf32>
    %c7_262 = arith.constant 7 : index
    %c0_263 = arith.constant 0 : index
    %c0_264 = arith.constant 0 : index
    %278 = vector.load %arg5[%c7_262, %c0_263, %c0_264] : memref<9x8x16xf32, #tpu.memory_space<vmem>>, vector<1x8x16xf32>
    %279 = vector.shape_cast %278 : vector<1x8x16xf32> to vector<8x16xf32>
    %cst_265 = arith.constant dense<0.000000e+00> : vector<256x16xf32>
    %280 = tpu.matmul %277, %279, %cst_265 {dimension_numbers = #tpu.dot_dimension_numbers<[1], [0], [0], [1], [0, 0, 1, 1], [], []>} : vector<256x8xf32>, vector<8x16xf32>, vector<256x16xf32> -> vector<256x16xf32>
    %281 = arith.addf %275, %280 : vector<256x16xf32>
    %c2_266 = arith.constant 2 : index
    %c9_267 = arith.constant 9 : index
    %c0_268 = arith.constant 0 : index
    %282 = vector.load %arg16[%c2_266, %c9_267, %c0_268] : memref<18x25x8xf32, #tpu.memory_space<vmem>>, vector<16x16x8xf32>
    %283 = vector.shape_cast %282 : vector<16x16x8xf32> to vector<256x8xf32>
    %c8_269 = arith.constant 8 : index
    %c0_270 = arith.constant 0 : index
    %c0_271 = arith.constant 0 : index
    %284 = vector.load %arg5[%c8_269, %c0_270, %c0_271] : memref<9x8x16xf32, #tpu.memory_space<vmem>>, vector<1x8x16xf32>
    %285 = vector.shape_cast %284 : vector<1x8x16xf32> to vector<8x16xf32>
    %cst_272 = arith.constant dense<0.000000e+00> : vector<256x16xf32>
    %286 = tpu.matmul %283, %285, %cst_272 {dimension_numbers = #tpu.dot_dimension_numbers<[1], [0], [0], [1], [0, 0, 1, 1], [], []>} : vector<256x8xf32>, vector<8x16xf32>, vector<256x16xf32> -> vector<256x16xf32>
    %287 = arith.addf %281, %286 : vector<256x16xf32>
    %288 = vector.broadcast %15 : vector<1x16xf32> to vector<256x16xf32>
    %289 = arith.addf %287, %288 : vector<256x16xf32>
    %290 = vector.extract_strided_slice %20 {offsets = [1, 0, 0], sizes = [1, 1, 16], strides = [1, 1, 1]} : vector<2x1x16xf32> to vector<1x1x16xf32>
    %291 = vector.shape_cast %290 : vector<1x1x16xf32> to vector<1x16xf32>
    %292 = vector.broadcast %291 : vector<1x16xf32> to vector<256x16xf32>
    %293 = arith.addf %289, %292 : vector<256x16xf32>
    %cst_273 = arith.constant dense<0.000000e+00> : vector<16xf32>
    %294 = vector.multi_reduction <add>, %293, %cst_273 [0] : vector<256x16xf32> to vector<16xf32>
    %295 = vector.shape_cast %294 : vector<16xf32> to vector<1x16xf32>
    %cst_274 = arith.constant dense<0.000000e+00> : vector<1x16xf32>
    %296 = tpu.matmul %295, %18, %cst_274 {dimension_numbers = #tpu.dot_dimension_numbers<[1], [0], [0], [1], [0, 0, 1, 1], [], []>} : vector<1x16xf32>, vector<16x16xf32>, vector<1x16xf32> -> vector<1x16xf32>
    %297 = vector.broadcast %296 : vector<1x16xf32> to vector<256x16xf32>
    %298 = arith.subf %293, %297 : vector<256x16xf32>
    %299 = arith.mulf %298, %298 : vector<256x16xf32>
    %cst_275 = arith.constant dense<0.000000e+00> : vector<16xf32>
    %300 = vector.multi_reduction <add>, %299, %cst_275 [0] : vector<256x16xf32> to vector<16xf32>
    %301 = vector.shape_cast %300 : vector<16xf32> to vector<1x16xf32>
    %cst_276 = arith.constant dense<0.000000e+00> : vector<1x16xf32>
    %302 = tpu.matmul %301, %18, %cst_276 {dimension_numbers = #tpu.dot_dimension_numbers<[1], [0], [0], [1], [0, 0, 1, 1], [], []>} : vector<1x16xf32>, vector<16x16xf32>, vector<1x16xf32> -> vector<1x16xf32>
    %cst_277 = arith.constant 9.99999997E-7 : f32
    %303 = vector.broadcast %cst_277 : f32 to vector<1x16xf32>
    %304 = arith.addf %302, %303 : vector<1x16xf32>
    %305 = math.rsqrt %304 : vector<1x16xf32>
    %306 = vector.broadcast %305 : vector<1x16xf32> to vector<256x16xf32>
    %307 = arith.mulf %298, %306 : vector<256x16xf32>
    %308 = vector.broadcast %16 : vector<1x16xf32> to vector<256x16xf32>
    %309 = arith.mulf %307, %308 : vector<256x16xf32>
    %310 = vector.broadcast %17 : vector<1x16xf32> to vector<256x16xf32>
    %311 = arith.addf %309, %310 : vector<256x16xf32>
    %cst_278 = arith.constant 0.000000e+00 : f32
    %312 = vector.broadcast %cst_278 : f32 to vector<256x16xf32>
    %313 = arith.subf %312, %311 : vector<256x16xf32>
    %314 = math.exp %313 : vector<256x16xf32>
    %cst_279 = arith.constant 1.000000e+00 : f32
    %315 = vector.broadcast %cst_279 : f32 to vector<256x16xf32>
    %316 = arith.addf %315, %314 : vector<256x16xf32>
    %cst_280 = arith.constant 1.000000e+00 : f32
    %317 = vector.broadcast %cst_280 : f32 to vector<256x16xf32>
    %318 = arith.divf %317, %316 : vector<256x16xf32>
    %319 = arith.mulf %311, %318 : vector<256x16xf32>
    %320 = vector.shape_cast %319 : vector<256x16xf32> to vector<16x16x16xf32>
    %c1_281 = arith.constant 1 : index
    %c8_282 = arith.constant 8 : index
    %c0_283 = arith.constant 0 : index
    %321 = vector.load %arg17[%c1_281, %c8_282, %c0_283] : memref<18x25x16xf32, #tpu.memory_space<vmem>>, vector<16x16x16xf32>
    tpu.vector_store %arg17[%c1_281, %c8_282, %c0_283], %320 {strides = array<i32>} : memref<18x25x16xf32, #tpu.memory_space<vmem>>, vector<16x16x16xf32>,
    %c0_284 = arith.constant 0 : index
    %c7_285 = arith.constant 7 : index
    %c0_286 = arith.constant 0 : index
    %322 = vector.load %arg17[%c0_284, %c7_285, %c0_286] : memref<18x25x16xf32, #tpu.memory_space<vmem>>, vector<16x16x16xf32>
    %323 = vector.shape_cast %322 : vector<16x16x16xf32> to vector<256x16xf32>
    %c0_287 = arith.constant 0 : index
    %c0_288 = arith.constant 0 : index
    %c0_289 = arith.constant 0 : index
    %324 = vector.load %arg11[%c0_287, %c0_288, %c0_289] : memref<9x16x16xf32, #tpu.memory_space<vmem>>, vector<1x16x16xf32>
    %325 = vector.shape_cast %324 : vector<1x16x16xf32> to vector<16x16xf32>
    %cst_290 = arith.constant dense<0.000000e+00> : vector<256x16xf32>
    %326 = tpu.matmul %323, %325, %cst_290 {dimension_numbers = #tpu.dot_dimension_numbers<[1], [0], [0], [1], [0, 0, 1, 1], [], []>} : vector<256x16xf32>, vector<16x16xf32>, vector<256x16xf32> -> vector<256x16xf32>
    %c0_291 = arith.constant 0 : index
    %c8_292 = arith.constant 8 : index
    %c0_293 = arith.constant 0 : index
    %327 = vector.load %arg17[%c0_291, %c8_292, %c0_293] : memref<18x25x16xf32, #tpu.memory_space<vmem>>, vector<16x16x16xf32>
    %328 = vector.shape_cast %327 : vector<16x16x16xf32> to vector<256x16xf32>
    %c1_294 = arith.constant 1 : index
    %c0_295 = arith.constant 0 : index
    %c0_296 = arith.constant 0 : index
    %329 = vector.load %arg11[%c1_294, %c0_295, %c0_296] : memref<9x16x16xf32, #tpu.memory_space<vmem>>, vector<1x16x16xf32>
    %330 = vector.shape_cast %329 : vector<1x16x16xf32> to vector<16x16xf32>
    %cst_297 = arith.constant dense<0.000000e+00> : vector<256x16xf32>
    %331 = tpu.matmul %328, %330, %cst_297 {dimension_numbers = #tpu.dot_dimension_numbers<[1], [0], [0], [1], [0, 0, 1, 1], [], []>} : vector<256x16xf32>, vector<16x16xf32>, vector<256x16xf32> -> vector<256x16xf32>
    %332 = arith.addf %326, %331 : vector<256x16xf32>
    %c0_298 = arith.constant 0 : index
    %c9_299 = arith.constant 9 : index
    %c0_300 = arith.constant 0 : index
    %333 = vector.load %arg17[%c0_298, %c9_299, %c0_300] : memref<18x25x16xf32, #tpu.memory_space<vmem>>, vector<16x16x16xf32>
    %334 = vector.shape_cast %333 : vector<16x16x16xf32> to vector<256x16xf32>
    %c2_301 = arith.constant 2 : index
    %c0_302 = arith.constant 0 : index
    %c0_303 = arith.constant 0 : index
    %335 = vector.load %arg11[%c2_301, %c0_302, %c0_303] : memref<9x16x16xf32, #tpu.memory_space<vmem>>, vector<1x16x16xf32>
    %336 = vector.shape_cast %335 : vector<1x16x16xf32> to vector<16x16xf32>
    %cst_304 = arith.constant dense<0.000000e+00> : vector<256x16xf32>
    %337 = tpu.matmul %334, %336, %cst_304 {dimension_numbers = #tpu.dot_dimension_numbers<[1], [0], [0], [1], [0, 0, 1, 1], [], []>} : vector<256x16xf32>, vector<16x16xf32>, vector<256x16xf32> -> vector<256x16xf32>
    %338 = arith.addf %332, %337 : vector<256x16xf32>
    %c1_305 = arith.constant 1 : index
    %c7_306 = arith.constant 7 : index
    %c0_307 = arith.constant 0 : index
    %339 = vector.load %arg17[%c1_305, %c7_306, %c0_307] : memref<18x25x16xf32, #tpu.memory_space<vmem>>, vector<16x16x16xf32>
    %340 = vector.shape_cast %339 : vector<16x16x16xf32> to vector<256x16xf32>
    %c3_308 = arith.constant 3 : index
    %c0_309 = arith.constant 0 : index
    %c0_310 = arith.constant 0 : index
    %341 = vector.load %arg11[%c3_308, %c0_309, %c0_310] : memref<9x16x16xf32, #tpu.memory_space<vmem>>, vector<1x16x16xf32>
    %342 = vector.shape_cast %341 : vector<1x16x16xf32> to vector<16x16xf32>
    %cst_311 = arith.constant dense<0.000000e+00> : vector<256x16xf32>
    %343 = tpu.matmul %340, %342, %cst_311 {dimension_numbers = #tpu.dot_dimension_numbers<[1], [0], [0], [1], [0, 0, 1, 1], [], []>} : vector<256x16xf32>, vector<16x16xf32>, vector<256x16xf32> -> vector<256x16xf32>
    %344 = arith.addf %338, %343 : vector<256x16xf32>
    %c1_312 = arith.constant 1 : index
    %c8_313 = arith.constant 8 : index
    %c0_314 = arith.constant 0 : index
    %345 = vector.load %arg17[%c1_312, %c8_313, %c0_314] : memref<18x25x16xf32, #tpu.memory_space<vmem>>, vector<16x16x16xf32>
    %346 = vector.shape_cast %345 : vector<16x16x16xf32> to vector<256x16xf32>
    %c4_315 = arith.constant 4 : index
    %c0_316 = arith.constant 0 : index
    %c0_317 = arith.constant 0 : index
    %347 = vector.load %arg11[%c4_315, %c0_316, %c0_317] : memref<9x16x16xf32, #tpu.memory_space<vmem>>, vector<1x16x16xf32>
    %348 = vector.shape_cast %347 : vector<1x16x16xf32> to vector<16x16xf32>
    %cst_318 = arith.constant dense<0.000000e+00> : vector<256x16xf32>
    %349 = tpu.matmul %346, %348, %cst_318 {dimension_numbers = #tpu.dot_dimension_numbers<[1], [0], [0], [1], [0, 0, 1, 1], [], []>} : vector<256x16xf32>, vector<16x16xf32>, vector<256x16xf32> -> vector<256x16xf32>
    %350 = arith.addf %344, %349 : vector<256x16xf32>
    %c1_319 = arith.constant 1 : index
    %c9_320 = arith.constant 9 : index
    %c0_321 = arith.constant 0 : index
    %351 = vector.load %arg17[%c1_319, %c9_320, %c0_321] : memref<18x25x16xf32, #tpu.memory_space<vmem>>, vector<16x16x16xf32>
    %352 = vector.shape_cast %351 : vector<16x16x16xf32> to vector<256x16xf32>
    %c5_322 = arith.constant 5 : index
    %c0_323 = arith.constant 0 : index
    %c0_324 = arith.constant 0 : index
    %353 = vector.load %arg11[%c5_322, %c0_323, %c0_324] : memref<9x16x16xf32, #tpu.memory_space<vmem>>, vector<1x16x16xf32>
    %354 = vector.shape_cast %353 : vector<1x16x16xf32> to vector<16x16xf32>
    %cst_325 = arith.constant dense<0.000000e+00> : vector<256x16xf32>
    %355 = tpu.matmul %352, %354, %cst_325 {dimension_numbers = #tpu.dot_dimension_numbers<[1], [0], [0], [1], [0, 0, 1, 1], [], []>} : vector<256x16xf32>, vector<16x16xf32>, vector<256x16xf32> -> vector<256x16xf32>
    %356 = arith.addf %350, %355 : vector<256x16xf32>
    %c2_326 = arith.constant 2 : index
    %c7_327 = arith.constant 7 : index
    %c0_328 = arith.constant 0 : index
    %357 = vector.load %arg17[%c2_326, %c7_327, %c0_328] : memref<18x25x16xf32, #tpu.memory_space<vmem>>, vector<16x16x16xf32>
    %358 = vector.shape_cast %357 : vector<16x16x16xf32> to vector<256x16xf32>
    %c6_329 = arith.constant 6 : index
    %c0_330 = arith.constant 0 : index
    %c0_331 = arith.constant 0 : index
    %359 = vector.load %arg11[%c6_329, %c0_330, %c0_331] : memref<9x16x16xf32, #tpu.memory_space<vmem>>, vector<1x16x16xf32>
    %360 = vector.shape_cast %359 : vector<1x16x16xf32> to vector<16x16xf32>
    %cst_332 = arith.constant dense<0.000000e+00> : vector<256x16xf32>
    %361 = tpu.matmul %358, %360, %cst_332 {dimension_numbers = #tpu.dot_dimension_numbers<[1], [0], [0], [1], [0, 0, 1, 1], [], []>} : vector<256x16xf32>, vector<16x16xf32>, vector<256x16xf32> -> vector<256x16xf32>
    %362 = arith.addf %356, %361 : vector<256x16xf32>
    %c2_333 = arith.constant 2 : index
    %c8_334 = arith.constant 8 : index
    %c0_335 = arith.constant 0 : index
    %363 = vector.load %arg17[%c2_333, %c8_334, %c0_335] : memref<18x25x16xf32, #tpu.memory_space<vmem>>, vector<16x16x16xf32>
    %364 = vector.shape_cast %363 : vector<16x16x16xf32> to vector<256x16xf32>
    %c7_336 = arith.constant 7 : index
    %c0_337 = arith.constant 0 : index
    %c0_338 = arith.constant 0 : index
    %365 = vector.load %arg11[%c7_336, %c0_337, %c0_338] : memref<9x16x16xf32, #tpu.memory_space<vmem>>, vector<1x16x16xf32>
    %366 = vector.shape_cast %365 : vector<1x16x16xf32> to vector<16x16xf32>
    %cst_339 = arith.constant dense<0.000000e+00> : vector<256x16xf32>
    %367 = tpu.matmul %364, %366, %cst_339 {dimension_numbers = #tpu.dot_dimension_numbers<[1], [0], [0], [1], [0, 0, 1, 1], [], []>} : vector<256x16xf32>, vector<16x16xf32>, vector<256x16xf32> -> vector<256x16xf32>
    %368 = arith.addf %362, %367 : vector<256x16xf32>
    %c2_340 = arith.constant 2 : index
    %c9_341 = arith.constant 9 : index
    %c0_342 = arith.constant 0 : index
    %369 = vector.load %arg17[%c2_340, %c9_341, %c0_342] : memref<18x25x16xf32, #tpu.memory_space<vmem>>, vector<16x16x16xf32>
    %370 = vector.shape_cast %369 : vector<16x16x16xf32> to vector<256x16xf32>
    %c8_343 = arith.constant 8 : index
    %c0_344 = arith.constant 0 : index
    %c0_345 = arith.constant 0 : index
    %371 = vector.load %arg11[%c8_343, %c0_344, %c0_345] : memref<9x16x16xf32, #tpu.memory_space<vmem>>, vector<1x16x16xf32>
    %372 = vector.shape_cast %371 : vector<1x16x16xf32> to vector<16x16xf32>
    %cst_346 = arith.constant dense<0.000000e+00> : vector<256x16xf32>
    %373 = tpu.matmul %370, %372, %cst_346 {dimension_numbers = #tpu.dot_dimension_numbers<[1], [0], [0], [1], [0, 0, 1, 1], [], []>} : vector<256x16xf32>, vector<16x16xf32>, vector<256x16xf32> -> vector<256x16xf32>
    %374 = arith.addf %368, %373 : vector<256x16xf32>
    %375 = vector.broadcast %19 : vector<1x16xf32> to vector<256x16xf32>
    %376 = arith.addf %374, %375 : vector<256x16xf32>
    %cst_347 = arith.constant dense<0.000000e+00> : vector<256x16xf32>
    %377 = tpu.matmul %206, %21, %cst_347 {dimension_numbers = #tpu.dot_dimension_numbers<[1], [0], [0], [1], [0, 0, 1, 1], [], []>} : vector<256x8xf32>, vector<8x16xf32>, vector<256x16xf32> -> vector<256x16xf32>
    %378 = vector.broadcast %22 : vector<1x16xf32> to vector<256x16xf32>
    %379 = arith.addf %377, %378 : vector<256x16xf32>
    %380 = arith.addf %379, %376 : vector<256x16xf32>
    %381 = vector.shape_cast %380 : vector<256x16xf32> to vector<16x16x16xf32>
    %c1_348 = arith.constant 1 : index
    %c0_349 = arith.constant 0 : index
    %c0_350 = arith.constant 0 : index
    %c0_351 = arith.constant 0 : index
    %382 = vector.load %arg15[%c1_348, %c0_349, %c0_350, %c0_351] : memref<2x16x16x16xf32, #tpu.memory_space<vmem>>, vector<1x16x16x16xf32>
    %383 = vector.shape_cast %382 : vector<1x16x16x16xf32> to vector<16x16x16xf32>
    %384 = vector.shape_cast %381 : vector<16x16x16xf32> to vector<1x16x16x16xf32>
    tpu.vector_store %arg15[%c1_348, %c0_349, %c0_350, %c0_351], %384 {strides = array<i32>} : memref<2x16x16x16xf32, #tpu.memory_space<vmem>>, vector<1x16x16x16xf32>,
    return
  }
  func.func @transform_0(%arg0: i32) -> (i32, i32, i32, i32) {
    %c0_i32 = arith.constant 0 : i32
    %c0_i32_0 = arith.constant 0 : i32
    %c0_i32_1 = arith.constant 0 : i32
    %c0_i32_2 = arith.constant 0 : i32
    return %arg0, %c0_i32, %c0_i32_0, %c0_i32_1 : i32, i32, i32, i32
  }
  func.func @transform_1(%arg0: i32) -> (i32, i32) {
    %c0_i32 = arith.constant 0 : i32
    %c0_i32_0 = arith.constant 0 : i32
    %c0_i32_1 = arith.constant 0 : i32
    return %c0_i32, %c0_i32_0 : i32, i32
  }
  func.func @transform_2(%arg0: i32) -> (i32, i32) {
    %c0_i32 = arith.constant 0 : i32
    %c0_i32_0 = arith.constant 0 : i32
    %c0_i32_1 = arith.constant 0 : i32
    return %c0_i32, %c0_i32_0 : i32, i32
  }
  func.func @transform_3(%arg0: i32) -> (i32, i32) {
    %c0_i32 = arith.constant 0 : i32
    %c0_i32_0 = arith.constant 0 : i32
    %c0_i32_1 = arith.constant 0 : i32
    return %c0_i32, %c0_i32_0 : i32, i32
  }
  func.func @transform_4(%arg0: i32) -> (i32, i32, i32) {
    %c0_i32 = arith.constant 0 : i32
    %c0_i32_0 = arith.constant 0 : i32
    %c0_i32_1 = arith.constant 0 : i32
    %c0_i32_2 = arith.constant 0 : i32
    return %c0_i32, %c0_i32_0, %c0_i32_1 : i32, i32, i32
  }
  func.func @transform_5(%arg0: i32) -> (i32, i32) {
    %c0_i32 = arith.constant 0 : i32
    %c0_i32_0 = arith.constant 0 : i32
    %c0_i32_1 = arith.constant 0 : i32
    return %c0_i32, %c0_i32_0 : i32, i32
  }
  func.func @transform_6(%arg0: i32) -> (i32, i32, i32) {
    %c0_i32 = arith.constant 0 : i32
    %c0_i32_0 = arith.constant 0 : i32
    %c0_i32_1 = arith.constant 0 : i32
    return %arg0, %c0_i32, %c0_i32_0 : i32, i32, i32
  }
  func.func @transform_7(%arg0: i32) -> (i32, i32) {
    %c0_i32 = arith.constant 0 : i32
    %c0_i32_0 = arith.constant 0 : i32
    %c0_i32_1 = arith.constant 0 : i32
    return %c0_i32, %c0_i32_0 : i32, i32
  }
  func.func @transform_8(%arg0: i32) -> (i32, i32) {
    %c0_i32 = arith.constant 0 : i32
    %c0_i32_0 = arith.constant 0 : i32
    %c0_i32_1 = arith.constant 0 : i32
    return %c0_i32, %c0_i32_0 : i32, i32
  }
  func.func @transform_9(%arg0: i32) -> (i32, i32) {
    %c0_i32 = arith.constant 0 : i32
    %c0_i32_0 = arith.constant 0 : i32
    %c0_i32_1 = arith.constant 0 : i32
    return %c0_i32, %c0_i32_0 : i32, i32
  }
  func.func @transform_10(%arg0: i32) -> (i32, i32, i32) {
    %c0_i32 = arith.constant 0 : i32
    %c0_i32_0 = arith.constant 0 : i32
    %c0_i32_1 = arith.constant 0 : i32
    %c0_i32_2 = arith.constant 0 : i32
    return %c0_i32, %c0_i32_0, %c0_i32_1 : i32, i32, i32
  }
  func.func @transform_11(%arg0: i32) -> (i32, i32) {
    %c0_i32 = arith.constant 0 : i32
    %c0_i32_0 = arith.constant 0 : i32
    %c0_i32_1 = arith.constant 0 : i32
    return %c0_i32, %c0_i32_0 : i32, i32
  }
  func.func @transform_12(%arg0: i32) -> (i32, i32) {
    %c0_i32 = arith.constant 0 : i32
    %c0_i32_0 = arith.constant 0 : i32
    %c0_i32_1 = arith.constant 0 : i32
    return %c0_i32, %c0_i32_0 : i32, i32
  }
  func.func @transform_13(%arg0: i32) -> (i32, i32) {
    %c0_i32 = arith.constant 0 : i32
    %c0_i32_0 = arith.constant 0 : i32
    %c0_i32_1 = arith.constant 0 : i32
    return %c0_i32, %c0_i32_0 : i32, i32
  }
  func.func @transform_14(%arg0: i32) -> (i32, i32, i32, i32) {
    %c0_i32 = arith.constant 0 : i32
    %c0_i32_0 = arith.constant 0 : i32
    %c0_i32_1 = arith.constant 0 : i32
    %c0_i32_2 = arith.constant 0 : i32
    return %arg0, %c0_i32, %c0_i32_0, %c0_i32_1 : i32, i32, i32, i32
  }
}

</mosaic_0001>

<bundles_post_ra>
// kernel: resnet_block_ddpmpp.1
= control target key start
LH: loop header
LB: loop body
LE: loop exit
PB: predicated region body
PF: predicated region fallthrough
CT: control target
= control target key end

     0   :  { %vm47_vm0 = vcmask 64512   ;;  %v31494_v0 = vmov 0.0   ;;  %vm24290_vm1 = vmmov 0   ;;  %vm50_vm2 = vcmask 58368   ;;  %s31479_s3 = inlined_call_operand.vmem [shape: f32[8,8], index: 3, kind: input, shape index: {}]   ;;  %s31480_s0 = inlined_call_operand.vmem [shape: f32[2,16,16,8], index: 0, kind: input, shape index: {}]   ;;  %s31481_s4 = inlined_call_operand.vmem [shape: f32[9,8,16], index: 4, kind: input, shape index: {}]   ;;  %s31482_s1 = inlined_call_operand.vmem [shape: f32[1,8], index: 1, kind: input, shape index: {}]   ;;  %s31483_s2 = inlined_call_operand.vmem [shape: f32[1,8], index: 2, kind: input, shape index: {}]   ;;  %s31484_s9 = inlined_call_operand.vmem [shape: f32[16,16], index: 9, kind: input, shape index: {}]   ;;  %s31485_s5 = inlined_call_operand.vmem [shape: f32[1,16], index: 5, kind: input, shape index: {}]   ;;  %s31486_s6 = inlined_call_operand.vmem [shape: f32[2,1,16], index: 6, kind: input, shape index: {}]   ;;  %s31487_s10 = inlined_call_operand.vmem [shape: f32[9,16,16], index: 10, kind: input, shape index: {}]   ;;  %s31488_s7 = inlined_call_operand.vmem [shape: f32[1,16], index: 7, kind: input, shape index: {}]   ;;  %s31489_s8 = inlined_call_operand.vmem [shape: f32[1,16], index: 8, kind: input, shape index: {}]   ;;  %s31490_s12 = inlined_call_operand.vmem [shape: f32[8,16], index: 12, kind: input, shape index: {}]   ;;  %s31491_s11 = inlined_call_operand.vmem [shape: f32[1,16], index: 11, kind: input, shape index: {}]   ;;  %s31492_s13 = inlined_call_operand.vmem [shape: f32[1,16], index: 13, kind: input, shape index: {}]   ;;  %s31493_s14 = inlined_call_operand.vmem [shape: f32[2,16,16,16], index: 14, kind: output, shape index: {}]  }
   0x1   :  { %20381 = vmatprep.subr.mxu0 %v31494_v0  ;;  %v135_v1 = vld [vmem:[%s31479_s3] sm:$0xff]  ;;  %20383 = vmatprep.mubr.msk.f32.mxu0 %vm24290_vm1, %v31494_v0  ;;  %v24381_v3 = vld [vmem:[%s31480_s0 + $0x8] sm:$0xff]  ;;  %48 = vst.msk [vmem:[#allocation2 + $0x7] sm:$0xff] %vm47_vm0, %v31494_v0  ;;  %49 = vst.msk [vmem:[#allocation2 + $0xf] sm:$0xff] %vm47_vm0, %v31494_v0  ;;  %vm57_vm3 = vcmask 57344   ;;  %vm90_vm4 = vcmask 130048  }
   0x2   :  { %v24376_v2 = vld [vmem:[%s31480_s0] sm:$0xff]  ;;  %53 = vst.msk [vmem:[#allocation2 + $0x227] sm:$0xff] %vm47_vm0, %v31494_v0  ;;  %54 = vst.msk [vmem:[#allocation2 + $0x22f] sm:$0xff] %vm47_vm0, %v31494_v0  ;;  %20382 = vmatpush3.msra.mxu0 %v135_v1  ;;  %v24394_v4 = vld [vmem:[%s31480_s0 + $0x10] sm:$0xff]  ;;  %v179_v7 = vsel %vm47_vm0, %v24381_v3, 0.0  ;;  %20386 = vmatprep.subr.mxu1 %v31494_v0  ;;  %vm93_vm5 = vcmask 123904  }
   0x3   :  { %v24399_v5 = vld [vmem:[%s31480_s0 + $0x18] sm:$0xff]  ;;  %v178_v6 = vsel %vm47_vm0, %v24376_v2, 0.0  ;;  %v24409_v8 = vld [vmem:[%s31480_s0 + $0x20] sm:$0xff]  ;;  %v181_v10 = vsel %vm47_vm0, %v24394_v4, 0.0  ;;  %20387 = vmatpush3.msra.mxu1 %v135_v1  ;;  %20388 = vmatprep.mubr.msk.f32.mxu1 %vm24290_vm1, %v31494_v0  ;;  %v24420_v12 = vld [vmem:[%s31480_s0 + $0x28] sm:$0xff]  ;;  %vm100_vm6 = vcmask 122880  }
   0x4   :  { %v180_v9 = vadd.f32 %v179_v7, %v178_v6  ;;  %v183_v11 = vsel %vm47_vm0, %v24399_v5, 0.0  ;;  %v185_v14 = vsel %vm47_vm0, %v24409_v8, 0.0  ;;  %v24427_v15 = vld [vmem:[%s31480_s0 + $0x30] sm:$0xff]  ;;  %v187_v17 = vsel %vm47_vm0, %v24420_v12, 0.0  ;;  %v24434_v18 = vld [vmem:[%s31480_s0 + $0x38] sm:$0xff]  ;;  %v24441_v21 = vld [vmem:[%s31480_s0 + $0x40] sm:$0xff] }
   0x5   :  { %v189_v20 = vsel %vm47_vm0, %v24427_v15, 0.0  ;;  %v191_v23 = vsel %vm47_vm0, %v24434_v18, 0.0  ;;  %v24448_v24 = vld [vmem:[%s31480_s0 + $0x48] sm:$0xff]  ;;  %v193_v26 = vsel %vm47_vm0, %v24441_v21, 0.0  ;;  %v24455_v27 = vld [vmem:[%s31480_s0 + $0x50] sm:$0xff]  ;;  %v24462_v30 = vld [vmem:[%s31480_s0 + $0x58] sm:$0xff] }
   0x6   :  { %v182_v13 = vadd.f32 %v181_v10, %v180_v9  ;;  %v195_v29 = vsel %vm47_vm0, %v24448_v24, 0.0  ;;  %v197_v32 = vsel %vm47_vm0, %v24455_v27, 0.0  ;;  %v24469_v33 = vld [vmem:[%s31480_s0 + $0x60] sm:$0xff]  ;;  %v199_v35 = vsel %vm47_vm0, %v24462_v30, 0.0  ;;  %v24476_v36 = vld [vmem:[%s31480_s0 + $0x68] sm:$0xff]  ;;  %v24483_v39 = vld [vmem:[%s31480_s0 + $0x70] sm:$0xff] }
   0x7   :  { %v201_v38 = vsel %vm47_vm0, %v24469_v33, 0.0  ;;  %v203_v41 = vsel %vm47_vm0, %v24476_v36, 0.0  ;;  %v24490_v42 = vld [vmem:[%s31480_s0 + $0x78] sm:$0xff]  ;;  %v205_v44 = vsel %vm47_vm0, %v24483_v39, 0.0  ;;  %v24497_v45 = vld [vmem:[%s31480_s0 + $0x80] sm:$0xff]  ;;  %v24504_v48 = vld [vmem:[%s31480_s0 + $0x88] sm:$0xff] }
   0x8   :  { %v184_v16 = vadd.f32 %v183_v11, %v182_v13  ;;  %v207_v47 = vsel %vm47_vm0, %v24490_v42, 0.0  ;;  %v209_v50 = vsel %vm47_vm0, %v24497_v45, 0.0  ;;  %v24511_v51 = vld [vmem:[%s31480_s0 + $0x90] sm:$0xff]  ;;  %v211_v53 = vsel %vm47_vm0, %v24504_v48, 0.0  ;;  %v24518_v54 = vld [vmem:[%s31480_s0 + $0x98] sm:$0xff]  ;;  %v24525_v57 = vld [vmem:[%s31480_s0 + $0xa0] sm:$0xff] }
   0x9   :  { %v213_v56 = vsel %vm47_vm0, %v24511_v51, 0.0  ;;  %v215_v59 = vsel %vm47_vm0, %v24518_v54, 0.0  ;;  %v24532_v60 = vld [vmem:[%s31480_s0 + $0xa8] sm:$0xff]  ;;  %v217_v62 = vsel %vm47_vm0, %v24525_v57, 0.0  ;;  %v24539_v63 = vld [vmem:[%s31480_s0 + $0xb0] sm:$0xff]  ;;  %v24546_v7 = vld [vmem:[%s31480_s0 + $0xb8] sm:$0xff] }
   0xa   :  { %v186_v19 = vadd.f32 %v185_v14, %v184_v16  ;;  %v219_v6 = vsel %vm47_vm0, %v24532_v60, 0.0  ;;  %v221_v10 = vsel %vm47_vm0, %v24539_v63, 0.0  ;;  %v24553_v11 = vld [vmem:[%s31480_s0 + $0xc0] sm:$0xff]  ;;  %v223_v14 = vsel %vm47_vm0, %v24546_v7, 0.0  ;;  %v24560_v16 = vld [vmem:[%s31480_s0 + $0xc8] sm:$0xff] }
   0xb   :  { %51 = vst.msk [vmem:[#allocation2 + $0x17] sm:$0x3] %vm50_vm2, %v31494_v0  ;;  %55 = vst.msk [vmem:[#allocation2 + $0x237] sm:$0x3] %vm50_vm2, %v31494_v0 }
   0xc   :  { %v188_v22 = vadd.f32 %v187_v17, %v186_v19  ;;  %v225_v19 = vsel %vm47_vm0, %v24553_v11, 0.0  ;;  %58 = vst.msk [vmem:[#allocation2 + $0x27] sm:$0x1] %vm57_vm3, %v31494_v0  ;;  %59 = vst.msk [vmem:[#allocation2 + $0x47] sm:$0x1] %vm57_vm3, %v31494_v0 }
   0xd   :  { %60 = vst.msk [vmem:[#allocation2 + $0x67] sm:$0x1] %vm57_vm3, %v31494_v0  ;;  %61 = vst.msk [vmem:[#allocation2 + $0x87] sm:$0x1] %vm57_vm3, %v31494_v0 }
   0xe   :  { %v190_v25 = vadd.f32 %v189_v20, %v188_v22  ;;  %v24567_v20 = vld [vmem:[%s31480_s0 + $0xd0] sm:$0xff]  ;;  %62 = vst.msk [vmem:[#allocation2 + $0xa7] sm:$0x1] %vm57_vm3, %v31494_v0  ;;  %63 = vst.msk [vmem:[#allocation2 + $0xc7] sm:$0x1] %vm57_vm3, %v31494_v0 }
   0xf   :  { %64 = vst.msk [vmem:[#allocation2 + $0xe7] sm:$0x1] %vm57_vm3, %v31494_v0  ;;  %65 = vst.msk [vmem:[#allocation2 + $0x107] sm:$0x1] %vm57_vm3, %v31494_v0 }
  0x10   :  { %v192_v28 = vadd.f32 %v191_v23, %v190_v25  ;;  %v227_v23 = vsel %vm47_vm0, %v24560_v16, 0.0  ;;  %v24574_v25 = vld [vmem:[%s31480_s0 + $0xd8] sm:$0xff]  ;;  %66 = vst.msk [vmem:[#allocation2 + $0x127] sm:$0x1] %vm57_vm3, %v31494_v0  ;;  %67 = vst.msk [vmem:[#allocation2 + $0x147] sm:$0x1] %vm57_vm3, %v31494_v0 }
  0x11   :  { %68 = vst.msk [vmem:[#allocation2 + $0x167] sm:$0x1] %vm57_vm3, %v31494_v0  ;;  %69 = vst.msk [vmem:[#allocation2 + $0x187] sm:$0x1] %vm57_vm3, %v31494_v0 }
  0x12   :  { %v194_v31 = vadd.f32 %v193_v26, %v192_v28  ;;  %v229_v28 = vsel %vm47_vm0, %v24567_v20, 0.0  ;;  %70 = vst.msk [vmem:[#allocation2 + $0x1a7] sm:$0x1] %vm57_vm3, %v31494_v0  ;;  %71 = vst.msk [vmem:[#allocation2 + $0x1c7] sm:$0x1] %vm57_vm3, %v31494_v0 }
  0x13   :  { %72 = vst.msk [vmem:[#allocation2 + $0x1e7] sm:$0x1] %vm57_vm3, %v31494_v0  ;;  %73 = vst.msk [vmem:[#allocation2 + $0x207] sm:$0x1] %vm57_vm3, %v31494_v0 }
  0x14   :  { %v196_v34 = vadd.f32 %v195_v29, %v194_v31  ;;  %v24581_v29 = vld [vmem:[%s31480_s0 + $0xe0] sm:$0xff]  ;;  %74 = vst.msk [vmem:[#allocation2 + $0x38] sm:$0x1] %vm57_vm3, %v31494_v0  ;;  %75 = vst.msk [vmem:[#allocation2 + $0x58] sm:$0x1] %vm57_vm3, %v31494_v0 }
  0x15   :  { %76 = vst.msk [vmem:[#allocation2 + $0x78] sm:$0x1] %vm57_vm3, %v31494_v0  ;;  %77 = vst.msk [vmem:[#allocation2 + $0x98] sm:$0x1] %vm57_vm3, %v31494_v0 }
  0x16   :  { %v198_v37 = vadd.f32 %v197_v32, %v196_v34  ;;  %v231_v32 = vsel %vm47_vm0, %v24574_v25, 0.0  ;;  %v24588_v34 = vld [vmem:[%s31480_s0 + $0xe8] sm:$0xff]  ;;  %78 = vst.msk [vmem:[#allocation2 + $0xb8] sm:$0x1] %vm57_vm3, %v31494_v0  ;;  %79 = vst.msk [vmem:[#allocation2 + $0xd8] sm:$0x1] %vm57_vm3, %v31494_v0 }
  0x17   :  { %80 = vst.msk [vmem:[#allocation2 + $0xf8] sm:$0x1] %vm57_vm3, %v31494_v0  ;;  %81 = vst.msk [vmem:[#allocation2 + $0x118] sm:$0x1] %vm57_vm3, %v31494_v0 }
  0x18   :  { %v200_v40 = vadd.f32 %v199_v35, %v198_v37  ;;  %v233_v37 = vsel %vm47_vm0, %v24581_v29, 0.0  ;;  %82 = vst.msk [vmem:[#allocation2 + $0x138] sm:$0x1] %vm57_vm3, %v31494_v0  ;;  %83 = vst.msk [vmem:[#allocation2 + $0x158] sm:$0x1] %vm57_vm3, %v31494_v0 }
  0x19   :  { %84 = vst.msk [vmem:[#allocation2 + $0x178] sm:$0x1] %vm57_vm3, %v31494_v0  ;;  %85 = vst.msk [vmem:[#allocation2 + $0x198] sm:$0x1] %vm57_vm3, %v31494_v0 }
  0x1a   :  { %v202_v43 = vadd.f32 %v201_v38, %v200_v40  ;;  %v24595_v38 = vld [vmem:[%s31480_s0 + $0xf0] sm:$0xff]  ;;  %86 = vst.msk [vmem:[#allocation2 + $0x1b8] sm:$0x1] %vm57_vm3, %v31494_v0  ;;  %87 = vst.msk [vmem:[#allocation2 + $0x1d8] sm:$0x1] %vm57_vm3, %v31494_v0 }
  0x1b   :  { %88 = vst.msk [vmem:[#allocation2 + $0x1f8] sm:$0x1] %vm57_vm3, %v31494_v0  ;;  %89 = vst.msk [vmem:[#allocation2 + $0x218] sm:$0x1] %vm57_vm3, %v31494_v0 }
  0x1c   :  { %v204_v46 = vadd.f32 %v203_v41, %v202_v43  ;;  %v235_v41 = vsel %vm47_vm0, %v24588_v34, 0.0  ;;  %v24602_v43 = vld [vmem:[%s31480_s0 + $0xf8] sm:$0xff] }
  0x1e   :  { %v206_v49 = vadd.f32 %v205_v44, %v204_v46  ;;  %v237_v46 = vsel %vm47_vm0, %v24595_v38, 0.0 }
  0x20   :  { %v208_v52 = vadd.f32 %v207_v47, %v206_v49  ;;  %v239_v49 = vsel %vm47_vm0, %v24602_v43, 0.0 }
  0x22   :  { %v210_v55 = vadd.f32 %v209_v50, %v208_v52 }
  0x24   :  { %v212_v58 = vadd.f32 %v211_v53, %v210_v55 }
  0x26   :  { %v214_v61 = vadd.f32 %v213_v56, %v212_v58 }
  0x28   :  { %v216_v1 = vadd.f32 %v215_v59, %v214_v61 }
  0x2a   :  { %v218_v9 = vadd.f32 %v217_v62, %v216_v1  ;;  %v320_v62 = vlaneseq }
  0x2c   :  { %v220_v13 = vadd.f32 %v219_v6, %v218_v9  ;;  %v321_v1 = vshrl.u32 %v320_v62, 7 }
  0x2e   :  { %v222_v17 = vadd.f32 %v221_v10, %v220_v13  ;;  %v24609_v10 = vsub.s32 0, %v321_v1 }
  0x30   :  { %v224_v22 = vadd.f32 %v223_v14, %v222_v17  ;;  %31724 = vst [vmem:[#allocation4_spill] sm:$0xff] %v24609_v10 }
  0x32   :  { %v226_v26 = vadd.f32 %v225_v19, %v224_v22 }
  0x34   :  { %v228_v31 = vadd.f32 %v227_v23, %v226_v26 }
  0x36   :  { %v230_v35 = vadd.f32 %v229_v28, %v228_v31 }
  0x38   :  { %v232_v40 = vadd.f32 %v231_v32, %v230_v35 }
  0x3a   :  { %v234_v44 = vadd.f32 %v233_v37, %v232_v40 }
  0x3c   :  { %v236_v47 = vadd.f32 %v235_v41, %v234_v44 }
  0x3e   :  { %v238_v50 = vadd.f32 %v237_v46, %v236_v47 }
  0x40   :  { %v240_v52 = vadd.f32 %v239_v49, %v238_v50 }
  0x42   :  { %v241_v53 = vrot.slane %v240_v52, 4 }
  0x44   :  { %v242_v55 = vadd.f32 %v241_v53, %v240_v52 }
  0x46   :  { %v243_v56 = vrot.slane %v242_v55, 2 }
  0x48   :  { %v244_v58 = vadd.f32 %v243_v56, %v242_v55 }
  0x4a   :  { %v245_v59 = vrot.slane %v244_v58, 1 }
  0x4c   :  { %v246_v61 = vadd.f32 %v245_v59, %v244_v58 }
  0x4e   :  { %20384 = vmatmul.mubr.msk.f32.vlgmr.msra.gmra.mrb[0].mxu0 %vm47_vm0, %v246_v61 }
 0x121   :  { %v316_v6 = vpop.f32.mrb[0].mxu0 }
 0x122   :  { %v20385_v9 = vpop.f32.mrb[1].mxu0  ;;  %v24612_v13 = vrot.slane %v316_v6, %v24609_v10 }
 0x124   :  { %v24616_v14 = vsub.f32 %v24376_v2, %v24612_v13  ;;  %v24620_v17 = vsub.f32 %v24381_v3, %v24612_v13  ;;  %v24624_v19 = vsub.f32 %v24394_v4, %v24612_v13  ;;  %v24628_v22 = vsub.f32 %v24399_v5, %v24612_v13 }
 0x125   :  { %v24636_v2 = vsub.f32 %v24409_v8, %v24612_v13  ;;  %v24642_v4 = vsub.f32 %v24420_v12, %v24612_v13  ;;  %v24650_v35 = vsub.f32 %v24427_v15, %v24612_v13  ;;  %v24657_v12 = vsub.f32 %v24434_v18, %v24612_v13 }
 0x126   :  { %v356_v23 = vmul.f32 %v24616_v14, %v24616_v14  ;;  %v357_v26 = vmul.f32 %v24620_v17, %v24620_v17  ;;  %v358_v3 = vmul.f32 %v24624_v19, %v24624_v19  ;;  %v359_v5 = vmul.f32 %v24628_v22, %v24628_v22 }
 0x127   :  { %v360_v8 = vmul.f32 %v24636_v2, %v24636_v2  ;;  %v361_v41 = vmul.f32 %v24642_v4, %v24642_v4  ;;  %v24664_v15 = vsub.f32 %v24441_v21, %v24612_v13  ;;  %v362_v47 = vmul.f32 %v24650_v35, %v24650_v35 }
 0x128   :  { %v388_v28 = vsel %vm47_vm0, %v356_v23, 0.0  ;;  %v389_v31 = vsel %vm47_vm0, %v357_v26, 0.0  ;;  %v391_v37 = vsel %vm47_vm0, %v358_v3, 0.0  ;;  %v393_v44 = vsel %vm47_vm0, %v359_v5, 0.0 }
 0x129   :  { %v390_v32 = vadd.f32 %v389_v31, %v388_v28  ;;  %v395_v49 = vsel %vm47_vm0, %v360_v8, 0.0  ;;  %v24671_v18 = vsub.f32 %v24448_v24, %v24612_v13  ;;  %v363_v52 = vmul.f32 %v24657_v12, %v24657_v12 }
 0x12a   :  { %v397_v53 = vsel %vm47_vm0, %v361_v41, 0.0  ;;  %v24678_v21 = vsub.f32 %v24455_v27, %v24612_v13  ;;  %v364_v56 = vmul.f32 %v24664_v15, %v24664_v15  ;;  %v399_v58 = vsel %vm47_vm0, %v362_v47, 0.0 }
 0x12b   :  { %v392_v40 = vadd.f32 %v391_v37, %v390_v32  ;;  %v24685_v24 = vsub.f32 %v24462_v30, %v24612_v13  ;;  %v365_v61 = vmul.f32 %v24671_v18, %v24671_v18  ;;  %v401_v62 = vsel %vm47_vm0, %v363_v52, 0.0 }
 0x12c   :  { %v24692_v27 = vsub.f32 %v24469_v33, %v24612_v13  ;;  %v366_v6 = vmul.f32 %v24678_v21, %v24678_v21  ;;  %v403_v9 = vsel %vm47_vm0, %v364_v56, 0.0  ;;  %v24699_v30 = vsub.f32 %v24476_v36, %v24612_v13 }
 0x12d   :  { %v394_v46 = vadd.f32 %v393_v44, %v392_v40  ;;  %v367_v26 = vmul.f32 %v24685_v24, %v24685_v24  ;;  %v405_v3 = vsel %vm47_vm0, %v365_v61, 0.0  ;;  %v24706_v33 = vsub.f32 %v24483_v39, %v24612_v13 }
 0x12e   :  { %v368_v28 = vmul.f32 %v24692_v27, %v24692_v27  ;;  %v407_v31 = vsel %vm47_vm0, %v366_v6, 0.0  ;;  %v24713_v36 = vsub.f32 %v24490_v42, %v24612_v13  ;;  %v369_v8 = vmul.f32 %v24699_v30, %v24699_v30 }
 0x12f   :  { %v396_v50 = vadd.f32 %v395_v49, %v394_v46  ;;  %v409_v37 = vsel %vm47_vm0, %v367_v26, 0.0  ;;  %v24720_v39 = vsub.f32 %v24497_v45, %v24612_v13  ;;  %v370_v41 = vmul.f32 %v24706_v33, %v24706_v33 }
 0x130   :  { %v411_v44 = vsel %vm47_vm0, %v368_v28, 0.0  ;;  %v24727_v42 = vsub.f32 %v24504_v48, %v24612_v13  ;;  %v371_v47 = vmul.f32 %v24713_v36, %v24713_v36  ;;  %v413_v49 = vsel %vm47_vm0, %v369_v8, 0.0 }
 0x131   :  { %v398_v55 = vadd.f32 %v397_v53, %v396_v50  ;;  %v24734_v45 = vsub.f32 %v24511_v51, %v24612_v13  ;;  %v372_v52 = vmul.f32 %v24720_v39, %v24720_v39  ;;  %v415_v53 = vsel %vm47_vm0, %v370_v41, 0.0 }
 0x132   :  { %v24741_v48 = vsub.f32 %v24518_v54, %v24612_v13  ;;  %v373_v56 = vmul.f32 %v24727_v42, %v24727_v42  ;;  %v24748_v51 = vsub.f32 %v24525_v57, %v24612_v13  ;;  %v24755_v54 = vsub.f32 %v24532_v60, %v24612_v13 }
 0x133   :  { %v400_v59 = vadd.f32 %v399_v58, %v398_v55  ;;  %v417_v58 = vsel %vm47_vm0, %v371_v47, 0.0  ;;  %v374_v61 = vmul.f32 %v24734_v45, %v24734_v45  ;;  %v24762_v57 = vsub.f32 %v24539_v63, %v24612_v13 }
 0x134   :  { %v375_v6 = vmul.f32 %v24741_v48, %v24741_v48  ;;  %v376_v26 = vmul.f32 %v24748_v51, %v24748_v51  ;;  %v24769_v60 = vsub.f32 %v24546_v7, %v24612_v13  ;;  %v377_v28 = vmul.f32 %v24755_v54, %v24755_v54 }
 0x135   :  { %v402_v1 = vadd.f32 %v401_v62, %v400_v59  ;;  %v419_v62 = vsel %vm47_vm0, %v372_v52, 0.0  ;;  %v24776_v63 = vsub.f32 %v24553_v11, %v24612_v13  ;;  %v378_v8 = vmul.f32 %v24762_v57, %v24762_v57 }
 0x136   :  { %v24783_v7 = vsub.f32 %v24560_v16, %v24612_v13  ;;  %v379_v41 = vmul.f32 %v24769_v60, %v24769_v60  ;;  %v24790_v11 = vsub.f32 %v24567_v20, %v24612_v13  ;;  %v24797_v16 = vsub.f32 %v24574_v25, %v24612_v13 }
 0x137   :  { %v404_v23 = vadd.f32 %v403_v9, %v402_v1  ;;  %v421_v9 = vsel %vm47_vm0, %v373_v56, 0.0  ;;  %v380_v47 = vmul.f32 %v24776_v63, %v24776_v63  ;;  %v24804_v20 = vsub.f32 %v24581_v29, %v24612_v13 }
 0x138   :  { %v381_v52 = vmul.f32 %v24783_v7, %v24783_v7  ;;  %v382_v56 = vmul.f32 %v24790_v11, %v24790_v11  ;;  %v24811_v25 = vsub.f32 %v24588_v34, %v24612_v13  ;;  %v24818_v29 = vsub.f32 %v24595_v38, %v24612_v13 }
 0x139   :  { %v406_v5 = vadd.f32 %v405_v3, %v404_v23  ;;  %v423_v3 = vsel %vm47_vm0, %v374_v61, 0.0  ;;  %v383_v61 = vmul.f32 %v24797_v16, %v24797_v16  ;;  %v24825_v34 = vsub.f32 %v24602_v43, %v24612_v13 }
 0x13a   :  { %v386_v38 = vmul.f32 %v24818_v29, %v24818_v29 }
 0x13b   :  { %v408_v32 = vadd.f32 %v407_v31, %v406_v5  ;;  %v425_v31 = vsel %vm47_vm0, %v375_v6, 0.0  ;;  %v384_v6 = vmul.f32 %v24804_v20, %v24804_v20 }
 0x13c   :  { %v447_v43 = vsel %vm47_vm0, %v386_v38, 0.0 }
 0x13d   :  { %v410_v40 = vadd.f32 %v409_v37, %v408_v32  ;;  %v427_v37 = vsel %vm47_vm0, %v376_v26, 0.0  ;;  %v385_v26 = vmul.f32 %v24811_v25, %v24811_v25 }
 0x13f   :  { %v412_v46 = vadd.f32 %v411_v44, %v410_v40  ;;  %v429_v44 = vsel %vm47_vm0, %v377_v28, 0.0  ;;  %v443_v28 = vsel %vm47_vm0, %v384_v6, 0.0 }
 0x141   :  { %v414_v50 = vadd.f32 %v413_v49, %v412_v46  ;;  %v431_v49 = vsel %vm47_vm0, %v378_v8, 0.0  ;;  %v445_v8 = vsel %vm47_vm0, %v385_v26, 0.0 }
 0x143   :  { %v416_v55 = vadd.f32 %v415_v53, %v414_v50  ;;  %v433_v53 = vsel %vm47_vm0, %v379_v41, 0.0 }
 0x145   :  { %v418_v59 = vadd.f32 %v417_v58, %v416_v55  ;;  %v435_v58 = vsel %vm47_vm0, %v380_v47, 0.0 }
 0x147   :  { %v420_v1 = vadd.f32 %v419_v62, %v418_v59  ;;  %v437_v62 = vsel %vm47_vm0, %v381_v52, 0.0 }
 0x149   :  { %v422_v23 = vadd.f32 %v421_v9, %v420_v1  ;;  %v439_v9 = vsel %vm47_vm0, %v382_v56, 0.0  ;;  %v931_v56 = vld [vmem:[%s31481_s4] sm:$0xff] }
 0x14b   :  { %v424_v5 = vadd.f32 %v423_v3, %v422_v23  ;;  %v441_v3 = vsel %vm47_vm0, %v383_v61, 0.0 }
 0x14d   :  { %v426_v32 = vadd.f32 %v425_v31, %v424_v5 }
 0x14f   :  { %v428_v40 = vadd.f32 %v427_v37, %v426_v32  ;;  %v387_v32 = vmul.f32 %v24825_v34, %v24825_v34 }
 0x151   :  { %v430_v46 = vadd.f32 %v429_v44, %v428_v40  ;;  %v449_v40 = vsel %vm47_vm0, %v387_v32, 0.0 }
 0x153   :  { %v432_v50 = vadd.f32 %v431_v49, %v430_v46 }
 0x155   :  { %v434_v55 = vadd.f32 %v433_v53, %v432_v50  ;;  %v17748_v53 = vld [vmem:[%s31481_s4 + $0x8] sm:$0xff] }
 0x156   :  { %20391 = vmatprep.subr.mxu0 %v17748_v53 }
 0x157   :  { %v436_v59 = vadd.f32 %v435_v58, %v434_v55  ;;  %v932_v55 = vld [vmem:[#allocation2 + $0x8] sm:$0xff]  ;;  %20392 = vmatpush3.msra.mxu0 %v17748_v53  ;;  %v933_v58 = vld [vmem:[#allocation2 + $0x10] sm:$0xff] }
 0x158   :  { %20393 = vmatprep.mubr.msk.f32.mxu0 %vm47_vm0, %v932_v55  ;;  %20441 = vmatprep.subr.mxu0 %v931_v56 }
 0x159   :  { %v438_v1 = vadd.f32 %v437_v62, %v436_v59  ;;  %20394 = vmatmul.mubr.msk.f32.vlgmr.msra.gmra.mrb[2].mxu0 %vm47_vm0, %v933_v58 }
 0x15a   :  { %20442 = vmatpush3.msra.mxu0 %v931_v56 }
 0x15b   :  { %v440_v23 = vadd.f32 %v439_v9, %v438_v1  ;;  %v24918_v1 = vld [vmem:[%s31481_s4 + $0x10] sm:$0xff] }
 0x15c   :  { %20491 = vmatprep.subr.mxu0 %v24918_v1 }
 0x15d   :  { %v442_v5 = vadd.f32 %v441_v3, %v440_v23  ;;  %v24927_v23 = vld [vmem:[%s31482_s1] ss:$0 sm:$0xff] }
 0x15f   :  { %v444_v31 = vadd.f32 %v443_v28, %v442_v5 }
 0x161   :  { %v446_v37 = vadd.f32 %v445_v8, %v444_v31  ;;  %v24944_v31 = vld [vmem:[%s31483_s2] ss:$0 sm:$0xff] }
 0x163   :  { %v448_v13 = vadd.f32 %v447_v43, %v446_v37 }
 0x165   :  { %v450_v41 = vadd.f32 %v449_v40, %v448_v13 }
 0x167   :  { %v451_v44 = vrot.slane %v450_v41, 4 }
 0x169   :  { %v452_v46 = vadd.f32 %v451_v44, %v450_v41 }
 0x16b   :  { %v453_v47 = vrot.slane %v452_v46, 2 }
 0x16d   :  { %v454_v49 = vadd.f32 %v453_v47, %v452_v46 }
 0x16f   :  { %v455_v50 = vrot.slane %v454_v49, 1 }
 0x171   :  { %v456_v52 = vadd.f32 %v455_v50, %v454_v49 }
 0x173   :  { %20389 = vmatmul.mubr.msk.f32.vlgmr.msra.gmra.mrb[0].mxu1 %vm47_vm0, %v456_v52 }
 0x174   :  { %20852 = vmatprep.mubr.msk.f32.mxu1 %vm24290_vm1, %v31494_v0 }
 0x246   :  { %v526_v59 = vpop.f32.mrb[0].mxu1 }
 0x247   :  { %v527_v61 = vadd.f32 1e-06, %v526_v59  ;;  %v20390_v62 = vpop.f32.mrb[1].mxu1 }
 0x249   :  { %23668 = vrsqrt.f32 %v527_v61 }
 0x253   :  { %v23669_v6 = vpop.eup %23668 }
 0x254   :  { %v24922_v9 = vrot.slane %v23669_v6, %v24609_v10 }
 0x256   :  { %v24931_v26 = vmul.f32 %v24922_v9, %v24748_v51  ;;  %v559_v3 = vmul.f32 %v24922_v9, %v24776_v63  ;;  %v560_v5 = vmul.f32 %v24922_v9, %v24783_v7  ;;  %v561_v38 = vmul.f32 %v24922_v9, %v24790_v11 }
 0x257   :  { %v562_v28 = vmul.f32 %v24922_v9, %v24797_v16  ;;  %v563_v51 = vmul.f32 %v24922_v9, %v24804_v20  ;;  %v564_v63 = vmul.f32 %v24922_v9, %v24811_v25  ;;  %v565_v7 = vmul.f32 %v24922_v9, %v24818_v29 }
 0x258   :  { %v566_v11 = vmul.f32 %v24922_v9, %v24825_v34  ;;  %v24956_v16 = vmul.f32 %v24922_v9, %v24755_v54  ;;  %v24960_v32 = vmul.f32 %v24922_v9, %v24762_v57  ;;  %v597_v8 = vmul.f32 %v24927_v23, %v559_v3 }
 0x259   :  { %v598_v20 = vmul.f32 %v24927_v23, %v560_v5  ;;  %v599_v25 = vmul.f32 %v24927_v23, %v561_v38  ;;  %v600_v37 = vmul.f32 %v24927_v23, %v562_v28  ;;  %v601_v29 = vmul.f32 %v24927_v23, %v563_v51 }
 0x25a   :  { %v602_v34 = vmul.f32 %v24927_v23, %v564_v63  ;;  %v603_v43 = vmul.f32 %v24927_v23, %v565_v7  ;;  %v604_v54 = vmul.f32 %v24927_v23, %v566_v11  ;;  %v24971_v13 = vadd.f32 %v24944_v31, %v597_v8 }
 0x25b   :  { %v24974_v57 = vadd.f32 %v24944_v31, %v598_v20  ;;  %v24977_v40 = vadd.f32 %v24944_v31, %v599_v25  ;;  %v24980_v41 = vadd.f32 %v24944_v31, %v600_v37  ;;  %v24983_v44 = vadd.f32 %v24944_v31, %v601_v29 }
 0x25c   :  { %v24986_v46 = vadd.f32 %v24944_v31, %v602_v34  ;;  %v24989_v47 = vadd.f32 %v24944_v31, %v603_v43  ;;  %v24992_v49 = vadd.f32 %v24944_v31, %v604_v54  ;;  %v667_v50 = vsub.f32 0.0, %v24971_v13 }
 0x25d   :  { %v668_v52 = vsub.f32 0.0, %v24974_v57  ;;  %v669_v53 = vsub.f32 0.0, %v24977_v40  ;;  %v670_v55 = vsub.f32 0.0, %v24980_v41  ;;  %v671_v56 = vsub.f32 0.0, %v24983_v44 }
 0x25e   :  { %v672_v58 = vsub.f32 0.0, %v24986_v46  ;;  %v673_v59 = vsub.f32 0.0, %v24989_v47  ;;  %v674_v61 = vsub.f32 0.0, %v24992_v49  ;;  %v723_v62 = vmul.f32 1.442695, %v667_v50 }
 0x25f   :  { %v725_v6 = vmul.f32 1.442695, %v668_v52  ;;  %v727_v3 = vmul.f32 1.442695, %v669_v53  ;;  %v729_v5 = vmul.f32 1.442695, %v670_v55  ;;  %v535_v28 = vmul.f32 %v24922_v9, %v24616_v14 }
 0x260   :  { %v731_v38 = vmul.f32 1.442695, %v671_v56  ;;  %23670 = vpow2.f32 %v723_v62  ;;  %v733_v51 = vmul.f32 1.442695, %v672_v58  ;;  %v735_v63 = vmul.f32 1.442695, %v673_v59 }
 0x261   :  { %v737_v7 = vmul.f32 1.442695, %v674_v61  ;;  %23672 = vpow2.f32 %v725_v6  ;;  %v573_v11 = vmul.f32 %v24927_v23, %v535_v28  ;;  %v536_v8 = vmul.f32 %v24922_v9, %v24620_v17 }
 0x262   :  { %v537_v20 = vmul.f32 %v24922_v9, %v24624_v19  ;;  %23674 = vpow2.f32 %v727_v3  ;;  %v538_v25 = vmul.f32 %v24922_v9, %v24628_v22  ;;  %v539_v14 = vmul.f32 %v24922_v9, %v24636_v2 }
 0x263   :  { %v540_v37 = vmul.f32 %v24922_v9, %v24642_v4  ;;  %23676 = vpow2.f32 %v729_v5  ;;  %v25016_v29 = vadd.f32 %v24944_v31, %v573_v11  ;;  %v574_v34 = vmul.f32 %v24927_v23, %v536_v8 }
 0x264   :  { %v575_v17 = vmul.f32 %v24927_v23, %v537_v20  ;;  %23678 = vpow2.f32 %v731_v38  ;;  %v576_v19 = vmul.f32 %v24927_v23, %v538_v25  ;;  %v577_v43 = vmul.f32 %v24927_v23, %v539_v14 }
 0x265   :  { %v578_v22 = vmul.f32 %v24927_v23, %v540_v37  ;;  %23680 = vpow2.f32 %v733_v51  ;;  %v643_v2 = vsub.f32 0.0, %v25016_v29  ;;  %v25025_v4 = vadd.f32 %v24944_v31, %v574_v34 }
 0x266   :  { %v25028_v54 = vadd.f32 %v24944_v31, %v575_v17  ;;  %23682 = vpow2.f32 %v735_v63  ;;  %v25031_v50 = vadd.f32 %v24944_v31, %v576_v19  ;;  %v25034_v52 = vadd.f32 %v24944_v31, %v577_v43 }
 0x267   :  { %v25037_v53 = vadd.f32 %v24944_v31, %v578_v22  ;;  %23684 = vpow2.f32 %v737_v7  ;;  %v675_v55 = vmul.f32 1.442695, %v643_v2  ;;  %v644_v56 = vsub.f32 0.0, %v25025_v4 }
 0x268   :  { %v645_v58 = vsub.f32 0.0, %v25028_v54  ;;  %v646_v59 = vsub.f32 0.0, %v25031_v50  ;;  %v647_v61 = vsub.f32 0.0, %v25034_v52  ;;  %v541_v6 = vmul.f32 %v24922_v9, %v24650_v35 }
 0x269   :  { %v648_v62 = vsub.f32 0.0, %v25037_v53  ;;  %23686 = vpow2.f32 %v675_v55  ;;  %v677_v3 = vmul.f32 1.442695, %v644_v56  ;;  %v542_v38 = vmul.f32 %v24922_v9, %v24657_v12 }
 0x26a   :  { %v679_v5 = vmul.f32 1.442695, %v645_v58  ;;  %v23671_v28 = vpop.eup %23670  ;;  %v681_v51 = vmul.f32 1.442695, %v646_v59  ;;  %v683_v63 = vmul.f32 1.442695, %v647_v61  ;;  %v579_v11 = vmul.f32 %v24927_v23, %v541_v6 }
 0x26b   :  { %v25048_v7 = vmul.f32 1.442695, %v648_v62  ;;  %v23673_v8 = vpop.eup %23672  ;;  %v763_v20 = vadd.f32 1.0, %v23671_v28  ;;  %23688 = vpow2.f32 %v677_v3  ;;  %v580_v25 = vmul.f32 %v24927_v23, %v542_v38 }
 0x26c   :  { %v543_v35 = vmul.f32 %v24922_v9, %v24664_v15  ;;  %v23675_v14 = vpop.eup %23674  ;;  %v764_v37 = vadd.f32 1.0, %v23673_v8  ;;  %23690 = vpow2.f32 %v679_v5  ;;  %v25055_v12 = vadd.f32 %v24944_v31, %v579_v11 }
 0x26d   :  { %v544_v34 = vmul.f32 %v24922_v9, %v24671_v18  ;;  %v23677_v17 = vpop.eup %23676  ;;  %v765_v19 = vadd.f32 1.0, %v23675_v14  ;;  %23692 = vrcp.f32 %v763_v20  ;;  %v25060_v43 = vadd.f32 %v24944_v31, %v580_v25 }
 0x26e   :  { %v581_v22 = vmul.f32 %v24927_v23, %v543_v35  ;;  %v23679_v2 = vpop.eup %23678  ;;  %v766_v55 = vadd.f32 1.0, %v23677_v17  ;;  %23694 = vrcp.f32 %v764_v37  ;;  %v649_v15 = vsub.f32 0.0, %v25055_v12 }
 0x26f   :  { %v582_v56 = vmul.f32 %v24927_v23, %v544_v34  ;;  %v23681_v58 = vpop.eup %23680  ;;  %v767_v59 = vadd.f32 1.0, %v23679_v2  ;;  %23696 = vrcp.f32 %v765_v19  ;;  %v650_v18 = vsub.f32 0.0, %v25060_v43 }
 0x270   :  { %v25067_v61 = vadd.f32 %v24944_v31, %v581_v22  ;;  %v23683_v62 = vpop.eup %23682  ;;  %v768_v6 = vadd.f32 1.0, %v23681_v58  ;;  %23698 = vrcp.f32 %v766_v55  ;;  %v687_v3 = vmul.f32 1.442695, %v649_v15 }
 0x271   :  { %v25070_v5 = vadd.f32 %v24944_v31, %v582_v56  ;;  %v23685_v38 = vpop.eup %23684  ;;  %v769_v28 = vadd.f32 1.0, %v23683_v62  ;;  %23700 = vrcp.f32 %v767_v59  ;;  %v689_v11 = vmul.f32 1.442695, %v650_v18 }
 0x272   :  { %v651_v8 = vsub.f32 0.0, %v25067_v61  ;;  %v770_v20 = vadd.f32 1.0, %v23685_v38  ;;  %23702 = vrcp.f32 %v768_v6  ;;  %v545_v35 = vmul.f32 %v24922_v9, %v24678_v21 }
 0x273   :  { %v652_v25 = vsub.f32 0.0, %v25070_v5  ;;  %v23687_v14 = vpop.eup %23686  ;;  %23704 = vrcp.f32 %v769_v28  ;;  %v546_v34 = vmul.f32 %v24922_v9, %v24685_v24  ;;  %v547_v17 = vmul.f32 %v24922_v9, %v24692_v27 }
 0x274   :  { %v691_v37 = vmul.f32 1.442695, %v651_v8  ;;  %23706 = vrcp.f32 %v770_v20  ;;  %v739_v19 = vadd.f32 1.0, %v23687_v14  ;;  %v583_v2 = vmul.f32 %v24927_v23, %v545_v35 }
 0x275   :  { %v693_v22 = vmul.f32 1.442695, %v652_v25  ;;  %v23689_v55 = vpop.eup %23688  ;;  %23708 = vpow2.f32 %v681_v51  ;;  %v584_v15 = vmul.f32 %v24927_v23, %v546_v34  ;;  %v585_v21 = vmul.f32 %v24927_v23, %v547_v17 }
 0x276   :  { %v548_v56 = vmul.f32 %v24922_v9, %v24699_v30  ;;  %v23691_v58 = vpop.eup %23690  ;;  %23710 = vrcp.f32 %v739_v19  ;;  %v740_v24 = vadd.f32 1.0, %v23689_v55  ;;  %v25086_v59 = vadd.f32 %v24944_v31, %v583_v2 }
 0x277   :  { %v549_v27 = vmul.f32 %v24922_v9, %v24706_v33  ;;  %v25090_v18 = vpop.eup %23692  ;;  %v741_v62 = vadd.f32 1.0, %v23691_v58  ;;  %23712 = vpow2.f32 %v683_v63  ;;  %v25093_v51 = vadd.f32 %v24944_v31, %v584_v15 }
 0x278   :  { %v25096_v6 = vadd.f32 %v24944_v31, %v585_v21  ;;  %v25098_v30 = vpop.eup %23694  ;;  %23714 = vrcp.f32 %v740_v24  ;;  %v653_v38 = vsub.f32 0.0, %v25086_v59  ;;  %v586_v28 = vmul.f32 %v24927_v23, %v548_v56 }
 0x279   :  { %v587_v8 = vmul.f32 %v24927_v23, %v549_v27  ;;  %v23697_v33 = vpop.eup %23696  ;;  %23716 = vrcp.f32 %v741_v62  ;;  %v654_v20 = vsub.f32 0.0, %v25093_v51  ;;  %v550_v25 = vmul.f32 %v24922_v9, %v24713_v36 }
 0x27a   :  { %v655_v63 = vsub.f32 0.0, %v25096_v6  ;;  %v23699_v35 = vpop.eup %23698  ;;  %v861_v14 = vmul.f32 %v23697_v33, %v24977_v40  ;;  %23718 = vpow2.f32 %v25048_v7  ;;  %v695_v34 = vmul.f32 1.442695, %v653_v38 }
 0x27b   :  { %v25110_v17 = vadd.f32 %v24944_v31, %v586_v28  ;;  %v23701_v19 = vpop.eup %23700  ;;  %v862_v2 = vmul.f32 %v23699_v35, %v24980_v41  ;;  %23720 = vpow2.f32 %v687_v3  ;;  %v697_v55 = vmul.f32 1.442695, %v654_v20 }
 0x27c   :  { %v699_v15 = vmul.f32 1.442695, %v655_v63  ;;  %v23703_v21 = vpop.eup %23702  ;;  %v863_v56 = vmul.f32 %v23701_v19, %v24983_v44  ;;  %893 = vst.msk [vmem:[#allocation2 + $0x1c8] sm:$0xff] %vm47_vm0, %v861_v14  ;;  %23722 = vpow2.f32 %v689_v11  ;;  %v25117_v40 = vadd.f32 %v24944_v31, %v587_v8 }
 0x27d   :  { %v656_v36 = vsub.f32 0.0, %v25110_v17  ;;  %v23705_v7 = vpop.eup %23704  ;;  %v864_v58 = vmul.f32 %v23703_v21, %v24986_v46  ;;  %894 = vst.msk [vmem:[#allocation2 + $0x1d0] sm:$0xff] %vm47_vm0, %v862_v2  ;;  %23724 = vpow2.f32 %v691_v37  ;;  %v588_v41 = vmul.f32 %v24927_v23, %v550_v25 }
 0x27e   :  { %v551_v3 = vmul.f32 %v24922_v9, %v24720_v39  ;;  %v23707_v44 = vpop.eup %23706  ;;  %v865_v24 = vmul.f32 %v23705_v7, %v24989_v47  ;;  %895 = vst.msk [vmem:[#allocation2 + $0x1e8] sm:$0xff] %vm47_vm0, %v863_v56  ;;  %23726 = vpow2.f32 %v693_v22  ;;  %v657_v27 = vsub.f32 0.0, %v25117_v40 }
 0x27f   :  { %v701_v11 = vmul.f32 1.442695, %v656_v36  ;;  %v23709_v62 = vpop.eup %23708  ;;  %v866_v46 = vmul.f32 %v23707_v44, %v24992_v49  ;;  %896 = vst.msk [vmem:[#allocation2 + $0x1f0] sm:$0xff] %vm47_vm0, %v864_v58  ;;  %23728 = vpow2.f32 %v695_v34  ;;  %v25130_v37 = vadd.f32 %v24944_v31, %v588_v41 }
 0x280   :  { %v589_v39 = vmul.f32 %v24927_v23, %v551_v3  ;;  %v23711_v38 = vpop.eup %23710  ;;  %897 = vst.msk [vmem:[#allocation2 + $0x208] sm:$0xff] %vm47_vm0, %v865_v24  ;;  %v742_v47 = vadd.f32 1.0, %v23709_v62  ;;  %23730 = vpow2.f32 %v697_v55  ;;  %v703_v22 = vmul.f32 1.442695, %v657_v27 }
 0x281   :  { %v552_v28 = vmul.f32 %v24922_v9, %v24727_v42  ;;  %v23713_v8 = vpop.eup %23712  ;;  %898 = vst.msk [vmem:[#allocation2 + $0x210] sm:$0xff] %vm47_vm0, %v866_v46  ;;  %v835_v49 = vmul.f32 %v23711_v38, %v25016_v29  ;;  %23732 = vpow2.f32 %v699_v15  ;;  %v658_v33 = vsub.f32 0.0, %v25130_v37 }
 0x282   :  { %v25140_v20 = vadd.f32 %v24944_v31, %v589_v39  ;;  %v23715_v63 = vpop.eup %23714  ;;  %23734 = vrcp.f32 %v742_v47  ;;  %v743_v25 = vadd.f32 1.0, %v23713_v8  ;;  %v553_v14 = vmul.f32 %v24922_v9, %v24734_v45 }
 0x283   :  { %v590_v35 = vmul.f32 %v24927_v23, %v552_v28  ;;  %v23717_v42 = vpop.eup %23716  ;;  %v558_v34 = vmul.f32 %v24922_v9, %v24769_v60  ;;  %867 = vst.msk [vmem:[#allocation2 + $0x28] sm:$0xff] %vm47_vm0, %v835_v49  ;;  %v836_v29 = vmul.f32 %v23715_v63, %v25025_v4  ;;  %23736 = vpow2.f32 %v701_v11 }
 0x284   :  { %v705_v19 = vmul.f32 1.442695, %v658_v33  ;;  %v23719_v2 = vpop.eup %23718  ;;  %v837_v55 = vmul.f32 %v23717_v42, %v25028_v54  ;;  %23738 = vrcp.f32 %v743_v25  ;;  %v591_v21 = vmul.f32 %v24927_v23, %v553_v14 }
 0x285   :  { %v25151_v15 = vadd.f32 %v24944_v31, %v590_v35  ;;  %v23721_v45 = vpop.eup %23720  ;;  %v595_v56 = vmul.f32 %v24927_v23, %v24960_v32  ;;  %868 = vst.msk [vmem:[#allocation2 + $0x30] sm:$0xff] %vm47_vm0, %v836_v29  ;;  %v744_v60 = vadd.f32 1.0, %v23719_v2  ;;  %23740 = vpow2.f32 %v703_v22 }
 0x286   :  { %v554_v4 = vmul.f32 %v24922_v9, %v24741_v48  ;;  %v23723_v36 = vpop.eup %23722  ;;  %869 = vst.msk [vmem:[#allocation2 + $0x48] sm:$0xff] %vm47_vm0, %v837_v55  ;;  %v745_v54 = vadd.f32 1.0, %v23721_v45  ;;  %23742 = vpow2.f32 %v705_v19  ;;  %v659_v7 = vsub.f32 0.0, %v25140_v20 }
 0x287   :  { %v25162_v58 = vadd.f32 %v24944_v31, %v591_v21  ;;  %v23725_v41 = vpop.eup %23724  ;;  %23744 = vrcp.f32 %v744_v60  ;;  %v746_v32 = vadd.f32 1.0, %v23723_v36  ;;  %v593_v44 = vmul.f32 %v24927_v23, %v24931_v26 }
 0x288   :  { %v592_v3 = vmul.f32 %v24927_v23, %v554_v4  ;;  %v23727_v24 = vpop.eup %23726  ;;  %v596_v48 = vmul.f32 %v24927_v23, %v558_v34  ;;  %23746 = vrcp.f32 %v745_v54  ;;  %v747_v9 = vadd.f32 1.0, %v23725_v41 }
 0x289   :  { %v660_v11 = vsub.f32 0.0, %v25151_v15  ;;  %v23729_v27 = vpop.eup %23728  ;;  %23748 = vrcp.f32 %v746_v32  ;;  %v748_v62 = vadd.f32 1.0, %v23727_v24  ;;  %v661_v46 = vsub.f32 0.0, %v25162_v58 }
 0x28a   :  { %v25171_v39 = vadd.f32 %v24944_v31, %v592_v3  ;;  %v23731_v38 = vpop.eup %23730  ;;  %v934_v47 = vld [vmem:[#allocation2 + $0x28] sm:$0xff]  ;;  %23750 = vrcp.f32 %v747_v9  ;;  %v749_v22 = vadd.f32 1.0, %v23729_v27  ;;  %v25174_v26 = vadd.f32 %v24944_v31, %v593_v44 }
 0x28b   :  { %v594_v28 = vmul.f32 %v24927_v23, %v24956_v16  ;;  %v23733_v8 = vpop.eup %23732  ;;  %20396 = vmatprep.mubr.msk.f32.mxu0 %vm47_vm0, %v934_v47  ;;  %23752 = vrcp.f32 %v748_v62  ;;  %v750_v49 = vadd.f32 1.0, %v23731_v38  ;;  %v707_v33 = vmul.f32 1.442695, %v659_v7 }
 0x28c   :  { %v662_v63 = vsub.f32 0.0, %v25171_v39  ;;  %v23735_v25 = vpop.eup %23734  ;;  %v935_v35 = vld [vmem:[#allocation2 + $0x30] sm:$0xff]  ;;  %23754 = vrcp.f32 %v749_v22  ;;  %v751_v14 = vadd.f32 1.0, %v23733_v8  ;;  %v25184_v34 = vadd.f32 %v24944_v31, %v595_v56 }
 0x28d   :  { %v25181_v42 = vadd.f32 %v24944_v31, %v594_v28  ;;  %v23737_v29 = vpop.eup %23736  ;;  %20397 = vmatmul.mubr.msk.f32.gmra.mrb[4].mxu0 %vm47_vm0, %v935_v35  ;;  %v25187_v23 = vld [vmem:[#allocation2 + $0x48] sm:$0xff]  ;;  %v838_v16 = vmul.f32 %v23735_v25, %v25031_v50  ;;  %23756 = vrcp.f32 %v750_v49  ;;  %v709_v19 = vmul.f32 1.442695, %v660_v11  ;;  %v25496_v10 = vld [vmem:[#allocation2 + $0x31] sm:$0xff] }
 0x28e   :  { %v711_v2 = vmul.f32 1.442695, %v661_v46  ;;  %v23739_v55 = vpop.eup %23738  ;;  %20399 = vmatprep.mubr.msk.f32.mxu0 %vm47_vm0, %v25187_v23  ;;  %23758 = vrcp.f32 %v751_v14  ;;  %v752_v21 = vadd.f32 1.0, %v23737_v29  ;;  %v663_v45 = vsub.f32 0.0, %v25174_v26  ;;  %v25490_v0 = vld [vmem:[#allocation2 + $0x29] sm:$0xff]  ;;  %31728 = vst [vmem:[#allocation8_spill] sm:$0xff] %v25496_v10 }
 0x28f   :  { %v664_v56 = vsub.f32 0.0, %v25181_v42  ;;  %v23741_v60 = vpop.eup %23740  ;;  %870 = vst.msk [vmem:[#allocation2 + $0x50] sm:$0xff] %vm47_vm0, %v838_v16  ;;  %v839_v4 = vmul.f32 %v23739_v55, %v25034_v52  ;;  %23760 = vpow2.f32 %v707_v33  ;;  %v25197_v50 = vadd.f32 %v24944_v31, %v596_v48  ;;  %31727 = vst [vmem:[#allocation7_spill] sm:$0xff] %v25490_v0 }
 0x290   :  { %v859_v36 = vmul.f32 %v25090_v18, %v24971_v13  ;;  %v23743_v54 = vpop.eup %23742  ;;  %23762 = vrcp.f32 %v752_v21  ;;  %v753_v7 = vadd.f32 1.0, %v23741_v60  ;;  %v713_v41 = vmul.f32 1.442695, %v662_v63 }
 0x291   :  { %v665_v32 = vsub.f32 0.0, %v25184_v34  ;;  %v23745_v3 = vpop.eup %23744  ;;  %871 = vst.msk [vmem:[#allocation2 + $0x68] sm:$0xff] %vm47_vm0, %v839_v4  ;;  %v754_v44 = vadd.f32 1.0, %v23743_v54  ;;  %23764 = vpow2.f32 %v709_v19  ;;  %v666_v52 = vsub.f32 0.0, %v25197_v50 }
 0x292   :  { %891 = vst.msk [vmem:[#allocation2 + $0x1a8] sm:$0xff] %vm47_vm0, %v859_v36  ;;  %v860_v31 = vmul.f32 %v25098_v30, %v24974_v57  ;;  %v23747_v24 = vpop.eup %23746  ;;  %v840_v13 = vmul.f32 %v23745_v3, %v25037_v53  ;;  %23766 = vrcp.f32 %v753_v7  ;;  %v715_v18 = vmul.f32 1.442695, %v663_v45 }
 0x293   :  { %v23749_v48 = vpop.eup %23748  ;;  %v841_v9 = vmul.f32 %v23747_v24, %v25055_v12  ;;  %23768 = vrcp.f32 %v754_v44  ;;  %v717_v11 = vmul.f32 1.442695, %v664_v56  ;;  %v719_v46 = vmul.f32 1.442695, %v665_v32 }
 0x294   :  { %892 = vst.msk [vmem:[#allocation2 + $0x1b0] sm:$0xff] %vm47_vm0, %v860_v31  ;;  %v23751_v27 = vpop.eup %23750  ;;  %872 = vst.msk [vmem:[#allocation2 + $0x70] sm:$0xff] %vm47_vm0, %v840_v13  ;;  %v842_v62 = vmul.f32 %v23749_v48, %v25060_v43  ;;  %23770 = vpow2.f32 %v711_v2  ;;  %v721_v30 = vmul.f32 1.442695, %v666_v52 }
 0x295   :  { %v23753_v57 = vpop.eup %23752  ;;  %873 = vst.msk [vmem:[#allocation2 + $0x88] sm:$0xff] %vm47_vm0, %v841_v9  ;;  %v843_v53 = vmul.f32 %v23751_v27, %v25067_v61  ;;  %23772 = vpow2.f32 %v713_v41 }
 0x296   :  { %v23755_v38 = vpop.eup %23754  ;;  %v25214_v12 = vld [vmem:[#allocation2 + $0x50] sm:$0xff]  ;;  %874 = vst.msk [vmem:[#allocation2 + $0x90] sm:$0xff] %vm47_vm0, %v842_v62  ;;  %v844_v47 = vmul.f32 %v23753_v57, %v25070_v5  ;;  %23774 = vpow2.f32 %v715_v18 }
 0x297   :  { %v23757_v22 = vpop.eup %23756  ;;  %20400 = vmatmul.mubr.msk.f32.gmra.mrb[6].mxu0 %vm47_vm0, %v25214_v12  ;;  %875 = vst.msk [vmem:[#allocation2 + $0xa8] sm:$0xff] %vm47_vm0, %v843_v53  ;;  %v845_v43 = vmul.f32 %v23755_v38, %v25086_v59  ;;  %23776 = vpow2.f32 %v717_v11 }
 0x298   :  { %v23759_v61 = vpop.eup %23758  ;;  %v25222_v28 = vld [vmem:[#allocation2 + $0x68] sm:$0xff]  ;;  %876 = vst.msk [vmem:[#allocation2 + $0xb0] sm:$0xff] %vm47_vm0, %v844_v47  ;;  %v846_v8 = vmul.f32 %v23757_v22, %v25093_v51  ;;  %23778 = vpow2.f32 %v719_v46 }
 0x299   :  { %v23761_v49 = vpop.eup %23760  ;;  %20402 = vmatprep.mubr.msk.f32.mxu0 %vm47_vm0, %v25222_v28  ;;  %877 = vst.msk [vmem:[#allocation2 + $0xc8] sm:$0xff] %vm47_vm0, %v845_v43  ;;  %v847_v5 = vmul.f32 %v23759_v61, %v25096_v6  ;;  %23780 = vpow2.f32 %v721_v30 }
 0x29a   :  { %v23763_v33 = vpop.eup %23762  ;;  %878 = vst.msk [vmem:[#allocation2 + $0xd0] sm:$0xff] %vm47_vm0, %v846_v8  ;;  %v755_v59 = vadd.f32 1.0, %v23761_v49  ;;  %v25330_v49 = vld [vmem:[#allocation2 + $0x1a8] sm:$0xff] }
 0x29b   :  { %v23765_v63 = vpop.eup %23764  ;;  %v25231_v25 = vld [vmem:[#allocation2 + $0x70] sm:$0xff]  ;;  %879 = vst.msk [vmem:[#allocation2 + $0xe8] sm:$0xff] %vm47_vm0, %v847_v5  ;;  %v848_v51 = vmul.f32 %v23763_v33, %v25110_v17  ;;  %v25338_v33 = vld [vmem:[#allocation2 + $0x1c8] sm:$0xff] }
 0x29c   :  { %v23767_v35 = vpop.eup %23766  ;;  %20403 = vmatmul.mubr.msk.f32.gmra.mrb[8].mxu0 %vm47_vm0, %v25231_v25  ;;  %v25237_v14 = vld [vmem:[#allocation2 + $0x88] sm:$0xff]  ;;  %23782 = vrcp.f32 %v755_v59  ;;  %v756_v6 = vadd.f32 1.0, %v23765_v63  ;;  %v25334_v5 = vld [vmem:[#allocation2 + $0x1b0] sm:$0xff] }
 0x29d   :  { %v23769_v29 = vpop.eup %23768  ;;  %20405 = vmatprep.mubr.msk.f32.mxu0 %vm47_vm0, %v25237_v14  ;;  %880 = vst.msk [vmem:[#allocation2 + $0xf0] sm:$0xff] %vm47_vm0, %v848_v51  ;;  %v849_v16 = vmul.f32 %v23767_v35, %v25117_v40  ;;  %v25244_v55 = vld [vmem:[#allocation2 + $0x90] sm:$0xff]  ;;  %v25346_v63 = vld [vmem:[#allocation2 + $0x1e8] sm:$0xff] }
 0x29e   :  { %v23771_v19 = vpop.eup %23770  ;;  %v850_v2 = vmul.f32 %v23769_v29, %v25130_v37  ;;  %23784 = vrcp.f32 %v756_v6  ;;  %v25249_v56 = vld [vmem:[#allocation2 + $0xa8] sm:$0xff]  ;;  %v25342_v59 = vld [vmem:[#allocation2 + $0x1d0] sm:$0xff]  ;;  %v25358_v29 = vld [vmem:[%s31481_s4 + $0x18] sm:$0xff] }
 0x29f   :  { %v23773_v17 = vpop.eup %23772  ;;  %881 = vst.msk [vmem:[#allocation2 + $0x108] sm:$0xff] %vm47_vm0, %v849_v16  ;;  %v757_v21 = vadd.f32 1.0, %v23771_v19  ;;  %v25254_v7 = vld [vmem:[#allocation2 + $0xb0] sm:$0xff]  ;;  %v899_v51 = vld [vmem:[#allocation2 + $0x7] sm:$0xff] }
 0x2a0   :  { %v23775_v45 = vpop.eup %23774  ;;  %20406 = vmatmul.mubr.msk.f32.gmra.mrb[10].mxu0 %vm47_vm0, %v25244_v55  ;;  %882 = vst.msk [vmem:[#allocation2 + $0x110] sm:$0xff] %vm47_vm0, %v850_v2  ;;  %v758_v60 = vadd.f32 1.0, %v23773_v17  ;;  %v25258_v32 = vld [vmem:[#allocation2 + $0xc8] sm:$0xff]  ;;  %v25350_v35 = vld [vmem:[#allocation2 + $0x1f0] sm:$0xff] }
 0x2a1   :  { %v23777_v40 = vpop.eup %23776  ;;  %20408 = vmatprep.mubr.msk.f32.mxu0 %vm47_vm0, %v25249_v56  ;;  %23786 = vrcp.f32 %v757_v21  ;;  %v759_v37 = vadd.f32 1.0, %v23775_v45  ;;  %v25262_v52 = vld [vmem:[#allocation2 + $0xd0] sm:$0xff]  ;;  %v25361_v16 = vld [vmem:[#allocation2 + $0x27] sm:$0xff] }
 0x2a2   :  { %v23779_v4 = vpop.eup %23778  ;;  %23788 = vrcp.f32 %v758_v60  ;;  %v760_v36 = vadd.f32 1.0, %v23777_v40  ;;  %v25267_v13 = vld [vmem:[#allocation2 + $0xe8] sm:$0xff] }
 0x2a3   :  { %v23781_v54 = vpop.eup %23780  ;;  %23790 = vrcp.f32 %v759_v37  ;;  %v761_v41 = vadd.f32 1.0, %v23779_v4  ;;  %v900_v6 = vld [vmem:[#allocation2 + $0xf] sm:$0xff]  ;;  %v25371_v2 = vld [vmem:[#allocation2 + $0x47] sm:$0xff] }
 0x2a4   :  { %20409 = vmatmul.mubr.msk.f32.gmra.mrb[12].mxu0 %vm47_vm0, %v25254_v7  ;;  %23792 = vrcp.f32 %v760_v36  ;;  %v762_v3 = vadd.f32 1.0, %v23781_v54  ;;  %v25273_v9 = vld [vmem:[#allocation2 + $0xf0] sm:$0xff]  ;;  %v25387_v45 = vld [vmem:[#allocation2 + $0x87] sm:$0xff] }
 0x2a5   :  { %20411 = vmatprep.mubr.msk.f32.mxu0 %vm47_vm0, %v25258_v32  ;;  %23794 = vrcp.f32 %v761_v41  ;;  %v25367_v19 = vld [vmem:[#allocation2 + $0x2f] sm:$0xff]  ;;  %v25395_v40 = vld [vmem:[#allocation2 + $0xa7] sm:$0xff] }
 0x2a6   :  { %v23783_v44 = vpop.eup %23782  ;;  %23796 = vrcp.f32 %v762_v3  ;;  %v25375_v17 = vld [vmem:[#allocation2 + $0x4f] sm:$0xff]  ;;  %v25403_v4 = vld [vmem:[#allocation2 + $0xc7] sm:$0xff] }
 0x2a7   :  { %v851_v31 = vmul.f32 %v23783_v44, %v25140_v20  ;;  %v25278_v20 = vld [vmem:[#allocation2 + $0x108] sm:$0xff]  ;;  %v25286_v30 = vld [vmem:[#allocation2 + $0x110] sm:$0xff] }
 0x2a8   :  { %v23785_v24 = vpop.eup %23784  ;;  %20412 = vmatmul.mubr.msk.f32.gmra.mrb[14].mxu0 %vm47_vm0, %v25262_v52  ;;  %v25383_v21 = vld [vmem:[#allocation2 + $0x6f] sm:$0xff]  ;;  %v25411_v54 = vld [vmem:[#allocation2 + $0xe7] sm:$0xff] }
 0x2a9   :  { %20414 = vmatprep.mubr.msk.f32.mxu0 %vm47_vm0, %v25267_v13  ;;  %883 = vst.msk [vmem:[#allocation2 + $0x128] sm:$0xff] %vm47_vm0, %v851_v31  ;;  %v852_v18 = vmul.f32 %v23785_v24, %v25151_v15  ;;  %v25391_v60 = vld [vmem:[#allocation2 + $0x8f] sm:$0xff]  ;;  %v25419_v3 = vld [vmem:[#allocation2 + $0x107] sm:$0xff] }
 0x2aa   :  { %v25399_v37 = vld [vmem:[#allocation2 + $0xaf] sm:$0xff] }
 0x2ab   :  { %v23787_v48 = vpop.eup %23786  ;;  %884 = vst.msk [vmem:[#allocation2 + $0x130] sm:$0xff] %vm47_vm0, %v852_v18  ;;  %v25407_v36 = vld [vmem:[#allocation2 + $0xcf] sm:$0xff] }
 0x2ac   :  { %v23789_v11 = vpop.eup %23788  ;;  %20415 = vmatmul.mubr.msk.f32.gmra.mrb[16].mxu0 %vm47_vm0, %v25273_v9  ;;  %v853_v27 = vmul.f32 %v23787_v48, %v25162_v58  ;;  %v25415_v41 = vld [vmem:[#allocation2 + $0xef] sm:$0xff] }
 0x2ad   :  { %v23791_v62 = vpop.eup %23790  ;;  %20417 = vmatprep.mubr.msk.f32.mxu0 %vm47_vm0, %v25278_v20  ;;  %v854_v46 = vmul.f32 %v23789_v11, %v25171_v39  ;;  %v25423_v44 = vld [vmem:[#allocation2 + $0x10f] sm:$0xff] }
 0x2ae   :  { %v23793_v15 = vpop.eup %23792  ;;  %885 = vst.msk [vmem:[#allocation2 + $0x148] sm:$0xff] %vm47_vm0, %v853_v27  ;;  %v855_v57 = vmul.f32 %v23791_v62, %v25174_v26 }
 0x2af   :  { %v23795_v53 = vpop.eup %23794  ;;  %886 = vst.msk [vmem:[#allocation2 + $0x150] sm:$0xff] %vm47_vm0, %v854_v46  ;;  %v856_v38 = vmul.f32 %v23793_v15, %v25181_v42  ;;  %v25459_v15 = vld [vmem:[#allocation2 + $0x1a7] sm:$0xff] }
 0x2b0   :  { %v23797_v47 = vpop.eup %23796  ;;  %20418 = vmatmul.mubr.msk.f32.gmra.mrb[18].mxu0 %vm47_vm0, %v25286_v30  ;;  %v25292_v58 = vld [vmem:[#allocation2 + $0x128] sm:$0xff]  ;;  %887 = vst.msk [vmem:[#allocation2 + $0x168] sm:$0xff] %vm47_vm0, %v855_v57  ;;  %v857_v39 = vmul.f32 %v23795_v53, %v25184_v34 }
 0x2b1   :  { %20420 = vmatprep.mubr.msk.f32.mxu0 %vm47_vm0, %v25292_v58  ;;  %888 = vst.msk [vmem:[#allocation2 + $0x170] sm:$0xff] %vm47_vm0, %v856_v38  ;;  %v858_v26 = vmul.f32 %v23797_v47, %v25197_v50  ;;  %v25427_v31 = vld [vmem:[#allocation2 + $0x127] sm:$0xff]  ;;  %v25463_v57 = vld [vmem:[#allocation2 + $0x1af] sm:$0xff] }
 0x2b2   :  { %889 = vst.msk [vmem:[#allocation2 + $0x188] sm:$0xff] %vm47_vm0, %v857_v39  ;;  %v25301_v42 = vld [vmem:[#allocation2 + $0x130] sm:$0xff]  ;;  %v25467_v53 = vld [vmem:[#allocation2 + $0x1c7] sm:$0xff] }
 0x2b3   :  { %890 = vst.msk [vmem:[#allocation2 + $0x190] sm:$0xff] %vm47_vm0, %v858_v26  ;;  %v25431_v24 = vld [vmem:[#allocation2 + $0x12f] sm:$0xff]  ;;  %v25475_v47 = vld [vmem:[#allocation2 + $0x1e7] sm:$0xff] }
 0x2b4   :  { %20421 = vmatmul.mubr.msk.f32.gmra.mrb[20].mxu0 %vm47_vm0, %v25301_v42  ;;  %v25471_v38 = vld [vmem:[#allocation2 + $0x1cf] sm:$0xff]  ;;  %31726 = vst [vmem:[#allocation6_spill] sm:$0xff] %v25475_v47 }
 0x2b5   :  { %v25306_v22 = vld [vmem:[#allocation2 + $0x148] sm:$0xff]  ;;  %31725 = vst [vmem:[#allocation5_spill] sm:$0xff] %v25471_v38 }
 0x2b6   :  { %20423 = vmatprep.mubr.msk.f32.mxu0 %vm47_vm0, %v25306_v22  ;;  %v25310_v34 = vld [vmem:[#allocation2 + $0x150] sm:$0xff]  ;;  %v25435_v18 = vld [vmem:[#allocation2 + $0x147] sm:$0xff] }
 0x2b7   :  { %v25314_v50 = vld [vmem:[#allocation2 + $0x168] sm:$0xff] }
 0x2b8   :  { %20424 = vmatmul.mubr.msk.f32.gmra.mrb[22].mxu0 %vm47_vm0, %v25310_v34  ;;  %v25318_v43 = vld [vmem:[#allocation2 + $0x170] sm:$0xff]  ;;  %v25443_v11 = vld [vmem:[#allocation2 + $0x167] sm:$0xff] }
 0x2b9   :  { %20426 = vmatprep.mubr.msk.f32.mxu0 %vm47_vm0, %v25314_v50  ;;  %v25322_v61 = vld [vmem:[#allocation2 + $0x188] sm:$0xff] }
 0x2ba   :  { %v25326_v8 = vld [vmem:[#allocation2 + $0x190] sm:$0xff]  ;;  %v25451_v62 = vld [vmem:[#allocation2 + $0x187] sm:$0xff] }
 0x2bb   :  { %v25439_v48 = vld [vmem:[#allocation2 + $0x14f] sm:$0xff] }
 0x2bc   :  { %20427 = vmatmul.mubr.msk.f32.gmra.mrb[24].mxu0 %vm47_vm0, %v25318_v43  ;;  %v25447_v27 = vld [vmem:[#allocation2 + $0x16f] sm:$0xff] }
 0x2bd   :  { %20429 = vmatprep.mubr.msk.f32.mxu0 %vm47_vm0, %v25322_v61  ;;  %v25455_v46 = vld [vmem:[#allocation2 + $0x18f] sm:$0xff] }
 0x2be   :  { %v1608_v39 = vld [vmem:[#allocation2 + $0x9] sm:$0xff] }
 0x2bf   :  { %v25479_v26 = vld [vmem:[#allocation2 + $0x1ef] sm:$0xff] }
 0x2c0   :  { %20430 = vmatmul.mubr.msk.f32.gmra.mrb[26].mxu0 %vm47_vm0, %v25326_v8 }
 0x2c1   :  { %20432 = vmatprep.mubr.msk.f32.mxu0 %vm47_vm0, %v25330_v49 }
 0x2c4   :  { %20433 = vmatmul.mubr.msk.f32.gmra.mrb[28].mxu0 %vm47_vm0, %v25334_v5 }
 0x2c5   :  { %20435 = vmatprep.mubr.msk.f32.mxu0 %vm47_vm0, %v25338_v33 }
 0x2c8   :  { %20436 = vmatmul.mubr.msk.f32.gmra.mrb[30].mxu0 %vm47_vm0, %v25342_v59 }
 0x2c9   :  { %20438 = vmatprep.mubr.msk.f32.mxu0 %vm47_vm0, %v25346_v63 }
 0x2cc   :  { %20439 = vmatmul.mubr.msk.f32.gmra.mrb[32].mxu0 %vm47_vm0, %v25350_v35 }
 0x2cd   :  { %20443 = vmatprep.mubr.msk.f32.mxu0 %vm47_vm0, %v899_v51  ;;  %v1609_v51 = vld [vmem:[#allocation2 + $0x11] sm:$0xff] }
 0x2d0   :  { %20444 = vmatmul.mubr.msk.f32.vlgmr.msra.gmra.mrb[2].mxu0 %vm47_vm0, %v900_v6  ;;  %v25487_v6 = vld [vmem:[%s31481_s4 + $0x20] sm:$0xff] }
 0x2d1   :  { %20492 = vmatpush3.msra.mxu0 %v24918_v1  ;;  %20446 = vmatprep.mubr.msk.f32.mxu0 %vm47_vm0, %v25361_v16  ;;  %v25379_v1 = vld [vmem:[#allocation2 + $0x67] sm:$0xff] }
 0x2d2   :  { %20541 = vmatprep.subr.mxu0 %v25358_v29 }
 0x2d4   :  { %20447 = vmatmul.mubr.msk.f32.gmra.mrb[4].mxu0 %vm47_vm0, %v25367_v19 }
 0x2d5   :  { %20449 = vmatprep.mubr.msk.f32.mxu0 %vm47_vm0, %v25371_v2 }
 0x2d8   :  { %20450 = vmatmul.mubr.msk.f32.gmra.mrb[6].mxu0 %vm47_vm0, %v25375_v17 }
 0x2d9   :  { %20452 = vmatprep.mubr.msk.f32.mxu0 %vm47_vm0, %v25379_v1 }
 0x2dc   :  { %20453 = vmatmul.mubr.msk.f32.gmra.mrb[8].mxu0 %vm47_vm0, %v25383_v21 }
 0x2dd   :  { %20455 = vmatprep.mubr.msk.f32.mxu0 %vm47_vm0, %v25387_v45 }
 0x2e0   :  { %20456 = vmatmul.mubr.msk.f32.gmra.mrb[10].mxu0 %vm47_vm0, %v25391_v60 }
 0x2e1   :  { %20458 = vmatprep.mubr.msk.f32.mxu0 %vm47_vm0, %v25395_v40 }
 0x2e4   :  { %20459 = vmatmul.mubr.msk.f32.gmra.mrb[12].mxu0 %vm47_vm0, %v25399_v37 }
 0x2e5   :  { %20461 = vmatprep.mubr.msk.f32.mxu0 %vm47_vm0, %v25403_v4 }
 0x2e8   :  { %20462 = vmatmul.mubr.msk.f32.gmra.mrb[14].mxu0 %vm47_vm0, %v25407_v36 }
 0x2e9   :  { %20464 = vmatprep.mubr.msk.f32.mxu0 %vm47_vm0, %v25411_v54 }
 0x2ec   :  { %20465 = vmatmul.mubr.msk.f32.gmra.mrb[16].mxu0 %vm47_vm0, %v25415_v41 }
 0x2ed   :  { %20467 = vmatprep.mubr.msk.f32.mxu0 %vm47_vm0, %v25419_v3 }
 0x2f0   :  { %20468 = vmatmul.mubr.msk.f32.gmra.mrb[18].mxu0 %vm47_vm0, %v25423_v44 }
 0x2f1   :  { %20470 = vmatprep.mubr.msk.f32.mxu0 %vm47_vm0, %v25427_v31 }
 0x2f4   :  { %20471 = vmatmul.mubr.msk.f32.gmra.mrb[20].mxu0 %vm47_vm0, %v25431_v24 }
 0x2f5   :  { %20473 = vmatprep.mubr.msk.f32.mxu0 %vm47_vm0, %v25435_v18 }
 0x2f8   :  { %20474 = vmatmul.mubr.msk.f32.gmra.mrb[22].mxu0 %vm47_vm0, %v25439_v48 }
 0x2f9   :  { %20476 = vmatprep.mubr.msk.f32.mxu0 %vm47_vm0, %v25443_v11 }
 0x2fc   :  { %20477 = vmatmul.mubr.msk.f32.gmra.mrb[24].mxu0 %vm47_vm0, %v25447_v27 }
 0x2fd   :  { %20479 = vmatprep.mubr.msk.f32.mxu0 %vm47_vm0, %v25451_v62 }
 0x300   :  { %20480 = vmatmul.mubr.msk.f32.gmra.mrb[26].mxu0 %vm47_vm0, %v25455_v46 }
 0x301   :  { %20482 = vmatprep.mubr.msk.f32.mxu0 %vm47_vm0, %v25459_v15 }
 0x304   :  { %20483 = vmatmul.mubr.msk.f32.gmra.mrb[28].mxu0 %vm47_vm0, %v25463_v57 }
 0x305   :  { %20485 = vmatprep.mubr.msk.f32.mxu0 %vm47_vm0, %v25467_v53 }
 0x308   :  { %20486 = vmatmul.mubr.msk.f32.gmra.mrb[30].mxu0 %vm47_vm0, %v25471_v38 }
 0x309   :  { %20488 = vmatprep.mubr.msk.f32.mxu0 %vm47_vm0, %v25475_v47 }
 0x30c   :  { %20489 = vmatmul.mubr.msk.f32.gmra.mrb[32].mxu0 %vm47_vm0, %v25479_v26 }
 0x30d   :  { %20493 = vmatprep.mubr.msk.f32.mxu0 %vm47_vm0, %v1608_v39  ;;  %v25500_v39 = vld [vmem:[#allocation2 + $0x49] sm:$0xff] }
 0x30e   :  { %31729 = vst [vmem:[#allocation9_spill] sm:$0xff] %v25500_v39 }
 0x310   :  { %20494 = vmatmul.mubr.msk.f32.vlgmr.msra.gmra.mrb[2].mxu0 %vm47_vm0, %v1609_v51  ;;  %v25504_v51 = vld [vmem:[#allocation2 + $0x51] sm:$0xff] }
 0x311   :  { %20542 = vmatpush3.msra.mxu0 %v25358_v29  ;;  %20496 = vmatprep.mubr.msk.f32.mxu0 %vm47_vm0, %v25490_v0  ;;  %31730 = vst [vmem:[#allocation10_spill] sm:$0xff] %v25504_v51  ;;  %v25508_v29 = vld [vmem:[#allocation2 + $0x69] sm:$0xff]  ;;  %v25512_v0 = vld [vmem:[#allocation2 + $0x71] sm:$0xff] }
 0x312   :  { %20591 = vmatprep.subr.mxu0 %v25487_v6  ;;  %31731 = vst [vmem:[#allocation11_spill] sm:$0xff] %v25508_v29  ;;  %31732 = vst [vmem:[#allocation12_spill] sm:$0xff] %v25512_v0 }
 0x314   :  { %20497 = vmatmul.mubr.msk.f32.gmra.mrb[4].mxu0 %vm47_vm0, %v25496_v10  ;;  %v25516_v10 = vld [vmem:[#allocation2 + $0x89] sm:$0xff] }
 0x315   :  { %20499 = vmatprep.mubr.msk.f32.mxu0 %vm47_vm0, %v25500_v39  ;;  %31733 = vst [vmem:[#allocation13_spill] sm:$0xff] %v25516_v10  ;;  %v25520_v39 = vld [vmem:[#allocation2 + $0x91] sm:$0xff] }
 0x316   :  { %31734 = vst [vmem:[#allocation14_spill] sm:$0xff] %v25520_v39 }
 0x318   :  { %20500 = vmatmul.mubr.msk.f32.gmra.mrb[6].mxu0 %vm47_vm0, %v25504_v51  ;;  %v25524_v51 = vld [vmem:[#allocation2 + $0xa9] sm:$0xff] }
 0x319   :  { %20502 = vmatprep.mubr.msk.f32.mxu0 %vm47_vm0, %v25508_v29  ;;  %31735 = vst [vmem:[#allocation15_spill] sm:$0xff] %v25524_v51  ;;  %v25528_v29 = vld [vmem:[#allocation2 + $0xb1] sm:$0xff] }
 0x31a   :  { %31736 = vst [vmem:[#allocation16_spill] sm:$0xff] %v25528_v29 }
 0x31c   :  { %20503 = vmatmul.mubr.msk.f32.gmra.mrb[8].mxu0 %vm47_vm0, %v25512_v0  ;;  %v25532_v0 = vld [vmem:[#allocation2 + $0xc9] sm:$0xff] }
 0x31d   :  { %20505 = vmatprep.mubr.msk.f32.mxu0 %vm47_vm0, %v25516_v10  ;;  %31737 = vst [vmem:[#allocation17_spill] sm:$0xff] %v25532_v0  ;;  %v25536_v10 = vld [vmem:[#allocation2 + $0xd1] sm:$0xff] }
 0x31e   :  { %31738 = vst [vmem:[#allocation18_spill] sm:$0xff] %v25536_v10 }
 0x320   :  { %20506 = vmatmul.mubr.msk.f32.gmra.mrb[10].mxu0 %vm47_vm0, %v25520_v39  ;;  %v25540_v39 = vld [vmem:[#allocation2 + $0xe9] sm:$0xff] }
 0x321   :  { %20508 = vmatprep.mubr.msk.f32.mxu0 %vm47_vm0, %v25524_v51  ;;  %31739 = vst [vmem:[#allocation19_spill] sm:$0xff] %v25540_v39  ;;  %v25544_v51 = vld [vmem:[#allocation2 + $0xf1] sm:$0xff] }
 0x322   :  { %31740 = vst [vmem:[#allocation20_spill] sm:$0xff] %v25544_v51 }
 0x324   :  { %20509 = vmatmul.mubr.msk.f32.gmra.mrb[12].mxu0 %vm47_vm0, %v25528_v29  ;;  %v25548_v29 = vld [vmem:[#allocation2 + $0x109] sm:$0xff] }
 0x325   :  { %20511 = vmatprep.mubr.msk.f32.mxu0 %vm47_vm0, %v25532_v0  ;;  %31741 = vst [vmem:[#allocation21_spill] sm:$0xff] %v25548_v29  ;;  %v25552_v0 = vld [vmem:[#allocation2 + $0x111] sm:$0xff] }
 0x326   :  { %31742 = vst [vmem:[#allocation22_spill] sm:$0xff] %v25552_v0 }
 0x328   :  { %20512 = vmatmul.mubr.msk.f32.gmra.mrb[14].mxu0 %vm47_vm0, %v25536_v10  ;;  %v25556_v10 = vld [vmem:[#allocation2 + $0x129] sm:$0xff] }
 0x329   :  { %20514 = vmatprep.mubr.msk.f32.mxu0 %vm47_vm0, %v25540_v39  ;;  %31743 = vst [vmem:[#allocation23_spill] sm:$0xff] %v25556_v10  ;;  %v25560_v39 = vld [vmem:[#allocation2 + $0x131] sm:$0xff] }
 0x32a   :  { %31744 = vst [vmem:[#allocation24_spill] sm:$0xff] %v25560_v39 }
 0x32c   :  { %20515 = vmatmul.mubr.msk.f32.gmra.mrb[16].mxu0 %vm47_vm0, %v25544_v51  ;;  %v25564_v51 = vld [vmem:[#allocation2 + $0x149] sm:$0xff] }
 0x32d   :  { %20517 = vmatprep.mubr.msk.f32.mxu0 %vm47_vm0, %v25548_v29  ;;  %31745 = vst [vmem:[#allocation25_spill] sm:$0xff] %v25564_v51  ;;  %v25568_v29 = vld [vmem:[#allocation2 + $0x151] sm:$0xff] }
 0x32e   :  { %31746 = vst [vmem:[#allocation26_spill] sm:$0xff] %v25568_v29 }
 0x330   :  { %20518 = vmatmul.mubr.msk.f32.gmra.mrb[18].mxu0 %vm47_vm0, %v25552_v0  ;;  %v25572_v0 = vld [vmem:[#allocation2 + $0x169] sm:$0xff] }
 0x331   :  { %20520 = vmatprep.mubr.msk.f32.mxu0 %vm47_vm0, %v25556_v10  ;;  %31747 = vst [vmem:[#allocation27_spill] sm:$0xff] %v25572_v0  ;;  %v25576_v10 = vld [vmem:[#allocation2 + $0x171] sm:$0xff] }
 0x332   :  { %31748 = vst [vmem:[#allocation28_spill] sm:$0xff] %v25576_v10 }
 0x334   :  { %20521 = vmatmul.mubr.msk.f32.gmra.mrb[20].mxu0 %vm47_vm0, %v25560_v39  ;;  %v25580_v39 = vld [vmem:[#allocation2 + $0x189] sm:$0xff] }
 0x335   :  { %20523 = vmatprep.mubr.msk.f32.mxu0 %vm47_vm0, %v25564_v51  ;;  %31749 = vst [vmem:[#allocation29_spill] sm:$0xff] %v25580_v39  ;;  %v25584_v51 = vld [vmem:[#allocation2 + $0x191] sm:$0xff] }
 0x336   :  { %31750 = vst [vmem:[#allocation30_spill] sm:$0xff] %v25584_v51 }
 0x338   :  { %20524 = vmatmul.mubr.msk.f32.gmra.mrb[22].mxu0 %vm47_vm0, %v25568_v29  ;;  %v25588_v29 = vld [vmem:[#allocation2 + $0x1a9] sm:$0xff] }
 0x339   :  { %20526 = vmatprep.mubr.msk.f32.mxu0 %vm47_vm0, %v25572_v0  ;;  %31751 = vst [vmem:[#allocation31_spill] sm:$0xff] %v25588_v29  ;;  %v25592_v0 = vld [vmem:[#allocation2 + $0x1b1] sm:$0xff] }
 0x33c   :  { %20527 = vmatmul.mubr.msk.f32.gmra.mrb[24].mxu0 %vm47_vm0, %v25576_v10  ;;  %v25596_v10 = vld [vmem:[#allocation2 + $0x1c9] sm:$0xff] }
 0x33d   :  { %20529 = vmatprep.mubr.msk.f32.mxu0 %vm47_vm0, %v25580_v39  ;;  %31752 = vst [vmem:[#allocation32_spill] sm:$0xff] %v25596_v10  ;;  %v25600_v39 = vld [vmem:[#allocation2 + $0x1d1] sm:$0xff] }
 0x340   :  { %20530 = vmatmul.mubr.msk.f32.gmra.mrb[26].mxu0 %vm47_vm0, %v25584_v51  ;;  %v25604_v51 = vld [vmem:[#allocation2 + $0x1e9] sm:$0xff] }
 0x341   :  { %20532 = vmatprep.mubr.msk.f32.mxu0 %vm47_vm0, %v25588_v29  ;;  %31753 = vst [vmem:[#allocation33_spill] sm:$0xff] %v25604_v51  ;;  %v25608_v29 = vld [vmem:[#allocation2 + $0x1f1] sm:$0xff] }
 0x344   :  { %20533 = vmatmul.mubr.msk.f32.gmra.mrb[28].mxu0 %vm47_vm0, %v25592_v0 }
 0x345   :  { %20535 = vmatprep.mubr.msk.f32.mxu0 %vm47_vm0, %v25596_v10  ;;  %v17912_v10 = vld [vmem:[%s31481_s4 + $0x28] sm:$0xff] }
 0x348   :  { %20536 = vmatmul.mubr.msk.f32.gmra.mrb[30].mxu0 %vm47_vm0, %v25600_v39 }
 0x349   :  { %20538 = vmatprep.mubr.msk.f32.mxu0 %vm47_vm0, %v25604_v51 }
 0x34c   :  { %20539 = vmatmul.mubr.msk.f32.gmra.mrb[32].mxu0 %vm47_vm0, %v25608_v29 }
 0x34d   :  { %20543 = vmatprep.mubr.msk.f32.mxu0 %vm47_vm0, %v25361_v16  ;;  %v25676_v16 = vld [vmem:[#allocation2 + $0x207] sm:$0xff] }
 0x350   :  { %20544 = vmatmul.mubr.msk.f32.vlgmr.msra.gmra.mrb[2].mxu0 %vm47_vm0, %v25367_v19  ;;  %v25680_v19 = vld [vmem:[#allocation2 + $0x20f] sm:$0xff] }
 0x351   :  { %20592 = vmatpush3.msra.mxu0 %v25487_v6  ;;  %20546 = vmatprep.mubr.msk.f32.mxu0 %vm47_vm0, %v25371_v2  ;;  %v2382_v6 = vld [vmem:[#allocation2 + $0x28] sm:$0xff] }
 0x352   :  { %20641 = vmatprep.subr.mxu0 %v17912_v10 }
 0x354   :  { %20547 = vmatmul.mubr.msk.f32.gmra.mrb[4].mxu0 %vm47_vm0, %v25375_v17 }
 0x355   :  { %20549 = vmatprep.mubr.msk.f32.mxu0 %vm47_vm0, %v25379_v1 }
 0x358   :  { %20550 = vmatmul.mubr.msk.f32.gmra.mrb[6].mxu0 %vm47_vm0, %v25383_v21 }
 0x359   :  { %20552 = vmatprep.mubr.msk.f32.mxu0 %vm47_vm0, %v25387_v45 }
 0x35c   :  { %20553 = vmatmul.mubr.msk.f32.gmra.mrb[8].mxu0 %vm47_vm0, %v25391_v60 }
 0x35d   :  { %20555 = vmatprep.mubr.msk.f32.mxu0 %vm47_vm0, %v25395_v40 }
 0x360   :  { %20556 = vmatmul.mubr.msk.f32.gmra.mrb[10].mxu0 %vm47_vm0, %v25399_v37 }
 0x361   :  { %20558 = vmatprep.mubr.msk.f32.mxu0 %vm47_vm0, %v25403_v4 }
 0x364   :  { %20559 = vmatmul.mubr.msk.f32.gmra.mrb[12].mxu0 %vm47_vm0, %v25407_v36 }
 0x365   :  { %20561 = vmatprep.mubr.msk.f32.mxu0 %vm47_vm0, %v25411_v54 }
 0x368   :  { %20562 = vmatmul.mubr.msk.f32.gmra.mrb[14].mxu0 %vm47_vm0, %v25415_v41 }
 0x369   :  { %20564 = vmatprep.mubr.msk.f32.mxu0 %vm47_vm0, %v25419_v3 }
 0x36c   :  { %20565 = vmatmul.mubr.msk.f32.gmra.mrb[16].mxu0 %vm47_vm0, %v25423_v44 }
 0x36d   :  { %20567 = vmatprep.mubr.msk.f32.mxu0 %vm47_vm0, %v25427_v31 }
 0x370   :  { %20568 = vmatmul.mubr.msk.f32.gmra.mrb[18].mxu0 %vm47_vm0, %v25431_v24 }
 0x371   :  { %20570 = vmatprep.mubr.msk.f32.mxu0 %vm47_vm0, %v25435_v18 }
 0x374   :  { %20571 = vmatmul.mubr.msk.f32.gmra.mrb[20].mxu0 %vm47_vm0, %v25439_v48 }
 0x375   :  { %20573 = vmatprep.mubr.msk.f32.mxu0 %vm47_vm0, %v25443_v11 }
 0x378   :  { %20574 = vmatmul.mubr.msk.f32.gmra.mrb[22].mxu0 %vm47_vm0, %v25447_v27 }
 0x379   :  { %20576 = vmatprep.mubr.msk.f32.mxu0 %vm47_vm0, %v25451_v62 }
 0x37c   :  { %20577 = vmatmul.mubr.msk.f32.gmra.mrb[24].mxu0 %vm47_vm0, %v25455_v46 }
 0x37d   :  { %20579 = vmatprep.mubr.msk.f32.mxu0 %vm47_vm0, %v25459_v15 }
 0x380   :  { %20580 = vmatmul.mubr.msk.f32.gmra.mrb[26].mxu0 %vm47_vm0, %v25463_v57 }
 0x381   :  { %20582 = vmatprep.mubr.msk.f32.mxu0 %vm47_vm0, %v25467_v53 }
 0x384   :  { %20583 = vmatmul.mubr.msk.f32.gmra.mrb[28].mxu0 %vm47_vm0, %v25471_v38  ;;  %v2383_v38 = vld [vmem:[#allocation2 + $0x30] sm:$0xff] }
 0x385   :  { %20585 = vmatprep.mubr.msk.f32.mxu0 %vm47_vm0, %v25475_v47  ;;  %v17945_v47 = vld [vmem:[%s31481_s4 + $0x30] sm:$0xff] }
 0x388   :  { %20586 = vmatmul.mubr.msk.f32.gmra.mrb[30].mxu0 %vm47_vm0, %v25479_v26 }
 0x389   :  { %20588 = vmatprep.mubr.msk.f32.mxu0 %vm47_vm0, %v25676_v16 }
 0x38c   :  { %20589 = vmatmul.mubr.msk.f32.gmra.mrb[32].mxu0 %vm47_vm0, %v25680_v19 }
 0x38d   :  { %20593 = vmatprep.mubr.msk.f32.mxu0 %vm47_vm0, %v2382_v6  ;;  %v31774_v6 = vld [vmem:[#allocation27_spill] sm:$0xff] }
 0x390   :  { %20594 = vmatmul.mubr.msk.f32.vlgmr.msra.gmra.mrb[2].mxu0 %vm47_vm0, %v2383_v38  ;;  %v31772_v38 = vld [vmem:[#allocation25_spill] sm:$0xff] }
 0x391   :  { %20642 = vmatpush3.msra.mxu0 %v17912_v10  ;;  %20596 = vmatprep.mubr.msk.f32.mxu0 %vm47_vm0, %v25187_v23  ;;  %v25745_v10 = vld [vmem:[#allocation2 + $0x208] sm:$0xff]  ;;  %v25749_v23 = vld [vmem:[#allocation2 + $0x210] sm:$0xff] }
 0x392   :  { %20691 = vmatprep.subr.mxu0 %v17945_v47 }
 0x394   :  { %20597 = vmatmul.mubr.msk.f32.gmra.mrb[4].mxu0 %vm47_vm0, %v25214_v12  ;;  %v31754_v12 = vld [vmem:[#allocation7_spill] sm:$0xff] }
 0x395   :  { %20599 = vmatprep.mubr.msk.f32.mxu0 %vm47_vm0, %v25222_v28  ;;  %v17978_v28 = vld [vmem:[%s31481_s4 + $0x38] sm:$0xff] }
 0x398   :  { %20600 = vmatmul.mubr.msk.f32.gmra.mrb[6].mxu0 %vm47_vm0, %v25231_v25  ;;  %v31755_v25 = vld [vmem:[#allocation8_spill] sm:$0xff] }
 0x399   :  { %20602 = vmatprep.mubr.msk.f32.mxu0 %vm47_vm0, %v25237_v14  ;;  %v31756_v14 = vld [vmem:[#allocation9_spill] sm:$0xff] }
 0x39c   :  { %20603 = vmatmul.mubr.msk.f32.gmra.mrb[8].mxu0 %vm47_vm0, %v25244_v55  ;;  %v31757_v55 = vld [vmem:[#allocation10_spill] sm:$0xff] }
 0x39d   :  { %20605 = vmatprep.mubr.msk.f32.mxu0 %vm47_vm0, %v25249_v56  ;;  %v31758_v56 = vld [vmem:[#allocation11_spill] sm:$0xff] }
 0x3a0   :  { %20606 = vmatmul.mubr.msk.f32.gmra.mrb[10].mxu0 %vm47_vm0, %v25254_v7  ;;  %v31759_v7 = vld [vmem:[#allocation12_spill] sm:$0xff] }
 0x3a1   :  { %20608 = vmatprep.mubr.msk.f32.mxu0 %vm47_vm0, %v25258_v32  ;;  %v31760_v32 = vld [vmem:[#allocation13_spill] sm:$0xff] }
 0x3a4   :  { %20609 = vmatmul.mubr.msk.f32.gmra.mrb[12].mxu0 %vm47_vm0, %v25262_v52  ;;  %v31761_v52 = vld [vmem:[#allocation14_spill] sm:$0xff] }
 0x3a5   :  { %20611 = vmatprep.mubr.msk.f32.mxu0 %vm47_vm0, %v25267_v13  ;;  %v31762_v13 = vld [vmem:[#allocation15_spill] sm:$0xff] }
 0x3a8   :  { %20612 = vmatmul.mubr.msk.f32.gmra.mrb[14].mxu0 %vm47_vm0, %v25273_v9  ;;  %v31763_v9 = vld [vmem:[#allocation16_spill] sm:$0xff] }
 0x3a9   :  { %20614 = vmatprep.mubr.msk.f32.mxu0 %vm47_vm0, %v25278_v20  ;;  %v31764_v20 = vld [vmem:[#allocation17_spill] sm:$0xff] }
 0x3ac   :  { %20615 = vmatmul.mubr.msk.f32.gmra.mrb[16].mxu0 %vm47_vm0, %v25286_v30  ;;  %v31765_v30 = vld [vmem:[#allocation18_spill] sm:$0xff] }
 0x3ad   :  { %20617 = vmatprep.mubr.msk.f32.mxu0 %vm47_vm0, %v25292_v58  ;;  %v31766_v58 = vld [vmem:[#allocation19_spill] sm:$0xff] }
 0x3b0   :  { %20618 = vmatmul.mubr.msk.f32.gmra.mrb[18].mxu0 %vm47_vm0, %v25301_v42  ;;  %v31767_v42 = vld [vmem:[#allocation20_spill] sm:$0xff] }
 0x3b1   :  { %20620 = vmatprep.mubr.msk.f32.mxu0 %vm47_vm0, %v25306_v22  ;;  %v31768_v22 = vld [vmem:[#allocation21_spill] sm:$0xff] }
 0x3b4   :  { %20621 = vmatmul.mubr.msk.f32.gmra.mrb[20].mxu0 %vm47_vm0, %v25310_v34  ;;  %v31769_v34 = vld [vmem:[#allocation22_spill] sm:$0xff] }
 0x3b5   :  { %20623 = vmatprep.mubr.msk.f32.mxu0 %vm47_vm0, %v25314_v50  ;;  %v31770_v50 = vld [vmem:[#allocation23_spill] sm:$0xff] }
 0x3b8   :  { %20624 = vmatmul.mubr.msk.f32.gmra.mrb[22].mxu0 %vm47_vm0, %v25318_v43  ;;  %v31771_v43 = vld [vmem:[#allocation24_spill] sm:$0xff] }
 0x3b9   :  { %20626 = vmatprep.mubr.msk.f32.mxu0 %vm47_vm0, %v25322_v61 }
 0x3bc   :  { %20627 = vmatmul.mubr.msk.f32.gmra.mrb[24].mxu0 %vm47_vm0, %v25326_v8 }
 0x3bd   :  { %20629 = vmatprep.mubr.msk.f32.mxu0 %vm47_vm0, %v25330_v49 }
 0x3c0   :  { %20630 = vmatmul.mubr.msk.f32.gmra.mrb[26].mxu0 %vm47_vm0, %v25334_v5 }
 0x3c1   :  { %20632 = vmatprep.mubr.msk.f32.mxu0 %vm47_vm0, %v25338_v33 }
 0x3c4   :  { %20633 = vmatmul.mubr.msk.f32.gmra.mrb[28].mxu0 %vm47_vm0, %v25342_v59 }
 0x3c5   :  { %20635 = vmatprep.mubr.msk.f32.mxu0 %vm47_vm0, %v25346_v63 }
 0x3c8   :  { %20636 = vmatmul.mubr.msk.f32.gmra.mrb[30].mxu0 %vm47_vm0, %v25350_v35 }
 0x3c9   :  { %20638 = vmatprep.mubr.msk.f32.mxu0 %vm47_vm0, %v25745_v10 }
 0x3cc   :  { %20639 = vmatmul.mubr.msk.f32.gmra.mrb[32].mxu0 %vm47_vm0, %v25749_v23 }
 0x3cd   :  { %20643 = vmatprep.mubr.msk.f32.mxu0 %vm47_vm0, %v31754_v12  ;;  %v31775_v12 = vld [vmem:[#allocation28_spill] sm:$0xff] }
 0x3d0   :  { %20644 = vmatmul.mubr.msk.f32.vlgmr.msra.gmra.mrb[2].mxu0 %vm47_vm0, %v31755_v25  ;;  %v31776_v25 = vld [vmem:[#allocation29_spill] sm:$0xff] }
 0x3d1   :  { %20692 = vmatpush3.msra.mxu0 %v17945_v47  ;;  %20646 = vmatprep.mubr.msk.f32.mxu0 %vm47_vm0, %v31756_v14  ;;  %v31773_v47 = vld [vmem:[#allocation26_spill] sm:$0xff] }
 0x3d2   :  { %20741 = vmatprep.subr.mxu0 %v17978_v28 }
 0x3d4   :  { %20647 = vmatmul.mubr.msk.f32.gmra.mrb[4].mxu0 %vm47_vm0, %v31757_v55 }
 0x3d5   :  { %20649 = vmatprep.mubr.msk.f32.mxu0 %vm47_vm0, %v31758_v56 }
 0x3d8   :  { %20650 = vmatmul.mubr.msk.f32.gmra.mrb[6].mxu0 %vm47_vm0, %v31759_v7 }
 0x3d9   :  { %20652 = vmatprep.mubr.msk.f32.mxu0 %vm47_vm0, %v31760_v32 }
 0x3dc   :  { %20653 = vmatmul.mubr.msk.f32.gmra.mrb[8].mxu0 %vm47_vm0, %v31761_v52 }
 0x3dd   :  { %20655 = vmatprep.mubr.msk.f32.mxu0 %vm47_vm0, %v31762_v13 }
 0x3e0   :  { %20656 = vmatmul.mubr.msk.f32.gmra.mrb[10].mxu0 %vm47_vm0, %v31763_v9 }
 0x3e1   :  { %20658 = vmatprep.mubr.msk.f32.mxu0 %vm47_vm0, %v31764_v20 }
 0x3e4   :  { %20659 = vmatmul.mubr.msk.f32.gmra.mrb[12].mxu0 %vm47_vm0, %v31765_v30 }
 0x3e5   :  { %20661 = vmatprep.mubr.msk.f32.mxu0 %vm47_vm0, %v31766_v58 }
 0x3e8   :  { %20662 = vmatmul.mubr.msk.f32.gmra.mrb[14].mxu0 %vm47_vm0, %v31767_v42 }
 0x3e9   :  { %20664 = vmatprep.mubr.msk.f32.mxu0 %vm47_vm0, %v31768_v22 }
 0x3ec   :  { %20665 = vmatmul.mubr.msk.f32.gmra.mrb[16].mxu0 %vm47_vm0, %v31769_v34  ;;  %v31777_v34 = vld [vmem:[#allocation30_spill] sm:$0xff] }
 0x3ed   :  { %20667 = vmatprep.mubr.msk.f32.mxu0 %vm47_vm0, %v31770_v50  ;;  %v31778_v50 = vld [vmem:[#allocation31_spill] sm:$0xff] }
 0x3f0   :  { %20668 = vmatmul.mubr.msk.f32.gmra.mrb[18].mxu0 %vm47_vm0, %v31771_v43 }
 0x3f1   :  { %20670 = vmatprep.mubr.msk.f32.mxu0 %vm47_vm0, %v31772_v38  ;;  %v31779_v38 = vld [vmem:[#allocation32_spill] sm:$0xff] }
 0x3f4   :  { %20671 = vmatmul.mubr.msk.f32.gmra.mrb[20].mxu0 %vm47_vm0, %v31773_v47 }
 0x3f5   :  { %20673 = vmatprep.mubr.msk.f32.mxu0 %vm47_vm0, %v31774_v6 }
 0x3f8   :  { %20674 = vmatmul.mubr.msk.f32.gmra.mrb[22].mxu0 %vm47_vm0, %v31775_v12 }
 0x3f9   :  { %20676 = vmatprep.mubr.msk.f32.mxu0 %vm47_vm0, %v31776_v25  ;;  %v25816_v25 = vld [vmem:[#allocation2 + $0x209] sm:$0xff] }
 0x3fc   :  { %20677 = vmatmul.mubr.msk.f32.gmra.mrb[24].mxu0 %vm47_vm0, %v31777_v34 }
 0x3fd   :  { %20679 = vmatprep.mubr.msk.f32.mxu0 %vm47_vm0, %v31778_v50  ;;  %v25820_v50 = vld [vmem:[#allocation2 + $0x211] sm:$0xff] }
 0x400   :  { %20680 = vmatmul.mubr.msk.f32.gmra.mrb[26].mxu0 %vm47_vm0, %v25592_v0 }
 0x401   :  { %20682 = vmatprep.mubr.msk.f32.mxu0 %vm47_vm0, %v31779_v38 }
 0x404   :  { %20683 = vmatmul.mubr.msk.f32.gmra.mrb[28].mxu0 %vm47_vm0, %v25600_v39 }
 0x405   :  { %20685 = vmatprep.mubr.msk.f32.mxu0 %vm47_vm0, %v25604_v51  ;;  %v18011_v51 = vld [vmem:[%s31481_s4 + $0x40] sm:$0xff] }
 0x408   :  { %20686 = vmatmul.mubr.msk.f32.gmra.mrb[30].mxu0 %vm47_vm0, %v25608_v29 }
 0x409   :  { %20688 = vmatprep.mubr.msk.f32.mxu0 %vm47_vm0, %v25816_v25 }
 0x40c   :  { %20689 = vmatmul.mubr.msk.f32.gmra.mrb[32].mxu0 %vm47_vm0, %v25820_v50 }
 0x40d   :  { %20693 = vmatprep.mubr.msk.f32.mxu0 %vm47_vm0, %v25371_v2  ;;  %v31780_v2 = vld [vmem:[#allocation5_spill] sm:$0xff] }
 0x410   :  { %20694 = vmatmul.mubr.msk.f32.vlgmr.msra.gmra.mrb[2].mxu0 %vm47_vm0, %v25375_v17  ;;  %v31781_v17 = vld [vmem:[#allocation6_spill] sm:$0xff] }
 0x411   :  { %20742 = vmatpush3.msra.mxu0 %v17978_v28  ;;  %20696 = vmatprep.mubr.msk.f32.mxu0 %vm47_vm0, %v25379_v1  ;;  %v3187_v1 = vld [vmem:[#allocation2 + $0x227] sm:$0xff] }
 0x412   :  { %20791 = vmatprep.subr.mxu0 %v18011_v51 }
 0x414   :  { %20697 = vmatmul.mubr.msk.f32.gmra.mrb[4].mxu0 %vm47_vm0, %v25383_v21  ;;  %v3188_v21 = vld [vmem:[#allocation2 + $0x22f] sm:$0xff] }
 0x415   :  { %20699 = vmatprep.mubr.msk.f32.mxu0 %vm47_vm0, %v25387_v45  ;;  %v3544_v45 = vld [vmem:[#allocation2 + $0x48] sm:$0xff] }
 0x418   :  { %20700 = vmatmul.mubr.msk.f32.gmra.mrb[6].mxu0 %vm47_vm0, %v25391_v60  ;;  %v31782_v60 = vmov 0.0  }
 0x419   :  { %20702 = vmatprep.mubr.msk.f32.mxu0 %vm47_vm0, %v25395_v40  ;;  %91 = vst.msk [vmem:[#allocation3 + $0x7] sm:$0xff] %vm90_vm4, %v31782_v60  ;;  %92 = vst.msk [vmem:[#allocation3 + $0xf] sm:$0xff] %vm90_vm4, %v31782_v60  ;;  %v3545_v40 = vld [vmem:[#allocation2 + $0x50] sm:$0xff] }
 0x41a   :  { %96 = vst.msk [vmem:[#allocation3 + $0x227] sm:$0xff] %vm90_vm4, %v31782_v60  ;;  %97 = vst.msk [vmem:[#allocation3 + $0x22f] sm:$0xff] %vm90_vm4, %v31782_v60 }
 0x41b   :  { %94 = vst.msk [vmem:[#allocation3 + $0x17] sm:$0x3] %vm93_vm5, %v31782_v60  ;;  %98 = vst.msk [vmem:[#allocation3 + $0x237] sm:$0x3] %vm93_vm5, %v31782_v60 }
 0x41c   :  { %20703 = vmatmul.mubr.msk.f32.gmra.mrb[8].mxu0 %vm47_vm0, %v25399_v37  ;;  %v3546_v37 = vld [vmem:[#allocation2 + $0x68] sm:$0xff]  ;;  %101 = vst.msk [vmem:[#allocation3 + $0x27] sm:$0x1] %vm100_vm6, %v31782_v60  ;;  %102 = vst.msk [vmem:[#allocation3 + $0x47] sm:$0x1] %vm100_vm6, %v31782_v60 }
 0x41d   :  { %20705 = vmatprep.mubr.msk.f32.mxu0 %vm47_vm0, %v25403_v4  ;;  %v3547_v4 = vld [vmem:[#allocation2 + $0x70] sm:$0xff]  ;;  %103 = vst.msk [vmem:[#allocation3 + $0x67] sm:$0x1] %vm100_vm6, %v31782_v60  ;;  %104 = vst.msk [vmem:[#allocation3 + $0x87] sm:$0x1] %vm100_vm6, %v31782_v60 }
 0x41e   :  { %105 = vst.msk [vmem:[#allocation3 + $0xa7] sm:$0x1] %vm100_vm6, %v31782_v60  ;;  %106 = vst.msk [vmem:[#allocation3 + $0xc7] sm:$0x1] %vm100_vm6, %v31782_v60 }
 0x41f   :  { %107 = vst.msk [vmem:[#allocation3 + $0xe7] sm:$0x1] %vm100_vm6, %v31782_v60  ;;  %108 = vst.msk [vmem:[#allocation3 + $0x107] sm:$0x1] %vm100_vm6, %v31782_v60 }
 0x420   :  { %20706 = vmatmul.mubr.msk.f32.gmra.mrb[10].mxu0 %vm47_vm0, %v25407_v36  ;;  %v3548_v36 = vld [vmem:[#allocation2 + $0x88] sm:$0xff]  ;;  %109 = vst.msk [vmem:[#allocation3 + $0x127] sm:$0x1] %vm100_vm6, %v31782_v60  ;;  %110 = vst.msk [vmem:[#allocation3 + $0x147] sm:$0x1] %vm100_vm6, %v31782_v60 }
 0x421   :  { %20708 = vmatprep.mubr.msk.f32.mxu0 %vm47_vm0, %v25411_v54  ;;  %v3549_v54 = vld [vmem:[#allocation2 + $0x90] sm:$0xff]  ;;  %111 = vst.msk [vmem:[#allocation3 + $0x167] sm:$0x1] %vm100_vm6, %v31782_v60  ;;  %112 = vst.msk [vmem:[#allocation3 + $0x187] sm:$0x1] %vm100_vm6, %v31782_v60 }
 0x422   :  { %113 = vst.msk [vmem:[#allocation3 + $0x1a7] sm:$0x1] %vm100_vm6, %v31782_v60  ;;  %114 = vst.msk [vmem:[#allocation3 + $0x1c7] sm:$0x1] %vm100_vm6, %v31782_v60 }
 0x423   :  { %115 = vst.msk [vmem:[#allocation3 + $0x1e7] sm:$0x1] %vm100_vm6, %v31782_v60  ;;  %116 = vst.msk [vmem:[#allocation3 + $0x207] sm:$0x1] %vm100_vm6, %v31782_v60 }
 0x424   :  { %20709 = vmatmul.mubr.msk.f32.gmra.mrb[12].mxu0 %vm47_vm0, %v25415_v41  ;;  %v3550_v41 = vld [vmem:[#allocation2 + $0xa8] sm:$0xff]  ;;  %117 = vst.msk [vmem:[#allocation3 + $0x38] sm:$0x1] %vm100_vm6, %v31782_v60  ;;  %118 = vst.msk [vmem:[#allocation3 + $0x58] sm:$0x1] %vm100_vm6, %v31782_v60 }
 0x425   :  { %20711 = vmatprep.mubr.msk.f32.mxu0 %vm47_vm0, %v25419_v3  ;;  %v3551_v3 = vld [vmem:[#allocation2 + $0xb0] sm:$0xff]  ;;  %119 = vst.msk [vmem:[#allocation3 + $0x78] sm:$0x1] %vm100_vm6, %v31782_v60  ;;  %120 = vst.msk [vmem:[#allocation3 + $0x98] sm:$0x1] %vm100_vm6, %v31782_v60 }
 0x426   :  { %121 = vst.msk [vmem:[#allocation3 + $0xb8] sm:$0x1] %vm100_vm6, %v31782_v60  ;;  %122 = vst.msk [vmem:[#allocation3 + $0xd8] sm:$0x1] %vm100_vm6, %v31782_v60 }
 0x427   :  { %123 = vst.msk [vmem:[#allocation3 + $0xf8] sm:$0x1] %vm100_vm6, %v31782_v60  ;;  %124 = vst.msk [vmem:[#allocation3 + $0x118] sm:$0x1] %vm100_vm6, %v31782_v60 }
 0x428   :  { %20712 = vmatmul.mubr.msk.f32.gmra.mrb[14].mxu0 %vm47_vm0, %v25423_v44  ;;  %v3552_v44 = vld [vmem:[#allocation2 + $0xc8] sm:$0xff]  ;;  %125 = vst.msk [vmem:[#allocation3 + $0x138] sm:$0x1] %vm100_vm6, %v31782_v60  ;;  %126 = vst.msk [vmem:[#allocation3 + $0x158] sm:$0x1] %vm100_vm6, %v31782_v60 }
 0x429   :  { %20714 = vmatprep.mubr.msk.f32.mxu0 %vm47_vm0, %v25427_v31  ;;  %v3553_v31 = vld [vmem:[#allocation2 + $0xd0] sm:$0xff]  ;;  %127 = vst.msk [vmem:[#allocation3 + $0x178] sm:$0x1] %vm100_vm6, %v31782_v60  ;;  %128 = vst.msk [vmem:[#allocation3 + $0x198] sm:$0x1] %vm100_vm6, %v31782_v60 }
 0x42a   :  { %129 = vst.msk [vmem:[#allocation3 + $0x1b8] sm:$0x1] %vm100_vm6, %v31782_v60  ;;  %130 = vst.msk [vmem:[#allocation3 + $0x1d8] sm:$0x1] %vm100_vm6, %v31782_v60 }
 0x42b   :  { %131 = vst.msk [vmem:[#allocation3 + $0x1f8] sm:$0x1] %vm100_vm6, %v31782_v60  ;;  %132 = vst.msk [vmem:[#allocation3 + $0x218] sm:$0x1] %vm100_vm6, %v31782_v60 }
 0x42c   :  { %20715 = vmatmul.mubr.msk.f32.gmra.mrb[16].mxu0 %vm47_vm0, %v25431_v24  ;;  %v3554_v24 = vld [vmem:[#allocation2 + $0xe8] sm:$0xff] }
 0x42d   :  { %20717 = vmatprep.mubr.msk.f32.mxu0 %vm47_vm0, %v25435_v18  ;;  %v3555_v18 = vld [vmem:[#allocation2 + $0xf0] sm:$0xff] }
 0x430   :  { %20718 = vmatmul.mubr.msk.f32.gmra.mrb[18].mxu0 %vm47_vm0, %v25439_v48  ;;  %v3556_v48 = vld [vmem:[#allocation2 + $0x108] sm:$0xff] }
 0x431   :  { %20720 = vmatprep.mubr.msk.f32.mxu0 %vm47_vm0, %v25443_v11  ;;  %v3557_v11 = vld [vmem:[#allocation2 + $0x110] sm:$0xff] }
 0x434   :  { %20721 = vmatmul.mubr.msk.f32.gmra.mrb[20].mxu0 %vm47_vm0, %v25447_v27  ;;  %v3558_v27 = vld [vmem:[#allocation2 + $0x128] sm:$0xff] }
 0x435   :  { %20723 = vmatprep.mubr.msk.f32.mxu0 %vm47_vm0, %v25451_v62  ;;  %v3559_v62 = vld [vmem:[#allocation2 + $0x130] sm:$0xff] }
 0x438   :  { %20724 = vmatmul.mubr.msk.f32.gmra.mrb[22].mxu0 %vm47_vm0, %v25455_v46  ;;  %v3560_v46 = vld [vmem:[#allocation2 + $0x148] sm:$0xff] }
 0x439   :  { %20726 = vmatprep.mubr.msk.f32.mxu0 %vm47_vm0, %v25459_v15  ;;  %v3561_v15 = vld [vmem:[#allocation2 + $0x150] sm:$0xff] }
 0x43c   :  { %20727 = vmatmul.mubr.msk.f32.gmra.mrb[24].mxu0 %vm47_vm0, %v25463_v57  ;;  %v3562_v57 = vld [vmem:[#allocation2 + $0x168] sm:$0xff] }
 0x43d   :  { %20729 = vmatprep.mubr.msk.f32.mxu0 %vm47_vm0, %v25467_v53  ;;  %v3563_v53 = vld [vmem:[#allocation2 + $0x170] sm:$0xff] }
 0x440   :  { %20730 = vmatmul.mubr.msk.f32.gmra.mrb[26].mxu0 %vm47_vm0, %v31780_v2 }
 0x441   :  { %20732 = vmatprep.mubr.msk.f32.mxu0 %vm47_vm0, %v31781_v17 }
 0x444   :  { %20733 = vmatmul.mubr.msk.f32.gmra.mrb[28].mxu0 %vm47_vm0, %v25479_v26  ;;  %v3961_v26 = vld [vmem:[#allocation2 + $0x229] sm:$0xff] }
 0x445   :  { %20735 = vmatprep.mubr.msk.f32.mxu0 %vm47_vm0, %v25676_v16 }
 0x448   :  { %20736 = vmatmul.mubr.msk.f32.gmra.mrb[30].mxu0 %vm47_vm0, %v25680_v19  ;;  %v26018_v19 = vld [vmem:[%s31485_s5] ss:$0 sm:$0xff] }
 0x449   :  { %20738 = vmatprep.mubr.msk.f32.mxu0 %vm47_vm0, %v3187_v1 }
 0x44c   :  { %20739 = vmatmul.mubr.msk.f32.gmra.mrb[32].mxu0 %vm47_vm0, %v3188_v21 }
 0x44d   :  { %20743 = vmatprep.mubr.msk.f32.mxu0 %vm47_vm0, %v3544_v45 }
 0x450   :  { %20744 = vmatmul.mubr.msk.f32.vlgmr.msra.gmra.mrb[2].mxu0 %vm47_vm0, %v3545_v40 }
 0x451   :  { %20792 = vmatpush3.msra.mxu0 %v18011_v51  ;;  %20746 = vmatprep.mubr.msk.f32.mxu0 %vm47_vm0, %v3546_v37  ;;  %v139_v51 = vld [vmem:[%s31484_s9] sm:$0xff] }
 0x454   :  { %20747 = vmatmul.mubr.msk.f32.gmra.mrb[4].mxu0 %vm47_vm0, %v3547_v4 }
 0x455   :  { %20749 = vmatprep.mubr.msk.f32.mxu0 %vm47_vm0, %v3548_v36 }
 0x458   :  { %20750 = vmatmul.mubr.msk.f32.gmra.mrb[6].mxu0 %vm47_vm0, %v3549_v54 }
 0x459   :  { %20752 = vmatprep.mubr.msk.f32.mxu0 %vm47_vm0, %v3550_v41 }
 0x45c   :  { %20753 = vmatmul.mubr.msk.f32.gmra.mrb[8].mxu0 %vm47_vm0, %v3551_v3 }
 0x45d   :  { %20755 = vmatprep.mubr.msk.f32.mxu0 %vm47_vm0, %v3552_v44 }
 0x460   :  { %20756 = vmatmul.mubr.msk.f32.gmra.mrb[10].mxu0 %vm47_vm0, %v3553_v31 }
 0x461   :  { %20758 = vmatprep.mubr.msk.f32.mxu0 %vm47_vm0, %v3554_v24 }
 0x464   :  { %20759 = vmatmul.mubr.msk.f32.gmra.mrb[12].mxu0 %vm47_vm0, %v3555_v18 }
 0x465   :  { %20761 = vmatprep.mubr.msk.f32.mxu0 %vm47_vm0, %v3556_v48 }
 0x468   :  { %20762 = vmatmul.mubr.msk.f32.gmra.mrb[14].mxu0 %vm47_vm0, %v3557_v11 }
 0x469   :  { %20764 = vmatprep.mubr.msk.f32.mxu0 %vm47_vm0, %v3558_v27 }
 0x46c   :  { %20765 = vmatmul.mubr.msk.f32.gmra.mrb[16].mxu0 %vm47_vm0, %v3559_v62 }
 0x46d   :  { %20767 = vmatprep.mubr.msk.f32.mxu0 %vm47_vm0, %v3560_v46 }
 0x470   :  { %20768 = vmatmul.mubr.msk.f32.gmra.mrb[18].mxu0 %vm47_vm0, %v3561_v15 }
 0x471   :  { %20770 = vmatprep.mubr.msk.f32.mxu0 %vm47_vm0, %v3562_v57 }
 0x474   :  { %20771 = vmatmul.mubr.msk.f32.gmra.mrb[20].mxu0 %vm47_vm0, %v3563_v53 }
 0x475   :  { %20773 = vmatprep.mubr.msk.f32.mxu0 %vm47_vm0, %v25322_v61  ;;  %v3574_v61 = vld [vmem:[#allocation2 + $0x228] sm:$0xff] }
 0x478   :  { %20774 = vmatmul.mubr.msk.f32.gmra.mrb[22].mxu0 %vm47_vm0, %v25326_v8  ;;  %v3575_v8 = vld [vmem:[#allocation2 + $0x230] sm:$0xff] }
 0x479   :  { %20776 = vmatprep.mubr.msk.f32.mxu0 %vm47_vm0, %v25330_v49  ;;  %v31783_v49 = vld [vmem:[#allocation22_spill] sm:$0xff] }
 0x47c   :  { %20777 = vmatmul.mubr.msk.f32.gmra.mrb[24].mxu0 %vm47_vm0, %v25334_v5  ;;  %v31784_v5 = vld [vmem:[#allocation23_spill] sm:$0xff] }
 0x47d   :  { %20779 = vmatprep.mubr.msk.f32.mxu0 %vm47_vm0, %v25338_v33  ;;  %v31785_v33 = vld [vmem:[#allocation25_spill] sm:$0xff] }
 0x480   :  { %20780 = vmatmul.mubr.msk.f32.gmra.mrb[26].mxu0 %vm47_vm0, %v25342_v59  ;;  %v31786_v59 = vld [vmem:[#allocation29_spill] sm:$0xff] }
 0x481   :  { %20782 = vmatprep.mubr.msk.f32.mxu0 %vm47_vm0, %v25346_v63  ;;  %v31787_v63 = vld [vmem:[#allocation31_spill] sm:$0xff] }
 0x484   :  { %20783 = vmatmul.mubr.msk.f32.gmra.mrb[28].mxu0 %vm47_vm0, %v25350_v35  ;;  %v31788_v35 = vld [vmem:[#allocation33_spill] sm:$0xff] }
 0x485   :  { %20785 = vmatprep.mubr.msk.f32.mxu0 %vm47_vm0, %v25745_v10  ;;  %v26023_v10 = vld [vmem:[%s31486_s6] ss:$0 sm:$0xff] }
 0x488   :  { %20786 = vmatmul.mubr.msk.f32.gmra.mrb[30].mxu0 %vm47_vm0, %v25749_v23 }
 0x489   :  { %20788 = vmatprep.mubr.msk.f32.mxu0 %vm47_vm0, %v3574_v61 }
 0x48c   :  { %20789 = vmatmul.mubr.msk.f32.gmra.mrb[32].mxu0 %vm47_vm0, %v3575_v8 }
 0x48d   :  { %20793 = vmatprep.mubr.msk.f32.mxu0 %vm47_vm0, %v31756_v14 }
 0x490   :  { %20794 = vmatmul.mubr.msk.f32.vlgmr.msra.gmra.mrb[2].mxu0 %vm47_vm0, %v31757_v55 }
 0x491   :  { %20796 = vmatprep.mubr.msk.f32.mxu0 %vm47_vm0, %v31758_v56 }
 0x494   :  { %20797 = vmatmul.mubr.msk.f32.gmra.mrb[4].mxu0 %vm47_vm0, %v31759_v7 }
 0x495   :  { %20799 = vmatprep.mubr.msk.f32.mxu0 %vm47_vm0, %v31760_v32 }
 0x498   :  { %20800 = vmatmul.mubr.msk.f32.gmra.mrb[6].mxu0 %vm47_vm0, %v31761_v52 }
 0x499   :  { %20802 = vmatprep.mubr.msk.f32.mxu0 %vm47_vm0, %v31762_v13 }
 0x49c   :  { %20803 = vmatmul.mubr.msk.f32.gmra.mrb[8].mxu0 %vm47_vm0, %v31763_v9 }
 0x49d   :  { %20805 = vmatprep.mubr.msk.f32.mxu0 %vm47_vm0, %v31764_v20 }
 0x4a0   :  { %20806 = vmatmul.mubr.msk.f32.gmra.mrb[10].mxu0 %vm47_vm0, %v31765_v30 }
 0x4a1   :  { %20808 = vmatprep.mubr.msk.f32.mxu0 %vm47_vm0, %v31766_v58 }
 0x4a4   :  { %20809 = vmatmul.mubr.msk.f32.gmra.mrb[12].mxu0 %vm47_vm0, %v31767_v42 }
 0x4a5   :  { %20811 = vmatprep.mubr.msk.f32.mxu0 %vm47_vm0, %v31768_v22 }
 0x4a8   :  { %20812 = vmatmul.mubr.msk.f32.gmra.mrb[14].mxu0 %vm47_vm0, %v31783_v49 }
 0x4a9   :  { %20814 = vmatprep.mubr.msk.f32.mxu0 %vm47_vm0, %v31784_v5 }
 0x4ac   :  { %20815 = vmatmul.mubr.msk.f32.gmra.mrb[16].mxu0 %vm47_vm0, %v31771_v43 }
 0x4ad   :  { %20817 = vmatprep.mubr.msk.f32.mxu0 %vm47_vm0, %v31785_v33 }
 0x4b0   :  { %20818 = vmatmul.mubr.msk.f32.gmra.mrb[18].mxu0 %vm47_vm0, %v31773_v47 }
 0x4b1   :  { %20820 = vmatprep.mubr.msk.f32.mxu0 %vm47_vm0, %v31774_v6 }
 0x4b4   :  { %20821 = vmatmul.mubr.msk.f32.gmra.mrb[20].mxu0 %vm47_vm0, %v31775_v12 }
 0x4b5   :  { %20823 = vmatprep.mubr.msk.f32.mxu0 %vm47_vm0, %v31786_v59 }
 0x4b8   :  { %20824 = vmatmul.mubr.msk.f32.gmra.mrb[22].mxu0 %vm47_vm0, %v31777_v34 }
 0x4b9   :  { %20826 = vmatprep.mubr.msk.f32.mxu0 %vm47_vm0, %v31787_v63 }
 0x4bc   :  { %20827 = vmatmul.mubr.msk.f32.gmra.mrb[24].mxu0 %vm47_vm0, %v25592_v0  ;;  %v3962_v0 = vld [vmem:[#allocation2 + $0x231] sm:$0xff] }
 0x4bd   :  { %20829 = vmatprep.mubr.msk.f32.mxu0 %vm47_vm0, %v31779_v38 }
 0x4c0   :  { %20830 = vmatmul.mubr.msk.f32.gmra.mrb[26].mxu0 %vm47_vm0, %v25600_v39  ;;  %v31551_v39 = vmov 0.0|0.0  }
 0x4c1   :  { %20832 = vmatprep.mubr.msk.f32.mxu0 %vm47_vm0, %v31788_v35  ;;  %22365 = vmatprep.subr.bf16.mxu0 %v31551_v39 }
 0x4c2   :  { %22368 = vmatprep.subr.bf16.mxu1 %v31551_v39 }
 0x4c4   :  { %20833 = vmatmul.mubr.msk.f32.gmra.mrb[28].mxu0 %vm47_vm0, %v25608_v29  ;;  %v140_v29 = vld [vmem:[%s31484_s9 + $0x8] sm:$0xff] }
 0x4c5   :  { %20835 = vmatprep.mubr.msk.f32.mxu0 %vm47_vm0, %v25816_v25  ;;  %v26011_v16 = vpack.c.bf16 %v140_v29, %v139_v51 }
 0x4c7   :  { %31789 = vst [vmem:[#allocation7_spill] sm:$0xff] %v26011_v16  ;;  %22367 = vmatpush3.bf16.msra.mxu0 %v26011_v16  ;;  %22370 = vmatpush3.bf16.msra.mxu1 %v26011_v16 }
 0x4c8   :  { %20836 = vmatmul.mubr.msk.f32.gmra.mrb[30].mxu0 %vm47_vm0, %v25820_v50 }
 0x4c9   :  { %20838 = vmatprep.mubr.msk.f32.mxu0 %vm47_vm0, %v3961_v26 }
 0x4cc   :  { %20839 = vmatmul.mubr.msk.f32.gmra.mrb[32].mxu0 %vm47_vm0, %v3962_v0 }
 0x4cd   :  { %20845 = vmatprep.mubr.msk.f32.mxu0 %vm24290_vm1, %v31782_v60 }
 0x563   :  { %v20795_v23 = vpop.f32.mrb[2].mxu0 }
 0x564   :  { %v4325_v28 = vadd.f32 %v20795_v23, %v26018_v19  ;;  %v4127_v14 = vpop.f32.mrb[3].mxu0 }
 0x565   :  { %v4324_v55 = vadd.f32 %v26018_v19, %v4127_v14 }
 0x566   :  { %v26028_v56 = vadd.f32 %v26023_v10, %v4325_v28 }
 0x567   :  { %v26031_v7 = vadd.f32 %v26023_v10, %v4324_v55  ;;  %v20798_v32 = vpop.f32.mrb[4].mxu0 }
 0x568   :  { %v4327_v52 = vadd.f32 %v20798_v32, %v26018_v19  ;;  %v4137_v13 = vpop.f32.mrb[5].mxu0  ;;  %v4395_v9 = vsel %vm90_vm4, %v26028_v56, 0.0 }
 0x569   :  { %v4394_v20 = vsel %vm90_vm4, %v26031_v7, 0.0  ;;  %v4326_v30 = vadd.f32 %v26018_v19, %v4137_v13 }
 0x56a   :  { %v26040_v58 = vadd.f32 %v26023_v10, %v4327_v52  ;;  %v4396_v34 = vadd.f32 %v4395_v9, %v4394_v20 }
 0x56b   :  { %v26043_v42 = vadd.f32 %v26023_v10, %v4326_v30  ;;  %v20801_v22 = vpop.f32.mrb[6].mxu0 }
 0x56c   :  { %v4329_v50 = vadd.f32 %v20801_v22, %v26018_v19  ;;  %v4147_v43 = vpop.f32.mrb[7].mxu0  ;;  %v4399_v12 = vsel %vm90_vm4, %v26040_v58, 0.0 }
 0x56d   :  { %v4397_v38 = vsel %vm90_vm4, %v26043_v42, 0.0  ;;  %v4328_v47 = vadd.f32 %v26018_v19, %v4147_v43 }
 0x56e   :  { %v4398_v6 = vadd.f32 %v4397_v38, %v4396_v34  ;;  %v26052_v25 = vadd.f32 %v26023_v10, %v4329_v50 }
 0x56f   :  { %v26055_v2 = vadd.f32 %v26023_v10, %v4328_v47  ;;  %v20804_v17 = vpop.f32.mrb[8].mxu0 }
 0x570   :  { %v4400_v1 = vadd.f32 %v4399_v12, %v4398_v6  ;;  %v4331_v21 = vadd.f32 %v20804_v17, %v26018_v19  ;;  %v4157_v45 = vpop.f32.mrb[9].mxu0  ;;  %v4403_v36 = vsel %vm90_vm4, %v26052_v25, 0.0 }
 0x571   :  { %v4401_v40 = vsel %vm90_vm4, %v26055_v2, 0.0  ;;  %v4330_v37 = vadd.f32 %v26018_v19, %v4157_v45 }
 0x572   :  { %v4402_v4 = vadd.f32 %v4401_v40, %v4400_v1  ;;  %v26064_v54 = vadd.f32 %v26023_v10, %v4331_v21 }
 0x573   :  { %v26067_v41 = vadd.f32 %v26023_v10, %v4330_v37  ;;  %v20807_v3 = vpop.f32.mrb[10].mxu0 }
 0x574   :  { %v4404_v44 = vadd.f32 %v4403_v36, %v4402_v4  ;;  %v4333_v31 = vadd.f32 %v20807_v3, %v26018_v19  ;;  %v4167_v24 = vpop.f32.mrb[11].mxu0  ;;  %v4407_v27 = vsel %vm90_vm4, %v26064_v54, 0.0 }
 0x575   :  { %v4405_v18 = vsel %vm90_vm4, %v26067_v41, 0.0  ;;  %v4332_v48 = vadd.f32 %v26018_v19, %v4167_v24 }
 0x576   :  { %v4406_v11 = vadd.f32 %v4405_v18, %v4404_v44  ;;  %v26076_v62 = vadd.f32 %v26023_v10, %v4333_v31 }
 0x577   :  { %v26079_v46 = vadd.f32 %v26023_v10, %v4332_v48  ;;  %v20810_v15 = vpop.f32.mrb[12].mxu0 }
 0x578   :  { %v4408_v57 = vadd.f32 %v4407_v27, %v4406_v11  ;;  %v4335_v53 = vadd.f32 %v20810_v15, %v26018_v19  ;;  %v4177_v61 = vpop.f32.mrb[13].mxu0  ;;  %v4411_v33 = vsel %vm90_vm4, %v26076_v62, 0.0 }
 0x579   :  { %v4409_v8 = vsel %vm90_vm4, %v26079_v46, 0.0  ;;  %v4334_v49 = vadd.f32 %v26018_v19, %v4177_v61 }
 0x57a   :  { %v4410_v5 = vadd.f32 %v4409_v8, %v4408_v57  ;;  %v26088_v59 = vadd.f32 %v26023_v10, %v4335_v53 }
 0x57b   :  { %v26091_v63 = vadd.f32 %v26023_v10, %v4334_v49  ;;  %v20813_v35 = vpop.f32.mrb[14].mxu0 }
 0x57c   :  { %v4412_v26 = vadd.f32 %v4411_v33, %v4410_v5  ;;  %v4337_v0 = vadd.f32 %v20813_v35, %v26018_v19  ;;  %v4187_v51 = vpop.f32.mrb[15].mxu0  ;;  %v4415_v14 = vsel %vm90_vm4, %v26088_v59, 0.0 }
 0x57d   :  { %v4413_v29 = vsel %vm90_vm4, %v26091_v63, 0.0  ;;  %v4336_v23 = vadd.f32 %v26018_v19, %v4187_v51 }
 0x57e   :  { %v4414_v28 = vadd.f32 %v4413_v29, %v4412_v26  ;;  %v26100_v55 = vadd.f32 %v26023_v10, %v4337_v0 }
 0x57f   :  { %v26103_v32 = vadd.f32 %v26023_v10, %v4336_v23  ;;  %v20816_v52 = vpop.f32.mrb[16].mxu0 }
 0x580   :  { %v4416_v13 = vadd.f32 %v4415_v14, %v4414_v28  ;;  %v4339_v9 = vadd.f32 %v20816_v52, %v26018_v19  ;;  %v4197_v20 = vpop.f32.mrb[17].mxu0  ;;  %v4419_v50 = vsel %vm90_vm4, %v26100_v55, 0.0 }
 0x581   :  { %v4417_v30 = vsel %vm90_vm4, %v26103_v32, 0.0  ;;  %v4338_v22 = vadd.f32 %v26018_v19, %v4197_v20 }
 0x582   :  { %v4418_v34 = vadd.f32 %v4417_v30, %v4416_v13  ;;  %v26112_v43 = vadd.f32 %v26023_v10, %v4339_v9 }
 0x583   :  { %v26115_v38 = vadd.f32 %v26023_v10, %v4338_v22  ;;  %v20819_v47 = vpop.f32.mrb[18].mxu0 }
 0x584   :  { %v4420_v6 = vadd.f32 %v4419_v50, %v4418_v34  ;;  %v4341_v12 = vadd.f32 %v20819_v47, %v26018_v19  ;;  %v4207_v17 = vpop.f32.mrb[19].mxu0  ;;  %v4423_v40 = vsel %vm90_vm4, %v26112_v43, 0.0 }
 0x585   :  { %v4421_v1 = vsel %vm90_vm4, %v26115_v38, 0.0  ;;  %v4340_v21 = vadd.f32 %v26018_v19, %v4207_v17 }
 0x586   :  { %v4422_v45 = vadd.f32 %v4421_v1, %v4420_v6  ;;  %v26124_v37 = vadd.f32 %v26023_v10, %v4341_v12 }
 0x587   :  { %v26127_v4 = vadd.f32 %v26023_v10, %v4340_v21  ;;  %v20822_v36 = vpop.f32.mrb[20].mxu0 }
 0x588   :  { %v4424_v3 = vadd.f32 %v4423_v40, %v4422_v45  ;;  %v4343_v44 = vadd.f32 %v20822_v36, %v26018_v19  ;;  %v4217_v31 = vpop.f32.mrb[21].mxu0  ;;  %v4427_v11 = vsel %vm90_vm4, %v26124_v37, 0.0 }
 0x589   :  { %v4425_v24 = vsel %vm90_vm4, %v26127_v4, 0.0  ;;  %v4342_v18 = vadd.f32 %v26018_v19, %v4217_v31 }
 0x58a   :  { %v4426_v48 = vadd.f32 %v4425_v24, %v4424_v3  ;;  %v26136_v27 = vadd.f32 %v26023_v10, %v4343_v44 }
 0x58b   :  { %v26139_v15 = vadd.f32 %v26023_v10, %v4342_v18  ;;  %v20825_v57 = vpop.f32.mrb[22].mxu0 }
 0x58c   :  { %v4428_v53 = vadd.f32 %v4427_v11, %v4426_v48  ;;  %v4345_v61 = vadd.f32 %v20825_v57, %v26018_v19  ;;  %v4227_v8 = vpop.f32.mrb[23].mxu0  ;;  %v4431_v35 = vsel %vm90_vm4, %v26136_v27, 0.0 }
 0x58d   :  { %v4429_v49 = vsel %vm90_vm4, %v26139_v15, 0.0  ;;  %v4344_v5 = vadd.f32 %v26018_v19, %v4227_v8 }
 0x58e   :  { %v4430_v33 = vadd.f32 %v4429_v49, %v4428_v53  ;;  %v26148_v26 = vadd.f32 %v26023_v10, %v4345_v61 }
 0x58f   :  { %v26151_v0 = vadd.f32 %v26023_v10, %v4344_v5  ;;  %v20828_v51 = vpop.f32.mrb[24].mxu0 }
 0x590   :  { %v4432_v29 = vadd.f32 %v4431_v35, %v4430_v33  ;;  %v4347_v23 = vadd.f32 %v20828_v51, %v26018_v19  ;;  %v4237_v28 = vpop.f32.mrb[25].mxu0  ;;  %v4435_v9 = vsel %vm90_vm4, %v26148_v26, 0.0 }
 0x591   :  { %v4433_v14 = vsel %vm90_vm4, %v26151_v0, 0.0  ;;  %v4346_v52 = vadd.f32 %v26018_v19, %v4237_v28 }
 0x592   :  { %v4434_v13 = vadd.f32 %v4433_v14, %v4432_v29  ;;  %v26160_v20 = vadd.f32 %v26023_v10, %v4347_v23 }
 0x593   :  { %v26163_v30 = vadd.f32 %v26023_v10, %v4346_v52  ;;  %v20831_v22 = vpop.f32.mrb[26].mxu0 }
 0x594   :  { %v4436_v34 = vadd.f32 %v4435_v9, %v4434_v13  ;;  %v4349_v50 = vadd.f32 %v20831_v22, %v26018_v19  ;;  %v4247_v47 = vpop.f32.mrb[27].mxu0  ;;  %v4439_v1 = vsel %vm90_vm4, %v26160_v20, 0.0 }
 0x595   :  { %v4437_v6 = vsel %vm90_vm4, %v26163_v30, 0.0  ;;  %v4348_v12 = vadd.f32 %v26018_v19, %v4247_v47 }
 0x596   :  { %v4438_v17 = vadd.f32 %v4437_v6, %v4436_v34  ;;  %v26172_v21 = vadd.f32 %v26023_v10, %v4349_v50 }
 0x597   :  { %v26175_v45 = vadd.f32 %v26023_v10, %v4348_v12  ;;  %v20834_v40 = vpop.f32.mrb[28].mxu0 }
 0x598   :  { %v4440_v36 = vadd.f32 %v4439_v1, %v4438_v17  ;;  %v4351_v3 = vadd.f32 %v20834_v40, %v26018_v19  ;;  %v4257_v44 = vpop.f32.mrb[29].mxu0  ;;  %v4443_v48 = vsel %vm90_vm4, %v26172_v21, 0.0 }
 0x599   :  { %v4441_v31 = vsel %vm90_vm4, %v26175_v45, 0.0  ;;  %v4350_v24 = vadd.f32 %v26018_v19, %v4257_v44 }
 0x59a   :  { %v4442_v18 = vadd.f32 %v4441_v31, %v4440_v36  ;;  %v26184_v11 = vadd.f32 %v26023_v10, %v4351_v3 }
 0x59b   :  { %v26187_v57 = vadd.f32 %v26023_v10, %v4350_v24  ;;  %v20837_v53 = vpop.f32.mrb[30].mxu0 }
 0x59c   :  { %v4444_v61 = vadd.f32 %v4443_v48, %v4442_v18  ;;  %v4353_v8 = vadd.f32 %v20837_v53, %v26018_v19  ;;  %v4267_v49 = vpop.f32.mrb[31].mxu0  ;;  %v4447_v51 = vsel %vm90_vm4, %v26184_v11, 0.0  ;;  %v31790_v53 = vld [vmem:[#allocation4_spill] sm:$0xff] }
 0x59d   :  { %v4445_v5 = vsel %vm90_vm4, %v26187_v57, 0.0  ;;  %v4352_v33 = vadd.f32 %v26018_v19, %v4267_v49 }
 0x59e   :  { %v4446_v35 = vadd.f32 %v4445_v5, %v4444_v61  ;;  %v26196_v29 = vadd.f32 %v26023_v10, %v4353_v8 }
 0x59f   :  { %v26199_v23 = vadd.f32 %v26023_v10, %v4352_v33  ;;  %v20840_v28 = vpop.f32.mrb[32].mxu0 }
 0x5a0   :  { %v4448_v14 = vadd.f32 %v4447_v51, %v4446_v35  ;;  %v4355_v52 = vadd.f32 %v20840_v28, %v26018_v19  ;;  %v4277_v13 = vpop.f32.mrb[33].mxu0  ;;  %v4451_v50 = vsel %vm90_vm4, %v26196_v29, 0.0 }
 0x5a1   :  { %v4449_v9 = vsel %vm90_vm4, %v26199_v23, 0.0  ;;  %v4354_v22 = vadd.f32 %v26018_v19, %v4277_v13 }
 0x5a2   :  { %v4450_v34 = vadd.f32 %v4449_v9, %v4448_v14  ;;  %v26208_v47 = vadd.f32 %v26023_v10, %v4355_v52 }
 0x5a3   :  { %v26211_v6 = vadd.f32 %v26023_v10, %v4354_v22 }
 0x5a4   :  { %v4452_v12 = vadd.f32 %v4451_v50, %v4450_v34  ;;  %v4455_v40 = vsel %vm90_vm4, %v26208_v47, 0.0 }
 0x5a5   :  { %v4453_v17 = vsel %vm90_vm4, %v26211_v6, 0.0 }
 0x5a6   :  { %v4454_v1 = vadd.f32 %v4453_v17, %v4452_v12 }
 0x5a8   :  { %v4456_v36 = vadd.f32 %v4455_v40, %v4454_v1 }
 0x5aa   :  { %v4457_v19 = vrot.slane %v4456_v36, 4 }
 0x5ac   :  { %v4458_v3 = vadd.f32 %v4457_v19, %v4456_v36 }
 0x5ae   :  { %v4459_v44 = vrot.slane %v4458_v3, 2 }
 0x5b0   :  { %v4460_v31 = vadd.f32 %v4459_v44, %v4458_v3 }
 0x5b2   :  { %v4461_v24 = vrot.slane %v4460_v31, 1 }
 0x5b4   :  { %v4462_v18 = vadd.f32 %v4461_v24, %v4460_v31 }
 0x5b6   :  { %20846 = vmatmul.mubr.msk.f32.vlgmr.msra.gmra.mrb[34].mxu0 %vm90_vm4, %v4462_v18 }
 0x689   :  { %v4532_v48 = vpop.f32.mrb[34].mxu0 }
 0x68a   :  { %v20847_v10 = vpop.f32.mrb[35].mxu0  ;;  %v26219_v61 = vrot.slane %v4532_v48, %v31790_v53 }
 0x68c   :  { %v26223_v8 = vsub.f32 %v26031_v7, %v26219_v61  ;;  %v26227_v49 = vsub.f32 %v26028_v56, %v26219_v61  ;;  %v26231_v5 = vsub.f32 %v26043_v42, %v26219_v61  ;;  %v26235_v33 = vsub.f32 %v26040_v58, %v26219_v61 }
 0x68d   :  { %v26243_v7 = vsub.f32 %v26055_v2, %v26219_v61  ;;  %v26249_v42 = vsub.f32 %v26052_v25, %v26219_v61  ;;  %v26257_v13 = vsub.f32 %v26067_v41, %v26219_v61  ;;  %v26264_v25 = vsub.f32 %v26064_v54, %v26219_v61 }
 0x68e   :  { %v4572_v35 = vmul.f32 %v26223_v8, %v26223_v8  ;;  %v4573_v51 = vmul.f32 %v26227_v49, %v26227_v49  ;;  %v4574_v56 = vmul.f32 %v26231_v5, %v26231_v5  ;;  %v4575_v58 = vmul.f32 %v26235_v33, %v26235_v33 }
 0x68f   :  { %v4576_v2 = vmul.f32 %v26243_v7, %v26243_v7  ;;  %v4577_v34 = vmul.f32 %v26249_v42, %v26249_v42  ;;  %v26271_v41 = vsub.f32 %v26079_v46, %v26219_v61  ;;  %v4578_v17 = vmul.f32 %v26257_v13, %v26257_v13 }
 0x690   :  { %v4604_v28 = vsel %vm90_vm4, %v4572_v35, 0.0  ;;  %v4605_v14 = vsel %vm90_vm4, %v4573_v51, 0.0  ;;  %v4607_v9 = vsel %vm90_vm4, %v4574_v56, 0.0  ;;  %v4609_v50 = vsel %vm90_vm4, %v4575_v58, 0.0 }
 0x691   :  { %v4606_v52 = vadd.f32 %v4605_v14, %v4604_v28  ;;  %v4611_v1 = vsel %vm90_vm4, %v4576_v2, 0.0  ;;  %v26278_v54 = vsub.f32 %v26076_v62, %v26219_v61  ;;  %v4579_v36 = vmul.f32 %v26264_v25, %v26264_v25 }
 0x692   :  { %v4613_v19 = vsel %vm90_vm4, %v4577_v34, 0.0  ;;  %v26285_v46 = vsub.f32 %v26091_v63, %v26219_v61  ;;  %v4580_v44 = vmul.f32 %v26271_v41, %v26271_v41  ;;  %v4615_v31 = vsel %vm90_vm4, %v4578_v17, 0.0 }
 0x693   :  { %v4608_v22 = vadd.f32 %v4607_v9, %v4606_v52  ;;  %v26292_v62 = vsub.f32 %v26088_v59, %v26219_v61  ;;  %v4581_v18 = vmul.f32 %v26278_v54, %v26278_v54  ;;  %v4617_v48 = vsel %vm90_vm4, %v4579_v36, 0.0 }
 0x694   :  { %v26299_v63 = vsub.f32 %v26103_v32, %v26219_v61  ;;  %v4582_v35 = vmul.f32 %v26285_v46, %v26285_v46  ;;  %v4619_v51 = vsel %vm90_vm4, %v4580_v44, 0.0  ;;  %v26306_v59 = vsub.f32 %v26100_v55, %v26219_v61 }
 0x695   :  { %v4610_v12 = vadd.f32 %v4609_v50, %v4608_v22  ;;  %v4583_v58 = vmul.f32 %v26292_v62, %v26292_v62  ;;  %v4621_v28 = vsel %vm90_vm4, %v4581_v18, 0.0  ;;  %v26313_v32 = vsub.f32 %v26115_v38, %v26219_v61 }
 0x696   :  { %v4584_v52 = vmul.f32 %v26299_v63, %v26299_v63  ;;  %v4623_v2 = vsel %vm90_vm4, %v4582_v35, 0.0  ;;  %v26320_v55 = vsub.f32 %v26112_v43, %v26219_v61  ;;  %v4585_v22 = vmul.f32 %v26306_v59, %v26306_v59 }
 0x697   :  { %v4612_v40 = vadd.f32 %v4611_v1, %v4610_v12  ;;  %v4625_v34 = vsel %vm90_vm4, %v4583_v58, 0.0  ;;  %v26327_v38 = vsub.f32 %v26127_v4, %v26219_v61  ;;  %v4586_v12 = vmul.f32 %v26313_v32, %v26313_v32 }
 0x698   :  { %v4627_v17 = vsel %vm90_vm4, %v4584_v52, 0.0  ;;  %v26334_v43 = vsub.f32 %v26124_v37, %v26219_v61  ;;  %v4629_v36 = vsel %vm90_vm4, %v4585_v22, 0.0  ;;  %v26341_v4 = vsub.f32 %v26139_v15, %v26219_v61 }
 0x699   :  { %v4614_v3 = vadd.f32 %v4613_v19, %v4612_v40  ;;  %v4587_v40 = vmul.f32 %v26320_v55, %v26320_v55  ;;  %v4631_v44 = vsel %vm90_vm4, %v4586_v12, 0.0  ;;  %v26348_v37 = vsub.f32 %v26136_v27, %v26219_v61 }
 0x69a   :  { %v26355_v15 = vsub.f32 %v26151_v0, %v26219_v61  ;;  %v26362_v27 = vsub.f32 %v26148_v26, %v26219_v61  ;;  %v26369_v0 = vsub.f32 %v26163_v30, %v26219_v61  ;;  %v26376_v26 = vsub.f32 %v26160_v20, %v26219_v61 }
 0x69b   :  { %v4616_v24 = vadd.f32 %v4615_v31, %v4614_v3  ;;  %v4588_v3 = vmul.f32 %v26327_v38, %v26327_v38  ;;  %v4633_v18 = vsel %vm90_vm4, %v4587_v40, 0.0  ;;  %v26383_v30 = vsub.f32 %v26175_v45, %v26219_v61 }
 0x69c   :  { %v26390_v20 = vsub.f32 %v26172_v21, %v26219_v61  ;;  %v26397_v45 = vsub.f32 %v26187_v57, %v26219_v61  ;;  %v26404_v21 = vsub.f32 %v26184_v11, %v26219_v61  ;;  %v26411_v57 = vsub.f32 %v26199_v23, %v26219_v61 }
 0x69d   :  { %v4618_v10 = vadd.f32 %v4617_v48, %v4616_v24  ;;  %v4589_v24 = vmul.f32 %v26334_v43, %v26334_v43  ;;  %v4635_v35 = vsel %vm90_vm4, %v4588_v3, 0.0  ;;  %v26418_v11 = vsub.f32 %v26196_v29, %v26219_v61 }
 0x69e   :  { %v26425_v23 = vsub.f32 %v26211_v6, %v26219_v61  ;;  %v26432_v29 = vsub.f32 %v26208_v47, %v26219_v61 }
 0x69f   :  { %v4620_v56 = vadd.f32 %v4619_v51, %v4618_v10  ;;  %v4590_v10 = vmul.f32 %v26341_v4, %v26341_v4  ;;  %v4637_v58 = vsel %vm90_vm4, %v4589_v24, 0.0 }
 0x6a0   :  { %v4602_v6 = vmul.f32 %v26425_v23, %v26425_v23 }
 0x6a1   :  { %v4622_v14 = vadd.f32 %v4621_v28, %v4620_v56  ;;  %v4591_v56 = vmul.f32 %v26348_v37, %v26348_v37  ;;  %v4639_v52 = vsel %vm90_vm4, %v4590_v10, 0.0 }
 0x6a2   :  { %v4663_v47 = vsel %vm90_vm4, %v4602_v6, 0.0  ;;  %v5147_v6 = vld [vmem:[%s31487_s10] sm:$0xff] }
 0x6a3   :  { %v4624_v9 = vadd.f32 %v4623_v2, %v4622_v14  ;;  %v4592_v14 = vmul.f32 %v26355_v15, %v26355_v15  ;;  %v4641_v22 = vsel %vm90_vm4, %v4591_v56, 0.0 }
 0x6a5   :  { %v4626_v50 = vadd.f32 %v4625_v34, %v4624_v9  ;;  %v4593_v9 = vmul.f32 %v26362_v27, %v26362_v27  ;;  %v4643_v12 = vsel %vm90_vm4, %v4592_v14, 0.0 }
 0x6a7   :  { %v4628_v1 = vadd.f32 %v4627_v17, %v4626_v50  ;;  %v4594_v50 = vmul.f32 %v26369_v0, %v26369_v0  ;;  %v4645_v40 = vsel %vm90_vm4, %v4593_v9, 0.0 }
 0x6a9   :  { %v4630_v19 = vadd.f32 %v4629_v36, %v4628_v1  ;;  %v4595_v1 = vmul.f32 %v26376_v26, %v26376_v26  ;;  %v4647_v3 = vsel %vm90_vm4, %v4594_v50, 0.0 }
 0x6ab   :  { %v4632_v31 = vadd.f32 %v4631_v44, %v4630_v19  ;;  %v4596_v19 = vmul.f32 %v26383_v30, %v26383_v30  ;;  %v4649_v24 = vsel %vm90_vm4, %v4595_v1, 0.0 }
 0x6ad   :  { %v4634_v48 = vadd.f32 %v4633_v18, %v4632_v31  ;;  %v4597_v31 = vmul.f32 %v26390_v20, %v26390_v20  ;;  %v4651_v10 = vsel %vm90_vm4, %v4596_v19, 0.0 }
 0x6af   :  { %v4636_v51 = vadd.f32 %v4635_v35, %v4634_v48  ;;  %v4598_v48 = vmul.f32 %v26397_v45, %v26397_v45  ;;  %v4653_v56 = vsel %vm90_vm4, %v4597_v31, 0.0 }
 0x6b1   :  { %v4638_v28 = vadd.f32 %v4637_v58, %v4636_v51  ;;  %v4599_v51 = vmul.f32 %v26404_v21, %v26404_v21  ;;  %v4655_v14 = vsel %vm90_vm4, %v4598_v48, 0.0  ;;  %v18388_v48 = vld [vmem:[%s31480_s0 + $0x100] sm:$0xff] }
 0x6b3   :  { %v4640_v2 = vadd.f32 %v4639_v52, %v4638_v28  ;;  %v4600_v28 = vmul.f32 %v26411_v57, %v26411_v57  ;;  %v4657_v9 = vsel %vm90_vm4, %v4599_v51, 0.0 }
 0x6b5   :  { %v4642_v34 = vadd.f32 %v4641_v22, %v4640_v2  ;;  %v4601_v2 = vmul.f32 %v26418_v11, %v26418_v11 }
 0x6b7   :  { %v4644_v17 = vadd.f32 %v4643_v12, %v4642_v34  ;;  %v4659_v34 = vsel %vm90_vm4, %v4600_v28, 0.0  ;;  %v4603_v12 = vmul.f32 %v26432_v29, %v26432_v29 }
 0x6b9   :  { %v4646_v36 = vadd.f32 %v4645_v40, %v4644_v17  ;;  %v4661_v17 = vsel %vm90_vm4, %v4601_v2, 0.0  ;;  %v4665_v40 = vsel %vm90_vm4, %v4603_v12, 0.0  ;;  %v18391_v2 = vld [vmem:[%s31480_s0 + $0x118] sm:$0xff] }
 0x6bb   :  { %v4648_v44 = vadd.f32 %v4647_v3, %v4646_v36 }
 0x6bd   :  { %v4650_v18 = vadd.f32 %v4649_v24, %v4648_v44 }
 0x6bf   :  { %v4652_v35 = vadd.f32 %v4651_v10, %v4650_v18  ;;  %v18389_v10 = vld [vmem:[%s31480_s0 + $0x108] sm:$0xff] }
 0x6c0   :  { %v9006_v51 = vsel %vm47_vm0, %v18389_v10, 0.0 }
 0x6c1   :  { %v4654_v58 = vadd.f32 %v4653_v56, %v4652_v35  ;;  %v9005_v35 = vsel %vm47_vm0, %v18388_v48, 0.0  ;;  %v18390_v56 = vld [vmem:[%s31480_s0 + $0x110] sm:$0xff] }
 0x6c2   :  { %v9008_v28 = vsel %vm47_vm0, %v18390_v56, 0.0  ;;  %v18394_v48 = vld [vmem:[%s31480_s0 + $0x130] sm:$0xff]  ;;  %v18395_v56 = vld [vmem:[%s31480_s0 + $0x138] sm:$0xff] }
 0x6c3   :  { %v4656_v52 = vadd.f32 %v4655_v14, %v4654_v58  ;;  %v9007_v58 = vadd.f32 %v9006_v51, %v9005_v35  ;;  %v18050_v14 = vld [vmem:[%s31487_s10 + $0x10] sm:$0xff]  ;;  %v9016_v35 = vsel %vm47_vm0, %v18394_v48, 0.0  ;;  %v24188_v51 = vld [vmem:[%s31479_s3] sm:$0xff] }
 0x6c5   :  { %v4658_v22 = vadd.f32 %v4657_v9, %v4656_v52  ;;  %v18051_v52 = vld [vmem:[%s31487_s10 + $0x18] sm:$0xff]  ;;  %v9009_v9 = vadd.f32 %v9008_v28, %v9007_v58  ;;  %v9018_v28 = vsel %vm47_vm0, %v18395_v56, 0.0 }
 0x6c7   :  { %v4660_v50 = vadd.f32 %v4659_v34, %v4658_v22  ;;  %v22371_v22 = vpack.c.bf16 %v18051_v52, %v18050_v14  ;;  %v5148_v34 = vld [vmem:[%s31487_s10 + $0x8] sm:$0xff]  ;;  %v18396_v52 = vld [vmem:[%s31480_s0 + $0x140] sm:$0xff] }
 0x6c8   :  { %v22375_v12 = vpack.c.bf16 %v5148_v34, %v5147_v6 }
 0x6c9   :  { %v4662_v1 = vadd.f32 %v4661_v17, %v4660_v50  ;;  %v9010_v50 = vsel %vm47_vm0, %v18391_v2, 0.0  ;;  %v18392_v17 = vld [vmem:[%s31480_s0 + $0x120] sm:$0xff]  ;;  %22372 = vmatprep.subr.bf16.mxu0 %v22371_v22 }
 0x6ca   :  { %22374 = vmatpush3.bf16.msra.mxu0 %v22371_v22  ;;  %22376 = vmatprep.subr.bf16.mxu1 %v22375_v12  ;;  %v18397_v22 = vld [vmem:[%s31480_s0 + $0x148] sm:$0xff] }
 0x6cb   :  { %v4664_v61 = vadd.f32 %v4663_v47, %v4662_v1  ;;  %v9011_v1 = vadd.f32 %v9010_v50, %v9009_v9  ;;  %v5149_v47 = vld [vmem:[#allocation3 + $0x8] sm:$0xff]  ;;  %21373 = vmatprep.subr.mxu0 %v31782_v60  ;;  %v9020_v9 = vsel %vm47_vm0, %v18396_v52, 0.0  ;;  %v9022_v34 = vsel %vm47_vm0, %v18397_v22, 0.0  ;;  %v18398_v50 = vld [vmem:[%s31480_s0 + $0x150] sm:$0xff] }
 0x6cc   :  { %20859 = vmatprep.mubr.msk.f32.mxu0 %vm90_vm4, %v5149_v47 }
 0x6cd   :  { %v4666_v36 = vadd.f32 %v4665_v40, %v4664_v61  ;;  %v5115_v61 = vld [vmem:[#allocation3 + $0x7] sm:$0xff]  ;;  %v9012_v40 = vsel %vm47_vm0, %v18392_v17, 0.0  ;;  %v9024_v17 = vsel %vm47_vm0, %v18398_v50, 0.0 }
 0x6cf   :  { %v4667_v19 = vrot.slane %v4666_v36, 4 }
 0x6d1   :  { %v4668_v3 = vadd.f32 %v4667_v19, %v4666_v36  ;;  %v18393_v36 = vld [vmem:[%s31480_s0 + $0x128] sm:$0xff]  ;;  %v9013_v19 = vadd.f32 %v9012_v40, %v9011_v1  ;;  %v18399_v1 = vld [vmem:[%s31480_s0 + $0x158] sm:$0xff] }
 0x6d2   :  { %v9026_v40 = vsel %vm47_vm0, %v18399_v1, 0.0 }
 0x6d3   :  { %v4669_v44 = vrot.slane %v4668_v3, 2 }
 0x6d5   :  { %v4670_v31 = vadd.f32 %v4669_v44, %v4668_v3  ;;  %v5116_v44 = vld [vmem:[#allocation3 + $0xf] sm:$0xff] }
 0x6d7   :  { %v4671_v24 = vrot.slane %v4670_v31, 1 }
 0x6d9   :  { %v4672_v18 = vadd.f32 %v4671_v24, %v4670_v31  ;;  %v9014_v31 = vsel %vm47_vm0, %v18393_v36, 0.0  ;;  %v18400_v36 = vld [vmem:[%s31480_s0 + $0x160] sm:$0xff] }
 0x6da   :  { %v9015_v10 = vadd.f32 %v9014_v31, %v9013_v19 }
 0x6db   :  { %20853 = vmatmul.mubr.msk.f32.vlgmr.msra.gmra.mrb[2].mxu1 %vm90_vm4, %v4672_v18  ;;  %v5150_v18 = vld [vmem:[#allocation3 + $0x10] sm:$0xff] }
 0x6dc   :  { %22378 = vmatpush3.bf16.msra.mxu1 %v22375_v12  ;;  %20911 = vmatprep.mubr.msk.f32.mxu1 %vm90_vm4, %v5115_v61  ;;  %v9017_v58 = vadd.f32 %v9016_v35, %v9015_v10 }
 0x6dd   :  { %20860 = vmatmul.mubr.msk.f32.vlgmr.msra.gmra.mrb[36].mxu0 %vm90_vm4, %v5150_v18 }
 0x6de   :  { %21374 = vmatpush3.msra.mxu0 %v24188_v51  ;;  %v9019_v2 = vadd.f32 %v9018_v28, %v9017_v58 }
 0x6df   :  { %20912 = vmatmul.mubr.msk.f32.vlgmr.msra.gmra.mrb[4].mxu1 %vm90_vm4, %v5116_v44  ;;  %21378 = vmatprep.subr.mxu0 %v31782_v60  ;;  %v9028_v44 = vsel %vm47_vm0, %v18400_v36, 0.0 }
 0x6e0   :  { %v9021_v6 = vadd.f32 %v9020_v9, %v9019_v2 }
 0x6e2   :  { %v9023_v12 = vadd.f32 %v9022_v34, %v9021_v6 }
 0x6e4   :  { %v9025_v47 = vadd.f32 %v9024_v17, %v9023_v12 }
 0x7ae   :  { %v4742_v3 = vpop.f32.mrb[2].mxu1 }
 0x7af   :  { %v20854_v24 = vpop.f32.mrb[3].mxu1  ;;  %v4743_v14 = vadd.f32 1e-06, %v4742_v3  ;;  %v9027_v3 = vadd.f32 %v9026_v40, %v9025_v47 }
 0x7b1   :  { %23798 = vrsqrt.f32 %v4743_v14  ;;  %v26588_v18 = vadd.f32 %v9028_v44, %v9027_v3 }
 0x7bb   :  { %v23799_v61 = vpop.eup %23798 }
 0x7bc   :  { %v4750_v19 = vrot.slane %v23799_v61, %v31790_v53 }
 0x7be   :  { %v4751_v31 = vmul.f32 %v4750_v19, %v26223_v8  ;;  %v4752_v24 = vmul.f32 %v4750_v19, %v26227_v49  ;;  %v4753_v48 = vmul.f32 %v4750_v19, %v26231_v5  ;;  %v4754_v10 = vmul.f32 %v4750_v19, %v26235_v33 }
 0x7bf   :  { %v4755_v35 = vmul.f32 %v4750_v19, %v26243_v7  ;;  %v4756_v51 = vmul.f32 %v4750_v19, %v26249_v42  ;;  %v4757_v56 = vmul.f32 %v4750_v19, %v26257_v13  ;;  %v4758_v58 = vmul.f32 %v4750_v19, %v26264_v25 }
 0x7c0   :  { %v4759_v28 = vmul.f32 %v4750_v19, %v26271_v41  ;;  %v4760_v8 = vmul.f32 %v4750_v19, %v26278_v54  ;;  %v4761_v49 = vmul.f32 %v4750_v19, %v26285_v46  ;;  %v4762_v14 = vmul.f32 %v4750_v19, %v26292_v62  ;;  %v18048_v41 = vld [vmem:[%s31488_s7] ss:$0 sm:$0xff] }
 0x7c1   :  { %v4763_v5 = vmul.f32 %v4750_v19, %v26299_v63  ;;  %v4764_v33 = vmul.f32 %v4750_v19, %v26306_v59  ;;  %v4765_v7 = vmul.f32 %v4750_v19, %v26313_v32  ;;  %v4766_v42 = vmul.f32 %v4750_v19, %v26320_v55 }
 0x7c2   :  { %v4767_v13 = vmul.f32 %v4750_v19, %v26327_v38  ;;  %v4768_v25 = vmul.f32 %v4750_v19, %v26334_v43  ;;  %v4769_v54 = vmul.f32 %v4750_v19, %v26341_v4  ;;  %v4770_v46 = vmul.f32 %v4750_v19, %v26348_v37 }
 0x7c3   :  { %v4771_v62 = vmul.f32 %v4750_v19, %v26355_v15  ;;  %v4772_v63 = vmul.f32 %v4750_v19, %v26362_v27  ;;  %v4773_v59 = vmul.f32 %v4750_v19, %v26369_v0  ;;  %v4774_v32 = vmul.f32 %v4750_v19, %v26376_v26 }
 0x7c4   :  { %v4775_v55 = vmul.f32 %v4750_v19, %v26383_v30  ;;  %v4776_v38 = vmul.f32 %v4750_v19, %v26390_v20  ;;  %v4777_v43 = vmul.f32 %v4750_v19, %v26397_v45  ;;  %v4778_v52 = vmul.f32 %v4750_v19, %v26404_v21  ;;  %v26626_v21 = vld [vmem:[%s31489_s8] ss:$0 sm:$0xff] }
 0x7c5   :  { %v4779_v4 = vmul.f32 %v4750_v19, %v26411_v57  ;;  %v4780_v37 = vmul.f32 %v4750_v19, %v26418_v11  ;;  %v4781_v15 = vmul.f32 %v4750_v19, %v26425_v23  ;;  %v4782_v27 = vmul.f32 %v4750_v19, %v26432_v29 }
 0x7c6   :  { %v4789_v2 = vmul.f32 %v18048_v41, %v4751_v31  ;;  %v4790_v0 = vmul.f32 %v18048_v41, %v4752_v24  ;;  %v4791_v9 = vmul.f32 %v18048_v41, %v4753_v48  ;;  %v4792_v26 = vmul.f32 %v18048_v41, %v4754_v10 }
 0x7c7   :  { %v4793_v22 = vmul.f32 %v18048_v41, %v4755_v35  ;;  %v4794_v30 = vmul.f32 %v18048_v41, %v4756_v51  ;;  %v4795_v6 = vmul.f32 %v18048_v41, %v4757_v56  ;;  %v4796_v20 = vmul.f32 %v18048_v41, %v4758_v58 }
 0x7c8   :  { %v4797_v34 = vmul.f32 %v18048_v41, %v4759_v28  ;;  %v4798_v45 = vmul.f32 %v18048_v41, %v4760_v8  ;;  %v4799_v57 = vmul.f32 %v18048_v41, %v4761_v49  ;;  %v4800_v11 = vmul.f32 %v18048_v41, %v4762_v14 }
 0x7c9   :  { %v4801_v23 = vmul.f32 %v18048_v41, %v4763_v5  ;;  %v4802_v50 = vmul.f32 %v18048_v41, %v4764_v33  ;;  %v4803_v29 = vmul.f32 %v18048_v41, %v4765_v7  ;;  %v4804_v12 = vmul.f32 %v18048_v41, %v4766_v42 }
 0x7ca   :  { %v4805_v17 = vmul.f32 %v18048_v41, %v4767_v13  ;;  %v4806_v1 = vmul.f32 %v18048_v41, %v4768_v25  ;;  %v4807_v47 = vmul.f32 %v18048_v41, %v4769_v54  ;;  %v4808_v61 = vmul.f32 %v18048_v41, %v4770_v46 }
 0x7cb   :  { %v4809_v40 = vmul.f32 %v18048_v41, %v4771_v62  ;;  %v4810_v36 = vmul.f32 %v18048_v41, %v4772_v63  ;;  %v26628_v19 = vmul.f32 %v18048_v41, %v4773_v59  ;;  %v26631_v3 = vadd.f32 %v26626_v21, %v4789_v2  ;;  %v18117_v63 = vld [vmem:[%s31487_s10 + $0x28] sm:$0xff] }
 0x7cc   :  { %v26634_v44 = vadd.f32 %v26626_v21, %v4790_v0  ;;  %v26637_v31 = vadd.f32 %v26626_v21, %v4791_v9  ;;  %v26639_v24 = vmul.f32 %v18048_v41, %v4774_v32  ;;  %v26641_v48 = vmul.f32 %v18048_v41, %v4775_v55 }
 0x7cd   :  { %v26643_v10 = vmul.f32 %v18048_v41, %v4776_v38  ;;  %v26646_v35 = vadd.f32 %v26626_v21, %v4792_v26  ;;  %v26648_v51 = vmul.f32 %v18048_v41, %v4777_v43  ;;  %v26650_v56 = vmul.f32 %v18048_v41, %v4778_v52 }
 0x7ce   :  { %v26652_v58 = vmul.f32 %v18048_v41, %v4779_v4  ;;  %v26655_v28 = vadd.f32 %v26626_v21, %v4793_v22  ;;  %v26657_v8 = vmul.f32 %v18048_v41, %v4780_v37  ;;  %v26659_v49 = vmul.f32 %v18048_v41, %v4781_v15 }
 0x7cf   :  { %v26662_v14 = vadd.f32 %v26626_v21, %v4794_v30  ;;  %v26665_v5 = vadd.f32 %v26626_v21, %v4795_v6  ;;  %v26667_v33 = vmul.f32 %v18048_v41, %v4782_v27  ;;  %v4859_v7 = vsub.f32 0.0, %v26631_v3  ;;  %v18116_v41 = vld [vmem:[%s31487_s10 + $0x20] sm:$0xff] }
 0x7d0   :  { %v4860_v42 = vsub.f32 0.0, %v26634_v44  ;;  %v4861_v13 = vsub.f32 0.0, %v26637_v31  ;;  %v26673_v25 = vadd.f32 %v26626_v21, %v4796_v20  ;;  %v26676_v54 = vadd.f32 %v26626_v21, %v4797_v34 }
 0x7d1   :  { %v26679_v46 = vadd.f32 %v26626_v21, %v4798_v45  ;;  %v4862_v62 = vsub.f32 0.0, %v26646_v35  ;;  %v26689_v59 = vadd.f32 %v26626_v21, %v4799_v57  ;;  %v26692_v32 = vadd.f32 %v26626_v21, %v4800_v11 }
 0x7d2   :  { %v26695_v55 = vadd.f32 %v26626_v21, %v4801_v23  ;;  %v4863_v38 = vsub.f32 0.0, %v26655_v28  ;;  %v26699_v43 = vadd.f32 %v26626_v21, %v4802_v50  ;;  %v26702_v52 = vadd.f32 %v26626_v21, %v4803_v29 }
 0x7d3   :  { %v4864_v4 = vsub.f32 0.0, %v26662_v14  ;;  %v4865_v37 = vsub.f32 0.0, %v26665_v5  ;;  %v4891_v15 = vmul.f32 1.442695, %v4859_v7  ;;  %v4893_v27 = vmul.f32 1.442695, %v4860_v42 }
 0x7d4   :  { %v4895_v2 = vmul.f32 1.442695, %v4861_v13  ;;  %v22379_v0 = vpack.c.bf16 %v18117_v63, %v18116_v41  ;;  %v26707_v9 = vadd.f32 %v26626_v21, %v4804_v12  ;;  %v26710_v26 = vadd.f32 %v26626_v21, %v4805_v17 }
 0x7d5   :  { %v4866_v22 = vsub.f32 0.0, %v26673_v25  ;;  %v4897_v30 = vmul.f32 1.442695, %v4862_v62  ;;  %v26714_v6 = vadd.f32 %v26626_v21, %v4806_v1  ;;  %v4867_v20 = vsub.f32 0.0, %v26676_v54 }
 0x7d6   :  { %23800 = vpow2.f32 %v4891_v15  ;;  %v4899_v34 = vmul.f32 1.442695, %v4863_v38  ;;  %22380 = vmatprep.subr.bf16.mxu1 %v22379_v0  ;;  %v26718_v45 = vadd.f32 %v26626_v21, %v4807_v47  ;;  %v4868_v57 = vsub.f32 0.0, %v26679_v46  ;;  %v18401_v15 = vld [vmem:[%s31480_s0 + $0x168] sm:$0xff] }
 0x7d7   :  { %23802 = vpow2.f32 %v4893_v27  ;;  %v4901_v11 = vmul.f32 1.442695, %v4864_v4  ;;  %22382 = vmatpush3.bf16.msra.mxu1 %v22379_v0  ;;  %v26722_v23 = vadd.f32 %v26626_v21, %v4808_v61  ;;  %v4869_v50 = vsub.f32 0.0, %v26689_v59 }
 0x7d8   :  { %23804 = vpow2.f32 %v4895_v2  ;;  %v4903_v29 = vmul.f32 1.442695, %v4865_v37  ;;  %v26726_v12 = vadd.f32 %v26626_v21, %v4809_v40  ;;  %v4870_v17 = vsub.f32 0.0, %v26692_v32 }
 0x7d9   :  { %23806 = vpow2.f32 %v4897_v30  ;;  %v4905_v1 = vmul.f32 1.442695, %v4866_v22  ;;  %v26730_v47 = vadd.f32 %v26626_v21, %v4810_v36  ;;  %v4871_v7 = vsub.f32 0.0, %v26695_v55 }
 0x7da   :  { %23808 = vpow2.f32 %v4899_v34  ;;  %v4907_v42 = vmul.f32 1.442695, %v4867_v20  ;;  %v26735_v61 = vadd.f32 %v26626_v21, %v26628_v19  ;;  %v4872_v13 = vsub.f32 0.0, %v26699_v43 }
 0x7db   :  { %23810 = vpow2.f32 %v4901_v11  ;;  %v4909_v40 = vmul.f32 1.442695, %v4868_v57  ;;  %v26740_v62 = vadd.f32 %v26626_v21, %v26639_v24  ;;  %v4873_v41 = vsub.f32 0.0, %v26702_v52 }
 0x7dc   :  { %23812 = vpow2.f32 %v4903_v29  ;;  %v4911_v36 = vmul.f32 1.442695, %v4869_v50  ;;  %v26745_v63 = vadd.f32 %v26626_v21, %v26641_v48  ;;  %v4874_v38 = vsub.f32 0.0, %v26707_v9 }
 0x7dd   :  { %23814 = vpow2.f32 %v4905_v1  ;;  %v4913_v19 = vmul.f32 1.442695, %v4870_v17  ;;  %v26750_v4 = vadd.f32 %v26626_v21, %v26643_v10  ;;  %v4875_v37 = vsub.f32 0.0, %v26710_v26  ;;  %v18402_v17 = vld [vmem:[%s31480_s0 + $0x170] sm:$0xff] }
 0x7de   :  { %23816 = vpow2.f32 %v4907_v42  ;;  %v4915_v24 = vmul.f32 1.442695, %v4871_v7  ;;  %v26758_v48 = vadd.f32 %v26626_v21, %v26648_v51  ;;  %v4876_v27 = vsub.f32 0.0, %v26714_v6 }
 0x7df   :  { %23818 = vpow2.f32 %v4909_v40  ;;  %v4917_v2 = vmul.f32 1.442695, %v4872_v13  ;;  %v26765_v10 = vadd.f32 %v26626_v21, %v26650_v56  ;;  %v4877_v22 = vsub.f32 0.0, %v26718_v45 }
 0x7e0   :  { %v26761_v0 = vpop.eup %23800  ;;  %23820 = vpow2.f32 %v4911_v36  ;;  %v4919_v30 = vmul.f32 1.442695, %v4873_v41  ;;  %v4878_v34 = vsub.f32 0.0, %v26722_v23  ;;  %v4921_v51 = vmul.f32 1.442695, %v4874_v38 }
 0x7e1   :  { %31791 = vst [vmem:[#allocation8_spill] sm:$0xff] %v26765_v10  ;;  %v26768_v20 = vpop.eup %23802  ;;  %23822 = vpow2.f32 %v4913_v19  ;;  %v9030_v57 = vsel %vm47_vm0, %v18401_v15, 0.0  ;;  %v26776_v50 = vadd.f32 %v26626_v21, %v26652_v58  ;;  %v4879_v56 = vsub.f32 0.0, %v26726_v12 }
 0x7e2   :  { %v26772_v11 = vpop.eup %23804  ;;  %23824 = vpow2.f32 %v4915_v24  ;;  %v4923_v29 = vmul.f32 1.442695, %v4875_v37  ;;  %v26786_v7 = vadd.f32 %v26626_v21, %v26657_v8  ;;  %v4880_v42 = vsub.f32 0.0, %v26730_v47 }
 0x7e3   :  { %31792 = vst [vmem:[#allocation9_spill] sm:$0xff] %v26776_v50  ;;  %v26782_v1 = vpop.eup %23806  ;;  %23826 = vpow2.f32 %v4917_v2  ;;  %v4925_v13 = vmul.f32 1.442695, %v4876_v27  ;;  %v4881_v40 = vsub.f32 0.0, %v26735_v61  ;;  %v4927_v41 = vmul.f32 1.442695, %v4877_v22 }
 0x7e4   :  { %v26789_v58 = vpop.eup %23808  ;;  %23828 = vpow2.f32 %v4919_v30  ;;  %v9031_v36 = vadd.f32 %v9030_v57, %v26588_v18  ;;  %v4882_v19 = vsub.f32 0.0, %v26740_v62  ;;  %v4929_v37 = vmul.f32 1.442695, %v4878_v34  ;;  %v18403_v18 = vld [vmem:[%s31480_s0 + $0x178] sm:$0xff] }
 0x7e5   :  { %v26793_v38 = vpop.eup %23810  ;;  %23830 = vpow2.f32 %v4921_v51  ;;  %v9032_v8 = vsel %vm47_vm0, %v18402_v17, 0.0  ;;  %v26801_v15 = vadd.f32 %v26626_v21, %v26659_v49  ;;  %v4883_v27 = vsub.f32 0.0, %v26745_v63 }
 0x7e6   :  { %v26797_v24 = vpop.eup %23812  ;;  %23832 = vpow2.f32 %v4923_v29  ;;  %v4931_v2 = vmul.f32 1.442695, %v4879_v56  ;;  %v26811_v30 = vadd.f32 %v26626_v21, %v26667_v33  ;;  %v4884_v34 = vsub.f32 0.0, %v26750_v4 }
 0x7e7   :  { %31793 = vst [vmem:[#allocation10_spill] sm:$0xff] %v26801_v15  ;;  %v26807_v22 = vpop.eup %23814  ;;  %23834 = vpow2.f32 %v4925_v13  ;;  %v4933_v51 = vmul.f32 1.442695, %v4880_v42  ;;  %v4885_v57 = vsub.f32 0.0, %v26758_v48  ;;  %v4935_v56 = vmul.f32 1.442695, %v4881_v40 }
 0x7e8   :  { %31794 = vst [vmem:[#allocation11_spill] sm:$0xff] %v26811_v30  ;;  %v26814_v49 = vpop.eup %23816  ;;  %23836 = vpow2.f32 %v4927_v41  ;;  %v9033_v29 = vadd.f32 %v9032_v8, %v9031_v36  ;;  %v4886_v39 = vsub.f32 0.0, %v26765_v10  ;;  %v4937_v16 = vmul.f32 1.442695, %v4882_v19  ;;  %v18404_v41 = vld [vmem:[%s31480_s0 + $0x180] sm:$0xff] }
 0x7e9   :  { %v26817_v17 = vpop.eup %23818  ;;  %23838 = vpow2.f32 %v4929_v37  ;;  %v9034_v21 = vsel %vm47_vm0, %v18403_v18, 0.0  ;;  %v4887_v13 = vsub.f32 0.0, %v26776_v50  ;;  %v4939_v42 = vmul.f32 1.442695, %v4883_v27 }
 0x7ea   :  { %v26821_v33 = vpop.eup %23820  ;;  %23840 = vpow2.f32 %v4931_v2  ;;  %v4888_v36 = vsub.f32 0.0, %v26786_v7  ;;  %v4941_v8 = vmul.f32 1.442695, %v4884_v34  ;;  %v4889_v19 = vsub.f32 0.0, %v26801_v15  ;;  %v18405_v34 = vld [vmem:[%s31480_s0 + $0x188] sm:$0xff] }
 0x7eb   :  { %v26827_v40 = vpop.eup %23822  ;;  %23842 = vpow2.f32 %v4933_v51  ;;  %v4943_v18 = vmul.f32 1.442695, %v4885_v57  ;;  %v9035_v53 = vadd.f32 %v9034_v21, %v9033_v29  ;;  %v4890_v27 = vsub.f32 0.0, %v26811_v30 }
 0x7ec   :  { %v26830_v37 = vpop.eup %23824  ;;  %23844 = vpow2.f32 %v4935_v56  ;;  %v4945_v2 = vmul.f32 1.442695, %v4886_v39  ;;  %v9036_v50 = vsel %vm47_vm0, %v18404_v41, 0.0  ;;  %v4947_v51 = vmul.f32 1.442695, %v4887_v13 }
 0x7ed   :  { %v26833_v60 = vpop.eup %23826  ;;  %23846 = vpow2.f32 %v4937_v16  ;;  %v4949_v57 = vmul.f32 1.442695, %v4888_v36  ;;  %v4951_v29 = vmul.f32 1.442695, %v4889_v19  ;;  %v9037_v16 = vadd.f32 %v9036_v50, %v9035_v53  ;;  %v18406_v36 = vld [vmem:[%s31480_s0 + $0x190] sm:$0xff] }
 0x7ee   :  { %v26837_v10 = vpop.eup %23828  ;;  %23848 = vpow2.f32 %v4939_v42  ;;  %v4953_v21 = vmul.f32 1.442695, %v4890_v27  ;;  %v9038_v42 = vsel %vm47_vm0, %v18405_v34, 0.0  ;;  %v4955_v41 = vadd.f32 1.0, %v26761_v0 }
 0x7ef   :  { %v26842_v15 = vpop.eup %23830  ;;  %23850 = vpow2.f32 %v4941_v8  ;;  %v4956_v53 = vadd.f32 1.0, %v26768_v20  ;;  %v4957_v19 = vadd.f32 1.0, %v26772_v11  ;;  %v4958_v0 = vadd.f32 1.0, %v26782_v1  ;;  %v18407_v20 = vld [vmem:[%s31480_s0 + $0x198] sm:$0xff] }
 0x7f0   :  { %v26844_v56 = vpop.eup %23832  ;;  %23852 = vpow2.f32 %v4943_v18  ;;  %v9039_v18 = vadd.f32 %v9038_v42, %v9037_v16  ;;  %v4959_v34 = vadd.f32 1.0, %v26789_v58  ;;  %v4960_v11 = vadd.f32 1.0, %v26793_v38  ;;  %v18408_v38 = vld [vmem:[%s31480_s0 + $0x1a0] sm:$0xff] }
 0x7f1   :  { %v26846_v39 = vpop.eup %23834  ;;  %23854 = vpow2.f32 %v4945_v2  ;;  %v9040_v2 = vsel %vm47_vm0, %v18406_v36, 0.0  ;;  %v4961_v1 = vadd.f32 1.0, %v26797_v24  ;;  %v4962_v58 = vadd.f32 1.0, %v26807_v22 }
 0x7f2   :  { %v26849_v13 = vpop.eup %23836  ;;  %23856 = vpow2.f32 %v4947_v51  ;;  %v9041_v16 = vadd.f32 %v9040_v2, %v9039_v18  ;;  %v9042_v42 = vsel %vm47_vm0, %v18407_v20, 0.0  ;;  %v4963_v36 = vadd.f32 1.0, %v26814_v49 }
 0x7f3   :  { %v26855_v8 = vpop.eup %23838  ;;  %23858 = vpow2.f32 %v4949_v57  ;;  %v4964_v24 = vadd.f32 1.0, %v26817_v17  ;;  %v4965_v22 = vadd.f32 1.0, %v26821_v33  ;;  %v4966_v49 = vadd.f32 1.0, %v26827_v40  ;;  %v18409_v17 = vld [vmem:[%s31480_s0 + $0x1a8] sm:$0xff] }
 0x7f4   :  { %v26858_v50 = vpop.eup %23840  ;;  %23860 = vpow2.f32 %v4951_v29  ;;  %v9043_v18 = vadd.f32 %v9042_v42, %v9041_v16  ;;  %v9044_v2 = vsel %vm47_vm0, %v18408_v38, 0.0  ;;  %v4967_v20 = vadd.f32 1.0, %v26830_v37  ;;  %v18410_v16 = vld [vmem:[%s31480_s0 + $0x1b0] sm:$0xff] }
 0x7f5   :  { %v26861_v27 = vpop.eup %23842  ;;  %23862 = vpow2.f32 %v4953_v21  ;;  %v4968_v33 = vadd.f32 1.0, %v26833_v60  ;;  %v4969_v40 = vadd.f32 1.0, %v26837_v10  ;;  %v4970_v42 = vadd.f32 1.0, %v26842_v15 }
 0x7f6   :  { %v26865_v51 = vpop.eup %23844  ;;  %23864 = vrcp.f32 %v4955_v41  ;;  %v9046_v38 = vsel %vm47_vm0, %v18409_v17, 0.0  ;;  %v4971_v60 = vadd.f32 1.0, %v26844_v56  ;;  %v9048_v15 = vsel %vm47_vm0, %v18410_v16, 0.0 }
 0x7f7   :  { %v26871_v57 = vpop.eup %23846  ;;  %23866 = vrcp.f32 %v4956_v53  ;;  %v4975_v17 = vadd.f32 1.0, %v26858_v50  ;;  %v4977_v16 = vadd.f32 1.0, %v26865_v51 }
 0x7f8   :  { %v26874_v29 = vpop.eup %23848  ;;  %23868 = vrcp.f32 %v4957_v19 }
 0x7f9   :  { %v26877_v21 = vpop.eup %23850  ;;  %23870 = vrcp.f32 %v4958_v0 }
 0x7fa   :  { %v26881_v41 = vpop.eup %23852  ;;  %23872 = vrcp.f32 %v4959_v34 }
 0x7fb   :  { %v26887_v53 = vpop.eup %23854  ;;  %23874 = vrcp.f32 %v4960_v11 }
 0x7fc   :  { %v26890_v19 = vpop.eup %23856  ;;  %23876 = vrcp.f32 %v4961_v1 }
 0x7fd   :  { %v26893_v0 = vpop.eup %23858  ;;  %23878 = vrcp.f32 %v4962_v58  ;;  %v9045_v58 = vadd.f32 %v9044_v2, %v9043_v18 }
 0x7fe   :  { %v26897_v34 = vpop.eup %23860  ;;  %23880 = vrcp.f32 %v4963_v36 }
 0x7ff   :  { %v26903_v11 = vpop.eup %23862  ;;  %23882 = vrcp.f32 %v4964_v24  ;;  %v9047_v56 = vadd.f32 %v9046_v38, %v9045_v58  ;;  %v4979_v38 = vadd.f32 1.0, %v26874_v29 }
 0x800   :  { %v23865_v1 = vpop.eup %23864  ;;  %23884 = vrcp.f32 %v4965_v22  ;;  %v4972_v22 = vadd.f32 1.0, %v26846_v39  ;;  %v4974_v39 = vadd.f32 1.0, %v26855_v8 }
 0x801   :  { %v23867_v37 = vpop.eup %23866  ;;  %23886 = vrcp.f32 %v4966_v49  ;;  %v5051_v36 = vmul.f32 %v23865_v1, %v26631_v3  ;;  %v4973_v3 = vadd.f32 1.0, %v26849_v13  ;;  %v18411_v1 = vld [vmem:[%s31480_s0 + $0x1b8] sm:$0xff]  ;;  %v9049_v58 = vadd.f32 %v9048_v15, %v9047_v56 }
 0x802   :  { %v23869_v30 = vpop.eup %23868  ;;  %23888 = vrcp.f32 %v4967_v20  ;;  %v5052_v10 = vmul.f32 %v23867_v37, %v26634_v44  ;;  %v18150_v44 = vld [vmem:[%s31487_s10 + $0x30] sm:$0xff] }
 0x803   :  { %v23871_v24 = vpop.eup %23870  ;;  %23890 = vrcp.f32 %v4968_v33  ;;  %v5053_v18 = vmul.f32 %v23869_v30, %v26637_v31  ;;  %5083 = vst.msk [vmem:[#allocation3 + $0x28] sm:$0xff] %vm90_vm4, %v5051_v36  ;;  %v18151_v31 = vld [vmem:[%s31487_s10 + $0x38] sm:$0xff] }
 0x804   :  { %v23873_v49 = vpop.eup %23872  ;;  %23892 = vrcp.f32 %v4969_v40  ;;  %v5054_v2 = vmul.f32 %v23871_v24, %v26646_v35  ;;  %5084 = vst.msk [vmem:[#allocation3 + $0x30] sm:$0xff] %vm90_vm4, %v5052_v10  ;;  %v26931_v35 = vpack.c.bf16 %v18151_v31, %v18150_v44  ;;  %v4976_v40 = vadd.f32 1.0, %v26861_v27 }
 0x805   :  { %v23875_v30 = vpop.eup %23874  ;;  %23894 = vrcp.f32 %v4970_v42  ;;  %v5055_v13 = vmul.f32 %v23873_v49, %v26655_v28  ;;  %5085 = vst.msk [vmem:[#allocation3 + $0x48] sm:$0xff] %vm90_vm4, %v5053_v18  ;;  %v4978_v42 = vadd.f32 1.0, %v26871_v57  ;;  %v4980_v10 = vadd.f32 1.0, %v26877_v21 }
 0x806   :  { %v23877_v20 = vpop.eup %23876  ;;  %23896 = vrcp.f32 %v4971_v60  ;;  %v5056_v33 = vmul.f32 %v23875_v30, %v26662_v14  ;;  %5086 = vst.msk [vmem:[#allocation3 + $0x50] sm:$0xff] %vm90_vm4, %v5054_v2  ;;  %22384 = vmatprep.subr.bf16.mxu1 %v26931_v35  ;;  %v4981_v18 = vadd.f32 1.0, %v26881_v41  ;;  %v4982_v2 = vadd.f32 1.0, %v26887_v53 }
 0x807   :  { %v23879_v8 = vpop.eup %23878  ;;  %23898 = vrcp.f32 %v4972_v22  ;;  %v5057_v28 = vmul.f32 %v23877_v20, %v26665_v5  ;;  %5087 = vst.msk [vmem:[#allocation3 + $0x68] sm:$0xff] %vm90_vm4, %v5055_v13  ;;  %v9050_v5 = vsel %vm47_vm0, %v18411_v1, 0.0  ;;  %v4983_v44 = vadd.f32 1.0, %v26890_v19 }
 0x808   :  { %v23881_v50 = vpop.eup %23880  ;;  %23900 = vrcp.f32 %v4973_v3  ;;  %v5058_v14 = vmul.f32 %v23879_v8, %v26673_v25  ;;  %5088 = vst.msk [vmem:[#allocation3 + $0x70] sm:$0xff] %vm90_vm4, %v5056_v33  ;;  %v9051_v49 = vadd.f32 %v9050_v5, %v9049_v58  ;;  %v4984_v30 = vadd.f32 1.0, %v26893_v0 }
 0x809   :  { %v23883_v37 = vpop.eup %23882  ;;  %23902 = vrcp.f32 %v4974_v39  ;;  %v5059_v27 = vmul.f32 %v23881_v50, %v26676_v54  ;;  %5089 = vst.msk [vmem:[#allocation3 + $0x88] sm:$0xff] %vm90_vm4, %v5057_v28  ;;  %v18412_v54 = vld [vmem:[%s31480_s0 + $0x1c0] sm:$0xff]  ;;  %v4986_v8 = vadd.f32 1.0, %v26903_v11 }
 0x80a   :  { %v23885_v36 = vpop.eup %23884  ;;  %23904 = vrcp.f32 %v4975_v17  ;;  %v5060_v51 = vmul.f32 %v23883_v37, %v26679_v46  ;;  %5090 = vst.msk [vmem:[#allocation3 + $0x90] sm:$0xff] %vm90_vm4, %v5058_v14  ;;  %v26953_v25 = vld [vmem:[#allocation3 + $0x28] sm:$0xff] }
 0x80b   :  { %v26955_v60 = vld [vmem:[#allocation3 + $0x27] sm:$0xff]  ;;  %v23887_v57 = vpop.eup %23886  ;;  %23906 = vrcp.f32 %v4976_v40  ;;  %v5061_v24 = vmul.f32 %v23885_v36, %v26689_v59  ;;  %5091 = vst.msk [vmem:[#allocation3 + $0xa8] sm:$0xff] %vm90_vm4, %v5059_v27  ;;  %20862 = vmatprep.mubr.msk.f32.mxu0 %vm90_vm4, %v26953_v25  ;;  %v26967_v46 = vld [vmem:[#allocation3 + $0x30] sm:$0xff] }
 0x80c   :  { %20914 = vmatprep.mubr.msk.f32.mxu1 %vm90_vm4, %v26955_v60  ;;  %v26969_v29 = vld [vmem:[#allocation3 + $0x2f] sm:$0xff]  ;;  %v23889_v22 = vpop.eup %23888  ;;  %23908 = vrcp.f32 %v4977_v16  ;;  %v5062_v21 = vmul.f32 %v23887_v57, %v26692_v32  ;;  %5092 = vst.msk [vmem:[#allocation3 + $0xb0] sm:$0xff] %vm90_vm4, %v5060_v51  ;;  %20863 = vmatmul.mubr.msk.f32.gmra.mrb[38].mxu0 %vm90_vm4, %v26967_v46  ;;  %v26980_v15 = vld [vmem:[#allocation3 + $0x47] sm:$0xff]  ;;  %v9052_v32 = vsel %vm47_vm0, %v18412_v54, 0.0  ;;  %v27055_v51 = vld [vmem:[%s31480_s0 + $0x1d8] sm:$0xff] }
 0x80d   :  { %20915 = vmatmul.mubr.msk.f32.gmra.mrb[6].mxu1 %vm90_vm4, %v26969_v29  ;;  %v26978_v59 = vld [vmem:[#allocation3 + $0x48] sm:$0xff]  ;;  %v23891_v3 = vpop.eup %23890  ;;  %23910 = vrcp.f32 %v4978_v42  ;;  %v5063_v41 = vmul.f32 %v23889_v22, %v26695_v55  ;;  %5093 = vst.msk [vmem:[#allocation3 + $0xc8] sm:$0xff] %vm90_vm4, %v5061_v24  ;;  %v26999_v13 = vld [vmem:[#allocation3 + $0x50] sm:$0xff]  ;;  %v9053_v33 = vadd.f32 %v9052_v32, %v9051_v49  ;;  %31795 = vst [vmem:[#allocation12_spill] sm:$0xff] %v27055_v51 }
 0x80e   :  { %20865 = vmatprep.mubr.msk.f32.mxu0 %vm90_vm4, %v26978_v59  ;;  %20917 = vmatprep.mubr.msk.f32.mxu1 %vm90_vm4, %v26980_v15  ;;  %v23893_v56 = vpop.eup %23892  ;;  %23912 = vrcp.f32 %v4979_v38  ;;  %v5064_v31 = vmul.f32 %v23891_v3, %v26699_v43  ;;  %5094 = vst.msk [vmem:[#allocation3 + $0xd0] sm:$0xff] %vm90_vm4, %v5062_v21  ;;  %v18413_v55 = vld [vmem:[%s31480_s0 + $0x1c8] sm:$0xff]  ;;  %v4985_v43 = vadd.f32 1.0, %v26897_v34 }
 0x80f   :  { %v23895_v53 = vpop.eup %23894  ;;  %23914 = vrcp.f32 %v4980_v10  ;;  %v5065_v39 = vmul.f32 %v23893_v56, %v26702_v52  ;;  %5095 = vst.msk [vmem:[#allocation3 + $0xe8] sm:$0xff] %vm90_vm4, %v5063_v41  ;;  %v27001_v19 = vld [vmem:[#allocation3 + $0x4f] sm:$0xff]  ;;  %v27012_v0 = vld [vmem:[#allocation3 + $0x67] sm:$0xff] }
 0x810   :  { %v23897_v20 = vpop.eup %23896  ;;  %23916 = vrcp.f32 %v4981_v18  ;;  %v5066_v17 = vmul.f32 %v23895_v53, %v26707_v9  ;;  %5096 = vst.msk [vmem:[#allocation3 + $0xf0] sm:$0xff] %vm90_vm4, %v5064_v31  ;;  %20866 = vmatmul.mubr.msk.f32.gmra.mrb[40].mxu0 %vm90_vm4, %v26999_v13  ;;  %v27010_v52 = vld [vmem:[#allocation3 + $0x68] sm:$0xff]  ;;  %v9054_v9 = vsel %vm47_vm0, %v18413_v55, 0.0  ;;  %v27029_v16 = vld [vmem:[#allocation3 + $0x70] sm:$0xff]  ;;  %v31797_v55 = vld [vmem:[#allocation8_spill] sm:$0xff] }
 0x811   :  { %20918 = vmatmul.mubr.msk.f32.gmra.mrb[8].mxu1 %vm90_vm4, %v27001_v19  ;;  %v23899_v1 = vpop.eup %23898  ;;  %23918 = vrcp.f32 %v4982_v2  ;;  %v5067_v34 = vmul.f32 %v23897_v20, %v26710_v26  ;;  %5097 = vst.msk [vmem:[#allocation3 + $0x108] sm:$0xff] %vm90_vm4, %v5065_v39  ;;  %20868 = vmatprep.mubr.msk.f32.mxu0 %vm90_vm4, %v27010_v52  ;;  %v18414_v26 = vld [vmem:[%s31480_s0 + $0x1d0] sm:$0xff]  ;;  %v27039_v37 = vld [vmem:[#allocation3 + $0x88] sm:$0xff]  ;;  %v9055_v42 = vadd.f32 %v9054_v9, %v9053_v33 }
 0x812   :  { %20920 = vmatprep.mubr.msk.f32.mxu1 %vm90_vm4, %v27012_v0  ;;  %v23901_v40 = vpop.eup %23900  ;;  %23920 = vrcp.f32 %v4983_v44  ;;  %v5068_v28 = vmul.f32 %v23899_v1, %v26714_v6  ;;  %5098 = vst.msk [vmem:[#allocation3 + $0x110] sm:$0xff] %vm90_vm4, %v5066_v17  ;;  %v27031_v14 = vld [vmem:[#allocation3 + $0x6f] sm:$0xff] }
 0x813   :  { %v23903_v11 = vpop.eup %23902  ;;  %23922 = vrcp.f32 %v4984_v30  ;;  %v5069_v50 = vmul.f32 %v23901_v40, %v26718_v45  ;;  %5099 = vst.msk [vmem:[#allocation3 + $0x128] sm:$0xff] %vm90_vm4, %v5067_v34  ;;  %v27041_v45 = vld [vmem:[#allocation3 + $0x87] sm:$0xff]  ;;  %v27059_v57 = vld [vmem:[#allocation3 + $0x90] sm:$0xff] }
 0x814   :  { %v23905_v58 = vpop.eup %23904  ;;  %23924 = vrcp.f32 %v4985_v43  ;;  %v5070_v6 = vmul.f32 %v23903_v11, %v26722_v23  ;;  %5100 = vst.msk [vmem:[#allocation3 + $0x130] sm:$0xff] %vm90_vm4, %v5068_v28  ;;  %20869 = vmatmul.mubr.msk.f32.gmra.mrb[42].mxu0 %vm90_vm4, %v27029_v16  ;;  %v9056_v23 = vsel %vm47_vm0, %v18414_v26, 0.0  ;;  %v27061_v10 = vld [vmem:[#allocation3 + $0x8f] sm:$0xff]  ;;  %v31801_v11 = vld [vmem:[#allocation11_spill] sm:$0xff] }
 0x815   :  { %20921 = vmatmul.mubr.msk.f32.gmra.mrb[10].mxu1 %vm90_vm4, %v27031_v14  ;;  %v23907_v27 = vpop.eup %23906  ;;  %23926 = vrcp.f32 %v4986_v8  ;;  %v5071_v5 = vmul.f32 %v23905_v58, %v26726_v12  ;;  %5101 = vst.msk [vmem:[#allocation3 + $0x148] sm:$0xff] %vm90_vm4, %v5069_v50  ;;  %20871 = vmatprep.mubr.msk.f32.mxu0 %vm90_vm4, %v27039_v37  ;;  %v9057_v18 = vadd.f32 %v9056_v23, %v9055_v42  ;;  %v27090_v56 = vld [vmem:[#allocation3 + $0xb0] sm:$0xff]  ;;  %v31798_v20 = vld [vmem:[#allocation9_spill] sm:$0xff] }
 0x816   :  { %20923 = vmatprep.mubr.msk.f32.mxu1 %vm90_vm4, %v27041_v45  ;;  %v23909_v36 = vpop.eup %23908  ;;  %v5072_v38 = vmul.f32 %v23907_v27, %v26730_v47  ;;  %5102 = vst.msk [vmem:[#allocation3 + $0x150] sm:$0xff] %vm90_vm4, %v5070_v6  ;;  %v27069_v47 = vld [vmem:[#allocation3 + $0xa8] sm:$0xff]  ;;  %v31800_v9 = vld [vmem:[#allocation10_spill] sm:$0xff] }
 0x817   :  { %v23911_v12 = vpop.eup %23910  ;;  %v5073_v54 = vmul.f32 %v23909_v36, %v26735_v61  ;;  %5103 = vst.msk [vmem:[#allocation3 + $0x168] sm:$0xff] %vm90_vm4, %v5071_v5  ;;  %v27071_v61 = vld [vmem:[#allocation3 + $0xa7] sm:$0xff]  ;;  %v27092_v44 = vld [vmem:[#allocation3 + $0xaf] sm:$0xff] }
 0x818   :  { %v23913_v24 = vpop.eup %23912  ;;  %v5074_v22 = vmul.f32 %v23911_v12, %v26740_v62  ;;  %5104 = vst.msk [vmem:[#allocation3 + $0x170] sm:$0xff] %vm90_vm4, %v5072_v38  ;;  %20872 = vmatmul.mubr.msk.f32.gmra.mrb[44].mxu0 %vm90_vm4, %v27059_v57  ;;  %v9058_v62 = vsel %vm47_vm0, %v27055_v51, 0.0  ;;  %v27117_v8 = vld [vmem:[%s31480_s0 + $0x1e8] sm:$0xff]  ;;  %v27121_v28 = vld [vmem:[#allocation3 + $0xd0] sm:$0xff] }
 0x819   :  { %20924 = vmatmul.mubr.msk.f32.gmra.mrb[12].mxu1 %vm90_vm4, %v27061_v10  ;;  %v23915_v21 = vpop.eup %23914  ;;  %v5075_v49 = vmul.f32 %v23913_v24, %v26745_v63  ;;  %5105 = vst.msk [vmem:[#allocation3 + $0x188] sm:$0xff] %vm90_vm4, %v5073_v54  ;;  %20874 = vmatprep.mubr.msk.f32.mxu0 %vm90_vm4, %v27069_v47  ;;  %v27086_v63 = vld [vmem:[%s31480_s0 + $0x1e0] sm:$0xff]  ;;  %v9059_v30 = vadd.f32 %v9058_v62, %v9057_v18  ;;  %31799 = vst [vmem:[#allocation14_spill] sm:$0xff] %v27117_v8  ;;  %v27123_v26 = vld [vmem:[#allocation3 + $0xcf] sm:$0xff]  ;;  %v9062_v42 = vsel %vm47_vm0, %v27117_v8, 0.0 }
 0x81a   :  { %20926 = vmatprep.mubr.msk.f32.mxu1 %vm90_vm4, %v27071_v61  ;;  %v23917_v3 = vpop.eup %23916  ;;  %v5076_v2 = vmul.f32 %v23915_v21, %v26750_v4  ;;  %5106 = vst.msk [vmem:[#allocation3 + $0x190] sm:$0xff] %vm90_vm4, %v5074_v22  ;;  %31796 = vst [vmem:[#allocation13_spill] sm:$0xff] %v27086_v63  ;;  %v27100_v4 = vld [vmem:[#allocation3 + $0xc8] sm:$0xff]  ;;  %v9060_v17 = vsel %vm47_vm0, %v27086_v63, 0.0  ;;  %v27146_v27 = vld [vmem:[%s31480_s0 + $0x1f0] sm:$0xff] }
 0x81b   :  { %v23919_v41 = vpop.eup %23918  ;;  %v5077_v32 = vmul.f32 %v23917_v3, %v26758_v48  ;;  %5107 = vst.msk [vmem:[#allocation3 + $0x1a8] sm:$0xff] %vm90_vm4, %v5075_v49  ;;  %v27102_v48 = vld [vmem:[#allocation3 + $0xc7] sm:$0xff]  ;;  %v9061_v6 = vadd.f32 %v9060_v17, %v9059_v30  ;;  %31802 = vst [vmem:[#allocation15_spill] sm:$0xff] %v27146_v27  ;;  %v27148_v5 = vld [vmem:[#allocation3 + $0xf0] sm:$0xff]  ;;  %v9064_v54 = vsel %vm47_vm0, %v27146_v27, 0.0 }
 0x81c   :  { %v23921_v31 = vpop.eup %23920  ;;  %v5078_v53 = vmul.f32 %v23919_v41, %v31797_v55  ;;  %5108 = vst.msk [vmem:[#allocation3 + $0x1b0] sm:$0xff] %vm90_vm4, %v5076_v2  ;;  %20875 = vmatmul.mubr.msk.f32.gmra.mrb[46].mxu0 %vm90_vm4, %v27090_v56  ;;  %v27133_v58 = vld [vmem:[#allocation3 + $0xe7] sm:$0xff]  ;;  %v27150_v23 = vld [vmem:[#allocation3 + $0xef] sm:$0xff]  ;;  %v27169_v24 = vld [vmem:[%s31480_s0 + $0x1f8] sm:$0xff] }
 0x81d   :  { %20927 = vmatmul.mubr.msk.f32.gmra.mrb[14].mxu1 %vm90_vm4, %v27092_v44  ;;  %v23923_v39 = vpop.eup %23922  ;;  %v5079_v43 = vmul.f32 %v23921_v31, %v31798_v20  ;;  %5109 = vst.msk [vmem:[#allocation3 + $0x1c8] sm:$0xff] %vm90_vm4, %v5077_v32  ;;  %20877 = vmatprep.mubr.msk.f32.mxu0 %vm90_vm4, %v27100_v4  ;;  %v27156_v36 = vld [vmem:[#allocation3 + $0x108] sm:$0xff]  ;;  %v9063_v12 = vadd.f32 %v9062_v42, %v9061_v6  ;;  %31803 = vst [vmem:[#allocation16_spill] sm:$0xff] %v27169_v24  ;;  %v27171_v22 = vld [vmem:[#allocation3 + $0x110] sm:$0xff]  ;;  %v9066_v3 = vsel %vm47_vm0, %v27169_v24, 0.0 }
 0x81e   :  { %20929 = vmatprep.mubr.msk.f32.mxu1 %vm90_vm4, %v27102_v48  ;;  %v23925_v33 = vpop.eup %23924  ;;  %v5080_v1 = vmul.f32 %v23923_v39, %v26786_v7  ;;  %5110 = vst.msk [vmem:[#allocation3 + $0x1d0] sm:$0xff] %vm90_vm4, %v5078_v53  ;;  %v27131_v7 = vld [vmem:[#allocation3 + $0xe8] sm:$0xff]  ;;  %v27189_v2 = vld [vmem:[#allocation3 + $0x130] sm:$0xff] }
 0x81f   :  { %v23927_v34 = vpop.eup %23926  ;;  %v5081_v40 = vmul.f32 %v23925_v33, %v31800_v9  ;;  %5111 = vst.msk [vmem:[#allocation3 + $0x1e8] sm:$0xff] %vm90_vm4, %v5079_v43  ;;  %v27158_v38 = vld [vmem:[#allocation3 + $0x107] sm:$0xff]  ;;  %v27173_v18 = vld [vmem:[#allocation3 + $0x10f] sm:$0xff]  ;;  %v9065_v62 = vadd.f32 %v9064_v54, %v9063_v12 }
 0x820   :  { %v5082_v50 = vmul.f32 %v23927_v34, %v31801_v11  ;;  %5112 = vst.msk [vmem:[#allocation3 + $0x1f0] sm:$0xff] %vm90_vm4, %v5080_v1  ;;  %20878 = vmatmul.mubr.msk.f32.gmra.mrb[48].mxu0 %vm90_vm4, %v27121_v28  ;;  %v27179_v21 = vld [vmem:[#allocation3 + $0x128] sm:$0xff]  ;;  %v27205_v53 = vld [vmem:[#allocation3 + $0x150] sm:$0xff] }
 0x821   :  { %20930 = vmatmul.mubr.msk.f32.gmra.mrb[16].mxu1 %vm90_vm4, %v27123_v26  ;;  %5113 = vst.msk [vmem:[#allocation3 + $0x208] sm:$0xff] %vm90_vm4, %v5081_v40  ;;  %20880 = vmatprep.mubr.msk.f32.mxu0 %vm90_vm4, %v27131_v7  ;;  %v27181_v49 = vld [vmem:[#allocation3 + $0x127] sm:$0xff]  ;;  %v27191_v41 = vld [vmem:[#allocation3 + $0x12f] sm:$0xff]  ;;  %v9067_v55 = vadd.f32 %v9066_v3, %v9065_v62 }
 0x822   :  { %20932 = vmatprep.mubr.msk.f32.mxu1 %vm90_vm4, %v27133_v58  ;;  %5114 = vst.msk [vmem:[#allocation3 + $0x210] sm:$0xff] %vm90_vm4, %v5082_v50  ;;  %v27197_v32 = vld [vmem:[#allocation3 + $0x148] sm:$0xff]  ;;  %v27221_v17 = vld [vmem:[#allocation3 + $0x170] sm:$0xff] }
 0x823   :  { %v27199_v31 = vld [vmem:[#allocation3 + $0x147] sm:$0xff]  ;;  %v27207_v30 = vld [vmem:[#allocation3 + $0x14f] sm:$0xff]  ;;  %v9068_v43 = vrot.slane %v9067_v55, 4 }
 0x824   :  { %20881 = vmatmul.mubr.msk.f32.gmra.mrb[50].mxu0 %vm90_vm4, %v27148_v5  ;;  %v27213_v39 = vld [vmem:[#allocation3 + $0x168] sm:$0xff]  ;;  %v27237_v40 = vld [vmem:[#allocation3 + $0x190] sm:$0xff] }
 0x825   :  { %20933 = vmatmul.mubr.msk.f32.gmra.mrb[18].mxu1 %vm90_vm4, %v27150_v23  ;;  %20883 = vmatprep.mubr.msk.f32.mxu0 %vm90_vm4, %v27156_v36  ;;  %v27215_v20 = vld [vmem:[#allocation3 + $0x167] sm:$0xff]  ;;  %v27223_v33 = vld [vmem:[#allocation3 + $0x16f] sm:$0xff]  ;;  %v9069_v9 = vadd.f32 %v9068_v43, %v9067_v55  ;;  %31804 = vst [vmem:[#allocation17_spill] sm:$0xff] %v27237_v40 }
 0x826   :  { %20935 = vmatprep.mubr.msk.f32.mxu1 %vm90_vm4, %v27158_v38  ;;  %v27229_v1 = vld [vmem:[#allocation3 + $0x188] sm:$0xff]  ;;  %v27253_v12 = vld [vmem:[#allocation3 + $0x1b0] sm:$0xff] }
 0x827   :  { %v27231_v34 = vld [vmem:[#allocation3 + $0x187] sm:$0xff]  ;;  %v27239_v11 = vld [vmem:[#allocation3 + $0x18f] sm:$0xff]  ;;  %v9070_v42 = vrot.slane %v9069_v9, 2  ;;  %31806 = vst [vmem:[#allocation19_spill] sm:$0xff] %v27253_v12 }
 0x828   :  { %20884 = vmatmul.mubr.msk.f32.gmra.mrb[52].mxu0 %vm90_vm4, %v27171_v22  ;;  %v27245_v50 = vld [vmem:[#allocation3 + $0x1a8] sm:$0xff]  ;;  %v27269_v43 = vld [vmem:[#allocation3 + $0x1d0] sm:$0xff] }
 0x829   :  { %20936 = vmatmul.mubr.msk.f32.gmra.mrb[20].mxu1 %vm90_vm4, %v27173_v18  ;;  %20886 = vmatprep.mubr.msk.f32.mxu0 %vm90_vm4, %v27179_v21  ;;  %31805 = vst [vmem:[#allocation18_spill] sm:$0xff] %v27245_v50  ;;  %v27247_v6 = vld [vmem:[#allocation3 + $0x1a7] sm:$0xff]  ;;  %v27255_v54 = vld [vmem:[#allocation3 + $0x1af] sm:$0xff]  ;;  %v9071_v55 = vadd.f32 %v9070_v42, %v9069_v9  ;;  %31808 = vst [vmem:[#allocation21_spill] sm:$0xff] %v27269_v43 }
 0x82a   :  { %20938 = vmatprep.mubr.msk.f32.mxu1 %vm90_vm4, %v27181_v49  ;;  %v27261_v62 = vld [vmem:[#allocation3 + $0x1c8] sm:$0xff]  ;;  %v27285_v63 = vld [vmem:[#allocation3 + $0x1f0] sm:$0xff] }
 0x82b   :  { %31807 = vst [vmem:[#allocation20_spill] sm:$0xff] %v27261_v62  ;;  %v27263_v3 = vld [vmem:[#allocation3 + $0x1c7] sm:$0xff]  ;;  %v27271_v24 = vld [vmem:[#allocation3 + $0x1cf] sm:$0xff]  ;;  %v9072_v9 = vrot.slane %v9071_v55, 1 }
 0x82c   :  { %20887 = vmatmul.mubr.msk.f32.gmra.mrb[54].mxu0 %vm90_vm4, %v27189_v2  ;;  %v27277_v27 = vld [vmem:[#allocation3 + $0x1e8] sm:$0xff] }
 0x82d   :  { %20939 = vmatmul.mubr.msk.f32.gmra.mrb[22].mxu1 %vm90_vm4, %v27191_v41  ;;  %20889 = vmatprep.mubr.msk.f32.mxu0 %vm90_vm4, %v27197_v32  ;;  %31809 = vst [vmem:[#allocation24_spill] sm:$0xff] %v27277_v27  ;;  %v27279_v8 = vld [vmem:[#allocation3 + $0x1e7] sm:$0xff]  ;;  %v27287_v51 = vld [vmem:[#allocation3 + $0x1ef] sm:$0xff] }
 0x82e   :  { %20941 = vmatprep.mubr.msk.f32.mxu1 %vm90_vm4, %v27199_v31  ;;  %v5826_v42 = vld [vmem:[#allocation3 + $0x9] sm:$0xff] }
 0x830   :  { %20890 = vmatmul.mubr.msk.f32.gmra.mrb[56].mxu0 %vm90_vm4, %v27205_v53 }
 0x831   :  { %20942 = vmatmul.mubr.msk.f32.gmra.mrb[24].mxu1 %vm90_vm4, %v27207_v30  ;;  %20892 = vmatprep.mubr.msk.f32.mxu0 %vm90_vm4, %v27213_v39 }
 0x832   :  { %20944 = vmatprep.mubr.msk.f32.mxu1 %vm90_vm4, %v27215_v20 }
 0x834   :  { %20893 = vmatmul.mubr.msk.f32.gmra.mrb[58].mxu0 %vm90_vm4, %v27221_v17 }
 0x835   :  { %20945 = vmatmul.mubr.msk.f32.gmra.mrb[26].mxu1 %vm90_vm4, %v27223_v33  ;;  %20895 = vmatprep.mubr.msk.f32.mxu0 %vm90_vm4, %v27229_v1 }
 0x836   :  { %20947 = vmatprep.mubr.msk.f32.mxu1 %vm90_vm4, %v27231_v34 }
 0x838   :  { %20896 = vmatmul.mubr.msk.f32.gmra.mrb[60].mxu0 %vm90_vm4, %v27237_v40 }
 0x839   :  { %20948 = vmatmul.mubr.msk.f32.gmra.mrb[28].mxu1 %vm90_vm4, %v27239_v11  ;;  %20898 = vmatprep.mubr.msk.f32.mxu0 %vm90_vm4, %v27245_v50  ;;  %v5827_v50 = vld [vmem:[#allocation3 + $0x11] sm:$0xff] }
 0x83a   :  { %20950 = vmatprep.mubr.msk.f32.mxu1 %vm90_vm4, %v27247_v6 }
 0x83c   :  { %20899 = vmatmul.mubr.msk.f32.gmra.mrb[62].mxu0 %vm90_vm4, %v27253_v12  ;;  %v31810_v12 = vmov 0.0  }
 0x83d   :  { %20951 = vmatmul.mubr.msk.f32.gmra.mrb[30].mxu1 %vm90_vm4, %v27255_v54  ;;  %20901 = vmatprep.mubr.msk.f32.mxu0 %vm90_vm4, %v27261_v62  ;;  %v18184_v62 = vld [vmem:[%s31487_s10 + $0x40] sm:$0xff] }
 0x83e   :  { %20953 = vmatprep.mubr.msk.f32.mxu1 %vm90_vm4, %v27263_v3 }
 0x840   :  { %20902 = vmatmul.mubr.msk.f32.gmra.mrb[64].mxu0 %vm90_vm4, %v27269_v43  ;;  %v9073_v43 = vadd.f32 %v9072_v9, %v9071_v55  ;;  %v27306_v55 = vld [vmem:[#allocation3 + $0x29] sm:$0xff]  ;;  %v24189_v9 = vld [vmem:[%s31479_s3] sm:$0xff] }
 0x841   :  { %20954 = vmatmul.mubr.msk.f32.gmra.mrb[32].mxu1 %vm90_vm4, %v27271_v24  ;;  %20904 = vmatprep.mubr.msk.f32.mxu0 %vm90_vm4, %v27277_v27  ;;  %v18185_v27 = vld [vmem:[%s31487_s10 + $0x48] sm:$0xff] }
 0x842   :  { %20956 = vmatprep.mubr.msk.f32.mxu1 %vm90_vm4, %v27279_v8  ;;  %v27302_v40 = vpack.c.bf16 %v18185_v27, %v18184_v62  ;;  %v27315_v27 = vld [vmem:[#allocation3 + $0x31] sm:$0xff]  ;;  %v27329_v62 = vld [vmem:[#allocation3 + $0x69] sm:$0xff] }
 0x843   :  { %31812 = vst [vmem:[#allocation27_spill] sm:$0xff] %v27329_v62 }
 0x844   :  { %20905 = vmatmul.mubr.msk.f32.gmra.mrb[66].mxu0 %vm90_vm4, %v27285_v63 }
 0x845   :  { %20957 = vmatmul.mubr.msk.f32.gmra.mrb[34].mxu1 %vm90_vm4, %v27287_v51  ;;  %21375 = vmatprep.mubr.msk.f32.mxu0 %vm24290_vm1, %v31810_v12 }
 0x846   :  { %20963 = vmatprep.mubr.msk.f32.mxu1 %vm90_vm4, %v5826_v42  ;;  %v27337_v42 = vld [vmem:[#allocation3 + $0x89] sm:$0xff] }
 0x847   :  { %31814 = vst [vmem:[#allocation30_spill] sm:$0xff] %v27337_v42 }
 0x848   :  { %21376 = vmatmul.mubr.msk.f32.vlgmr.msra.gmra.mrb[68].mxu0 %vm47_vm0, %v9073_v43  ;;  %v27333_v43 = vld [vmem:[#allocation3 + $0x71] sm:$0xff] }
 0x849   :  { %20964 = vmatmul.mubr.msk.f32.vlgmr.msra.gmra.mrb[4].mxu1 %vm90_vm4, %v5827_v50  ;;  %21379 = vmatpush3.msra.mxu0 %v24189_v9  ;;  %v27321_v50 = vld [vmem:[#allocation3 + $0x49] sm:$0xff]  ;;  %31813 = vst [vmem:[#allocation28_spill] sm:$0xff] %v27333_v43  ;;  %v27341_v9 = vld [vmem:[#allocation3 + $0x91] sm:$0xff] }
 0x84a   :  { %20966 = vmatprep.mubr.msk.f32.mxu1 %vm90_vm4, %v27306_v55  ;;  %22386 = vmatpush3.bf16.msra.mxu1 %v26931_v35  ;;  %v27325_v35 = vld [vmem:[#allocation3 + $0x51] sm:$0xff]  ;;  %31815 = vst [vmem:[#allocation32_spill] sm:$0xff] %v27341_v9 }
 0x84b   :  { %22388 = vmatprep.subr.bf16.mxu1 %v27302_v40  ;;  %21380 = vmatprep.mubr.msk.f32.mxu0 %vm24290_vm1, %v31810_v12  ;;  %31811 = vst [vmem:[#allocation26_spill] sm:$0xff] %v27325_v35  ;;  %v27345_v12 = vld [vmem:[#allocation3 + $0xa9] sm:$0xff] }
 0x84c   :  { %31816 = vst [vmem:[#allocation5_spill] sm:$0xff] %v27345_v12 }
 0x84d   :  { %20967 = vmatmul.mubr.msk.f32.gmra.mrb[6].mxu1 %vm90_vm4, %v27315_v27 }
 0x84e   :  { %20969 = vmatprep.mubr.msk.f32.mxu1 %vm90_vm4, %v27321_v50 }
 0x851   :  { %20970 = vmatmul.mubr.msk.f32.gmra.mrb[8].mxu1 %vm90_vm4, %v27325_v35 }
 0x852   :  { %20972 = vmatprep.mubr.msk.f32.mxu1 %vm90_vm4, %v27329_v62  ;;  %v27349_v62 = vld [vmem:[#allocation3 + $0xb1] sm:$0xff] }
 0x853   :  { %31817 = vst [vmem:[#allocation6_spill] sm:$0xff] %v27349_v62 }
 0x855   :  { %20973 = vmatmul.mubr.msk.f32.gmra.mrb[10].mxu1 %vm90_vm4, %v27333_v43  ;;  %v27353_v43 = vld [vmem:[#allocation3 + $0xc9] sm:$0xff] }
 0x856   :  { %20975 = vmatprep.mubr.msk.f32.mxu1 %vm90_vm4, %v27337_v42  ;;  %31818 = vst [vmem:[#allocation22_spill] sm:$0xff] %v27353_v43  ;;  %v27357_v42 = vld [vmem:[#allocation3 + $0xd1] sm:$0xff] }
 0x857   :  { %31819 = vst [vmem:[#allocation23_spill] sm:$0xff] %v27357_v42 }
 0x859   :  { %20976 = vmatmul.mubr.msk.f32.gmra.mrb[12].mxu1 %vm90_vm4, %v27341_v9  ;;  %v27361_v9 = vld [vmem:[#allocation3 + $0xe9] sm:$0xff] }
 0x85a   :  { %20978 = vmatprep.mubr.msk.f32.mxu1 %vm90_vm4, %v27345_v12  ;;  %31820 = vst [vmem:[#allocation25_spill] sm:$0xff] %v27361_v9  ;;  %v27365_v12 = vld [vmem:[#allocation3 + $0xf1] sm:$0xff] }
 0x85b   :  { %31821 = vst [vmem:[#allocation29_spill] sm:$0xff] %v27365_v12 }
 0x85d   :  { %20979 = vmatmul.mubr.msk.f32.gmra.mrb[14].mxu1 %vm90_vm4, %v27349_v62  ;;  %v27369_v62 = vld [vmem:[#allocation3 + $0x109] sm:$0xff] }
 0x85e   :  { %20981 = vmatprep.mubr.msk.f32.mxu1 %vm90_vm4, %v27353_v43  ;;  %31822 = vst [vmem:[#allocation31_spill] sm:$0xff] %v27369_v62  ;;  %v27373_v43 = vld [vmem:[#allocation3 + $0x111] sm:$0xff] }
 0x85f   :  { %31823 = vst [vmem:[#allocation33_spill] sm:$0xff] %v27373_v43 }
 0x861   :  { %20982 = vmatmul.mubr.msk.f32.gmra.mrb[16].mxu1 %vm90_vm4, %v27357_v42  ;;  %v27377_v42 = vld [vmem:[#allocation3 + $0x129] sm:$0xff] }
 0x862   :  { %20984 = vmatprep.mubr.msk.f32.mxu1 %vm90_vm4, %v27361_v9  ;;  %31824 = vst [vmem:[#allocation8_spill] sm:$0xff] %v27377_v42  ;;  %v27381_v9 = vld [vmem:[#allocation3 + $0x131] sm:$0xff] }
 0x863   :  { %31825 = vst [vmem:[#allocation9_spill] sm:$0xff] %v27381_v9 }
 0x865   :  { %20985 = vmatmul.mubr.msk.f32.gmra.mrb[18].mxu1 %vm90_vm4, %v27365_v12  ;;  %v27385_v12 = vld [vmem:[#allocation3 + $0x149] sm:$0xff] }
 0x866   :  { %20987 = vmatprep.mubr.msk.f32.mxu1 %vm90_vm4, %v27369_v62  ;;  %31826 = vst [vmem:[#allocation10_spill] sm:$0xff] %v27385_v12  ;;  %v27389_v62 = vld [vmem:[#allocation3 + $0x151] sm:$0xff] }
 0x867   :  { %31827 = vst [vmem:[#allocation11_spill] sm:$0xff] %v27389_v62 }
 0x869   :  { %20988 = vmatmul.mubr.msk.f32.gmra.mrb[20].mxu1 %vm90_vm4, %v27373_v43  ;;  %v27393_v43 = vld [vmem:[#allocation3 + $0x169] sm:$0xff] }
 0x86a   :  { %20990 = vmatprep.mubr.msk.f32.mxu1 %vm90_vm4, %v27377_v42  ;;  %31828 = vst [vmem:[#allocation34_spill] sm:$0xff] %v27393_v43  ;;  %v27397_v42 = vld [vmem:[#allocation3 + $0x171] sm:$0xff] }
 0x86b   :  { %31829 = vst [vmem:[#allocation35_spill] sm:$0xff] %v27397_v42 }
 0x86d   :  { %20991 = vmatmul.mubr.msk.f32.gmra.mrb[22].mxu1 %vm90_vm4, %v27381_v9  ;;  %v27401_v9 = vld [vmem:[#allocation3 + $0x189] sm:$0xff] }
 0x86e   :  { %20993 = vmatprep.mubr.msk.f32.mxu1 %vm90_vm4, %v27385_v12  ;;  %31830 = vst [vmem:[#allocation36_spill] sm:$0xff] %v27401_v9  ;;  %v27405_v12 = vld [vmem:[#allocation3 + $0x191] sm:$0xff] }
 0x86f   :  { %31831 = vst [vmem:[#allocation37_spill] sm:$0xff] %v27405_v12 }
 0x871   :  { %20994 = vmatmul.mubr.msk.f32.gmra.mrb[24].mxu1 %vm90_vm4, %v27389_v62  ;;  %v27409_v62 = vld [vmem:[#allocation3 + $0x1a9] sm:$0xff] }
 0x872   :  { %20996 = vmatprep.mubr.msk.f32.mxu1 %vm90_vm4, %v27393_v43  ;;  %31832 = vst [vmem:[#allocation38_spill] sm:$0xff] %v27409_v62  ;;  %v27413_v43 = vpop.f32.mrb[36].mxu0 }
 0x873   :  { %31833 = vst [vmem:[#allocation39_spill] sm:$0xff] %v27413_v43  ;;  %v27415_v35 = vpop.f32.mrb[37].mxu0  ;;  %v18218_v43 = vld [vmem:[%s31487_s10 + $0x50] sm:$0xff] }
 0x874   :  { %31834 = vst [vmem:[#allocation40_spill] sm:$0xff] %v27415_v35  ;;  %v27433_v35 = vld [vmem:[#allocation3 + $0x1f1] sm:$0xff] }
 0x875   :  { %20997 = vmatmul.mubr.msk.f32.gmra.mrb[26].mxu1 %vm90_vm4, %v27397_v42  ;;  %v27417_v42 = vld [vmem:[#allocation3 + $0x1b1] sm:$0xff] }
 0x876   :  { %20999 = vmatprep.mubr.msk.f32.mxu1 %vm90_vm4, %v27401_v9  ;;  %v27421_v9 = vld [vmem:[#allocation3 + $0x1c9] sm:$0xff] }
 0x877   :  { %31835 = vst [vmem:[#allocation41_spill] sm:$0xff] %v27421_v9 }
 0x879   :  { %21000 = vmatmul.mubr.msk.f32.gmra.mrb[28].mxu1 %vm90_vm4, %v27405_v12  ;;  %v27425_v12 = vld [vmem:[#allocation3 + $0x1d1] sm:$0xff] }
 0x87a   :  { %21002 = vmatprep.mubr.msk.f32.mxu1 %vm90_vm4, %v27409_v62  ;;  %31836 = vst [vmem:[#allocation42_spill] sm:$0xff] %v27425_v12  ;;  %v27429_v62 = vld [vmem:[#allocation3 + $0x1e9] sm:$0xff] }
 0x87d   :  { %21003 = vmatmul.mubr.msk.f32.gmra.mrb[30].mxu1 %vm90_vm4, %v27417_v42 }
 0x87e   :  { %21005 = vmatprep.mubr.msk.f32.mxu1 %vm90_vm4, %v27421_v9 }
 0x881   :  { %21006 = vmatmul.mubr.msk.f32.gmra.mrb[32].mxu1 %vm90_vm4, %v27425_v12  ;;  %v18219_v12 = vld [vmem:[%s31487_s10 + $0x58] sm:$0xff] }
 0x882   :  { %21008 = vmatprep.mubr.msk.f32.mxu1 %vm90_vm4, %v27429_v62  ;;  %v22391_v9 = vpack.c.bf16 %v18219_v12, %v18218_v43  ;;  %v31880_v12 = vld [vmem:[#allocation22_spill] sm:$0xff]  ;;  %v31884_v43 = vld [vmem:[#allocation31_spill] sm:$0xff] }
 0x885   :  { %21009 = vmatmul.mubr.msk.f32.gmra.mrb[34].mxu1 %vm90_vm4, %v27433_v35 }
 0x886   :  { %21015 = vmatprep.mubr.msk.f32.mxu1 %vm90_vm4, %v26955_v60  ;;  %v27504_v60 = vld [vmem:[#allocation3 + $0x207] sm:$0xff] }
 0x889   :  { %21016 = vmatmul.mubr.msk.f32.vlgmr.msra.gmra.mrb[4].mxu1 %vm90_vm4, %v26969_v29  ;;  %v27508_v29 = vld [vmem:[#allocation3 + $0x20f] sm:$0xff] }
 0x88a   :  { %21018 = vmatprep.mubr.msk.f32.mxu1 %vm90_vm4, %v26980_v15  ;;  %22390 = vmatpush3.bf16.msra.mxu1 %v27302_v40  ;;  %v18252_v15 = vld [vmem:[%s31487_s10 + $0x60] sm:$0xff] }
 0x88b   :  { %22392 = vmatprep.subr.bf16.mxu1 %v22391_v9 }
 0x88d   :  { %21019 = vmatmul.mubr.msk.f32.gmra.mrb[6].mxu1 %vm90_vm4, %v27001_v19  ;;  %v18253_v19 = vld [vmem:[%s31487_s10 + $0x68] sm:$0xff] }
 0x88e   :  { %21021 = vmatprep.mubr.msk.f32.mxu1 %vm90_vm4, %v27012_v0  ;;  %v27520_v0 = vpack.c.bf16 %v18253_v19, %v18252_v15  ;;  %v31886_v19 = vld [vmem:[#allocation33_spill] sm:$0xff] }
 0x891   :  { %21022 = vmatmul.mubr.msk.f32.gmra.mrb[8].mxu1 %vm90_vm4, %v27031_v14 }
 0x892   :  { %21024 = vmatprep.mubr.msk.f32.mxu1 %vm90_vm4, %v27041_v45 }
 0x895   :  { %21025 = vmatmul.mubr.msk.f32.gmra.mrb[10].mxu1 %vm90_vm4, %v27061_v10 }
 0x896   :  { %21027 = vmatprep.mubr.msk.f32.mxu1 %vm90_vm4, %v27071_v61  ;;  %v31850_v61 = vld [vmem:[#allocation18_spill] sm:$0xff] }
 0x899   :  { %21028 = vmatmul.mubr.msk.f32.gmra.mrb[12].mxu1 %vm90_vm4, %v27092_v44 }
 0x89a   :  { %21030 = vmatprep.mubr.msk.f32.mxu1 %vm90_vm4, %v27102_v48  ;;  %v31854_v48 = vld [vmem:[#allocation20_spill] sm:$0xff] }
 0x89d   :  { %21031 = vmatmul.mubr.msk.f32.gmra.mrb[14].mxu1 %vm90_vm4, %v27123_v26  ;;  %v31857_v26 = vld [vmem:[#allocation21_spill] sm:$0xff] }
 0x89e   :  { %21033 = vmatprep.mubr.msk.f32.mxu1 %vm90_vm4, %v27133_v58 }
 0x8a1   :  { %21034 = vmatmul.mubr.msk.f32.gmra.mrb[16].mxu1 %vm90_vm4, %v27150_v23  ;;  %v27617_v23 = vld [vmem:[#allocation3 + $0x208] sm:$0xff] }
 0x8a2   :  { %21036 = vmatprep.mubr.msk.f32.mxu1 %vm90_vm4, %v27158_v38  ;;  %v27623_v38 = vld [vmem:[#allocation3 + $0x210] sm:$0xff] }
 0x8a5   :  { %21037 = vmatmul.mubr.msk.f32.gmra.mrb[18].mxu1 %vm90_vm4, %v27173_v18 }
 0x8a6   :  { %21039 = vmatprep.mubr.msk.f32.mxu1 %vm90_vm4, %v27181_v49 }
 0x8a9   :  { %21040 = vmatmul.mubr.msk.f32.gmra.mrb[20].mxu1 %vm90_vm4, %v27191_v41 }
 0x8aa   :  { %21042 = vmatprep.mubr.msk.f32.mxu1 %vm90_vm4, %v27199_v31  ;;  %v31868_v31 = vld [vmem:[#allocation27_spill] sm:$0xff] }
 0x8ad   :  { %21043 = vmatmul.mubr.msk.f32.gmra.mrb[22].mxu1 %vm90_vm4, %v27207_v30 }
 0x8ae   :  { %21045 = vmatprep.mubr.msk.f32.mxu1 %vm90_vm4, %v27215_v20  ;;  %v31872_v20 = vld [vmem:[#allocation30_spill] sm:$0xff] }
 0x8b1   :  { %21046 = vmatmul.mubr.msk.f32.gmra.mrb[24].mxu1 %vm90_vm4, %v27223_v33 }
 0x8b2   :  { %21048 = vmatprep.mubr.msk.f32.mxu1 %vm90_vm4, %v27231_v34  ;;  %v31876_v34 = vld [vmem:[#allocation5_spill] sm:$0xff] }
 0x8b5   :  { %21049 = vmatmul.mubr.msk.f32.gmra.mrb[26].mxu1 %vm90_vm4, %v27239_v11 }
 0x8b6   :  { %21051 = vmatprep.mubr.msk.f32.mxu1 %vm90_vm4, %v27247_v6  ;;  %v31879_v6 = vld [vmem:[#allocation6_spill] sm:$0xff] }
 0x8b9   :  { %21052 = vmatmul.mubr.msk.f32.gmra.mrb[28].mxu1 %vm90_vm4, %v27255_v54 }
 0x8ba   :  { %21054 = vmatprep.mubr.msk.f32.mxu1 %vm90_vm4, %v27263_v3  ;;  %v31881_v3 = vld [vmem:[#allocation23_spill] sm:$0xff] }
 0x8bd   :  { %21055 = vmatmul.mubr.msk.f32.gmra.mrb[30].mxu1 %vm90_vm4, %v27271_v24 }
 0x8be   :  { %21057 = vmatprep.mubr.msk.f32.mxu1 %vm90_vm4, %v27279_v8 }
 0x8c1   :  { %21058 = vmatmul.mubr.msk.f32.gmra.mrb[32].mxu1 %vm90_vm4, %v27287_v51 }
 0x8c2   :  { %21060 = vmatprep.mubr.msk.f32.mxu1 %vm90_vm4, %v27504_v60 }
 0x8c5   :  { %21061 = vmatmul.mubr.msk.f32.gmra.mrb[34].mxu1 %vm90_vm4, %v27508_v29 }
 0x8c6   :  { %21067 = vmatprep.mubr.msk.f32.mxu1 %vm90_vm4, %v26953_v25 }
 0x8c9   :  { %21068 = vmatmul.mubr.msk.f32.vlgmr.msra.gmra.mrb[4].mxu1 %vm90_vm4, %v26967_v46 }
 0x8ca   :  { %21070 = vmatprep.mubr.msk.f32.mxu1 %vm90_vm4, %v26978_v59  ;;  %22394 = vmatpush3.bf16.msra.mxu1 %v22391_v9  ;;  %v31885_v9 = vld [vmem:[#allocation4_spill] sm:$0xff] }
 0x8cb   :  { %22396 = vmatprep.subr.bf16.mxu1 %v27520_v0 }
 0x8cd   :  { %21071 = vmatmul.mubr.msk.f32.gmra.mrb[6].mxu1 %vm90_vm4, %v26999_v13 }
 0x8ce   :  { %21073 = vmatprep.mubr.msk.f32.mxu1 %vm90_vm4, %v27010_v52 }
 0x8d1   :  { %21074 = vmatmul.mubr.msk.f32.gmra.mrb[8].mxu1 %vm90_vm4, %v27029_v16 }
 0x8d2   :  { %21076 = vmatprep.mubr.msk.f32.mxu1 %vm90_vm4, %v27039_v37 }
 0x8d5   :  { %21077 = vmatmul.mubr.msk.f32.gmra.mrb[10].mxu1 %vm90_vm4, %v27059_v57 }
 0x8d6   :  { %21079 = vmatprep.mubr.msk.f32.mxu1 %vm90_vm4, %v27069_v47  ;;  %v31849_v47 = vld [vmem:[#allocation17_spill] sm:$0xff] }
 0x8d9   :  { %21080 = vmatmul.mubr.msk.f32.gmra.mrb[12].mxu1 %vm90_vm4, %v27090_v56 }
 0x8da   :  { %21082 = vmatprep.mubr.msk.f32.mxu1 %vm90_vm4, %v27100_v4  ;;  %v31853_v4 = vld [vmem:[#allocation19_spill] sm:$0xff] }
 0x8dd   :  { %21083 = vmatmul.mubr.msk.f32.gmra.mrb[14].mxu1 %vm90_vm4, %v27121_v28 }
 0x8de   :  { %21085 = vmatprep.mubr.msk.f32.mxu1 %vm90_vm4, %v27131_v7  ;;  %v31858_v7 = vld [vmem:[#allocation24_spill] sm:$0xff] }
 0x8df   :  { %v27547_v25 = vpop.f32.mrb[38].mxu0 }
 0x8e0   :  { %31837 = vst [vmem:[#allocation43_spill] sm:$0xff] %v27547_v25  ;;  %v27549_v46 = vpop.f32.mrb[39].mxu0 }
 0x8e1   :  { %31838 = vst [vmem:[#allocation44_spill] sm:$0xff] %v27549_v46  ;;  %21086 = vmatmul.mubr.msk.f32.gmra.mrb[16].mxu1 %vm90_vm4, %v27148_v5 }
 0x8e2   :  { %21088 = vmatprep.mubr.msk.f32.mxu1 %vm90_vm4, %v27156_v36 }
 0x8e3   :  { %v27555_v59 = vpop.f32.mrb[40].mxu0 }
 0x8e4   :  { %31839 = vst [vmem:[#allocation45_spill] sm:$0xff] %v27555_v59  ;;  %v27557_v13 = vpop.f32.mrb[41].mxu0 }
 0x8e5   :  { %31840 = vst [vmem:[#allocation46_spill] sm:$0xff] %v27557_v13  ;;  %21089 = vmatmul.mubr.msk.f32.gmra.mrb[18].mxu1 %vm90_vm4, %v27171_v22  ;;  %v18286_v22 = vld [vmem:[%s31487_s10 + $0x70] sm:$0xff] }
 0x8e6   :  { %21091 = vmatprep.mubr.msk.f32.mxu1 %vm90_vm4, %v27179_v21 }
 0x8e7   :  { %v27563_v52 = vpop.f32.mrb[42].mxu0 }
 0x8e8   :  { %31841 = vst [vmem:[#allocation47_spill] sm:$0xff] %v27563_v52  ;;  %v27565_v16 = vpop.f32.mrb[43].mxu0 }
 0x8e9   :  { %31842 = vst [vmem:[#allocation48_spill] sm:$0xff] %v27565_v16  ;;  %21092 = vmatmul.mubr.msk.f32.gmra.mrb[20].mxu1 %vm90_vm4, %v27189_v2 }
 0x8ea   :  { %21094 = vmatprep.mubr.msk.f32.mxu1 %vm90_vm4, %v27197_v32  ;;  %v31867_v32 = vld [vmem:[#allocation26_spill] sm:$0xff] }
 0x8eb   :  { %v27571_v14 = vpop.f32.mrb[44].mxu0 }
 0x8ec   :  { %31843 = vst [vmem:[#allocation49_spill] sm:$0xff] %v27571_v14  ;;  %v27573_v37 = vpop.f32.mrb[45].mxu0 }
 0x8ed   :  { %31844 = vst [vmem:[#allocation50_spill] sm:$0xff] %v27573_v37  ;;  %21095 = vmatmul.mubr.msk.f32.gmra.mrb[22].mxu1 %vm90_vm4, %v27205_v53 }
 0x8ee   :  { %21097 = vmatprep.mubr.msk.f32.mxu1 %vm90_vm4, %v27213_v39  ;;  %v31871_v39 = vld [vmem:[#allocation28_spill] sm:$0xff] }
 0x8ef   :  { %v27579_v45 = vpop.f32.mrb[46].mxu0 }
 0x8f0   :  { %31845 = vst [vmem:[#allocation51_spill] sm:$0xff] %v27579_v45  ;;  %v27581_v51 = vpop.f32.mrb[47].mxu0 }
 0x8f1   :  { %31846 = vst [vmem:[#allocation52_spill] sm:$0xff] %v27581_v51  ;;  %21098 = vmatmul.mubr.msk.f32.gmra.mrb[24].mxu1 %vm90_vm4, %v27221_v17  ;;  %v7398_v51 = vld [vmem:[#allocation3 + $0x16f] sm:$0xff] }
 0x8f2   :  { %21100 = vmatprep.mubr.msk.f32.mxu1 %vm90_vm4, %v27229_v1  ;;  %v31875_v1 = vld [vmem:[#allocation32_spill] sm:$0xff] }
 0x8f3   :  { %v27587_v57 = vpop.f32.mrb[48].mxu0 }
 0x8f4   :  { %31847 = vst [vmem:[#allocation53_spill] sm:$0xff] %v27587_v57  ;;  %v27589_v10 = vpop.f32.mrb[49].mxu0  ;;  %v7395_v57 = vld [vmem:[#allocation3 + $0x147] sm:$0xff] }
 0x8f5   :  { %31848 = vst [vmem:[#allocation54_spill] sm:$0xff] %v27589_v10  ;;  %21101 = vmatmul.mubr.msk.f32.gmra.mrb[26].mxu1 %vm90_vm4, %v31849_v47  ;;  %v24190_v47 = vld [vmem:[%s31480_s0 + $0x100] sm:$0xff]  ;;  %v31901_v10 = vld [vmem:[#allocation15_spill] sm:$0xff] }
 0x8f6   :  { %21103 = vmatprep.mubr.msk.f32.mxu1 %vm90_vm4, %v31850_v61 }
 0x8f7   :  { %v27595_v56 = vpop.f32.mrb[50].mxu0 }
 0x8f8   :  { %31851 = vst [vmem:[#allocation17_spill] sm:$0xff] %v27595_v56  ;;  %v27597_v44 = vpop.f32.mrb[51].mxu0  ;;  %v7393_v56 = vld [vmem:[#allocation3 + $0x127] sm:$0xff] }
 0x8f9   :  { %31852 = vst [vmem:[#allocation18_spill] sm:$0xff] %v27597_v44  ;;  %21104 = vmatmul.mubr.msk.f32.gmra.mrb[28].mxu1 %vm90_vm4, %v31853_v4  ;;  %v24191_v4 = vld [vmem:[%s31480_s0 + $0x108] sm:$0xff] }
 0x8fa   :  { %21106 = vmatprep.mubr.msk.f32.mxu1 %vm90_vm4, %v31854_v48  ;;  %v31899_v44 = vld [vmem:[#allocation13_spill] sm:$0xff] }
 0x8fb   :  { %v27603_v8 = vpop.f32.mrb[52].mxu0 }
 0x8fc   :  { %31855 = vst [vmem:[#allocation19_spill] sm:$0xff] %v27603_v8  ;;  %v27605_v28 = vpop.f32.mrb[53].mxu0  ;;  %v7391_v8 = vld [vmem:[#allocation3 + $0x107] sm:$0xff] }
 0x8fd   :  { %31856 = vst [vmem:[#allocation20_spill] sm:$0xff] %v27605_v28  ;;  %21107 = vmatmul.mubr.msk.f32.gmra.mrb[30].mxu1 %vm90_vm4, %v31857_v26  ;;  %v31888_v26 = vld [vmem:[#allocation9_spill] sm:$0xff] }
 0x8fe   :  { %21109 = vmatprep.mubr.msk.f32.mxu1 %vm90_vm4, %v31858_v7  ;;  %v24192_v7 = vld [vmem:[%s31480_s0 + $0x110] sm:$0xff] }
 0x8ff   :  { %v27611_v58 = vpop.f32.mrb[54].mxu0  ;;  %v7390_v28 = vld [vmem:[#allocation3 + $0xef] sm:$0xff] }
 0x900   :  { %31859 = vst [vmem:[#allocation21_spill] sm:$0xff] %v27611_v58  ;;  %v27613_v5 = vpop.f32.mrb[55].mxu0 }
 0x901   :  { %31860 = vst [vmem:[#allocation24_spill] sm:$0xff] %v27613_v5  ;;  %21110 = vmatmul.mubr.msk.f32.gmra.mrb[32].mxu1 %vm90_vm4, %v27285_v63  ;;  %v18287_v63 = vld [vmem:[%s31487_s10 + $0x78] sm:$0xff] }
 0x902   :  { %21112 = vmatprep.mubr.msk.f32.mxu1 %vm90_vm4, %v27617_v23  ;;  %v27637_v18 = vpack.c.bf16 %v18287_v63, %v18286_v22  ;;  %v31889_v63 = vld [vmem:[#allocation10_spill] sm:$0xff] }
 0x903   :  { %v27621_v36 = vpop.f32.mrb[56].mxu0 }
 0x904   :  { %31861 = vst [vmem:[#allocation55_spill] sm:$0xff] %v27621_v36  ;;  %v27625_v24 = vpop.f32.mrb[57].mxu0  ;;  %v7388_v36 = vld [vmem:[#allocation3 + $0xcf] sm:$0xff] }
 0x905   :  { %31862 = vst [vmem:[#allocation56_spill] sm:$0xff] %v27625_v24  ;;  %21113 = vmatmul.mubr.msk.f32.gmra.mrb[34].mxu1 %vm90_vm4, %v27623_v38 }
 0x906   :  { %21119 = vmatprep.mubr.msk.f32.mxu1 %vm90_vm4, %v27306_v55 }
 0x907   :  { %v27639_v21 = vpop.f32.mrb[58].mxu0 }
 0x908   :  { %31863 = vst [vmem:[#allocation57_spill] sm:$0xff] %v27639_v21  ;;  %v27641_v49 = vpop.f32.mrb[59].mxu0  ;;  %v7386_v21 = vld [vmem:[#allocation3 + $0xaf] sm:$0xff] }
 0x909   :  { %31864 = vst [vmem:[#allocation58_spill] sm:$0xff] %v27641_v49  ;;  %21120 = vmatmul.mubr.msk.f32.vlgmr.msra.gmra.mrb[4].mxu1 %vm90_vm4, %v27315_v27  ;;  %v31882_v27 = vld [vmem:[#allocation25_spill] sm:$0xff] }
 0x90a   :  { %21122 = vmatprep.mubr.msk.f32.mxu1 %vm90_vm4, %v27321_v50  ;;  %22398 = vmatpush3.bf16.msra.mxu1 %v27520_v0  ;;  %v31883_v50 = vld [vmem:[#allocation29_spill] sm:$0xff]  ;;  %v31887_v0 = vld [vmem:[#allocation8_spill] sm:$0xff] }
 0x90b   :  { %22400 = vmatprep.subr.bf16.mxu1 %v27637_v18  ;;  %v27649_v2 = vpop.f32.mrb[60].mxu0 }
 0x90c   :  { %31865 = vst [vmem:[#allocation59_spill] sm:$0xff] %v27649_v2  ;;  %v27651_v41 = vpop.f32.mrb[61].mxu0 }
 0x90d   :  { %31866 = vst [vmem:[#allocation60_spill] sm:$0xff] %v27651_v41  ;;  %21123 = vmatmul.mubr.msk.f32.gmra.mrb[6].mxu1 %vm90_vm4, %v31867_v32  ;;  %v24193_v32 = vld [vmem:[%s31480_s0 + $0x118] sm:$0xff] }
 0x90e   :  { %21125 = vmatprep.mubr.msk.f32.mxu1 %vm90_vm4, %v31868_v31 }
 0x90f   :  { %v27657_v53 = vpop.f32.mrb[62].mxu0 }
 0x910   :  { %31869 = vst [vmem:[#allocation26_spill] sm:$0xff] %v27657_v53  ;;  %v27659_v30 = vpop.f32.mrb[63].mxu0  ;;  %v7380_v53 = vld [vmem:[#allocation3 + $0x4f] sm:$0xff] }
 0x911   :  { %31870 = vst [vmem:[#allocation27_spill] sm:$0xff] %v27659_v30  ;;  %21126 = vmatmul.mubr.msk.f32.gmra.mrb[8].mxu1 %vm90_vm4, %v31871_v39 }
 0x912   :  { %21128 = vmatprep.mubr.msk.f32.mxu1 %vm90_vm4, %v31872_v20 }
 0x913   :  { %v27665_v17 = vpop.f32.mrb[64].mxu0 }
 0x914   :  { %31873 = vst [vmem:[#allocation28_spill] sm:$0xff] %v27665_v17  ;;  %v27667_v33 = vpop.f32.mrb[65].mxu0 }
 0x915   :  { %31874 = vst [vmem:[#allocation30_spill] sm:$0xff] %v27667_v33  ;;  %21129 = vmatmul.mubr.msk.f32.gmra.mrb[10].mxu1 %vm90_vm4, %v31875_v1  ;;  %v31890_v1 = vld [vmem:[#allocation11_spill] sm:$0xff] }
 0x916   :  { %21131 = vmatprep.mubr.msk.f32.mxu1 %vm90_vm4, %v31876_v34  ;;  %v24194_v34 = vld [vmem:[%s31480_s0 + $0x120] sm:$0xff] }
 0x917   :  { %v27673_v40 = vpop.f32.mrb[66].mxu0 }
 0x918   :  { %31877 = vst [vmem:[#allocation32_spill] sm:$0xff] %v27673_v40  ;;  %v27675_v11 = vpop.f32.mrb[67].mxu0 }
 0x919   :  { %31878 = vst [vmem:[#allocation5_spill] sm:$0xff] %v27675_v11  ;;  %21132 = vmatmul.mubr.msk.f32.gmra.mrb[12].mxu1 %vm90_vm4, %v31879_v6 }
 0x91a   :  { %21134 = vmatprep.mubr.msk.f32.mxu1 %vm90_vm4, %v31880_v12 }
 0x91b   :  { %v9143_v54 = vpop.f32.mrb[68].mxu0 }
 0x91c   :  { %v21377_v55 = vpop.f32.mrb[69].mxu0  ;;  %v27690_v15 = vrot.slane %v9143_v54, %v31885_v9  ;;  %v31891_v54 = vld [vmem:[#allocation34_spill] sm:$0xff] }
 0x91d   :  { %21135 = vmatmul.mubr.msk.f32.gmra.mrb[14].mxu1 %vm90_vm4, %v31881_v3  ;;  %v24195_v3 = vld [vmem:[%s31480_s0 + $0x128] sm:$0xff] }
 0x91e   :  { %21137 = vmatprep.mubr.msk.f32.mxu1 %vm90_vm4, %v31882_v27  ;;  %v27700_v61 = vsub.f32 %v24190_v47, %v27690_v15  ;;  %v27706_v48 = vsub.f32 %v24191_v4, %v27690_v15  ;;  %v27714_v22 = vsub.f32 %v24192_v7, %v27690_v15  ;;  %v27722_v31 = vsub.f32 %v24193_v32, %v27690_v15  ;;  %v24196_v47 = vld [vmem:[%s31480_s0 + $0x130] sm:$0xff] }
 0x91f   :  { %v27734_v6 = vsub.f32 %v24194_v34, %v27690_v15  ;;  %v27744_v55 = vsub.f32 %v24195_v3, %v27690_v15  ;;  %v27756_v4 = vsub.f32 %v24196_v47, %v27690_v15  ;;  %v31894_v3 = vld [vmem:[#allocation37_spill] sm:$0xff] }
 0x920   :  { %v9183_v39 = vmul.f32 %v27700_v61, %v27700_v61  ;;  %v9184_v20 = vmul.f32 %v27706_v48, %v27706_v48  ;;  %v9185_v12 = vmul.f32 %v27714_v22, %v27714_v22  ;;  %v9186_v27 = vmul.f32 %v27722_v31, %v27722_v31  ;;  %v24199_v47 = vld [vmem:[%s31480_s0 + $0x148] sm:$0xff] }
 0x921   :  { %21138 = vmatmul.mubr.msk.f32.gmra.mrb[16].mxu1 %vm90_vm4, %v31883_v50 }
 0x922   :  { %21140 = vmatprep.mubr.msk.f32.mxu1 %vm90_vm4, %v31884_v43  ;;  %v9215_v50 = vsel %vm47_vm0, %v9183_v39, 0.0  ;;  %v9216_v43 = vsel %vm47_vm0, %v9184_v20, 0.0  ;;  %v9218_v7 = vsel %vm47_vm0, %v9185_v12, 0.0  ;;  %v24197_v39 = vld [vmem:[%s31480_s0 + $0x138] sm:$0xff]  ;;  %v9220_v34 = vsel %vm47_vm0, %v9186_v27, 0.0  ;;  %v24198_v12 = vld [vmem:[%s31480_s0 + $0x140] sm:$0xff] }
 0x923   :  { %v27767_v20 = vsub.f32 %v24197_v39, %v27690_v15 }
 0x925   :  { %21141 = vmatmul.mubr.msk.f32.gmra.mrb[18].mxu1 %vm90_vm4, %v31886_v19  ;;  %v9217_v19 = vadd.f32 %v9216_v43, %v9215_v50  ;;  %v27778_v50 = vsub.f32 %v24198_v12, %v27690_v15  ;;  %v9189_v43 = vmul.f32 %v27756_v4, %v27756_v4  ;;  %v31896_v12 = vld [vmem:[#allocation41_spill] sm:$0xff] }
 0x926   :  { %21143 = vmatprep.mubr.msk.f32.mxu1 %vm90_vm4, %v31887_v0  ;;  %v31892_v0 = vld [vmem:[#allocation35_spill] sm:$0xff] }
 0x927   :  { %v9219_v32 = vadd.f32 %v9218_v7, %v9217_v19  ;;  %v27789_v7 = vsub.f32 %v24199_v47, %v27690_v15 }
 0x929   :  { %21144 = vmatmul.mubr.msk.f32.gmra.mrb[20].mxu1 %vm90_vm4, %v31888_v26  ;;  %v9187_v26 = vmul.f32 %v27734_v6, %v27734_v6 }
 0x92a   :  { %21146 = vmatprep.mubr.msk.f32.mxu1 %vm90_vm4, %v31889_v63  ;;  %v31893_v63 = vld [vmem:[#allocation36_spill] sm:$0xff] }
 0x92b   :  { %v9222_v19 = vsel %vm47_vm0, %v9187_v26, 0.0  ;;  %v24200_v26 = vld [vmem:[%s31480_s0 + $0x150] sm:$0xff] }
 0x92d   :  { %21147 = vmatmul.mubr.msk.f32.gmra.mrb[22].mxu1 %vm90_vm4, %v31890_v1  ;;  %v9188_v1 = vmul.f32 %v27744_v55, %v27744_v55 }
 0x92e   :  { %21149 = vmatprep.mubr.msk.f32.mxu1 %vm90_vm4, %v31891_v54  ;;  %v9221_v54 = vadd.f32 %v9220_v34, %v9219_v32  ;;  %v27800_v34 = vsub.f32 %v24200_v26, %v27690_v15 }
 0x92f   :  { %v9224_v32 = vsel %vm47_vm0, %v9188_v1, 0.0 }
 0x930   :  { %v9223_v27 = vadd.f32 %v9222_v19, %v9221_v54  ;;  %v9191_v54 = vmul.f32 %v27778_v50, %v27778_v50  ;;  %v9193_v26 = vmul.f32 %v27800_v34, %v27800_v34 }
 0x931   :  { %21150 = vmatmul.mubr.msk.f32.gmra.mrb[24].mxu1 %vm90_vm4, %v31892_v0  ;;  %v31895_v0 = vld [vmem:[#allocation38_spill] sm:$0xff] }
 0x932   :  { %21152 = vmatprep.mubr.msk.f32.mxu1 %vm90_vm4, %v31893_v63  ;;  %v9190_v63 = vmul.f32 %v27767_v20, %v27767_v20  ;;  %v9225_v39 = vadd.f32 %v9224_v32, %v9223_v27  ;;  %v31897_v32 = vld [vmem:[#allocation42_spill] sm:$0xff] }
 0x934   :  { %v9228_v27 = vsel %vm47_vm0, %v9190_v63, 0.0 }
 0x935   :  { %21153 = vmatmul.mubr.msk.f32.gmra.mrb[26].mxu1 %vm90_vm4, %v31894_v3  ;;  %v9226_v3 = vsel %vm47_vm0, %v9189_v43, 0.0  ;;  %v24202_v43 = vld [vmem:[%s31480_s0 + $0x160] sm:$0xff] }
 0x936   :  { %21155 = vmatprep.mubr.msk.f32.mxu1 %vm90_vm4, %v31895_v0  ;;  %v9227_v1 = vadd.f32 %v9226_v3, %v9225_v39  ;;  %v9192_v0 = vmul.f32 %v27789_v7, %v27789_v7  ;;  %v27822_v39 = vsub.f32 %v24202_v43, %v27690_v15  ;;  %v9230_v3 = vsel %vm47_vm0, %v9191_v54, 0.0  ;;  %v27840_v54 = vld [vmem:[#allocation3 + $0x209] sm:$0xff] }
 0x938   :  { %v9229_v47 = vadd.f32 %v9228_v27, %v9227_v1  ;;  %v9232_v27 = vsel %vm47_vm0, %v9192_v0, 0.0  ;;  %v9195_v43 = vmul.f32 %v27822_v39, %v27822_v39 }
 0x939   :  { %21156 = vmatmul.mubr.msk.f32.gmra.mrb[28].mxu1 %vm90_vm4, %v27417_v42  ;;  %v24201_v42 = vld [vmem:[%s31480_s0 + $0x158] sm:$0xff] }
 0x93a   :  { %21158 = vmatprep.mubr.msk.f32.mxu1 %vm90_vm4, %v31896_v12  ;;  %v27811_v19 = vsub.f32 %v24201_v42, %v27690_v15  ;;  %v9231_v63 = vadd.f32 %v9230_v3, %v9229_v47  ;;  %v24203_v12 = vld [vmem:[%s31480_s0 + $0x168] sm:$0xff]  ;;  %v9234_v3 = vsel %vm47_vm0, %v9193_v26, 0.0  ;;  %v9238_v40 = vsel %vm47_vm0, %v9195_v43, 0.0 }
 0x93b   :  { %v27833_v1 = vsub.f32 %v24203_v12, %v27690_v15  ;;  %v7379_v26 = vld [vmem:[#allocation3 + $0x47] sm:$0xff] }
 0x93c   :  { %v9194_v42 = vmul.f32 %v27811_v19, %v27811_v19 }
 0x93d   :  { %21159 = vmatmul.mubr.msk.f32.gmra.mrb[30].mxu1 %vm90_vm4, %v31897_v32  ;;  %v9233_v32 = vadd.f32 %v9232_v27, %v9231_v63  ;;  %v9196_v12 = vmul.f32 %v27833_v1, %v27833_v1 }
 0x93e   :  { %21161 = vmatprep.mubr.msk.f32.mxu1 %vm90_vm4, %v27429_v62  ;;  %v24204_v62 = vld [vmem:[%s31480_s0 + $0x170] sm:$0xff]  ;;  %v9236_v27 = vsel %vm47_vm0, %v9194_v42, 0.0  ;;  %v18320_v42 = vld [vmem:[%s31487_s10 + $0x80] sm:$0xff] }
 0x93f   :  { %v27846_v47 = vsub.f32 %v24204_v62, %v27690_v15  ;;  %v9235_v0 = vadd.f32 %v9234_v3, %v9233_v32  ;;  %v27862_v62 = vld [vmem:[#allocation3 + $0x211] sm:$0xff]  ;;  %v24206_v32 = vld [vmem:[%s31480_s0 + $0x180] sm:$0xff]  ;;  %v9240_v17 = vsel %vm47_vm0, %v9196_v12, 0.0 }
 0x940   :  { %v27870_v3 = vsub.f32 %v24206_v32, %v27690_v15  ;;  %v24207_v32 = vld [vmem:[%s31480_s0 + $0x188] sm:$0xff] }
 0x941   :  { %21162 = vmatmul.mubr.msk.f32.gmra.mrb[32].mxu1 %vm90_vm4, %v27433_v35  ;;  %v24205_v35 = vld [vmem:[%s31480_s0 + $0x178] sm:$0xff]  ;;  %v9237_v11 = vadd.f32 %v9236_v27, %v9235_v0  ;;  %v18321_v0 = vld [vmem:[%s31487_s10 + $0x88] sm:$0xff]  ;;  %v27886_v33 = vsub.f32 %v24207_v32, %v27690_v15 }
 0x942   :  { %21164 = vmatprep.mubr.msk.f32.mxu1 %vm90_vm4, %v27840_v54  ;;  %v27857_v63 = vsub.f32 %v24205_v35, %v27690_v15  ;;  %v9197_v35 = vmul.f32 %v27846_v47, %v27846_v47  ;;  %v27891_v30 = vpack.c.bf16 %v18321_v0, %v18320_v42  ;;  %v9199_v32 = vmul.f32 %v27870_v3, %v27870_v3 }
 0x943   :  { %v9239_v27 = vadd.f32 %v9238_v40, %v9237_v11  ;;  %v24208_v40 = vld [vmem:[%s31480_s0 + $0x190] sm:$0xff]  ;;  %v9200_v42 = vmul.f32 %v27886_v33, %v27886_v33 }
 0x944   :  { %v9198_v43 = vmul.f32 %v27857_v63, %v27857_v63  ;;  %v27898_v11 = vsub.f32 %v24208_v40, %v27690_v15  ;;  %v9242_v2 = vsel %vm47_vm0, %v9197_v35, 0.0  ;;  %v7382_v35 = vld [vmem:[#allocation3 + $0x6f] sm:$0xff]  ;;  %v9246_v40 = vsel %vm47_vm0, %v9199_v32, 0.0  ;;  %v7385_v32 = vld [vmem:[#allocation3 + $0xa7] sm:$0xff] }
 0x945   :  { %21165 = vmatmul.mubr.msk.f32.gmra.mrb[34].mxu1 %vm90_vm4, %v27862_v62  ;;  %v9241_v41 = vadd.f32 %v9240_v17, %v9239_v27 }
 0x946   :  { %21171 = vmatprep.mubr.msk.f32.mxu1 %vm90_vm4, %v7379_v26  ;;  %v7381_v26 = vld [vmem:[#allocation3 + $0x67] sm:$0xff]  ;;  %v9244_v0 = vsel %vm47_vm0, %v9198_v43, 0.0 }
 0x947   :  { %v9243_v12 = vadd.f32 %v9242_v2, %v9241_v41  ;;  %v7383_v2 = vld [vmem:[#allocation3 + $0x87] sm:$0xff] }
 0x949   :  { %21172 = vmatmul.mubr.msk.f32.vlgmr.msra.gmra.mrb[4].mxu1 %vm90_vm4, %v7380_v53  ;;  %v24209_v53 = vld [vmem:[%s31480_s0 + $0x198] sm:$0xff]  ;;  %v9245_v27 = vadd.f32 %v9244_v0, %v9243_v12  ;;  %v24211_v12 = vld [vmem:[%s31480_s0 + $0x1a8] sm:$0xff] }
 0x94a   :  { %21174 = vmatprep.mubr.msk.f32.mxu1 %vm90_vm4, %v7381_v26  ;;  %22402 = vmatpush3.bf16.msra.mxu1 %v27637_v18  ;;  %v27909_v17 = vsub.f32 %v24209_v53, %v27690_v15  ;;  %v24210_v18 = vld [vmem:[%s31480_s0 + $0x1a0] sm:$0xff]  ;;  %v9201_v26 = vmul.f32 %v27898_v11, %v27898_v11  ;;  %v27930_v53 = vsub.f32 %v24211_v12, %v27690_v15 }
 0x94b   :  { %22404 = vmatprep.subr.bf16.mxu1 %v27891_v30  ;;  %v27920_v41 = vsub.f32 %v24210_v18, %v27690_v15  ;;  %v9247_v43 = vadd.f32 %v9246_v40, %v9245_v27  ;;  %v7384_v18 = vld [vmem:[#allocation3 + $0x8f] sm:$0xff] }
 0x94c   :  { %v9202_v0 = vmul.f32 %v27909_v17, %v27909_v17  ;;  %v24212_v27 = vld [vmem:[%s31480_s0 + $0x1b0] sm:$0xff]  ;;  %v9250_v12 = vsel %vm47_vm0, %v9201_v26, 0.0  ;;  %v7387_v26 = vld [vmem:[#allocation3 + $0xc7] sm:$0xff] }
 0x94d   :  { %21175 = vmatmul.mubr.msk.f32.gmra.mrb[6].mxu1 %vm90_vm4, %v7382_v35  ;;  %v9248_v35 = vsel %vm47_vm0, %v9200_v42, 0.0  ;;  %v9203_v40 = vmul.f32 %v27920_v41, %v27920_v41 }
 0x94e   :  { %21177 = vmatprep.mubr.msk.f32.mxu1 %vm90_vm4, %v7383_v2  ;;  %v9249_v49 = vadd.f32 %v9248_v35, %v9247_v43  ;;  %v27940_v2 = vsub.f32 %v24212_v27, %v27690_v15  ;;  %v24213_v43 = vld [vmem:[%s31480_s0 + $0x1b8] sm:$0xff]  ;;  %v9252_v27 = vsel %vm47_vm0, %v9202_v0, 0.0 }
 0x94f   :  { %v27950_v35 = vsub.f32 %v24213_v43, %v27690_v15  ;;  %v9254_v43 = vsel %vm47_vm0, %v9203_v40, 0.0  ;;  %v7389_v40 = vld [vmem:[#allocation3 + $0xe7] sm:$0xff] }
 0x950   :  { %v9251_v42 = vadd.f32 %v9250_v12, %v9249_v49  ;;  %v24214_v49 = vld [vmem:[%s31480_s0 + $0x1c0] sm:$0xff]  ;;  %v9205_v12 = vmul.f32 %v27940_v2, %v27940_v2 }
 0x951   :  { %21178 = vmatmul.mubr.msk.f32.gmra.mrb[8].mxu1 %vm90_vm4, %v7384_v18  ;;  %v9204_v18 = vmul.f32 %v27930_v53, %v27930_v53 }
 0x952   :  { %21180 = vmatprep.mubr.msk.f32.mxu1 %vm90_vm4, %v7385_v32  ;;  %v9253_v24 = vadd.f32 %v9252_v27, %v9251_v42  ;;  %v27960_v32 = vsub.f32 %v24214_v49, %v27690_v15  ;;  %v9206_v27 = vmul.f32 %v27950_v35, %v27950_v35 }
 0x953   :  { %v9256_v49 = vsel %vm47_vm0, %v9204_v18, 0.0 }
 0x954   :  { %v9255_v0 = vadd.f32 %v9254_v43, %v9253_v24  ;;  %v24216_v24 = vld [vmem:[%s31480_s0 + $0x1d0] sm:$0xff]  ;;  %v9207_v43 = vmul.f32 %v27960_v32, %v27960_v32  ;;  %v9260_v58 = vsel %vm47_vm0, %v9206_v27, 0.0 }
 0x955   :  { %21181 = vmatmul.mubr.msk.f32.gmra.mrb[10].mxu1 %vm90_vm4, %v7386_v21  ;;  %v24215_v21 = vld [vmem:[%s31480_s0 + $0x1c8] sm:$0xff] }
 0x956   :  { %21183 = vmatprep.mubr.msk.f32.mxu1 %vm90_vm4, %v7387_v26  ;;  %v27970_v42 = vsub.f32 %v24215_v21, %v27690_v15  ;;  %v9257_v5 = vadd.f32 %v9256_v49, %v9255_v0  ;;  %v27980_v26 = vsub.f32 %v24216_v24, %v27690_v15  ;;  %v9258_v21 = vsel %vm47_vm0, %v9205_v12, 0.0  ;;  %v31898_v0 = vld [vmem:[#allocation12_spill] sm:$0xff] }
 0x957   :  { %v27988_v49 = vsub.f32 %v31898_v0, %v27690_v15  ;;  %v27996_v12 = vsub.f32 %v31899_v44, %v27690_v15  ;;  %v31900_v0 = vld [vmem:[#allocation14_spill] sm:$0xff] }
 0x958   :  { %v9259_v18 = vadd.f32 %v9258_v21, %v9257_v5  ;;  %v9209_v5 = vmul.f32 %v27980_v26, %v27980_v26  ;;  %v28004_v27 = vsub.f32 %v31900_v0, %v27690_v15  ;;  %v31902_v0 = vld [vmem:[#allocation16_spill] sm:$0xff] }
 0x959   :  { %21184 = vmatmul.mubr.msk.f32.gmra.mrb[12].mxu1 %vm90_vm4, %v7388_v36  ;;  %v9208_v36 = vmul.f32 %v27970_v42, %v27970_v42 }
 0x95a   :  { %21186 = vmatprep.mubr.msk.f32.mxu1 %vm90_vm4, %v7389_v40  ;;  %v9261_v24 = vadd.f32 %v9260_v58, %v9259_v18  ;;  %v9262_v40 = vsel %vm47_vm0, %v9207_v43, 0.0  ;;  %v7392_v18 = vld [vmem:[#allocation3 + $0x10f] sm:$0xff]  ;;  %v28012_v43 = vsub.f32 %v31901_v10, %v27690_v15 }
 0x95b   :  { %v9264_v58 = vsel %vm47_vm0, %v9208_v36, 0.0  ;;  %v28020_v36 = vsub.f32 %v31902_v0, %v27690_v15  ;;  %v7396_v0 = vld [vmem:[#allocation3 + $0x14f] sm:$0xff] }
 0x95c   :  { %v9263_v21 = vadd.f32 %v9262_v40, %v9261_v24  ;;  %v9266_v24 = vsel %vm47_vm0, %v9209_v5, 0.0  ;;  %v9213_v5 = vmul.f32 %v28012_v43, %v28012_v43 }
 0x95d   :  { %21187 = vmatmul.mubr.msk.f32.gmra.mrb[14].mxu1 %vm90_vm4, %v7390_v28  ;;  %v9210_v28 = vmul.f32 %v27988_v49, %v27988_v49  ;;  %v9214_v15 = vmul.f32 %v28020_v36, %v28020_v36 }
 0x95e   :  { %21189 = vmatprep.mubr.msk.f32.mxu1 %vm90_vm4, %v7391_v8  ;;  %v9265_v44 = vadd.f32 %v9264_v58, %v9263_v21  ;;  %v9211_v8 = vmul.f32 %v27996_v12, %v27996_v12  ;;  %v9212_v21 = vmul.f32 %v28004_v27, %v28004_v27 }
 0x95f   :  { %v9268_v58 = vsel %vm47_vm0, %v9210_v28, 0.0 }
 0x960   :  { %v9267_v40 = vadd.f32 %v9266_v24, %v9265_v44  ;;  %v9272_v24 = vsel %vm47_vm0, %v9212_v21, 0.0 }
 0x961   :  { %21190 = vmatmul.mubr.msk.f32.gmra.mrb[16].mxu1 %vm90_vm4, %v7392_v18  ;;  %v7394_v18 = vld [vmem:[#allocation3 + $0x12f] sm:$0xff] }
 0x962   :  { %21192 = vmatprep.mubr.msk.f32.mxu1 %vm90_vm4, %v7393_v56  ;;  %v9269_v10 = vadd.f32 %v9268_v58, %v9267_v40  ;;  %v9270_v56 = vsel %vm47_vm0, %v9211_v8, 0.0  ;;  %v7397_v40 = vld [vmem:[#allocation3 + $0x167] sm:$0xff]  ;;  %v9274_v58 = vsel %vm47_vm0, %v9213_v5, 0.0  ;;  %v9276_v8 = vsel %vm47_vm0, %v9214_v15, 0.0 }
 0x963   :  { %v7403_v15 = vld [vmem:[#allocation3 + $0x1c7] sm:$0xff] }
 0x964   :  { %v9271_v44 = vadd.f32 %v9270_v56, %v9269_v10  ;;  %v7399_v10 = vld [vmem:[#allocation3 + $0x187] sm:$0xff] }
 0x965   :  { %21193 = vmatmul.mubr.msk.f32.gmra.mrb[18].mxu1 %vm90_vm4, %v7394_v18 }
 0x966   :  { %21195 = vmatprep.mubr.msk.f32.mxu1 %vm90_vm4, %v7395_v57  ;;  %v9273_v28 = vadd.f32 %v9272_v24, %v9271_v44  ;;  %v7400_v44 = vld [vmem:[#allocation3 + $0x18f] sm:$0xff]  ;;  %v7401_v24 = vld [vmem:[#allocation3 + $0x1a7] sm:$0xff] }
 0x968   :  { %v9275_v18 = vadd.f32 %v9274_v58, %v9273_v28  ;;  %v7402_v28 = vld [vmem:[#allocation3 + $0x1af] sm:$0xff] }
 0x969   :  { %21196 = vmatmul.mubr.msk.f32.gmra.mrb[20].mxu1 %vm90_vm4, %v7396_v0  ;;  %v7404_v58 = vld [vmem:[#allocation3 + $0x1cf] sm:$0xff] }
 0x96a   :  { %21198 = vmatprep.mubr.msk.f32.mxu1 %vm90_vm4, %v7397_v40  ;;  %v9277_v57 = vadd.f32 %v9276_v8, %v9275_v18  ;;  %v7405_v18 = vld [vmem:[#allocation3 + $0x1e7] sm:$0xff]  ;;  %v7406_v8 = vld [vmem:[#allocation3 + $0x1ef] sm:$0xff] }
 0x96c   :  { %v9278_v21 = vrot.slane %v9277_v57, 4 }
 0x96d   :  { %21199 = vmatmul.mubr.msk.f32.gmra.mrb[22].mxu1 %vm90_vm4, %v7398_v51 }
 0x96e   :  { %21201 = vmatprep.mubr.msk.f32.mxu1 %vm90_vm4, %v7399_v10  ;;  %v9279_v56 = vadd.f32 %v9278_v21, %v9277_v57  ;;  %v7409_v57 = vld [vmem:[#allocation3 + $0x227] sm:$0xff]  ;;  %v7410_v10 = vld [vmem:[#allocation3 + $0x22f] sm:$0xff] }
 0x96f   :  { %v7767_v21 = vld [vmem:[#allocation3 + $0x48] sm:$0xff] }
 0x970   :  { %v9280_v0 = vrot.slane %v9279_v56, 2 }
 0x971   :  { %21202 = vmatmul.mubr.msk.f32.gmra.mrb[24].mxu1 %vm90_vm4, %v7400_v44  ;;  %v28057_v44 = vld [vmem:[%s31490_s12] sm:$0xff] }
 0x972   :  { %21204 = vmatprep.mubr.msk.f32.mxu1 %vm90_vm4, %v7401_v24  ;;  %v9281_v5 = vadd.f32 %v9280_v0, %v9279_v56  ;;  %v7768_v56 = vld [vmem:[#allocation3 + $0x50] sm:$0xff]  ;;  %v7771_v24 = vld [vmem:[#allocation3 + $0x88] sm:$0xff] }
 0x973   :  { %v7772_v0 = vld [vmem:[#allocation3 + $0x90] sm:$0xff] }
 0x974   :  { %v9282_v40 = vrot.slane %v9281_v5, 1 }
 0x975   :  { %21205 = vmatmul.mubr.msk.f32.gmra.mrb[26].mxu1 %vm90_vm4, %v7402_v28  ;;  %v7774_v28 = vld [vmem:[#allocation3 + $0xb0] sm:$0xff] }
 0x976   :  { %21207 = vmatprep.mubr.msk.f32.mxu1 %vm90_vm4, %v7403_v15  ;;  %v9283_v51 = vadd.f32 %v9282_v40, %v9281_v5  ;;  %v7773_v5 = vld [vmem:[#allocation3 + $0xa8] sm:$0xff] }
 0x977   :  { %v7775_v15 = vld [vmem:[#allocation3 + $0xc8] sm:$0xff] }
 0x978   :  { %21381 = vmatmul.mubr.msk.f32.vlgmr.msra.gmra.mrb[70].mxu0 %vm47_vm0, %v9283_v51  ;;  %v7777_v40 = vld [vmem:[#allocation3 + $0xe8] sm:$0xff]  ;;  %v7778_v51 = vld [vmem:[#allocation3 + $0xf0] sm:$0xff] }
 0x979   :  { %21208 = vmatmul.mubr.msk.f32.gmra.mrb[28].mxu1 %vm90_vm4, %v7404_v58  ;;  %v7779_v58 = vld [vmem:[#allocation3 + $0x108] sm:$0xff] }
 0x97a   :  { %21210 = vmatprep.mubr.msk.f32.mxu1 %vm90_vm4, %v7405_v18  ;;  %v7780_v18 = vld [vmem:[#allocation3 + $0x110] sm:$0xff] }
 0x97d   :  { %21211 = vmatmul.mubr.msk.f32.gmra.mrb[30].mxu1 %vm90_vm4, %v7406_v8  ;;  %v7781_v8 = vld [vmem:[#allocation3 + $0x128] sm:$0xff] }
 0x97e   :  { %21213 = vmatprep.mubr.msk.f32.mxu1 %vm90_vm4, %v27504_v60  ;;  %v7769_v60 = vld [vmem:[#allocation3 + $0x68] sm:$0xff] }
 0x981   :  { %21214 = vmatmul.mubr.msk.f32.gmra.mrb[32].mxu1 %vm90_vm4, %v27508_v29  ;;  %v7770_v29 = vld [vmem:[#allocation3 + $0x70] sm:$0xff] }
 0x982   :  { %21216 = vmatprep.mubr.msk.f32.mxu1 %vm90_vm4, %v7409_v57  ;;  %v7782_v57 = vld [vmem:[#allocation3 + $0x130] sm:$0xff] }
 0x985   :  { %21217 = vmatmul.mubr.msk.f32.gmra.mrb[34].mxu1 %vm90_vm4, %v7410_v10  ;;  %v7783_v10 = vld [vmem:[#allocation3 + $0x148] sm:$0xff] }
 0x986   :  { %21223 = vmatprep.mubr.msk.f32.mxu1 %vm90_vm4, %v7767_v21  ;;  %v7784_v21 = vld [vmem:[#allocation3 + $0x150] sm:$0xff] }
 0x989   :  { %21224 = vmatmul.mubr.msk.f32.vlgmr.msra.gmra.mrb[4].mxu1 %vm90_vm4, %v7768_v56  ;;  %v7785_v56 = vld [vmem:[#allocation3 + $0x168] sm:$0xff] }
 0x98a   :  { %21226 = vmatprep.mubr.msk.f32.mxu1 %vm90_vm4, %v7769_v60  ;;  %22406 = vmatpush3.bf16.msra.mxu1 %v27891_v30  ;;  %v7776_v30 = vld [vmem:[#allocation3 + $0xd0] sm:$0xff] }
 0x98b   :  { %21323 = vmatprep.subr.mxu1 %v28057_v44  ;;  %v7786_v60 = vld [vmem:[#allocation3 + $0x170] sm:$0xff] }
 0x98d   :  { %21227 = vmatmul.mubr.msk.f32.gmra.mrb[6].mxu1 %vm90_vm4, %v7770_v29  ;;  %v7787_v29 = vld [vmem:[#allocation3 + $0x188] sm:$0xff] }
 0x98e   :  { %21229 = vmatprep.mubr.msk.f32.mxu1 %vm90_vm4, %v7771_v24  ;;  %v7788_v24 = vld [vmem:[#allocation3 + $0x190] sm:$0xff] }
 0x991   :  { %21230 = vmatmul.mubr.msk.f32.gmra.mrb[8].mxu1 %vm90_vm4, %v7772_v0  ;;  %v7789_v0 = vld [vmem:[#allocation3 + $0x1a8] sm:$0xff] }
 0x992   :  { %21232 = vmatprep.mubr.msk.f32.mxu1 %vm90_vm4, %v7773_v5  ;;  %v7790_v5 = vld [vmem:[#allocation3 + $0x1b0] sm:$0xff] }
 0x995   :  { %21233 = vmatmul.mubr.msk.f32.gmra.mrb[10].mxu1 %vm90_vm4, %v7774_v28  ;;  %v7791_v28 = vld [vmem:[#allocation3 + $0x1c8] sm:$0xff] }
 0x996   :  { %21235 = vmatprep.mubr.msk.f32.mxu1 %vm90_vm4, %v7775_v15  ;;  %v7792_v15 = vld [vmem:[#allocation3 + $0x1d0] sm:$0xff] }
 0x999   :  { %21236 = vmatmul.mubr.msk.f32.gmra.mrb[12].mxu1 %vm90_vm4, %v7776_v30  ;;  %v7793_v30 = vld [vmem:[#allocation3 + $0x1e8] sm:$0xff] }
 0x99a   :  { %21238 = vmatprep.mubr.msk.f32.mxu1 %vm90_vm4, %v7777_v40  ;;  %v7794_v40 = vld [vmem:[#allocation3 + $0x1f0] sm:$0xff] }
 0x99d   :  { %21239 = vmatmul.mubr.msk.f32.gmra.mrb[14].mxu1 %vm90_vm4, %v7778_v51  ;;  %v7797_v51 = vld [vmem:[#allocation3 + $0x228] sm:$0xff] }
 0x99e   :  { %21241 = vmatprep.mubr.msk.f32.mxu1 %vm90_vm4, %v7779_v58  ;;  %v7798_v58 = vld [vmem:[#allocation3 + $0x230] sm:$0xff] }
 0x9a1   :  { %21242 = vmatmul.mubr.msk.f32.gmra.mrb[16].mxu1 %vm90_vm4, %v7780_v18  ;;  %v8155_v18 = vld [vmem:[#allocation3 + $0x49] sm:$0xff] }
 0x9a2   :  { %21244 = vmatprep.mubr.msk.f32.mxu1 %vm90_vm4, %v7781_v8  ;;  %v8156_v8 = vld [vmem:[#allocation3 + $0x51] sm:$0xff] }
 0x9a5   :  { %21245 = vmatmul.mubr.msk.f32.gmra.mrb[18].mxu1 %vm90_vm4, %v7782_v57  ;;  %v8157_v57 = vld [vmem:[#allocation3 + $0x69] sm:$0xff] }
 0x9a6   :  { %21247 = vmatprep.mubr.msk.f32.mxu1 %vm90_vm4, %v7783_v10  ;;  %v8158_v10 = vld [vmem:[#allocation3 + $0x71] sm:$0xff] }
 0x9a9   :  { %21248 = vmatmul.mubr.msk.f32.gmra.mrb[20].mxu1 %vm90_vm4, %v7784_v21  ;;  %v8160_v21 = vld [vmem:[#allocation3 + $0x91] sm:$0xff] }
 0x9aa   :  { %21250 = vmatprep.mubr.msk.f32.mxu1 %vm90_vm4, %v7785_v56  ;;  %v8161_v56 = vld [vmem:[#allocation3 + $0xa9] sm:$0xff] }
 0x9ad   :  { %21251 = vmatmul.mubr.msk.f32.gmra.mrb[22].mxu1 %vm90_vm4, %v7786_v60  ;;  %v8162_v60 = vld [vmem:[#allocation3 + $0xb1] sm:$0xff] }
 0x9ae   :  { %21253 = vmatprep.mubr.msk.f32.mxu1 %vm90_vm4, %v7787_v29  ;;  %v8163_v29 = vld [vmem:[#allocation3 + $0xc9] sm:$0xff] }
 0x9b1   :  { %21254 = vmatmul.mubr.msk.f32.gmra.mrb[24].mxu1 %vm90_vm4, %v7788_v24  ;;  %v8165_v24 = vld [vmem:[#allocation3 + $0xe9] sm:$0xff] }
 0x9b2   :  { %21256 = vmatprep.mubr.msk.f32.mxu1 %vm90_vm4, %v7789_v0  ;;  %v8166_v0 = vld [vmem:[#allocation3 + $0xf1] sm:$0xff] }
 0x9b5   :  { %21257 = vmatmul.mubr.msk.f32.gmra.mrb[26].mxu1 %vm90_vm4, %v7790_v5  ;;  %v8167_v5 = vld [vmem:[#allocation3 + $0x109] sm:$0xff] }
 0x9b6   :  { %21259 = vmatprep.mubr.msk.f32.mxu1 %vm90_vm4, %v7791_v28  ;;  %v8168_v28 = vld [vmem:[#allocation3 + $0x111] sm:$0xff] }
 0x9b9   :  { %21260 = vmatmul.mubr.msk.f32.gmra.mrb[28].mxu1 %vm90_vm4, %v7792_v15  ;;  %v8169_v15 = vld [vmem:[#allocation3 + $0x129] sm:$0xff] }
 0x9ba   :  { %21262 = vmatprep.mubr.msk.f32.mxu1 %vm90_vm4, %v7793_v30  ;;  %v8170_v30 = vld [vmem:[#allocation3 + $0x131] sm:$0xff] }
 0x9bd   :  { %21263 = vmatmul.mubr.msk.f32.gmra.mrb[30].mxu1 %vm90_vm4, %v7794_v40  ;;  %v8171_v40 = vld [vmem:[#allocation3 + $0x149] sm:$0xff] }
 0x9be   :  { %21265 = vmatprep.mubr.msk.f32.mxu1 %vm90_vm4, %v27617_v23  ;;  %v31903_v23 = vmov 0.0|0.0  }
 0x9c1   :  { %21266 = vmatmul.mubr.msk.f32.gmra.mrb[32].mxu1 %vm90_vm4, %v27623_v38  ;;  %v8159_v38 = vld [vmem:[#allocation3 + $0x89] sm:$0xff] }
 0x9c2   :  { %21268 = vmatprep.mubr.msk.f32.mxu1 %vm90_vm4, %v7797_v51  ;;  %v8172_v51 = vld [vmem:[#allocation3 + $0x151] sm:$0xff] }
 0x9c5   :  { %21269 = vmatmul.mubr.msk.f32.gmra.mrb[34].mxu1 %vm90_vm4, %v7798_v58  ;;  %v8173_v58 = vld [vmem:[#allocation3 + $0x169] sm:$0xff] }
 0x9c6   :  { %21275 = vmatprep.mubr.msk.f32.mxu1 %vm90_vm4, %v8155_v18  ;;  %v8174_v18 = vld [vmem:[#allocation3 + $0x171] sm:$0xff] }
 0x9c9   :  { %21276 = vmatmul.mubr.msk.f32.vlgmr.msra.gmra.mrb[4].mxu1 %vm90_vm4, %v8156_v8  ;;  %v8175_v8 = vld [vmem:[#allocation3 + $0x189] sm:$0xff] }
 0x9ca   :  { %21278 = vmatprep.mubr.msk.f32.mxu1 %vm90_vm4, %v8157_v57  ;;  %21324 = vmatpush3.msra.mxu1 %v28057_v44  ;;  %v8164_v44 = vld [vmem:[#allocation3 + $0xd1] sm:$0xff] }
 0x9cb   :  { %22407 = vmatprep.subr.bf16.mxu1 %v31903_v23  ;;  %v8176_v57 = vld [vmem:[#allocation3 + $0x191] sm:$0xff] }
 0x9cd   :  { %21279 = vmatmul.mubr.msk.f32.gmra.mrb[6].mxu1 %vm90_vm4, %v8158_v10  ;;  %v8177_v10 = vld [vmem:[#allocation3 + $0x1a9] sm:$0xff] }
 0x9ce   :  { %21281 = vmatprep.mubr.msk.f32.mxu1 %vm90_vm4, %v8159_v38  ;;  %v8178_v38 = vld [vmem:[#allocation3 + $0x1b1] sm:$0xff] }
 0x9d1   :  { %21282 = vmatmul.mubr.msk.f32.gmra.mrb[8].mxu1 %vm90_vm4, %v8160_v21  ;;  %v8179_v21 = vld [vmem:[#allocation3 + $0x1c9] sm:$0xff] }
 0x9d2   :  { %21284 = vmatprep.mubr.msk.f32.mxu1 %vm90_vm4, %v8161_v56  ;;  %v8180_v56 = vld [vmem:[#allocation3 + $0x1d1] sm:$0xff] }
 0x9d5   :  { %21285 = vmatmul.mubr.msk.f32.gmra.mrb[10].mxu1 %vm90_vm4, %v8162_v60  ;;  %v8181_v60 = vld [vmem:[#allocation3 + $0x1e9] sm:$0xff] }
 0x9d6   :  { %21287 = vmatprep.mubr.msk.f32.mxu1 %vm90_vm4, %v8163_v29  ;;  %v8182_v29 = vld [vmem:[#allocation3 + $0x1f1] sm:$0xff] }
 0x9d9   :  { %21288 = vmatmul.mubr.msk.f32.gmra.mrb[12].mxu1 %vm90_vm4, %v8164_v44  ;;  %v8185_v44 = vld [vmem:[#allocation3 + $0x229] sm:$0xff] }
 0x9da   :  { %21290 = vmatprep.mubr.msk.f32.mxu1 %vm90_vm4, %v8165_v24  ;;  %v8186_v24 = vld [vmem:[#allocation3 + $0x231] sm:$0xff] }
 0x9dd   :  { %21291 = vmatmul.mubr.msk.f32.gmra.mrb[14].mxu1 %vm90_vm4, %v8166_v0  ;;  %v24217_v0 = vld [vmem:[%s31480_s0] sm:$0xff] }
 0x9de   :  { %21293 = vmatprep.mubr.msk.f32.mxu1 %vm90_vm4, %v8167_v5  ;;  %v24218_v5 = vld [vmem:[%s31480_s0 + $0x8] sm:$0xff] }
 0x9e1   :  { %21294 = vmatmul.mubr.msk.f32.gmra.mrb[16].mxu1 %vm90_vm4, %v8168_v28  ;;  %v24220_v28 = vld [vmem:[%s31480_s0 + $0x18] sm:$0xff] }
 0x9e2   :  { %21296 = vmatprep.mubr.msk.f32.mxu1 %vm90_vm4, %v8169_v15  ;;  %v24221_v15 = vld [vmem:[%s31480_s0 + $0x20] sm:$0xff] }
 0x9e5   :  { %21297 = vmatmul.mubr.msk.f32.gmra.mrb[18].mxu1 %vm90_vm4, %v8170_v30  ;;  %v24222_v30 = vld [vmem:[%s31480_s0 + $0x28] sm:$0xff] }
 0x9e6   :  { %21299 = vmatprep.mubr.msk.f32.mxu1 %vm90_vm4, %v8171_v40  ;;  %v24224_v40 = vld [vmem:[%s31480_s0 + $0x38] sm:$0xff] }
 0x9e9   :  { %21300 = vmatmul.mubr.msk.f32.gmra.mrb[20].mxu1 %vm90_vm4, %v8172_v51  ;;  %v24225_v51 = vld [vmem:[%s31480_s0 + $0x40] sm:$0xff] }
 0x9ea   :  { %21302 = vmatprep.mubr.msk.f32.mxu1 %vm90_vm4, %v8173_v58  ;;  %v24226_v58 = vld [vmem:[%s31480_s0 + $0x48] sm:$0xff] }
 0x9ed   :  { %21303 = vmatmul.mubr.msk.f32.gmra.mrb[22].mxu1 %vm90_vm4, %v8174_v18  ;;  %v24227_v18 = vld [vmem:[%s31480_s0 + $0x50] sm:$0xff] }
 0x9ee   :  { %21305 = vmatprep.mubr.msk.f32.mxu1 %vm90_vm4, %v8175_v8  ;;  %v24228_v8 = vld [vmem:[%s31480_s0 + $0x58] sm:$0xff] }
 0x9f1   :  { %21306 = vmatmul.mubr.msk.f32.gmra.mrb[24].mxu1 %vm90_vm4, %v8176_v57  ;;  %v24229_v57 = vld [vmem:[%s31480_s0 + $0x60] sm:$0xff] }
 0x9f2   :  { %21308 = vmatprep.mubr.msk.f32.mxu1 %vm90_vm4, %v8177_v10  ;;  %v24230_v10 = vld [vmem:[%s31480_s0 + $0x68] sm:$0xff] }
 0x9f5   :  { %21309 = vmatmul.mubr.msk.f32.gmra.mrb[26].mxu1 %vm90_vm4, %v8178_v38  ;;  %v24231_v38 = vld [vmem:[%s31480_s0 + $0x70] sm:$0xff] }
 0x9f6   :  { %21311 = vmatprep.mubr.msk.f32.mxu1 %vm90_vm4, %v8179_v21  ;;  %v24232_v21 = vld [vmem:[%s31480_s0 + $0x78] sm:$0xff] }
 0x9f9   :  { %21312 = vmatmul.mubr.msk.f32.gmra.mrb[28].mxu1 %vm90_vm4, %v8180_v56  ;;  %v24233_v56 = vld [vmem:[%s31480_s0 + $0x80] sm:$0xff] }
 0x9fa   :  { %21314 = vmatprep.mubr.msk.f32.mxu1 %vm90_vm4, %v8181_v60  ;;  %v24234_v60 = vld [vmem:[%s31480_s0 + $0x88] sm:$0xff] }
 0x9fd   :  { %21315 = vmatmul.mubr.msk.f32.gmra.mrb[30].mxu1 %vm90_vm4, %v8182_v29  ;;  %v24235_v29 = vld [vmem:[%s31480_s0 + $0x90] sm:$0xff] }
 0x9fe   :  { %21317 = vmatprep.mubr.msk.f32.mxu1 %vm90_vm4, %v27840_v54  ;;  %v24219_v54 = vld [vmem:[%s31480_s0 + $0x10] sm:$0xff] }
 0xa01   :  { %21318 = vmatmul.mubr.msk.f32.gmra.mrb[32].mxu1 %vm90_vm4, %v27862_v62  ;;  %v31904_v62 = vld [vmem:[#allocation7_spill] sm:$0xff] }
 0xa02   :  { %21320 = vmatprep.mubr.msk.f32.mxu1 %vm90_vm4, %v8185_v44  ;;  %v24236_v44 = vld [vmem:[%s31480_s0 + $0x98] sm:$0xff] }
 0xa05   :  { %21321 = vmatmul.mubr.msk.f32.gmra.mrb[34].mxu1 %vm90_vm4, %v8186_v24  ;;  %v24237_v24 = vld [vmem:[%s31480_s0 + $0xa0] sm:$0xff] }
 0xa06   :  { %21325 = vmatprep.mubr.msk.f32.mxu1 %vm47_vm0, %v24217_v0  ;;  %v24238_v0 = vld [vmem:[%s31480_s0 + $0xa8] sm:$0xff] }
 0xa09   :  { %21326 = vmatmul.mubr.msk.f32.vlgmr.msra.gmra.mrb[4].mxu1 %vm47_vm0, %v24218_v5  ;;  %v24239_v5 = vld [vmem:[%s31480_s0 + $0xb0] sm:$0xff] }
 0xa0a   :  { %21328 = vmatprep.mubr.msk.f32.mxu1 %vm47_vm0, %v24219_v54  ;;  %22409 = vmatpush3.bf16.msra.mxu1 %v31904_v62  ;;  %v24240_v54 = vld [vmem:[%s31480_s0 + $0xb8] sm:$0xff] }
 0xa0b   :  { %22410 = vmatprep.subr.bf16.mxu1 %v31903_v23  ;;  %v24223_v23 = vld [vmem:[%s31480_s0 + $0x30] sm:$0xff] }
 0xa0d   :  { %21329 = vmatmul.mubr.msk.f32.gmra.mrb[6].mxu1 %vm47_vm0, %v24220_v28  ;;  %v24241_v28 = vld [vmem:[%s31480_s0 + $0xc0] sm:$0xff] }
 0xa0e   :  { %21331 = vmatprep.mubr.msk.f32.mxu1 %vm47_vm0, %v24221_v15  ;;  %v24242_v15 = vld [vmem:[%s31480_s0 + $0xc8] sm:$0xff] }
 0xa11   :  { %21332 = vmatmul.mubr.msk.f32.gmra.mrb[8].mxu1 %vm47_vm0, %v24222_v30  ;;  %v24243_v30 = vld [vmem:[%s31480_s0 + $0xd0] sm:$0xff] }
 0xa12   :  { %21334 = vmatprep.mubr.msk.f32.mxu1 %vm47_vm0, %v24223_v23  ;;  %v24244_v23 = vld [vmem:[%s31480_s0 + $0xd8] sm:$0xff] }
 0xa15   :  { %21335 = vmatmul.mubr.msk.f32.gmra.mrb[10].mxu1 %vm47_vm0, %v24224_v40  ;;  %v24245_v40 = vld [vmem:[%s31480_s0 + $0xe0] sm:$0xff] }
 0xa16   :  { %21337 = vmatprep.mubr.msk.f32.mxu1 %vm47_vm0, %v24225_v51  ;;  %v24246_v51 = vld [vmem:[%s31480_s0 + $0xe8] sm:$0xff] }
 0xa19   :  { %21338 = vmatmul.mubr.msk.f32.gmra.mrb[12].mxu1 %vm47_vm0, %v24226_v58  ;;  %v24247_v58 = vld [vmem:[%s31480_s0 + $0xf0] sm:$0xff] }
 0xa1a   :  { %21340 = vmatprep.mubr.msk.f32.mxu1 %vm47_vm0, %v24227_v18  ;;  %v24248_v18 = vld [vmem:[%s31480_s0 + $0xf8] sm:$0xff] }
 0xa1d   :  { %21341 = vmatmul.mubr.msk.f32.gmra.mrb[14].mxu1 %vm47_vm0, %v24228_v8  ;;  %v31905_v8 = vmov 0.0  }
 0xa1e   :  { %21343 = vmatprep.mubr.msk.f32.mxu1 %vm47_vm0, %v24229_v57  ;;  %v18422_v57 = vld [vmem:[%s31481_s4 + $0x8] sm:$0xff] }
 0xa1f   :  { %21383 = vmatprep.subr.mxu0 %v18422_v57 }
 0xa20   :  { %21384 = vmatpush3.msra.mxu0 %v18422_v57 }
 0xa21   :  { %21344 = vmatmul.mubr.msk.f32.gmra.mrb[16].mxu1 %vm47_vm0, %v24230_v10  ;;  %v9747_v10 = vld [vmem:[#allocation2 + $0x8] sm:$0xff] }
 0xa22   :  { %21346 = vmatprep.mubr.msk.f32.mxu1 %vm47_vm0, %v24231_v38  ;;  %v9746_v38 = vld [vmem:[%s31481_s4] sm:$0xff]  ;;  %21385 = vmatprep.mubr.msk.f32.mxu0 %vm47_vm0, %v9747_v10 }
 0xa23   :  { %21433 = vmatprep.subr.mxu0 %v9746_v38 }
 0xa25   :  { %21347 = vmatmul.mubr.msk.f32.gmra.mrb[18].mxu1 %vm47_vm0, %v24232_v21  ;;  %v9748_v21 = vld [vmem:[#allocation2 + $0x10] sm:$0xff] }
 0xa26   :  { %21349 = vmatprep.mubr.msk.f32.mxu1 %vm47_vm0, %v24233_v56  ;;  %21386 = vmatmul.mubr.msk.f32.vlgmr.msra.gmra.mrb[72].mxu0 %vm47_vm0, %v9748_v21 }
 0xa27   :  { %21434 = vmatpush3.msra.mxu0 %v9746_v38 }
 0xa29   :  { %21350 = vmatmul.mubr.msk.f32.gmra.mrb[20].mxu1 %vm47_vm0, %v24234_v60 }
 0xa2a   :  { %21352 = vmatprep.mubr.msk.f32.mxu1 %vm47_vm0, %v24235_v29 }
 0xa2d   :  { %21353 = vmatmul.mubr.msk.f32.gmra.mrb[22].mxu1 %vm47_vm0, %v24236_v44 }
 0xa2e   :  { %21355 = vmatprep.mubr.msk.f32.mxu1 %vm47_vm0, %v24237_v24 }
 0xa31   :  { %21356 = vmatmul.mubr.msk.f32.gmra.mrb[24].mxu1 %vm47_vm0, %v24238_v0 }
 0xa32   :  { %21358 = vmatprep.mubr.msk.f32.mxu1 %vm47_vm0, %v24239_v5 }
 0xa35   :  { %21359 = vmatmul.mubr.msk.f32.gmra.mrb[26].mxu1 %vm47_vm0, %v24240_v54 }
 0xa36   :  { %21361 = vmatprep.mubr.msk.f32.mxu1 %vm47_vm0, %v24241_v28 }
 0xa39   :  { %21362 = vmatmul.mubr.msk.f32.gmra.mrb[28].mxu1 %vm47_vm0, %v24242_v15 }
 0xa3a   :  { %21364 = vmatprep.mubr.msk.f32.mxu1 %vm47_vm0, %v24243_v30 }
 0xa3d   :  { %21365 = vmatmul.mubr.msk.f32.gmra.mrb[30].mxu1 %vm47_vm0, %v24244_v23 }
 0xa3e   :  { %21367 = vmatprep.mubr.msk.f32.mxu1 %vm47_vm0, %v24245_v40 }
 0xa41   :  { %21368 = vmatmul.mubr.msk.f32.gmra.mrb[32].mxu1 %vm47_vm0, %v24246_v51 }
 0xa42   :  { %21370 = vmatprep.mubr.msk.f32.mxu1 %vm47_vm0, %v24247_v58 }
 0xa45   :  { %21371 = vmatmul.mubr.msk.f32.gmra.mrb[34].mxu1 %vm47_vm0, %v24248_v18 }
 0xa46   :  { %21837 = vmatprep.mubr.msk.f32.mxu1 %vm24290_vm1, %v31905_v8 }
 0xa4b   :  { %v9353_v56 = vpop.f32.mrb[70].mxu0 }
 0xa4c   :  { %v21382_v60 = vpop.f32.mrb[71].mxu0  ;;  %v9354_v29 = vadd.f32 1e-06, %v9353_v56 }
 0xa4e   :  { %23928 = vrsqrt.f32 %v9354_v29 }
 0xa58   :  { %v23929_v44 = vpop.eup %23928 }
 0xa59   :  { %v9361_v24 = vrot.slane %v23929_v44, %v31885_v9 }
 0xa5b   :  { %v9362_v0 = vmul.f32 %v9361_v24, %v27700_v61  ;;  %v9363_v5 = vmul.f32 %v9361_v24, %v27706_v48  ;;  %v9364_v54 = vmul.f32 %v9361_v24, %v27714_v22  ;;  %v9365_v28 = vmul.f32 %v9361_v24, %v27722_v31 }
 0xa5c   :  { %v9366_v15 = vmul.f32 %v9361_v24, %v27734_v6  ;;  %v9367_v30 = vmul.f32 %v9361_v24, %v27744_v55  ;;  %v9368_v23 = vmul.f32 %v9361_v24, %v27756_v4  ;;  %v9369_v40 = vmul.f32 %v9361_v24, %v27767_v20 }
 0xa5d   :  { %v9370_v51 = vmul.f32 %v9361_v24, %v27778_v50  ;;  %v9371_v58 = vmul.f32 %v9361_v24, %v27789_v7  ;;  %v9372_v61 = vmul.f32 %v9361_v24, %v27800_v34  ;;  %v9373_v48 = vmul.f32 %v9361_v24, %v27811_v19 }
 0xa5e   :  { %v9374_v22 = vmul.f32 %v9361_v24, %v27822_v39  ;;  %v9375_v31 = vmul.f32 %v9361_v24, %v27833_v1  ;;  %v9376_v6 = vmul.f32 %v9361_v24, %v27846_v47  ;;  %v9377_v55 = vmul.f32 %v9361_v24, %v27857_v63  ;;  %v28298_v47 = vld [vmem:[%s31481_s4 + $0x10] sm:$0xff] }
 0xa5f   :  { %v9378_v4 = vmul.f32 %v9361_v24, %v27870_v3  ;;  %v9379_v20 = vmul.f32 %v9361_v24, %v27886_v33  ;;  %v9380_v50 = vmul.f32 %v9361_v24, %v27898_v11  ;;  %v9381_v7 = vmul.f32 %v9361_v24, %v27909_v17  ;;  %31906 = vst [vmem:[#allocation6_spill] sm:$0xff] %v28298_v47 }
 0xa60   :  { %v9382_v34 = vmul.f32 %v9361_v24, %v27920_v41  ;;  %v9383_v19 = vmul.f32 %v9361_v24, %v27930_v53  ;;  %v9384_v39 = vmul.f32 %v9361_v24, %v27940_v2  ;;  %v9385_v1 = vmul.f32 %v9361_v24, %v27950_v35  ;;  %21483 = vmatprep.subr.mxu0 %v28298_v47  ;;  %v24249_v35 = vld [vmem:[%s31482_s1] ss:$0 sm:$0xff] }
 0xa61   :  { %v9386_v63 = vmul.f32 %v9361_v24, %v27960_v32  ;;  %v9387_v33 = vmul.f32 %v9361_v24, %v27970_v42  ;;  %v9388_v3 = vmul.f32 %v9361_v24, %v27980_v26  ;;  %v9389_v11 = vmul.f32 %v9361_v24, %v27988_v49 }
 0xa62   :  { %v9390_v17 = vmul.f32 %v9361_v24, %v27996_v12  ;;  %v9391_v41 = vmul.f32 %v9361_v24, %v28004_v27  ;;  %v9392_v53 = vmul.f32 %v9361_v24, %v28012_v43  ;;  %v9393_v2 = vmul.f32 %v9361_v24, %v28020_v36  ;;  %v28315_v24 = vld [vmem:[%s31483_s2] ss:$0 sm:$0xff] }
 0xa63   :  { %v9394_v32 = vmul.f32 %v24249_v35, %v9362_v0  ;;  %v9395_v42 = vmul.f32 %v24249_v35, %v9363_v5  ;;  %v9396_v18 = vmul.f32 %v24249_v35, %v9364_v54  ;;  %v9397_v26 = vmul.f32 %v24249_v35, %v9365_v28 }
 0xa64   :  { %v9398_v57 = vmul.f32 %v24249_v35, %v9366_v15  ;;  %v9399_v49 = vmul.f32 %v24249_v35, %v9367_v30  ;;  %v9400_v10 = vmul.f32 %v24249_v35, %v9368_v23  ;;  %v9401_v38 = vmul.f32 %v24249_v35, %v9369_v40 }
 0xa65   :  { %v9402_v21 = vmul.f32 %v24249_v35, %v9370_v51  ;;  %v9403_v12 = vmul.f32 %v24249_v35, %v9371_v58  ;;  %v9404_v56 = vmul.f32 %v24249_v35, %v9372_v61  ;;  %v9405_v27 = vmul.f32 %v24249_v35, %v9373_v48 }
 0xa66   :  { %v9406_v60 = vmul.f32 %v24249_v35, %v9374_v22  ;;  %v9407_v43 = vmul.f32 %v24249_v35, %v9375_v31  ;;  %v9408_v29 = vmul.f32 %v24249_v35, %v9376_v6  ;;  %v9409_v36 = vmul.f32 %v24249_v35, %v9377_v55 }
 0xa67   :  { %v9410_v44 = vmul.f32 %v24249_v35, %v9378_v4  ;;  %v28318_v0 = vadd.f32 %v28315_v24, %v9394_v32  ;;  %v28321_v5 = vadd.f32 %v28315_v24, %v9395_v42  ;;  %v28324_v54 = vadd.f32 %v28315_v24, %v9396_v18 }
 0xa68   :  { %v9411_v28 = vmul.f32 %v24249_v35, %v9379_v20  ;;  %v9412_v15 = vmul.f32 %v24249_v35, %v9380_v50  ;;  %v9413_v30 = vmul.f32 %v24249_v35, %v9381_v7  ;;  %v28327_v23 = vadd.f32 %v28315_v24, %v9397_v26 }
 0xa69   :  { %v28329_v40 = vmul.f32 %v24249_v35, %v9382_v34  ;;  %v28331_v51 = vmul.f32 %v24249_v35, %v9383_v19  ;;  %v28333_v58 = vmul.f32 %v24249_v35, %v9384_v39  ;;  %v28336_v61 = vadd.f32 %v28315_v24, %v9398_v57 }
 0xa6a   :  { %v28338_v48 = vmul.f32 %v24249_v35, %v9385_v1  ;;  %v28340_v22 = vmul.f32 %v24249_v35, %v9386_v63  ;;  %v28343_v31 = vadd.f32 %v28315_v24, %v9399_v49  ;;  %v28346_v6 = vadd.f32 %v28315_v24, %v9400_v10 }
 0xa6b   :  { %v28348_v55 = vmul.f32 %v24249_v35, %v9387_v33  ;;  %v9458_v4 = vsub.f32 0.0, %v28318_v0  ;;  %v9459_v20 = vsub.f32 0.0, %v28321_v5  ;;  %v9460_v50 = vsub.f32 0.0, %v28324_v54 }
 0xa6c   :  { %v28353_v7 = vmul.f32 %v24249_v35, %v9388_v3  ;;  %v28355_v34 = vmul.f32 %v24249_v35, %v9389_v11  ;;  %v28358_v19 = vadd.f32 %v28315_v24, %v9401_v38  ;;  %v9461_v39 = vsub.f32 0.0, %v28327_v23 }
 0xa6d   :  { %v28361_v1 = vmul.f32 %v24249_v35, %v9390_v17  ;;  %v28363_v63 = vmul.f32 %v24249_v35, %v9391_v41  ;;  %v28366_v33 = vadd.f32 %v28315_v24, %v9402_v21  ;;  %v9462_v32 = vsub.f32 0.0, %v28336_v61 }
 0xa6e   :  { %v28369_v42 = vmul.f32 %v24249_v35, %v9392_v53  ;;  %v28372_v3 = vadd.f32 %v28315_v24, %v9403_v12  ;;  %v9463_v11 = vsub.f32 0.0, %v28343_v31  ;;  %v9464_v18 = vsub.f32 0.0, %v28346_v6 }
 0xa6f   :  { %v28377_v26 = vadd.f32 %v28315_v24, %v9404_v56  ;;  %v9490_v17 = vmul.f32 1.442695, %v9458_v4  ;;  %v9492_v41 = vmul.f32 1.442695, %v9459_v20  ;;  %v9494_v57 = vmul.f32 1.442695, %v9460_v50 }
 0xa70   :  { %v28379_v49 = vmul.f32 %v24249_v35, %v9393_v2  ;;  %v28382_v10 = vadd.f32 %v28315_v24, %v9405_v27  ;;  %v9465_v53 = vsub.f32 0.0, %v28358_v19  ;;  %v9496_v38 = vmul.f32 1.442695, %v9461_v39 }
 0xa71   :  { %v28386_v21 = vadd.f32 %v28315_v24, %v9406_v60  ;;  %v9466_v12 = vsub.f32 0.0, %v28366_v33  ;;  %23930 = vpow2.f32 %v9490_v17  ;;  %v9498_v9 = vmul.f32 1.442695, %v9462_v32 }
 0xa72   :  { %v28390_v56 = vadd.f32 %v28315_v24, %v9407_v43  ;;  %v9467_v4 = vsub.f32 0.0, %v28372_v3  ;;  %23932 = vpow2.f32 %v9492_v41  ;;  %v9500_v2 = vmul.f32 1.442695, %v9463_v11 }
 0xa73   :  { %v28394_v35 = vadd.f32 %v28315_v24, %v9408_v29  ;;  %v9468_v27 = vsub.f32 0.0, %v28377_v26  ;;  %23934 = vpow2.f32 %v9494_v57  ;;  %v9502_v20 = vmul.f32 1.442695, %v9464_v18 }
 0xa74   :  { %v28398_v60 = vadd.f32 %v28315_v24, %v9409_v36  ;;  %v9469_v50 = vsub.f32 0.0, %v28382_v10  ;;  %23936 = vpow2.f32 %v9496_v38  ;;  %v9504_v39 = vmul.f32 1.442695, %v9465_v53 }
 0xa75   :  { %v28402_v43 = vadd.f32 %v28315_v24, %v9410_v44  ;;  %v9470_v32 = vsub.f32 0.0, %v28386_v21  ;;  %23938 = vpow2.f32 %v9498_v9  ;;  %v9506_v11 = vmul.f32 1.442695, %v9466_v12 }
 0xa76   :  { %v28406_v29 = vadd.f32 %v28315_v24, %v9411_v28  ;;  %v9471_v17 = vsub.f32 0.0, %v28390_v56  ;;  %23940 = vpow2.f32 %v9500_v2  ;;  %v9508_v18 = vmul.f32 1.442695, %v9467_v4 }
 0xa77   :  { %v28410_v36 = vadd.f32 %v28315_v24, %v9412_v15  ;;  %v9472_v41 = vsub.f32 0.0, %v28394_v35  ;;  %23942 = vpow2.f32 %v9502_v20  ;;  %v9510_v57 = vmul.f32 1.442695, %v9468_v27 }
 0xa78   :  { %v28414_v44 = vadd.f32 %v28315_v24, %v9413_v30  ;;  %v9473_v9 = vsub.f32 0.0, %v28398_v60  ;;  %23944 = vpow2.f32 %v9504_v39  ;;  %v9512_v53 = vmul.f32 1.442695, %v9469_v50 }
 0xa79   :  { %v28419_v28 = vadd.f32 %v28315_v24, %v28329_v40  ;;  %v9474_v38 = vsub.f32 0.0, %v28402_v43  ;;  %23946 = vpow2.f32 %v9506_v11  ;;  %v9514_v15 = vmul.f32 1.442695, %v9470_v32 }
 0xa7a   :  { %v28424_v12 = vadd.f32 %v28315_v24, %v28331_v51  ;;  %v9475_v4 = vsub.f32 0.0, %v28406_v29  ;;  %23948 = vpow2.f32 %v9508_v18  ;;  %v9516_v30 = vmul.f32 1.442695, %v9471_v17 }
 0xa7b   :  { %v28427_v2 = vpop.eup %23930  ;;  %v28431_v27 = vadd.f32 %v28315_v24, %v28333_v58  ;;  %v9476_v40 = vsub.f32 0.0, %v28410_v36  ;;  %23950 = vpow2.f32 %v9510_v57  ;;  %v9518_v20 = vmul.f32 1.442695, %v9472_v41 }
 0xa7c   :  { %v28434_v50 = vpop.eup %23932  ;;  %v28438_v51 = vadd.f32 %v28315_v24, %v28338_v48  ;;  %v9477_v39 = vsub.f32 0.0, %v28414_v44  ;;  %23952 = vpow2.f32 %v9512_v53  ;;  %v9520_v32 = vmul.f32 1.442695, %v9473_v9 }
 0xa7d   :  { %v28441_v11 = vpop.eup %23934  ;;  %v28445_v58 = vadd.f32 %v28315_v24, %v28340_v22  ;;  %v9478_v17 = vsub.f32 0.0, %v28419_v28  ;;  %23954 = vpow2.f32 %v9514_v15  ;;  %v9522_v18 = vmul.f32 1.442695, %v9474_v38 }
 0xa7e   :  { %v28448_v41 = vpop.eup %23936  ;;  %v28452_v48 = vadd.f32 %v28315_v24, %v28348_v55  ;;  %v9479_v57 = vsub.f32 0.0, %v28424_v12  ;;  %23956 = vpow2.f32 %v9516_v30  ;;  %v9524_v9 = vmul.f32 1.442695, %v9475_v4 }
 0xa7f   :  { %v28455_v53 = vpop.eup %23938  ;;  %v28459_v22 = vadd.f32 %v28315_v24, %v28353_v7  ;;  %v9480_v8 = vsub.f32 0.0, %v28431_v27  ;;  %23958 = vpow2.f32 %v9518_v20  ;;  %v9526_v38 = vmul.f32 1.442695, %v9476_v40 }
 0xa80   :  { %v28462_v15 = vpop.eup %23940  ;;  %v28466_v55 = vadd.f32 %v28315_v24, %v28355_v34  ;;  %v9481_v62 = vsub.f32 0.0, %v28438_v51  ;;  %23960 = vpow2.f32 %v9520_v32  ;;  %v9528_v4 = vmul.f32 1.442695, %v9477_v39 }
 0xa81   :  { %v28469_v30 = vpop.eup %23942  ;;  %v28473_v7 = vadd.f32 %v28315_v24, %v28361_v1  ;;  %v9482_v47 = vsub.f32 0.0, %v28445_v58  ;;  %23962 = vpow2.f32 %v9522_v18  ;;  %v9530_v40 = vmul.f32 1.442695, %v9478_v17 }
 0xa82   :  { %v28476_v20 = vpop.eup %23944  ;;  %v28480_v34 = vadd.f32 %v28315_v24, %v28363_v63  ;;  %v9483_v45 = vsub.f32 0.0, %v28452_v48  ;;  %23964 = vpow2.f32 %v9524_v9  ;;  %v9532_v39 = vmul.f32 1.442695, %v9479_v57 }
 0xa83   :  { %31907 = vst [vmem:[#allocation22_spill] sm:$0xff] %v28473_v7  ;;  %v23947_v32 = vpop.eup %23946  ;;  %v28485_v37 = vadd.f32 %v28315_v24, %v28369_v42  ;;  %v9484_v1 = vsub.f32 0.0, %v28459_v22  ;;  %23966 = vpow2.f32 %v9526_v38  ;;  %v9534_v18 = vmul.f32 1.442695, %v9480_v8 }
 0xa84   :  { %31908 = vst [vmem:[#allocation23_spill] sm:$0xff] %v28480_v34  ;;  %v23949_v17 = vpop.eup %23948  ;;  %v28490_v14 = vadd.f32 %v28315_v24, %v28379_v49  ;;  %v9485_v63 = vsub.f32 0.0, %v28466_v55  ;;  %23968 = vpow2.f32 %v9528_v4  ;;  %v9536_v16 = vmul.f32 1.442695, %v9481_v62 }
 0xa85   :  { %31909 = vst [vmem:[#allocation25_spill] sm:$0xff] %v28485_v37  ;;  %v23951_v9 = vpop.eup %23950  ;;  %v9486_v57 = vsub.f32 0.0, %v28473_v7  ;;  %23970 = vpow2.f32 %v9530_v40  ;;  %v9538_v52 = vmul.f32 1.442695, %v9482_v47  ;;  %v9487_v13 = vsub.f32 0.0, %v28480_v34 }
 0xa86   :  { %v23953_v42 = vpop.eup %23952  ;;  %23972 = vpow2.f32 %v9532_v39  ;;  %v9540_v38 = vmul.f32 1.442695, %v9483_v45  ;;  %v9488_v59 = vsub.f32 0.0, %v28485_v37  ;;  %v9542_v24 = vmul.f32 1.442695, %v9484_v1 }
 0xa87   :  { %v23955_v8 = vpop.eup %23954  ;;  %23974 = vpow2.f32 %v9534_v18  ;;  %v9489_v46 = vsub.f32 0.0, %v28490_v14  ;;  %v9544_v62 = vmul.f32 1.442695, %v9485_v63  ;;  %v9546_v25 = vmul.f32 1.442695, %v9486_v57 }
 0xa88   :  { %v23957_v49 = vpop.eup %23956  ;;  %23976 = vpow2.f32 %v9536_v16  ;;  %v9548_v47 = vmul.f32 1.442695, %v9487_v13  ;;  %v9550_v39 = vmul.f32 1.442695, %v9488_v59  ;;  %v9554_v1 = vadd.f32 1.0, %v28427_v2 }
 0xa89   :  { %v23959_v4 = vpop.eup %23958  ;;  %23978 = vpow2.f32 %v9538_v52  ;;  %v9552_v34 = vmul.f32 1.442695, %v9489_v46  ;;  %v9555_v16 = vadd.f32 1.0, %v28434_v50  ;;  %v9556_v52 = vadd.f32 1.0, %v28441_v11 }
 0xa8a   :  { %v23961_v40 = vpop.eup %23960  ;;  %23980 = vpow2.f32 %v9540_v38  ;;  %v9557_v59 = vadd.f32 1.0, %v28448_v41  ;;  %v9558_v46 = vadd.f32 1.0, %v28455_v53  ;;  %v9559_v2 = vadd.f32 1.0, %v28462_v15 }
 0xa8b   :  { %v23963_v7 = vpop.eup %23962  ;;  %23982 = vpow2.f32 %v9542_v24  ;;  %v9560_v38 = vadd.f32 1.0, %v28469_v30  ;;  %v9562_v24 = vadd.f32 1.0, %v23947_v32  ;;  %v9565_v30 = vadd.f32 1.0, %v23953_v42 }
 0xa8c   :  { %v23965_v45 = vpop.eup %23964  ;;  %23984 = vpow2.f32 %v9544_v62  ;;  %v9563_v62 = vadd.f32 1.0, %v23949_v17  ;;  %v9567_v32 = vadd.f32 1.0, %v23957_v49 }
 0xa8d   :  { %v23967_v37 = vpop.eup %23966  ;;  %23986 = vpow2.f32 %v9546_v25 }
 0xa8e   :  { %v23969_v18 = vpop.eup %23968  ;;  %23988 = vpow2.f32 %v9548_v47  ;;  %v9564_v47 = vadd.f32 1.0, %v23951_v9 }
 0xa8f   :  { %v23971_v63 = vpop.eup %23970  ;;  %23990 = vpow2.f32 %v9550_v39 }
 0xa90   :  { %v28500_v57 = vpop.eup %23972  ;;  %23992 = vpow2.f32 %v9552_v34  ;;  %v9561_v34 = vadd.f32 1.0, %v28476_v20  ;;  %v9566_v20 = vadd.f32 1.0, %v23955_v8  ;;  %v9571_v8 = vadd.f32 1.0, %v23965_v45 }
 0xa91   :  { %v28503_v13 = vpop.eup %23974  ;;  %23994 = vrcp.f32 %v9554_v1  ;;  %v9574_v45 = vadd.f32 1.0, %v23971_v63 }
 0xa92   :  { %v28506_v25 = vpop.eup %23976  ;;  %23996 = vrcp.f32 %v9555_v16 }
 0xa93   :  { %v28509_v50 = vpop.eup %23978  ;;  %23998 = vrcp.f32 %v9556_v52 }
 0xa94   :  { %v28512_v11 = vpop.eup %23980  ;;  %24000 = vrcp.f32 %v9557_v59  ;;  %v9568_v59 = vadd.f32 1.0, %v23959_v4  ;;  %v9572_v4 = vadd.f32 1.0, %v23967_v37 }
 0xa95   :  { %v28515_v41 = vpop.eup %23982  ;;  %24002 = vrcp.f32 %v9558_v46  ;;  %v9569_v46 = vadd.f32 1.0, %v23961_v40 }
 0xa96   :  { %v28517_v53 = vpop.eup %23984  ;;  %24004 = vrcp.f32 %v9559_v2 }
 0xa97   :  { %v28519_v15 = vpop.eup %23986  ;;  %24006 = vrcp.f32 %v9560_v38  ;;  %v9570_v38 = vadd.f32 1.0, %v23963_v7 }
 0xa98   :  { %v28521_v39 = vpop.eup %23988  ;;  %24008 = vrcp.f32 %v9561_v34 }
 0xa99   :  { %v28523_v1 = vpop.eup %23990  ;;  %24010 = vrcp.f32 %v9562_v24 }
 0xa9a   :  { %v28525_v16 = vpop.eup %23992  ;;  %24012 = vrcp.f32 %v9563_v62  ;;  %v9573_v62 = vadd.f32 1.0, %v23969_v18 }
 0xa9b   :  { %v23995_v52 = vpop.eup %23994  ;;  %24014 = vrcp.f32 %v9564_v47  ;;  %v9575_v47 = vadd.f32 1.0, %v28500_v57 }
 0xa9c   :  { %v23997_v17 = vpop.eup %23996  ;;  %24016 = vrcp.f32 %v9565_v30  ;;  %v9650_v9 = vmul.f32 %v23995_v52, %v28318_v0  ;;  %v9579_v52 = vadd.f32 1.0, %v28512_v11 }
 0xa9d   :  { %v23999_v2 = vpop.eup %23998  ;;  %24018 = vrcp.f32 %v9566_v20  ;;  %v9651_v42 = vmul.f32 %v23997_v17, %v28321_v5  ;;  %v9581_v17 = vadd.f32 1.0, %v28517_v53 }
 0xa9e   :  { %v24001_v34 = vpop.eup %24000  ;;  %24020 = vrcp.f32 %v9567_v32  ;;  %v9652_v24 = vmul.f32 %v23999_v2, %v28324_v54  ;;  %9682 = vst.msk [vmem:[#allocation2 + $0x28] sm:$0xff] %vm47_vm0, %v9650_v9 }
 0xa9f   :  { %v24003_v49 = vpop.eup %24002  ;;  %24022 = vrcp.f32 %v9568_v59  ;;  %v9653_v40 = vmul.f32 %v24001_v34, %v28327_v23  ;;  %9683 = vst.msk [vmem:[#allocation2 + $0x30] sm:$0xff] %vm47_vm0, %v9651_v42  ;;  %v9584_v34 = vadd.f32 1.0, %v28523_v1 }
 0xaa0   :  { %v24005_v0 = vpop.eup %24004  ;;  %24024 = vrcp.f32 %v9569_v46  ;;  %v9654_v7 = vmul.f32 %v24003_v49, %v28336_v61  ;;  %9684 = vst.msk [vmem:[#allocation2 + $0x48] sm:$0xff] %vm47_vm0, %v9652_v24  ;;  %v9576_v61 = vadd.f32 1.0, %v28503_v13 }
 0xaa1   :  { %v24007_v5 = vpop.eup %24006  ;;  %24026 = vrcp.f32 %v9570_v38  ;;  %v9655_v54 = vmul.f32 %v24005_v0, %v28343_v31  ;;  %9685 = vst.msk [vmem:[#allocation2 + $0x50] sm:$0xff] %vm47_vm0, %v9653_v40  ;;  %v9577_v31 = vadd.f32 1.0, %v28506_v25  ;;  %v9583_v38 = vadd.f32 1.0, %v28521_v39 }
 0xaa2   :  { %v24009_v37 = vpop.eup %24008  ;;  %24028 = vrcp.f32 %v9571_v8  ;;  %v9656_v23 = vmul.f32 %v24007_v5, %v28346_v6  ;;  %9686 = vst.msk [vmem:[#allocation2 + $0x68] sm:$0xff] %vm47_vm0, %v9654_v7  ;;  %v9578_v6 = vadd.f32 1.0, %v28509_v50 }
 0xaa3   :  { %v24011_v18 = vpop.eup %24010  ;;  %24030 = vrcp.f32 %v9572_v4  ;;  %v9657_v30 = vmul.f32 %v24009_v37, %v28358_v19  ;;  %9687 = vst.msk [vmem:[#allocation2 + $0x70] sm:$0xff] %vm47_vm0, %v9655_v54 }
 0xaa4   :  { %v24013_v63 = vpop.eup %24012  ;;  %24032 = vrcp.f32 %v9573_v62  ;;  %v9658_v20 = vmul.f32 %v24011_v18, %v28366_v33  ;;  %9688 = vst.msk [vmem:[#allocation2 + $0x88] sm:$0xff] %vm47_vm0, %v9656_v23 }
 0xaa5   :  { %v24015_v57 = vpop.eup %24014  ;;  %24034 = vrcp.f32 %v9574_v45  ;;  %v9659_v32 = vmul.f32 %v24013_v63, %v28372_v3  ;;  %9689 = vst.msk [vmem:[#allocation2 + $0x90] sm:$0xff] %vm47_vm0, %v9657_v30  ;;  %v28549_v13 = vld [vmem:[#allocation2 + $0x28] sm:$0xff]  ;;  %v9580_v3 = vadd.f32 1.0, %v28515_v41  ;;  %v31910_v63 = vld [vmem:[#allocation22_spill] sm:$0xff] }
 0xaa6   :  { %v24017_v19 = vpop.eup %24016  ;;  %24036 = vrcp.f32 %v9575_v47  ;;  %v9660_v25 = vmul.f32 %v24015_v57, %v28377_v26  ;;  %9690 = vst.msk [vmem:[#allocation2 + $0xa8] sm:$0xff] %vm47_vm0, %v9658_v20  ;;  %21388 = vmatprep.mubr.msk.f32.mxu0 %vm47_vm0, %v28549_v13  ;;  %v28556_v33 = vld [vmem:[#allocation2 + $0x30] sm:$0xff]  ;;  %v31911_v20 = vld [vmem:[#allocation23_spill] sm:$0xff] }
 0xaa7   :  { %v24019_v50 = vpop.eup %24018  ;;  %24038 = vrcp.f32 %v9576_v61  ;;  %v9661_v59 = vmul.f32 %v24017_v19, %v28382_v10  ;;  %9691 = vst.msk [vmem:[#allocation2 + $0xb0] sm:$0xff] %vm47_vm0, %v9659_v32  ;;  %21389 = vmatmul.mubr.msk.f32.gmra.mrb[74].mxu0 %vm47_vm0, %v28556_v33  ;;  %v28563_v11 = vld [vmem:[#allocation2 + $0x48] sm:$0xff]  ;;  %v9582_v10 = vadd.f32 1.0, %v28519_v15 }
 0xaa8   :  { %v24021_v26 = vpop.eup %24020  ;;  %24040 = vrcp.f32 %v9577_v31  ;;  %v9662_v46 = vmul.f32 %v24019_v50, %v28386_v21  ;;  %9692 = vst.msk [vmem:[#allocation2 + $0xc8] sm:$0xff] %vm47_vm0, %v9660_v25  ;;  %21391 = vmatprep.mubr.msk.f32.mxu0 %vm47_vm0, %v28563_v11  ;;  %v28576_v21 = vld [vmem:[#allocation2 + $0x50] sm:$0xff] }
 0xaa9   :  { %v24023_v41 = vpop.eup %24022  ;;  %24042 = vrcp.f32 %v9578_v6  ;;  %v9663_v9 = vmul.f32 %v24021_v26, %v28390_v56  ;;  %9693 = vst.msk [vmem:[#allocation2 + $0xd0] sm:$0xff] %vm47_vm0, %v9661_v59  ;;  %v28583_v56 = vld [vmem:[#allocation2 + $0x68] sm:$0xff] }
 0xaaa   :  { %v24025_v2 = vpop.eup %24024  ;;  %24044 = vrcp.f32 %v9579_v52  ;;  %v9664_v53 = vmul.f32 %v24023_v41, %v28394_v35  ;;  %9694 = vst.msk [vmem:[#allocation2 + $0xe8] sm:$0xff] %vm47_vm0, %v9662_v46  ;;  %v9585_v35 = vadd.f32 1.0, %v28525_v16  ;;  %v28594_v16 = vld [vmem:[#allocation2 + $0x70] sm:$0xff]  ;;  %v31912_v6 = vld [vmem:[#allocation25_spill] sm:$0xff]  ;;  %v28681_v46 = vld [vmem:[%s31491_s11] ss:$0 sm:$0xff] }
 0xaab   :  { %v24027_v42 = vpop.eup %24026  ;;  %24046 = vrcp.f32 %v9580_v3  ;;  %v9665_v15 = vmul.f32 %v24025_v2, %v28398_v60  ;;  %9695 = vst.msk [vmem:[#allocation2 + $0xf0] sm:$0xff] %vm47_vm0, %v9663_v9  ;;  %21392 = vmatmul.mubr.msk.f32.gmra.mrb[76].mxu0 %vm47_vm0, %v28576_v21  ;;  %v31913_v9 = vld [vmem:[#allocation39_spill] sm:$0xff] }
 0xaac   :  { %v24029_v39 = vpop.eup %24028  ;;  %24048 = vrcp.f32 %v9581_v17  ;;  %v9666_v8 = vmul.f32 %v24027_v42, %v28402_v43  ;;  %9696 = vst.msk [vmem:[#allocation2 + $0x108] sm:$0xff] %vm47_vm0, %v9664_v53  ;;  %21394 = vmatprep.mubr.msk.f32.mxu0 %vm47_vm0, %v28583_v56  ;;  %v28610_v5 = vld [vmem:[#allocation2 + $0x90] sm:$0xff]  ;;  %v22449_v2 = vadd.f32 %v31913_v9, %v28681_v46  ;;  %v31915_v42 = vld [vmem:[#allocation40_spill] sm:$0xff] }
 0xaad   :  { %v24031_v1 = vpop.eup %24030  ;;  %24050 = vrcp.f32 %v9582_v10  ;;  %v9667_v60 = vmul.f32 %v24029_v39, %v28406_v29  ;;  %9697 = vst.msk [vmem:[#allocation2 + $0x110] sm:$0xff] %vm47_vm0, %v9665_v15  ;;  %v28600_v29 = vld [vmem:[#allocation2 + $0x88] sm:$0xff]  ;;  %v31916_v15 = vld [vmem:[#allocation44_spill] sm:$0xff] }
 0xaae   :  { %v24033_v24 = vpop.eup %24032  ;;  %24052 = vrcp.f32 %v9583_v38  ;;  %v9668_v49 = vmul.f32 %v24031_v1, %v28410_v36  ;;  %9698 = vst.msk [vmem:[#allocation2 + $0x128] sm:$0xff] %vm47_vm0, %v9666_v8  ;;  %v28616_v54 = vld [vmem:[#allocation2 + $0xa8] sm:$0xff]  ;;  %v28626_v18 = vld [vmem:[#allocation2 + $0xb0] sm:$0xff]  ;;  %v31914_v38 = vld [vmem:[#allocation43_spill] sm:$0xff]  ;;  %v22458_v39 = vadd.f32 %v28681_v46, %v31916_v15 }
 0xaaf   :  { %v24035_v43 = vpop.eup %24034  ;;  %24054 = vrcp.f32 %v9584_v34  ;;  %v9669_v4 = vmul.f32 %v24033_v24, %v28414_v44  ;;  %9699 = vst.msk [vmem:[#allocation2 + $0x130] sm:$0xff] %vm47_vm0, %v9667_v60  ;;  %21395 = vmatmul.mubr.msk.f32.gmra.mrb[78].mxu0 %vm47_vm0, %v28594_v16  ;;  %v28632_v30 = vld [vmem:[#allocation2 + $0xc8] sm:$0xff]  ;;  %v22455_v53 = vadd.f32 %v31914_v38, %v28681_v46  ;;  %v22452_v34 = vadd.f32 %v28681_v46, %v31915_v42  ;;  %v28704_v1 = vld [vmem:[%s31492_s13] ss:$0 sm:$0xff]  ;;  %v31922_v38 = vld [vmem:[#allocation50_spill] sm:$0xff] }
 0xab0   :  { %v24037_v40 = vpop.eup %24036  ;;  %24056 = vrcp.f32 %v9585_v35  ;;  %v9670_v0 = vmul.f32 %v24035_v43, %v28419_v28  ;;  %9700 = vst.msk [vmem:[#allocation2 + $0x148] sm:$0xff] %vm47_vm0, %v9668_v49  ;;  %21397 = vmatprep.mubr.msk.f32.mxu0 %vm47_vm0, %v28600_v29  ;;  %v28642_v19 = vld [vmem:[#allocation2 + $0xd0] sm:$0xff] }
 0xab1   :  { %v24039_v36 = vpop.eup %24038  ;;  %v9671_v62 = vmul.f32 %v24037_v40, %v28424_v12  ;;  %9701 = vst.msk [vmem:[#allocation2 + $0x150] sm:$0xff] %vm47_vm0, %v9669_v4  ;;  %v28648_v25 = vld [vmem:[#allocation2 + $0xe8] sm:$0xff] }
 0xab2   :  { %v24041_v44 = vpop.eup %24040  ;;  %v9672_v7 = vmul.f32 %v24039_v36, %v28431_v27  ;;  %9702 = vst.msk [vmem:[#allocation2 + $0x168] sm:$0xff] %vm47_vm0, %v9670_v0  ;;  %v28654_v50 = vld [vmem:[#allocation2 + $0xf0] sm:$0xff]  ;;  %v31917_v4 = vld [vmem:[#allocation45_spill] sm:$0xff]  ;;  %v22456_v36 = vadd.f32 %v22455_v53, %v28704_v1  ;;  %v22476_v53 = vadd.f32 %v28681_v46, %v31922_v38 }
 0xab3   :  { %v24043_v45 = vpop.eup %24042  ;;  %v9673_v28 = vmul.f32 %v24041_v44, %v28438_v51  ;;  %9703 = vst.msk [vmem:[#allocation2 + $0x170] sm:$0xff] %vm47_vm0, %v9671_v62  ;;  %21398 = vmatmul.mubr.msk.f32.gmra.mrb[80].mxu0 %vm47_vm0, %v28610_v5  ;;  %v22461_v40 = vadd.f32 %v31917_v4, %v28681_v46  ;;  %v31918_v62 = vld [vmem:[#allocation46_spill] sm:$0xff]  ;;  %v31930_v38 = vld [vmem:[#allocation17_spill] sm:$0xff] }
 0xab4   :  { %v24045_v12 = vpop.eup %24044  ;;  %v9674_v37 = vmul.f32 %v24043_v45, %v28445_v58  ;;  %9704 = vst.msk [vmem:[#allocation2 + $0x188] sm:$0xff] %vm47_vm0, %v9672_v7  ;;  %21400 = vmatprep.mubr.msk.f32.mxu0 %vm47_vm0, %v28616_v54  ;;  %v28662_v3 = vld [vmem:[#allocation2 + $0x110] sm:$0xff]  ;;  %v22464_v44 = vadd.f32 %v28681_v46, %v31918_v62 }
 0xab5   :  { %v24047_v27 = vpop.eup %24046  ;;  %v9675_v47 = vmul.f32 %v24045_v12, %v28452_v48  ;;  %9705 = vst.msk [vmem:[#allocation2 + $0x190] sm:$0xff] %vm47_vm0, %v9673_v28  ;;  %v28666_v59 = vld [vmem:[#allocation2 + $0x128] sm:$0xff]  ;;  %v22459_v12 = vadd.f32 %v22458_v39, %v28704_v1 }
 0xab6   :  { %v24049_v51 = vpop.eup %24048  ;;  %v9676_v23 = vmul.f32 %v24047_v27, %v28459_v22  ;;  %9706 = vst.msk [vmem:[#allocation2 + $0x1a8] sm:$0xff] %vm47_vm0, %v9674_v37  ;;  %v28670_v26 = vld [vmem:[#allocation2 + $0x130] sm:$0xff] }
 0xab7   :  { %v24051_v61 = vpop.eup %24050  ;;  %v9677_v58 = vmul.f32 %v24049_v51, %v28466_v55  ;;  %9707 = vst.msk [vmem:[#allocation2 + $0x1b0] sm:$0xff] %vm47_vm0, %v9675_v47  ;;  %21401 = vmatmul.mubr.msk.f32.gmra.mrb[82].mxu0 %vm47_vm0, %v28626_v18  ;;  %v28674_v17 = vld [vmem:[#allocation2 + $0x148] sm:$0xff] }
 0xab8   :  { %v24053_v48 = vpop.eup %24052  ;;  %v9678_v31 = vmul.f32 %v24051_v61, %v31910_v63  ;;  %9708 = vst.msk [vmem:[#allocation2 + $0x1c8] sm:$0xff] %vm47_vm0, %v9676_v23  ;;  %21403 = vmatprep.mubr.msk.f32.mxu0 %vm47_vm0, %v28632_v30  ;;  %v28683_v41 = vld [vmem:[#allocation2 + $0x150] sm:$0xff]  ;;  %v31919_v23 = vld [vmem:[#allocation47_spill] sm:$0xff] }
 0xab9   :  { %v24055_v22 = vpop.eup %24054  ;;  %v9679_v57 = vmul.f32 %v24053_v48, %v31911_v20  ;;  %9709 = vst.msk [vmem:[#allocation2 + $0x1d0] sm:$0xff] %vm47_vm0, %v9677_v58  ;;  %v28687_v10 = vld [vmem:[#allocation2 + $0x168] sm:$0xff]  ;;  %v22467_v61 = vadd.f32 %v31919_v23, %v28681_v46  ;;  %v22462_v58 = vadd.f32 %v22461_v40, %v28704_v1  ;;  %v31920_v48 = vld [vmem:[#allocation48_spill] sm:$0xff]  ;;  %v22465_v20 = vadd.f32 %v22464_v44, %v28704_v1 }
 0xaba   :  { %v24057_v55 = vpop.eup %24056  ;;  %v9680_v32 = vmul.f32 %v24055_v22, %v31912_v6  ;;  %9710 = vst.msk [vmem:[#allocation2 + $0x1e8] sm:$0xff] %vm47_vm0, %v9678_v31  ;;  %v28699_v35 = vld [vmem:[#allocation2 + $0x170] sm:$0xff]  ;;  %v22470_v63 = vadd.f32 %v28681_v46, %v31920_v48  ;;  %v9714_v40 = vld [vmem:[#allocation2 + $0x7] sm:$0xff] }
 0xabb   :  { %v9681_v52 = vmul.f32 %v24057_v55, %v28490_v14  ;;  %9711 = vst.msk [vmem:[#allocation2 + $0x1f0] sm:$0xff] %vm47_vm0, %v9679_v57  ;;  %21404 = vmatmul.mubr.msk.f32.gmra.mrb[84].mxu0 %vm47_vm0, %v28642_v19  ;;  %v28658_v14 = vld [vmem:[#allocation2 + $0x108] sm:$0xff]  ;;  %v31928_v48 = vld [vmem:[#allocation54_spill] sm:$0xff] }
 0xabc   :  { %9712 = vst.msk [vmem:[#allocation2 + $0x208] sm:$0xff] %vm47_vm0, %v9680_v32  ;;  %21406 = vmatprep.mubr.msk.f32.mxu0 %vm47_vm0, %v28648_v25  ;;  %v28708_v60 = vld [vmem:[#allocation2 + $0x188] sm:$0xff]  ;;  %v28718_v7 = vld [vmem:[#allocation2 + $0x190] sm:$0xff]  ;;  %v22471_v15 = vadd.f32 %v22470_v63, %v28704_v1  ;;  %v22488_v63 = vadd.f32 %v28681_v46, %v31928_v48 }
 0xabd   :  { %9713 = vst.msk [vmem:[#allocation2 + $0x210] sm:$0xff] %vm47_vm0, %v9681_v52  ;;  %v28724_v37 = vld [vmem:[#allocation2 + $0x1a8] sm:$0xff] }
 0xabe   :  { %v28745_v31 = vld [vmem:[#allocation2 + $0x1b0] sm:$0xff]  ;;  %v31921_v52 = vld [vmem:[#allocation49_spill] sm:$0xff] }
 0xabf   :  { %21407 = vmatmul.mubr.msk.f32.gmra.mrb[86].mxu0 %vm47_vm0, %v28654_v50  ;;  %v28754_v57 = vld [vmem:[#allocation2 + $0x1c8] sm:$0xff]  ;;  %v22473_v9 = vadd.f32 %v31921_v52, %v28681_v46 }
 0xac0   :  { %21409 = vmatprep.mubr.msk.f32.mxu0 %vm47_vm0, %v28658_v14  ;;  %v28767_v42 = vld [vmem:[#allocation2 + $0x1d0] sm:$0xff]  ;;  %v31927_v23 = vld [vmem:[#allocation53_spill] sm:$0xff] }
 0xac1   :  { %v28776_v39 = vld [vmem:[#allocation2 + $0x1e8] sm:$0xff] }
 0xac2   :  { %31923 = vst [vmem:[#allocation29_spill] sm:$0xff] %v28776_v39  ;;  %v28789_v44 = vld [vmem:[#allocation2 + $0x1f0] sm:$0xff] }
 0xac3   :  { %21410 = vmatmul.mubr.msk.f32.gmra.mrb[88].mxu0 %vm47_vm0, %v28662_v3  ;;  %31926 = vst [vmem:[#allocation31_spill] sm:$0xff] %v28789_v44 }
 0xac4   :  { %21412 = vmatprep.mubr.msk.f32.mxu0 %vm47_vm0, %v28666_v59 }
 0xac7   :  { %21413 = vmatmul.mubr.msk.f32.gmra.mrb[90].mxu0 %vm47_vm0, %v28670_v26 }
 0xac8   :  { %21415 = vmatprep.mubr.msk.f32.mxu0 %vm47_vm0, %v28674_v17 }
 0xacb   :  { %21416 = vmatmul.mubr.msk.f32.gmra.mrb[92].mxu0 %vm47_vm0, %v28683_v41 }
 0xacc   :  { %21418 = vmatprep.mubr.msk.f32.mxu0 %vm47_vm0, %v28687_v10 }
 0xacf   :  { %21419 = vmatmul.mubr.msk.f32.gmra.mrb[94].mxu0 %vm47_vm0, %v28699_v35 }
 0xad0   :  { %21421 = vmatprep.mubr.msk.f32.mxu0 %vm47_vm0, %v28708_v60 }
 0xad3   :  { %21422 = vmatmul.mubr.msk.f32.gmra.mrb[96].mxu0 %vm47_vm0, %v28718_v7 }
 0xad4   :  { %21424 = vmatprep.mubr.msk.f32.mxu0 %vm47_vm0, %v28724_v37 }
 0xad7   :  { %21425 = vmatmul.mubr.msk.f32.gmra.mrb[98].mxu0 %vm47_vm0, %v28745_v31 }
 0xad8   :  { %21427 = vmatprep.mubr.msk.f32.mxu0 %vm47_vm0, %v28754_v57 }
 0xadb   :  { %21428 = vmatmul.mubr.msk.f32.gmra.mrb[100].mxu0 %vm47_vm0, %v28767_v42 }
 0xadc   :  { %v21327_v8 = vpop.f32.mrb[4].mxu1  ;;  %21430 = vmatprep.mubr.msk.f32.mxu0 %vm47_vm0, %v28776_v39  ;;  %v29098_v39 = vld [vmem:[#allocation2 + $0x31] sm:$0xff] }
 0xadd   :  { %v22450_v24 = vadd.f32 %v22449_v2, %v21327_v8  ;;  %v8749_v49 = vpop.f32.mrb[5].mxu1  ;;  %v22468_v2 = vadd.f32 %v22467_v61, %v28704_v1  ;;  %v22485_v61 = vadd.f32 %v31927_v23, %v28681_v46  ;;  %31949 = vst [vmem:[#allocation8_spill] sm:$0xff] %v29098_v39 }
 0xade   :  { %v22453_v43 = vadd.f32 %v22452_v34, %v8749_v49 }
 0xadf   :  { %v22451_v0 = vadd.f32 %v22450_v24, %v28704_v1  ;;  %21431 = vmatmul.mubr.msk.f32.gmra.mrb[102].mxu0 %vm47_vm0, %v28789_v44  ;;  %v29092_v44 = vld [vmem:[#allocation2 + $0x29] sm:$0xff] }
 0xae0   :  { %v22454_v45 = vadd.f32 %v22453_v43, %v28704_v1  ;;  %v21330_v28 = vpop.f32.mrb[6].mxu1  ;;  %v31924_v43 = vld [vmem:[#allocation51_spill] sm:$0xff]  ;;  %21435 = vmatprep.mubr.msk.f32.mxu0 %vm47_vm0, %v9714_v40  ;;  %31948 = vst [vmem:[#allocation33_spill] sm:$0xff] %v29092_v44 }
 0xae1   :  { %8941 = vst.msk [vmem:[%s31493_s14 + $0x8] sm:$0xff] %vm90_vm4, %v22451_v0  ;;  %v22457_v27 = vadd.f32 %v22456_v36, %v21330_v28  ;;  %v8759_v47 = vpop.f32.mrb[7].mxu1  ;;  %v22479_v4 = vadd.f32 %v31924_v43, %v28681_v46  ;;  %v22474_v0 = vadd.f32 %v22473_v9, %v28704_v1  ;;  %v31925_v36 = vld [vmem:[#allocation52_spill] sm:$0xff]  ;;  %v22477_v28 = vadd.f32 %v22476_v53, %v28704_v1  ;;  %v31929_v9 = vld [vmem:[#allocation6_spill] sm:$0xff] }
 0xae2   :  { %8940 = vst.msk [vmem:[%s31493_s14] sm:$0xff] %vm90_vm4, %v22454_v45  ;;  %v22460_v51 = vadd.f32 %v22459_v12, %v8759_v47  ;;  %v22482_v62 = vadd.f32 %v28681_v46, %v31925_v36  ;;  %v9715_v47 = vld [vmem:[#allocation2 + $0xf] sm:$0xff]  ;;  %v22491_v53 = vadd.f32 %v31930_v38, %v28681_v46  ;;  %v22489_v43 = vadd.f32 %v22488_v63, %v28704_v1 }
 0xae3   :  { %8943 = vst.msk [vmem:[%s31493_s14 + $0x18] sm:$0xff] %vm90_vm4, %v22457_v27  ;;  %21436 = vmatmul.mubr.msk.f32.vlgmr.msra.gmra.mrb[72].mxu0 %vm47_vm0, %v9715_v47  ;;  %v28856_v47 = vld [vmem:[#allocation2 + $0x4f] sm:$0xff] }
 0xae4   :  { %8942 = vst.msk [vmem:[%s31493_s14 + $0x10] sm:$0xff] %vm90_vm4, %v22460_v51  ;;  %v21333_v22 = vpop.f32.mrb[8].mxu1  ;;  %21484 = vmatpush3.msra.mxu0 %v31929_v9 }
 0xae5   :  { %v22463_v55 = vadd.f32 %v22462_v58, %v21333_v22  ;;  %v8769_v6 = vpop.f32.mrb[9].mxu1  ;;  %v22480_v58 = vadd.f32 %v22479_v4, %v28704_v1  ;;  %v28843_v4 = vld [vmem:[#allocation2 + $0x47] sm:$0xff] }
 0xae6   :  { %v22466_v32 = vadd.f32 %v22465_v20, %v8769_v6  ;;  %v22483_v20 = vadd.f32 %v22482_v62, %v28704_v1  ;;  %v28819_v6 = vld [vmem:[#allocation2 + $0x27] sm:$0xff]  ;;  %v31932_v62 = vld [vmem:[#allocation19_spill] sm:$0xff] }
 0xae7   :  { %8945 = vst.msk [vmem:[%s31493_s14 + $0x28] sm:$0xff] %vm90_vm4, %v22463_v55  ;;  %v28816_v55 = vld [vmem:[%s31481_s4 + $0x18] sm:$0xff]  ;;  %21438 = vmatprep.mubr.msk.f32.mxu0 %vm47_vm0, %v28819_v6 }
 0xae8   :  { %8944 = vst.msk [vmem:[%s31493_s14 + $0x20] sm:$0xff] %vm90_vm4, %v22466_v32  ;;  %v21336_v34 = vpop.f32.mrb[10].mxu1  ;;  %21533 = vmatprep.subr.mxu0 %v28816_v55 }
 0xae9   :  { %v22469_v8 = vadd.f32 %v22468_v2, %v21336_v34  ;;  %v8779_v24 = vpop.f32.mrb[11].mxu1  ;;  %v22486_v34 = vadd.f32 %v22485_v61, %v28704_v1  ;;  %v28865_v61 = vld [vmem:[#allocation2 + $0x67] sm:$0xff] }
 0xaea   :  { %v22472_v49 = vadd.f32 %v22471_v15, %v8779_v24  ;;  %v31931_v15 = vld [vmem:[#allocation18_spill] sm:$0xff] }
 0xaeb   :  { %8947 = vst.msk [vmem:[%s31493_s14 + $0x38] sm:$0xff] %vm90_vm4, %v22469_v8  ;;  %v22494_v8 = vadd.f32 %v28681_v46, %v31931_v15  ;;  %v28834_v24 = vld [vmem:[#allocation2 + $0x2f] sm:$0xff] }
 0xaec   :  { %8946 = vst.msk [vmem:[%s31493_s14 + $0x30] sm:$0xff] %vm90_vm4, %v22472_v49  ;;  %v21339_v45 = vpop.f32.mrb[12].mxu1  ;;  %21439 = vmatmul.mubr.msk.f32.gmra.mrb[74].mxu0 %vm47_vm0, %v28834_v24 }
 0xaed   :  { %v22475_v12 = vadd.f32 %v22474_v0, %v21339_v45  ;;  %v8789_v27 = vpop.f32.mrb[13].mxu1  ;;  %21441 = vmatprep.mubr.msk.f32.mxu0 %vm47_vm0, %v28843_v4  ;;  %v22497_v45 = vadd.f32 %v31932_v62, %v28681_v46  ;;  %v22495_v23 = vadd.f32 %v22494_v8, %v28704_v1 }
 0xaee   :  { %v22478_v51 = vadd.f32 %v22477_v28, %v8789_v27  ;;  %v22492_v28 = vadd.f32 %v22491_v53, %v28704_v1 }
 0xaef   :  { %8949 = vst.msk [vmem:[%s31493_s14 + $0x48] sm:$0xff] %vm90_vm4, %v22475_v12  ;;  %v31933_v12 = vld [vmem:[#allocation20_spill] sm:$0xff] }
 0xaf0   :  { %8948 = vst.msk [vmem:[%s31493_s14 + $0x40] sm:$0xff] %vm90_vm4, %v22478_v51  ;;  %v21342_v22 = vpop.f32.mrb[14].mxu1  ;;  %v22500_v27 = vadd.f32 %v28681_v46, %v31933_v12  ;;  %21442 = vmatmul.mubr.msk.f32.gmra.mrb[76].mxu0 %vm47_vm0, %v28856_v47 }
 0xaf1   :  { %v22481_v32 = vadd.f32 %v22480_v58, %v21342_v22  ;;  %v8799_v52 = vpop.f32.mrb[15].mxu1  ;;  %21444 = vmatprep.mubr.msk.f32.mxu0 %vm47_vm0, %v28865_v61  ;;  %v31934_v22 = vld [vmem:[#allocation21_spill] sm:$0xff] }
 0xaf2   :  { %v22484_v2 = vadd.f32 %v22483_v20, %v8799_v52  ;;  %v22503_v20 = vadd.f32 %v31934_v22, %v28681_v46  ;;  %v31935_v52 = vld [vmem:[#allocation24_spill] sm:$0xff]  ;;  %v22501_v53 = vadd.f32 %v22500_v27, %v28704_v1 }
 0xaf3   :  { %8951 = vst.msk [vmem:[%s31493_s14 + $0x58] sm:$0xff] %vm90_vm4, %v22481_v32  ;;  %v22498_v32 = vadd.f32 %v22497_v45, %v28704_v1  ;;  %v22506_v9 = vadd.f32 %v28681_v46, %v31935_v52  ;;  %v28900_v45 = vld [vmem:[#allocation2 + $0x8f] sm:$0xff]  ;;  %v28909_v27 = vld [vmem:[#allocation2 + $0xa7] sm:$0xff] }
 0xaf4   :  { %8950 = vst.msk [vmem:[%s31493_s14 + $0x50] sm:$0xff] %vm90_vm4, %v22484_v2  ;;  %v21345_v49 = vpop.f32.mrb[16].mxu1  ;;  %v28878_v2 = vld [vmem:[#allocation2 + $0x6f] sm:$0xff] }
 0xaf5   :  { %v22487_v40 = vadd.f32 %v22486_v34, %v21345_v49  ;;  %v8809_v0 = vpop.f32.mrb[17].mxu1  ;;  %21445 = vmatmul.mubr.msk.f32.gmra.mrb[78].mxu0 %vm47_vm0, %v28878_v2  ;;  %v28887_v34 = vld [vmem:[#allocation2 + $0x87] sm:$0xff]  ;;  %v22507_v12 = vadd.f32 %v22506_v9, %v28704_v1  ;;  %v28922_v52 = vld [vmem:[#allocation2 + $0xaf] sm:$0xff] }
 0xaf6   :  { %v22490_v36 = vadd.f32 %v22489_v43, %v8809_v0  ;;  %21447 = vmatprep.mubr.msk.f32.mxu0 %vm47_vm0, %v28887_v34  ;;  %v31936_v43 = vld [vmem:[#allocation55_spill] sm:$0xff]  ;;  %v22504_v0 = vadd.f32 %v22503_v20, %v28704_v1  ;;  %v31939_v20 = vld [vmem:[#allocation58_spill] sm:$0xff] }
 0xaf7   :  { %8953 = vst.msk [vmem:[%s31493_s14 + $0x68] sm:$0xff] %vm90_vm4, %v22487_v40  ;;  %v22509_v40 = vadd.f32 %v31936_v43, %v28681_v46  ;;  %v31940_v43 = vld [vmem:[#allocation59_spill] sm:$0xff] }
 0xaf8   :  { %8952 = vst.msk [vmem:[%s31493_s14 + $0x60] sm:$0xff] %vm90_vm4, %v22490_v36  ;;  %v21348_v51 = vpop.f32.mrb[18].mxu1  ;;  %v31937_v36 = vld [vmem:[#allocation56_spill] sm:$0xff] }
 0xaf9   :  { %v22493_v58 = vadd.f32 %v22492_v28, %v21348_v51  ;;  %v8819_v48 = vpop.f32.mrb[19].mxu1  ;;  %v22512_v62 = vadd.f32 %v28681_v46, %v31937_v36  ;;  %21448 = vmatmul.mubr.msk.f32.gmra.mrb[80].mxu0 %vm47_vm0, %v28900_v45  ;;  %v22510_v22 = vadd.f32 %v22509_v40, %v28704_v1  ;;  %v22521_v40 = vadd.f32 %v31940_v43, %v28681_v46  ;;  %v31941_v36 = vld [vmem:[#allocation60_spill] sm:$0xff] }
 0xafa   :  { %v22496_v63 = vadd.f32 %v22495_v23, %v8819_v48  ;;  %21450 = vmatprep.mubr.msk.f32.mxu0 %vm47_vm0, %v28909_v27  ;;  %v31938_v48 = vld [vmem:[#allocation57_spill] sm:$0xff] }
 0xafb   :  { %8955 = vst.msk [vmem:[%s31493_s14 + $0x78] sm:$0xff] %vm90_vm4, %v22493_v58  ;;  %v28975_v43 = vld [vmem:[#allocation2 + $0x107] sm:$0xff] }
 0xafc   :  { %8954 = vst.msk [vmem:[%s31493_s14 + $0x70] sm:$0xff] %vm90_vm4, %v22496_v63  ;;  %v21351_v38 = vpop.f32.mrb[20].mxu1  ;;  %v22515_v63 = vadd.f32 %v31938_v48, %v28681_v46 }
 0xafd   :  { %v22499_v15 = vadd.f32 %v22498_v32, %v21351_v38  ;;  %v8829_v8 = vpop.f32.mrb[21].mxu1  ;;  %v22518_v32 = vadd.f32 %v28681_v46, %v31939_v20  ;;  %v22513_v38 = vadd.f32 %v22512_v62, %v28704_v1  ;;  %21451 = vmatmul.mubr.msk.f32.gmra.mrb[82].mxu0 %vm47_vm0, %v28922_v52  ;;  %v22524_v62 = vadd.f32 %v28681_v46, %v31941_v36 }
 0xafe   :  { %v22502_v49 = vadd.f32 %v22501_v53, %v8829_v8  ;;  %v28931_v53 = vld [vmem:[#allocation2 + $0xc7] sm:$0xff] }
 0xaff   :  { %8957 = vst.msk [vmem:[%s31493_s14 + $0x88] sm:$0xff] %vm90_vm4, %v22499_v15  ;;  %21453 = vmatprep.mubr.msk.f32.mxu0 %vm47_vm0, %v28931_v53 }
 0xb00   :  { %8956 = vst.msk [vmem:[%s31493_s14 + $0x80] sm:$0xff] %vm90_vm4, %v22502_v49  ;;  %v21354_v28 = vpop.f32.mrb[22].mxu1 }
 0xb01   :  { %v22505_v51 = vadd.f32 %v22504_v0, %v21354_v28  ;;  %v8839_v23 = vpop.f32.mrb[23].mxu1  ;;  %v22516_v0 = vadd.f32 %v22515_v63, %v28704_v1  ;;  %v28944_v28 = vld [vmem:[#allocation2 + $0xcf] sm:$0xff] }
 0xb02   :  { %v22508_v58 = vadd.f32 %v22507_v12, %v8839_v23  ;;  %21454 = vmatmul.mubr.msk.f32.gmra.mrb[84].mxu0 %vm47_vm0, %v28944_v28  ;;  %v28953_v23 = vld [vmem:[#allocation2 + $0xe7] sm:$0xff] }
 0xb03   :  { %8959 = vst.msk [vmem:[%s31493_s14 + $0x98] sm:$0xff] %vm90_vm4, %v22505_v51  ;;  %v22519_v51 = vadd.f32 %v22518_v32, %v28704_v1  ;;  %21456 = vmatprep.mubr.msk.f32.mxu0 %vm47_vm0, %v28953_v23  ;;  %v22522_v32 = vadd.f32 %v22521_v40, %v28704_v1 }
 0xb04   :  { %8958 = vst.msk [vmem:[%s31493_s14 + $0x90] sm:$0xff] %vm90_vm4, %v22508_v58  ;;  %v21357_v9 = vpop.f32.mrb[24].mxu1 }
 0xb05   :  { %v22511_v15 = vadd.f32 %v22510_v22, %v21357_v9  ;;  %v8849_v8 = vpop.f32.mrb[25].mxu1  ;;  %v31942_v22 = vld [vmem:[#allocation26_spill] sm:$0xff]  ;;  %v31943_v9 = vld [vmem:[#allocation27_spill] sm:$0xff] }
 0xb06   :  { %v22514_v49 = vadd.f32 %v22513_v38, %v8849_v8  ;;  %v22527_v20 = vadd.f32 %v31942_v22, %v28681_v46  ;;  %v22530_v38 = vadd.f32 %v28681_v46, %v31943_v9  ;;  %v28997_v9 = vld [vmem:[#allocation2 + $0x127] sm:$0xff] }
 0xb07   :  { %8961 = vst.msk [vmem:[%s31493_s14 + $0xa8] sm:$0xff] %vm90_vm4, %v22511_v15  ;;  %v28966_v15 = vld [vmem:[#allocation2 + $0xef] sm:$0xff] }
 0xb08   :  { %8960 = vst.msk [vmem:[%s31493_s14 + $0xa0] sm:$0xff] %vm90_vm4, %v22514_v49  ;;  %v21360_v12 = vpop.f32.mrb[26].mxu1  ;;  %v22525_v49 = vadd.f32 %v22524_v62, %v28704_v1  ;;  %21457 = vmatmul.mubr.msk.f32.gmra.mrb[86].mxu0 %vm47_vm0, %v28966_v15  ;;  %v22528_v62 = vadd.f32 %v22527_v20, %v28704_v1 }
 0xb09   :  { %v22517_v58 = vadd.f32 %v22516_v0, %v21360_v12  ;;  %v8859_v48 = vpop.f32.mrb[27].mxu1  ;;  %21459 = vmatprep.mubr.msk.f32.mxu0 %vm47_vm0, %v28975_v43  ;;  %v31944_v12 = vld [vmem:[#allocation28_spill] sm:$0xff] }
 0xb0a   :  { %v22520_v63 = vadd.f32 %v22519_v51, %v8859_v48  ;;  %v22533_v51 = vadd.f32 %v31944_v12, %v28681_v46 }
 0xb0b   :  { %8963 = vst.msk [vmem:[%s31493_s14 + $0xb8] sm:$0xff] %vm90_vm4, %v22517_v58  ;;  %v31945_v58 = vld [vmem:[#allocation30_spill] sm:$0xff] }
 0xb0c   :  { %8962 = vst.msk [vmem:[%s31493_s14 + $0xb0] sm:$0xff] %vm90_vm4, %v22520_v63  ;;  %v21363_v8 = vpop.f32.mrb[28].mxu1  ;;  %v22536_v48 = vadd.f32 %v28681_v46, %v31945_v58  ;;  %v28988_v63 = vld [vmem:[#allocation2 + $0x10f] sm:$0xff] }
 0xb0d   :  { %v22523_v0 = vadd.f32 %v22522_v32, %v21363_v8  ;;  %v8869_v40 = vpop.f32.mrb[29].mxu1  ;;  %v22531_v32 = vadd.f32 %v22530_v38, %v28704_v1  ;;  %21460 = vmatmul.mubr.msk.f32.gmra.mrb[88].mxu0 %vm47_vm0, %v28988_v63  ;;  %v22534_v38 = vadd.f32 %v22533_v51, %v28704_v1  ;;  %v29010_v58 = vld [vmem:[#allocation2 + $0x12f] sm:$0xff] }
 0xb0e   :  { %v22526_v36 = vadd.f32 %v22525_v49, %v8869_v40  ;;  %21462 = vmatprep.mubr.msk.f32.mxu0 %vm47_vm0, %v28997_v9 }
 0xb0f   :  { %8965 = vst.msk [vmem:[%s31493_s14 + $0xc8] sm:$0xff] %vm90_vm4, %v22523_v0  ;;  %v31946_v0 = vld [vmem:[#allocation32_spill] sm:$0xff] }
 0xb10   :  { %8964 = vst.msk [vmem:[%s31493_s14 + $0xc0] sm:$0xff] %vm90_vm4, %v22526_v36  ;;  %v21366_v22 = vpop.f32.mrb[30].mxu1  ;;  %v22539_v40 = vadd.f32 %v31946_v0, %v28681_v46  ;;  %v31947_v36 = vld [vmem:[#allocation5_spill] sm:$0xff] }
 0xb11   :  { %v22529_v8 = vadd.f32 %v22528_v62, %v21366_v22  ;;  %v8879_v20 = vpop.f32.mrb[31].mxu1  ;;  %v22542_v12 = vadd.f32 %v28681_v46, %v31947_v36  ;;  %v22537_v22 = vadd.f32 %v22536_v48, %v28704_v1  ;;  %21463 = vmatmul.mubr.msk.f32.gmra.mrb[90].mxu0 %vm47_vm0, %v29010_v58 }
 0xb12   :  { %v22532_v49 = vadd.f32 %v22531_v32, %v8879_v20  ;;  %v29019_v32 = vld [vmem:[#allocation2 + $0x147] sm:$0xff]  ;;  %v22540_v20 = vadd.f32 %v22539_v40, %v28704_v1 }
 0xb13   :  { %8967 = vst.msk [vmem:[%s31493_s14 + $0xd8] sm:$0xff] %vm90_vm4, %v22529_v8  ;;  %21465 = vmatprep.mubr.msk.f32.mxu0 %vm47_vm0, %v29019_v32  ;;  %v22543_v0 = vadd.f32 %v22542_v12, %v28704_v1  ;;  %v29053_v1 = vld [vmem:[#allocation2 + $0x187] sm:$0xff]  ;;  %v29057_v12 = vld [vmem:[#allocation2 + $0x18f] sm:$0xff] }
 0xb14   :  { %8966 = vst.msk [vmem:[%s31493_s14 + $0xd0] sm:$0xff] %vm90_vm4, %v22532_v49  ;;  %v21369_v62 = vpop.f32.mrb[32].mxu1  ;;  %v29028_v49 = vld [vmem:[#allocation2 + $0x14f] sm:$0xff] }
 0xb15   :  { %v22535_v8 = vadd.f32 %v22534_v38, %v21369_v62  ;;  %v8889_v51 = vpop.f32.mrb[33].mxu1  ;;  %21466 = vmatmul.mubr.msk.f32.gmra.mrb[92].mxu0 %vm47_vm0, %v29028_v49  ;;  %v29037_v38 = vld [vmem:[#allocation2 + $0x167] sm:$0xff] }
 0xb16   :  { %v22538_v46 = vadd.f32 %v22537_v22, %v8889_v51  ;;  %21468 = vmatprep.mubr.msk.f32.mxu0 %vm47_vm0, %v29037_v38  ;;  %v29045_v22 = vld [vmem:[#allocation2 + $0x16f] sm:$0xff] }
 0xb17   :  { %8969 = vst.msk [vmem:[%s31493_s14 + $0xe8] sm:$0xff] %vm90_vm4, %v22535_v8  ;;  %v29061_v8 = vld [vmem:[#allocation2 + $0x1a7] sm:$0xff]  ;;  %v29065_v51 = vld [vmem:[#allocation2 + $0x1af] sm:$0xff] }
 0xb18   :  { %8968 = vst.msk [vmem:[%s31493_s14 + $0xe0] sm:$0xff] %vm90_vm4, %v22538_v46  ;;  %v21372_v48 = vpop.f32.mrb[34].mxu1  ;;  %v29069_v46 = vld [vmem:[#allocation2 + $0x1c7] sm:$0xff] }
 0xb19   :  { %v22541_v36 = vadd.f32 %v22540_v20, %v21372_v48  ;;  %v8899_v62 = vpop.f32.mrb[35].mxu1  ;;  %21469 = vmatmul.mubr.msk.f32.gmra.mrb[94].mxu0 %vm47_vm0, %v29045_v22  ;;  %v29073_v20 = vld [vmem:[#allocation2 + $0x1cf] sm:$0xff]  ;;  %v29077_v48 = vld [vmem:[#allocation2 + $0x1e7] sm:$0xff] }
 0xb1a   :  { %v22544_v40 = vadd.f32 %v22543_v0, %v8899_v62  ;;  %21471 = vmatprep.mubr.msk.f32.mxu0 %vm47_vm0, %v29053_v1  ;;  %v10422_v0 = vld [vmem:[#allocation2 + $0x9] sm:$0xff]  ;;  %v10423_v62 = vld [vmem:[#allocation2 + $0x11] sm:$0xff] }
 0xb1b   :  { %8971 = vst.msk [vmem:[%s31493_s14 + $0xf8] sm:$0xff] %vm90_vm4, %v22541_v36  ;;  %v29081_v36 = vld [vmem:[#allocation2 + $0x1ef] sm:$0xff] }
 0xb1c   :  { %8970 = vst.msk [vmem:[%s31493_s14 + $0xf0] sm:$0xff] %vm90_vm4, %v22544_v40  ;;  %v29089_v40 = vld [vmem:[%s31481_s4 + $0x20] sm:$0xff] }
 0xb1d   :  { %21472 = vmatmul.mubr.msk.f32.gmra.mrb[96].mxu0 %vm47_vm0, %v29057_v12 }
 0xb1e   :  { %21474 = vmatprep.mubr.msk.f32.mxu0 %vm47_vm0, %v29061_v8 }
 0xb21   :  { %21475 = vmatmul.mubr.msk.f32.gmra.mrb[98].mxu0 %vm47_vm0, %v29065_v51 }
 0xb22   :  { %21477 = vmatprep.mubr.msk.f32.mxu0 %vm47_vm0, %v29069_v46 }
 0xb25   :  { %21478 = vmatmul.mubr.msk.f32.gmra.mrb[100].mxu0 %vm47_vm0, %v29073_v20 }
 0xb26   :  { %21480 = vmatprep.mubr.msk.f32.mxu0 %vm47_vm0, %v29077_v48 }
 0xb29   :  { %21481 = vmatmul.mubr.msk.f32.gmra.mrb[102].mxu0 %vm47_vm0, %v29081_v36 }
 0xb2a   :  { %21485 = vmatprep.mubr.msk.f32.mxu0 %vm47_vm0, %v10422_v0  ;;  %v29102_v0 = vld [vmem:[#allocation2 + $0x49] sm:$0xff] }
 0xb2b   :  { %31950 = vst [vmem:[#allocation9_spill] sm:$0xff] %v29102_v0 }
 0xb2d   :  { %21486 = vmatmul.mubr.msk.f32.vlgmr.msra.gmra.mrb[72].mxu0 %vm47_vm0, %v10423_v62  ;;  %v29106_v62 = vld [vmem:[#allocation2 + $0x51] sm:$0xff] }
 0xb2e   :  { %21534 = vmatpush3.msra.mxu0 %v28816_v55  ;;  %21488 = vmatprep.mubr.msk.f32.mxu0 %vm47_vm0, %v29092_v44  ;;  %31951 = vst [vmem:[#allocation10_spill] sm:$0xff] %v29106_v62  ;;  %v29110_v55 = vld [vmem:[#allocation2 + $0x69] sm:$0xff]  ;;  %v29114_v44 = vld [vmem:[#allocation2 + $0x71] sm:$0xff] }
 0xb2f   :  { %21583 = vmatprep.subr.mxu0 %v29089_v40  ;;  %31952 = vst [vmem:[#allocation11_spill] sm:$0xff] %v29110_v55  ;;  %31953 = vst [vmem:[#allocation34_spill] sm:$0xff] %v29114_v44 }
 0xb31   :  { %21489 = vmatmul.mubr.msk.f32.gmra.mrb[74].mxu0 %vm47_vm0, %v29098_v39  ;;  %v29118_v39 = vld [vmem:[#allocation2 + $0x89] sm:$0xff] }
 0xb32   :  { %21491 = vmatprep.mubr.msk.f32.mxu0 %vm47_vm0, %v29102_v0  ;;  %31954 = vst [vmem:[#allocation35_spill] sm:$0xff] %v29118_v39  ;;  %v29122_v0 = vld [vmem:[#allocation2 + $0x91] sm:$0xff] }
 0xb33   :  { %31955 = vst [vmem:[#allocation36_spill] sm:$0xff] %v29122_v0 }
 0xb35   :  { %21492 = vmatmul.mubr.msk.f32.gmra.mrb[76].mxu0 %vm47_vm0, %v29106_v62  ;;  %v29126_v62 = vld [vmem:[#allocation2 + $0xa9] sm:$0xff] }
 0xb36   :  { %21494 = vmatprep.mubr.msk.f32.mxu0 %vm47_vm0, %v29110_v55  ;;  %31956 = vst [vmem:[#allocation37_spill] sm:$0xff] %v29126_v62  ;;  %v29130_v55 = vld [vmem:[#allocation2 + $0xb1] sm:$0xff] }
 0xb37   :  { %31957 = vst [vmem:[#allocation38_spill] sm:$0xff] %v29130_v55 }
 0xb39   :  { %21495 = vmatmul.mubr.msk.f32.gmra.mrb[78].mxu0 %vm47_vm0, %v29114_v44  ;;  %v29134_v44 = vld [vmem:[#allocation2 + $0xc9] sm:$0xff] }
 0xb3a   :  { %21497 = vmatprep.mubr.msk.f32.mxu0 %vm47_vm0, %v29118_v39  ;;  %31958 = vst [vmem:[#allocation41_spill] sm:$0xff] %v29134_v44  ;;  %v29138_v39 = vld [vmem:[#allocation2 + $0xd1] sm:$0xff] }
 0xb3b   :  { %31959 = vst [vmem:[#allocation42_spill] sm:$0xff] %v29138_v39 }
 0xb3d   :  { %21498 = vmatmul.mubr.msk.f32.gmra.mrb[80].mxu0 %vm47_vm0, %v29122_v0  ;;  %v29142_v0 = vld [vmem:[#allocation2 + $0xe9] sm:$0xff] }
 0xb3e   :  { %21500 = vmatprep.mubr.msk.f32.mxu0 %vm47_vm0, %v29126_v62  ;;  %31960 = vst [vmem:[#allocation12_spill] sm:$0xff] %v29142_v0  ;;  %v29146_v62 = vld [vmem:[#allocation2 + $0xf1] sm:$0xff] }
 0xb3f   :  { %31961 = vst [vmem:[#allocation13_spill] sm:$0xff] %v29146_v62 }
 0xb41   :  { %21501 = vmatmul.mubr.msk.f32.gmra.mrb[82].mxu0 %vm47_vm0, %v29130_v55  ;;  %v29150_v55 = vld [vmem:[#allocation2 + $0x109] sm:$0xff] }
 0xb42   :  { %21503 = vmatprep.mubr.msk.f32.mxu0 %vm47_vm0, %v29134_v44  ;;  %31962 = vst [vmem:[#allocation14_spill] sm:$0xff] %v29150_v55  ;;  %v29154_v44 = vld [vmem:[#allocation2 + $0x111] sm:$0xff] }
 0xb43   :  { %31963 = vst [vmem:[#allocation15_spill] sm:$0xff] %v29154_v44 }
 0xb45   :  { %21504 = vmatmul.mubr.msk.f32.gmra.mrb[84].mxu0 %vm47_vm0, %v29138_v39  ;;  %v29158_v39 = vld [vmem:[#allocation2 + $0x129] sm:$0xff] }
 0xb46   :  { %21506 = vmatprep.mubr.msk.f32.mxu0 %vm47_vm0, %v29142_v0  ;;  %31964 = vst [vmem:[#allocation16_spill] sm:$0xff] %v29158_v39  ;;  %v29162_v0 = vld [vmem:[#allocation2 + $0x131] sm:$0xff] }
 0xb47   :  { %31965 = vst [vmem:[#allocation22_spill] sm:$0xff] %v29162_v0 }
 0xb49   :  { %21507 = vmatmul.mubr.msk.f32.gmra.mrb[86].mxu0 %vm47_vm0, %v29146_v62  ;;  %v29166_v62 = vld [vmem:[#allocation2 + $0x149] sm:$0xff] }
 0xb4a   :  { %21509 = vmatprep.mubr.msk.f32.mxu0 %vm47_vm0, %v29150_v55  ;;  %31966 = vst [vmem:[#allocation23_spill] sm:$0xff] %v29166_v62  ;;  %v29170_v55 = vld [vmem:[#allocation2 + $0x151] sm:$0xff] }
 0xb4b   :  { %31967 = vst [vmem:[#allocation25_spill] sm:$0xff] %v29170_v55 }
 0xb4d   :  { %21510 = vmatmul.mubr.msk.f32.gmra.mrb[88].mxu0 %vm47_vm0, %v29154_v44  ;;  %v29174_v44 = vld [vmem:[#allocation2 + $0x169] sm:$0xff] }
 0xb4e   :  { %21512 = vmatprep.mubr.msk.f32.mxu0 %vm47_vm0, %v29158_v39  ;;  %31968 = vst [vmem:[#allocation39_spill] sm:$0xff] %v29174_v44  ;;  %v29178_v39 = vld [vmem:[#allocation2 + $0x171] sm:$0xff] }
 0xb4f   :  { %31969 = vst [vmem:[#allocation43_spill] sm:$0xff] %v29178_v39 }
 0xb51   :  { %21513 = vmatmul.mubr.msk.f32.gmra.mrb[90].mxu0 %vm47_vm0, %v29162_v0  ;;  %v29182_v0 = vld [vmem:[#allocation2 + $0x189] sm:$0xff] }
 0xb52   :  { %21515 = vmatprep.mubr.msk.f32.mxu0 %vm47_vm0, %v29166_v62  ;;  %31970 = vst [vmem:[#allocation40_spill] sm:$0xff] %v29182_v0  ;;  %v29186_v62 = vld [vmem:[#allocation2 + $0x191] sm:$0xff] }
 0xb53   :  { %31971 = vst [vmem:[#allocation44_spill] sm:$0xff] %v29186_v62 }
 0xb55   :  { %21516 = vmatmul.mubr.msk.f32.gmra.mrb[92].mxu0 %vm47_vm0, %v29170_v55  ;;  %v29190_v55 = vld [vmem:[#allocation2 + $0x1a9] sm:$0xff] }
 0xb56   :  { %21518 = vmatprep.mubr.msk.f32.mxu0 %vm47_vm0, %v29174_v44  ;;  %31972 = vst [vmem:[#allocation45_spill] sm:$0xff] %v29190_v55  ;;  %v29194_v44 = vld [vmem:[#allocation2 + $0x1b1] sm:$0xff] }
 0xb59   :  { %21519 = vmatmul.mubr.msk.f32.gmra.mrb[94].mxu0 %vm47_vm0, %v29178_v39  ;;  %v29198_v39 = vld [vmem:[#allocation2 + $0x1c9] sm:$0xff] }
 0xb5a   :  { %21521 = vmatprep.mubr.msk.f32.mxu0 %vm47_vm0, %v29182_v0  ;;  %31973 = vst [vmem:[#allocation46_spill] sm:$0xff] %v29198_v39  ;;  %v29202_v0 = vld [vmem:[#allocation2 + $0x1d1] sm:$0xff] }
 0xb5d   :  { %21522 = vmatmul.mubr.msk.f32.gmra.mrb[96].mxu0 %vm47_vm0, %v29186_v62  ;;  %v29206_v62 = vld [vmem:[#allocation2 + $0x1e9] sm:$0xff] }
 0xb5e   :  { %21524 = vmatprep.mubr.msk.f32.mxu0 %vm47_vm0, %v29190_v55  ;;  %v29210_v55 = vld [vmem:[#allocation2 + $0x1f1] sm:$0xff] }
 0xb61   :  { %21525 = vmatmul.mubr.msk.f32.gmra.mrb[98].mxu0 %vm47_vm0, %v29194_v44 }
 0xb62   :  { %21527 = vmatprep.mubr.msk.f32.mxu0 %vm47_vm0, %v29198_v39  ;;  %v18586_v39 = vld [vmem:[%s31481_s4 + $0x28] sm:$0xff] }
 0xb65   :  { %21528 = vmatmul.mubr.msk.f32.gmra.mrb[100].mxu0 %vm47_vm0, %v29202_v0 }
 0xb66   :  { %21530 = vmatprep.mubr.msk.f32.mxu0 %vm47_vm0, %v29206_v62 }
 0xb69   :  { %21531 = vmatmul.mubr.msk.f32.gmra.mrb[102].mxu0 %vm47_vm0, %v29210_v55 }
 0xb6a   :  { %21535 = vmatprep.mubr.msk.f32.mxu0 %vm47_vm0, %v28819_v6  ;;  %v29278_v6 = vld [vmem:[#allocation2 + $0x207] sm:$0xff] }
 0xb6d   :  { %21536 = vmatmul.mubr.msk.f32.vlgmr.msra.gmra.mrb[72].mxu0 %vm47_vm0, %v28834_v24  ;;  %v29282_v24 = vld [vmem:[#allocation2 + $0x20f] sm:$0xff] }
 0xb6e   :  { %21584 = vmatpush3.msra.mxu0 %v29089_v40  ;;  %21538 = vmatprep.mubr.msk.f32.mxu0 %vm47_vm0, %v28843_v4  ;;  %v18619_v40 = vld [vmem:[%s31481_s4 + $0x30] sm:$0xff] }
 0xb6f   :  { %21633 = vmatprep.subr.mxu0 %v18586_v39 }
 0xb71   :  { %21539 = vmatmul.mubr.msk.f32.gmra.mrb[74].mxu0 %vm47_vm0, %v28856_v47 }
 0xb72   :  { %21541 = vmatprep.mubr.msk.f32.mxu0 %vm47_vm0, %v28865_v61 }
 0xb75   :  { %21542 = vmatmul.mubr.msk.f32.gmra.mrb[76].mxu0 %vm47_vm0, %v28878_v2 }
 0xb76   :  { %21544 = vmatprep.mubr.msk.f32.mxu0 %vm47_vm0, %v28887_v34 }
 0xb79   :  { %21545 = vmatmul.mubr.msk.f32.gmra.mrb[78].mxu0 %vm47_vm0, %v28900_v45 }
 0xb7a   :  { %21547 = vmatprep.mubr.msk.f32.mxu0 %vm47_vm0, %v28909_v27 }
 0xb7d   :  { %21548 = vmatmul.mubr.msk.f32.gmra.mrb[80].mxu0 %vm47_vm0, %v28922_v52 }
 0xb7e   :  { %21550 = vmatprep.mubr.msk.f32.mxu0 %vm47_vm0, %v28931_v53 }
 0xb81   :  { %21551 = vmatmul.mubr.msk.f32.gmra.mrb[82].mxu0 %vm47_vm0, %v28944_v28 }
 0xb82   :  { %21553 = vmatprep.mubr.msk.f32.mxu0 %vm47_vm0, %v28953_v23 }
 0xb85   :  { %21554 = vmatmul.mubr.msk.f32.gmra.mrb[84].mxu0 %vm47_vm0, %v28966_v15 }
 0xb86   :  { %21556 = vmatprep.mubr.msk.f32.mxu0 %vm47_vm0, %v28975_v43 }
 0xb89   :  { %21557 = vmatmul.mubr.msk.f32.gmra.mrb[86].mxu0 %vm47_vm0, %v28988_v63 }
 0xb8a   :  { %21559 = vmatprep.mubr.msk.f32.mxu0 %vm47_vm0, %v28997_v9 }
 0xb8d   :  { %21560 = vmatmul.mubr.msk.f32.gmra.mrb[88].mxu0 %vm47_vm0, %v29010_v58 }
 0xb8e   :  { %21562 = vmatprep.mubr.msk.f32.mxu0 %vm47_vm0, %v29019_v32 }
 0xb91   :  { %21563 = vmatmul.mubr.msk.f32.gmra.mrb[90].mxu0 %vm47_vm0, %v29028_v49 }
 0xb92   :  { %21565 = vmatprep.mubr.msk.f32.mxu0 %vm47_vm0, %v29037_v38 }
 0xb95   :  { %21566 = vmatmul.mubr.msk.f32.gmra.mrb[92].mxu0 %vm47_vm0, %v29045_v22 }
 0xb96   :  { %21568 = vmatprep.mubr.msk.f32.mxu0 %vm47_vm0, %v29053_v1 }
 0xb99   :  { %21569 = vmatmul.mubr.msk.f32.gmra.mrb[94].mxu0 %vm47_vm0, %v29057_v12 }
 0xb9a   :  { %21571 = vmatprep.mubr.msk.f32.mxu0 %vm47_vm0, %v29061_v8 }
 0xb9d   :  { %21572 = vmatmul.mubr.msk.f32.gmra.mrb[96].mxu0 %vm47_vm0, %v29065_v51 }
 0xb9e   :  { %21574 = vmatprep.mubr.msk.f32.mxu0 %vm47_vm0, %v29069_v46 }
 0xba1   :  { %21575 = vmatmul.mubr.msk.f32.gmra.mrb[98].mxu0 %vm47_vm0, %v29073_v20 }
 0xba2   :  { %21577 = vmatprep.mubr.msk.f32.mxu0 %vm47_vm0, %v29077_v48 }
 0xba5   :  { %21578 = vmatmul.mubr.msk.f32.gmra.mrb[100].mxu0 %vm47_vm0, %v29081_v36 }
 0xba6   :  { %21580 = vmatprep.mubr.msk.f32.mxu0 %vm47_vm0, %v29278_v6 }
 0xba9   :  { %21581 = vmatmul.mubr.msk.f32.gmra.mrb[102].mxu0 %vm47_vm0, %v29282_v24 }
 0xbaa   :  { %21585 = vmatprep.mubr.msk.f32.mxu0 %vm47_vm0, %v28549_v13  ;;  %v31974_v13 = vld [vmem:[#allocation29_spill] sm:$0xff] }
 0xbad   :  { %21586 = vmatmul.mubr.msk.f32.vlgmr.msra.gmra.mrb[72].mxu0 %vm47_vm0, %v28556_v33  ;;  %v31975_v33 = vld [vmem:[#allocation31_spill] sm:$0xff] }
 0xbae   :  { %21634 = vmatpush3.msra.mxu0 %v18586_v39  ;;  %21588 = vmatprep.mubr.msk.f32.mxu0 %vm47_vm0, %v28563_v11  ;;  %v29349_v11 = vld [vmem:[#allocation2 + $0x208] sm:$0xff]  ;;  %v31999_v39 = vld [vmem:[#allocation44_spill] sm:$0xff] }
 0xbaf   :  { %21683 = vmatprep.subr.mxu0 %v18619_v40 }
 0xbb1   :  { %21589 = vmatmul.mubr.msk.f32.gmra.mrb[74].mxu0 %vm47_vm0, %v28576_v21  ;;  %v29353_v21 = vld [vmem:[#allocation2 + $0x210] sm:$0xff] }
 0xbb2   :  { %21591 = vmatprep.mubr.msk.f32.mxu0 %vm47_vm0, %v28583_v56  ;;  %v31976_v56 = vld [vmem:[#allocation33_spill] sm:$0xff] }
 0xbb5   :  { %21592 = vmatmul.mubr.msk.f32.gmra.mrb[76].mxu0 %vm47_vm0, %v28594_v16  ;;  %v18652_v16 = vld [vmem:[%s31481_s4 + $0x38] sm:$0xff] }
 0xbb6   :  { %21594 = vmatprep.mubr.msk.f32.mxu0 %vm47_vm0, %v28600_v29  ;;  %v31977_v29 = vld [vmem:[#allocation8_spill] sm:$0xff] }
 0xbb9   :  { %21595 = vmatmul.mubr.msk.f32.gmra.mrb[78].mxu0 %vm47_vm0, %v28610_v5  ;;  %v31978_v5 = vld [vmem:[#allocation9_spill] sm:$0xff] }
 0xbba   :  { %21597 = vmatprep.mubr.msk.f32.mxu0 %vm47_vm0, %v28616_v54  ;;  %v31979_v54 = vld [vmem:[#allocation10_spill] sm:$0xff] }
 0xbbd   :  { %21598 = vmatmul.mubr.msk.f32.gmra.mrb[80].mxu0 %vm47_vm0, %v28626_v18  ;;  %v31980_v18 = vld [vmem:[#allocation11_spill] sm:$0xff] }
 0xbbe   :  { %21600 = vmatprep.mubr.msk.f32.mxu0 %vm47_vm0, %v28632_v30  ;;  %v31981_v30 = vld [vmem:[#allocation34_spill] sm:$0xff] }
 0xbc1   :  { %21601 = vmatmul.mubr.msk.f32.gmra.mrb[82].mxu0 %vm47_vm0, %v28642_v19  ;;  %v31982_v19 = vld [vmem:[#allocation35_spill] sm:$0xff] }
 0xbc2   :  { %21603 = vmatprep.mubr.msk.f32.mxu0 %vm47_vm0, %v28648_v25  ;;  %v31983_v25 = vld [vmem:[#allocation36_spill] sm:$0xff] }
 0xbc5   :  { %21604 = vmatmul.mubr.msk.f32.gmra.mrb[84].mxu0 %vm47_vm0, %v28654_v50  ;;  %v31984_v50 = vld [vmem:[#allocation37_spill] sm:$0xff] }
 0xbc6   :  { %21606 = vmatprep.mubr.msk.f32.mxu0 %vm47_vm0, %v28658_v14  ;;  %v31985_v14 = vld [vmem:[#allocation38_spill] sm:$0xff] }
 0xbc9   :  { %21607 = vmatmul.mubr.msk.f32.gmra.mrb[86].mxu0 %vm47_vm0, %v28662_v3  ;;  %v31986_v3 = vld [vmem:[#allocation41_spill] sm:$0xff] }
 0xbca   :  { %21609 = vmatprep.mubr.msk.f32.mxu0 %vm47_vm0, %v28666_v59  ;;  %v31987_v59 = vld [vmem:[#allocation42_spill] sm:$0xff] }
 0xbcd   :  { %21610 = vmatmul.mubr.msk.f32.gmra.mrb[88].mxu0 %vm47_vm0, %v28670_v26  ;;  %v31988_v26 = vld [vmem:[#allocation12_spill] sm:$0xff] }
 0xbce   :  { %21612 = vmatprep.mubr.msk.f32.mxu0 %vm47_vm0, %v28674_v17  ;;  %v31989_v17 = vld [vmem:[#allocation13_spill] sm:$0xff] }
 0xbd1   :  { %21613 = vmatmul.mubr.msk.f32.gmra.mrb[90].mxu0 %vm47_vm0, %v28683_v41  ;;  %v31990_v41 = vld [vmem:[#allocation14_spill] sm:$0xff] }
 0xbd2   :  { %21615 = vmatprep.mubr.msk.f32.mxu0 %vm47_vm0, %v28687_v10  ;;  %v31991_v10 = vld [vmem:[#allocation15_spill] sm:$0xff] }
 0xbd5   :  { %21616 = vmatmul.mubr.msk.f32.gmra.mrb[92].mxu0 %vm47_vm0, %v28699_v35  ;;  %v31992_v35 = vld [vmem:[#allocation16_spill] sm:$0xff] }
 0xbd6   :  { %21618 = vmatprep.mubr.msk.f32.mxu0 %vm47_vm0, %v28708_v60  ;;  %v31993_v60 = vld [vmem:[#allocation22_spill] sm:$0xff] }
 0xbd9   :  { %21619 = vmatmul.mubr.msk.f32.gmra.mrb[94].mxu0 %vm47_vm0, %v28718_v7  ;;  %v31994_v7 = vld [vmem:[#allocation23_spill] sm:$0xff] }
 0xbda   :  { %21621 = vmatprep.mubr.msk.f32.mxu0 %vm47_vm0, %v28724_v37  ;;  %v31995_v37 = vld [vmem:[#allocation25_spill] sm:$0xff] }
 0xbdd   :  { %21622 = vmatmul.mubr.msk.f32.gmra.mrb[96].mxu0 %vm47_vm0, %v28745_v31  ;;  %v31996_v31 = vld [vmem:[#allocation39_spill] sm:$0xff] }
 0xbde   :  { %21624 = vmatprep.mubr.msk.f32.mxu0 %vm47_vm0, %v28754_v57  ;;  %v31997_v57 = vld [vmem:[#allocation43_spill] sm:$0xff] }
 0xbe1   :  { %21625 = vmatmul.mubr.msk.f32.gmra.mrb[98].mxu0 %vm47_vm0, %v28767_v42  ;;  %v31998_v42 = vld [vmem:[#allocation40_spill] sm:$0xff] }
 0xbe2   :  { %21627 = vmatprep.mubr.msk.f32.mxu0 %vm47_vm0, %v31974_v13  ;;  %v32001_v13 = vld [vmem:[#allocation46_spill] sm:$0xff] }
 0xbe5   :  { %21628 = vmatmul.mubr.msk.f32.gmra.mrb[100].mxu0 %vm47_vm0, %v31975_v33  ;;  %v29420_v33 = vld [vmem:[#allocation2 + $0x209] sm:$0xff] }
 0xbe6   :  { %21630 = vmatprep.mubr.msk.f32.mxu0 %vm47_vm0, %v29349_v11 }
 0xbe9   :  { %21631 = vmatmul.mubr.msk.f32.gmra.mrb[102].mxu0 %vm47_vm0, %v29353_v21 }
 0xbea   :  { %21635 = vmatprep.mubr.msk.f32.mxu0 %vm47_vm0, %v31976_v56  ;;  %v29424_v56 = vld [vmem:[#allocation2 + $0x211] sm:$0xff] }
 0xbed   :  { %21636 = vmatmul.mubr.msk.f32.vlgmr.msra.gmra.mrb[72].mxu0 %vm47_vm0, %v31977_v29  ;;  %v18685_v29 = vld [vmem:[%s31481_s4 + $0x40] sm:$0xff] }
 0xbee   :  { %21684 = vmatpush3.msra.mxu0 %v18619_v40  ;;  %21638 = vmatprep.mubr.msk.f32.mxu0 %vm47_vm0, %v31978_v5  ;;  %v32000_v40 = vld [vmem:[#allocation45_spill] sm:$0xff] }
 0xbef   :  { %21733 = vmatprep.subr.mxu0 %v18652_v16 }
 0xbf1   :  { %21639 = vmatmul.mubr.msk.f32.gmra.mrb[74].mxu0 %vm47_vm0, %v31979_v54 }
 0xbf2   :  { %21641 = vmatprep.mubr.msk.f32.mxu0 %vm47_vm0, %v31980_v18 }
 0xbf5   :  { %21642 = vmatmul.mubr.msk.f32.gmra.mrb[76].mxu0 %vm47_vm0, %v31981_v30 }
 0xbf6   :  { %21644 = vmatprep.mubr.msk.f32.mxu0 %vm47_vm0, %v31982_v19 }
 0xbf9   :  { %21645 = vmatmul.mubr.msk.f32.gmra.mrb[78].mxu0 %vm47_vm0, %v31983_v25 }
 0xbfa   :  { %21647 = vmatprep.mubr.msk.f32.mxu0 %vm47_vm0, %v31984_v50 }
 0xbfd   :  { %21648 = vmatmul.mubr.msk.f32.gmra.mrb[80].mxu0 %vm47_vm0, %v31985_v14 }
 0xbfe   :  { %21650 = vmatprep.mubr.msk.f32.mxu0 %vm47_vm0, %v31986_v3 }
 0xc01   :  { %21651 = vmatmul.mubr.msk.f32.gmra.mrb[82].mxu0 %vm47_vm0, %v31987_v59 }
 0xc02   :  { %21653 = vmatprep.mubr.msk.f32.mxu0 %vm47_vm0, %v31988_v26 }
 0xc05   :  { %21654 = vmatmul.mubr.msk.f32.gmra.mrb[84].mxu0 %vm47_vm0, %v31989_v17 }
 0xc06   :  { %21656 = vmatprep.mubr.msk.f32.mxu0 %vm47_vm0, %v31990_v41 }
 0xc09   :  { %21657 = vmatmul.mubr.msk.f32.gmra.mrb[86].mxu0 %vm47_vm0, %v31991_v10 }
 0xc0a   :  { %21659 = vmatprep.mubr.msk.f32.mxu0 %vm47_vm0, %v31992_v35 }
 0xc0d   :  { %21660 = vmatmul.mubr.msk.f32.gmra.mrb[88].mxu0 %vm47_vm0, %v31993_v60 }
 0xc0e   :  { %21662 = vmatprep.mubr.msk.f32.mxu0 %vm47_vm0, %v31994_v7 }
 0xc11   :  { %21663 = vmatmul.mubr.msk.f32.gmra.mrb[90].mxu0 %vm47_vm0, %v31995_v37 }
 0xc12   :  { %21665 = vmatprep.mubr.msk.f32.mxu0 %vm47_vm0, %v31996_v31 }
 0xc15   :  { %21666 = vmatmul.mubr.msk.f32.gmra.mrb[92].mxu0 %vm47_vm0, %v31997_v57 }
 0xc16   :  { %21668 = vmatprep.mubr.msk.f32.mxu0 %vm47_vm0, %v31998_v42 }
 0xc19   :  { %21669 = vmatmul.mubr.msk.f32.gmra.mrb[94].mxu0 %vm47_vm0, %v31999_v39 }
 0xc1a   :  { %21671 = vmatprep.mubr.msk.f32.mxu0 %vm47_vm0, %v32000_v40 }
 0xc1d   :  { %21672 = vmatmul.mubr.msk.f32.gmra.mrb[96].mxu0 %vm47_vm0, %v29194_v44 }
 0xc1e   :  { %21674 = vmatprep.mubr.msk.f32.mxu0 %vm47_vm0, %v32001_v13 }
 0xc21   :  { %21675 = vmatmul.mubr.msk.f32.gmra.mrb[98].mxu0 %vm47_vm0, %v29202_v0 }
 0xc22   :  { %21677 = vmatprep.mubr.msk.f32.mxu0 %vm47_vm0, %v29206_v62 }
 0xc25   :  { %21678 = vmatmul.mubr.msk.f32.gmra.mrb[100].mxu0 %vm47_vm0, %v29210_v55 }
 0xc26   :  { %21680 = vmatprep.mubr.msk.f32.mxu0 %vm47_vm0, %v29420_v33 }
 0xc29   :  { %21681 = vmatmul.mubr.msk.f32.gmra.mrb[102].mxu0 %vm47_vm0, %v29424_v56 }
 0xc2a   :  { %21685 = vmatprep.mubr.msk.f32.mxu0 %vm47_vm0, %v28843_v4  ;;  %v11996_v4 = vld [vmem:[#allocation2 + $0x227] sm:$0xff] }
 0xc2d   :  { %21686 = vmatmul.mubr.msk.f32.vlgmr.msra.gmra.mrb[72].mxu0 %vm47_vm0, %v28856_v47  ;;  %v11997_v47 = vld [vmem:[#allocation2 + $0x22f] sm:$0xff] }
 0xc2e   :  { %21734 = vmatpush3.msra.mxu0 %v18652_v16  ;;  %21688 = vmatprep.mubr.msk.f32.mxu0 %vm47_vm0, %v28865_v61  ;;  %v12352_v61 = vld [vmem:[#allocation2 + $0x48] sm:$0xff] }
 0xc2f   :  { %21783 = vmatprep.subr.mxu0 %v18685_v29  ;;  %v12382_v16 = vld [vmem:[#allocation2 + $0x228] sm:$0xff] }
 0xc31   :  { %21689 = vmatmul.mubr.msk.f32.gmra.mrb[74].mxu0 %vm47_vm0, %v28878_v2  ;;  %v12353_v2 = vld [vmem:[#allocation2 + $0x50] sm:$0xff] }
 0xc32   :  { %21691 = vmatprep.mubr.msk.f32.mxu0 %vm47_vm0, %v28887_v34  ;;  %v12354_v34 = vld [vmem:[#allocation2 + $0x68] sm:$0xff] }
 0xc35   :  { %21692 = vmatmul.mubr.msk.f32.gmra.mrb[76].mxu0 %vm47_vm0, %v28900_v45  ;;  %v12355_v45 = vld [vmem:[#allocation2 + $0x70] sm:$0xff] }
 0xc36   :  { %21694 = vmatprep.mubr.msk.f32.mxu0 %vm47_vm0, %v28909_v27  ;;  %v12356_v27 = vld [vmem:[#allocation2 + $0x88] sm:$0xff] }
 0xc39   :  { %21695 = vmatmul.mubr.msk.f32.gmra.mrb[78].mxu0 %vm47_vm0, %v28922_v52  ;;  %v12357_v52 = vld [vmem:[#allocation2 + $0x90] sm:$0xff] }
 0xc3a   :  { %21697 = vmatprep.mubr.msk.f32.mxu0 %vm47_vm0, %v28931_v53  ;;  %v12358_v53 = vld [vmem:[#allocation2 + $0xa8] sm:$0xff] }
 0xc3d   :  { %21698 = vmatmul.mubr.msk.f32.gmra.mrb[80].mxu0 %vm47_vm0, %v28944_v28  ;;  %v12359_v28 = vld [vmem:[#allocation2 + $0xb0] sm:$0xff] }
 0xc3e   :  { %21700 = vmatprep.mubr.msk.f32.mxu0 %vm47_vm0, %v28953_v23  ;;  %v12360_v23 = vld [vmem:[#allocation2 + $0xc8] sm:$0xff] }
 0xc41   :  { %21701 = vmatmul.mubr.msk.f32.gmra.mrb[82].mxu0 %vm47_vm0, %v28966_v15  ;;  %v12361_v15 = vld [vmem:[#allocation2 + $0xd0] sm:$0xff] }
 0xc42   :  { %21703 = vmatprep.mubr.msk.f32.mxu0 %vm47_vm0, %v28975_v43  ;;  %v12362_v43 = vld [vmem:[#allocation2 + $0xe8] sm:$0xff] }
 0xc45   :  { %21704 = vmatmul.mubr.msk.f32.gmra.mrb[84].mxu0 %vm47_vm0, %v28988_v63  ;;  %v12363_v63 = vld [vmem:[#allocation2 + $0xf0] sm:$0xff] }
 0xc46   :  { %21706 = vmatprep.mubr.msk.f32.mxu0 %vm47_vm0, %v28997_v9  ;;  %v12364_v9 = vld [vmem:[#allocation2 + $0x108] sm:$0xff] }
 0xc49   :  { %21707 = vmatmul.mubr.msk.f32.gmra.mrb[86].mxu0 %vm47_vm0, %v29010_v58  ;;  %v12365_v58 = vld [vmem:[#allocation2 + $0x110] sm:$0xff] }
 0xc4a   :  { %21709 = vmatprep.mubr.msk.f32.mxu0 %vm47_vm0, %v29019_v32  ;;  %v12366_v32 = vld [vmem:[#allocation2 + $0x128] sm:$0xff] }
 0xc4d   :  { %21710 = vmatmul.mubr.msk.f32.gmra.mrb[88].mxu0 %vm47_vm0, %v29028_v49  ;;  %v12367_v49 = vld [vmem:[#allocation2 + $0x130] sm:$0xff] }
 0xc4e   :  { %21712 = vmatprep.mubr.msk.f32.mxu0 %vm47_vm0, %v29037_v38  ;;  %v12368_v38 = vld [vmem:[#allocation2 + $0x148] sm:$0xff] }
 0xc51   :  { %21713 = vmatmul.mubr.msk.f32.gmra.mrb[90].mxu0 %vm47_vm0, %v29045_v22  ;;  %v12369_v22 = vld [vmem:[#allocation2 + $0x150] sm:$0xff] }
 0xc52   :  { %21715 = vmatprep.mubr.msk.f32.mxu0 %vm47_vm0, %v29053_v1  ;;  %v12370_v1 = vld [vmem:[#allocation2 + $0x168] sm:$0xff] }
 0xc55   :  { %21716 = vmatmul.mubr.msk.f32.gmra.mrb[92].mxu0 %vm47_vm0, %v29057_v12  ;;  %v12371_v12 = vld [vmem:[#allocation2 + $0x170] sm:$0xff] }
 0xc56   :  { %21718 = vmatprep.mubr.msk.f32.mxu0 %vm47_vm0, %v29061_v8  ;;  %v12372_v8 = vld [vmem:[#allocation2 + $0x188] sm:$0xff] }
 0xc59   :  { %21719 = vmatmul.mubr.msk.f32.gmra.mrb[94].mxu0 %vm47_vm0, %v29065_v51  ;;  %v12373_v51 = vld [vmem:[#allocation2 + $0x190] sm:$0xff] }
 0xc5a   :  { %21721 = vmatprep.mubr.msk.f32.mxu0 %vm47_vm0, %v29069_v46  ;;  %v12374_v46 = vld [vmem:[#allocation2 + $0x1a8] sm:$0xff] }
 0xc5d   :  { %21722 = vmatmul.mubr.msk.f32.gmra.mrb[96].mxu0 %vm47_vm0, %v29073_v20  ;;  %v12375_v20 = vld [vmem:[#allocation2 + $0x1b0] sm:$0xff] }
 0xc5e   :  { %21724 = vmatprep.mubr.msk.f32.mxu0 %vm47_vm0, %v29077_v48  ;;  %v12376_v48 = vld [vmem:[#allocation2 + $0x1c8] sm:$0xff] }
 0xc61   :  { %21725 = vmatmul.mubr.msk.f32.gmra.mrb[98].mxu0 %vm47_vm0, %v29081_v36  ;;  %v12377_v36 = vld [vmem:[#allocation2 + $0x1d0] sm:$0xff] }
 0xc62   :  { %21727 = vmatprep.mubr.msk.f32.mxu0 %vm47_vm0, %v29278_v6  ;;  %v12378_v6 = vld [vmem:[#allocation2 + $0x1e8] sm:$0xff] }
 0xc65   :  { %21728 = vmatmul.mubr.msk.f32.gmra.mrb[100].mxu0 %vm47_vm0, %v29282_v24  ;;  %v12379_v24 = vld [vmem:[#allocation2 + $0x1f0] sm:$0xff] }
 0xc66   :  { %21730 = vmatprep.mubr.msk.f32.mxu0 %vm47_vm0, %v11996_v4 }
 0xc69   :  { %21731 = vmatmul.mubr.msk.f32.gmra.mrb[102].mxu0 %vm47_vm0, %v11997_v47 }
 0xc6a   :  { %21735 = vmatprep.mubr.msk.f32.mxu0 %vm47_vm0, %v12352_v61 }
 0xc6d   :  { %21736 = vmatmul.mubr.msk.f32.vlgmr.msra.gmra.mrb[72].mxu0 %vm47_vm0, %v12353_v2 }
 0xc6e   :  { %21784 = vmatpush3.msra.mxu0 %v18685_v29  ;;  %21738 = vmatprep.mubr.msk.f32.mxu0 %vm47_vm0, %v12354_v34  ;;  %v12383_v29 = vld [vmem:[#allocation2 + $0x230] sm:$0xff] }
 0xc71   :  { %21739 = vmatmul.mubr.msk.f32.gmra.mrb[74].mxu0 %vm47_vm0, %v12355_v45 }
 0xc72   :  { %21741 = vmatprep.mubr.msk.f32.mxu0 %vm47_vm0, %v12356_v27 }
 0xc75   :  { %21742 = vmatmul.mubr.msk.f32.gmra.mrb[76].mxu0 %vm47_vm0, %v12357_v52 }
 0xc76   :  { %21744 = vmatprep.mubr.msk.f32.mxu0 %vm47_vm0, %v12358_v53 }
 0xc79   :  { %21745 = vmatmul.mubr.msk.f32.gmra.mrb[78].mxu0 %vm47_vm0, %v12359_v28 }
 0xc7a   :  { %21747 = vmatprep.mubr.msk.f32.mxu0 %vm47_vm0, %v12360_v23 }
 0xc7d   :  { %21748 = vmatmul.mubr.msk.f32.gmra.mrb[80].mxu0 %vm47_vm0, %v12361_v15 }
 0xc7e   :  { %21750 = vmatprep.mubr.msk.f32.mxu0 %vm47_vm0, %v12362_v43 }
 0xc81   :  { %21751 = vmatmul.mubr.msk.f32.gmra.mrb[82].mxu0 %vm47_vm0, %v12363_v63 }
 0xc82   :  { %21753 = vmatprep.mubr.msk.f32.mxu0 %vm47_vm0, %v12364_v9 }
 0xc85   :  { %21754 = vmatmul.mubr.msk.f32.gmra.mrb[84].mxu0 %vm47_vm0, %v12365_v58 }
 0xc86   :  { %21756 = vmatprep.mubr.msk.f32.mxu0 %vm47_vm0, %v12366_v32 }
 0xc89   :  { %21757 = vmatmul.mubr.msk.f32.gmra.mrb[86].mxu0 %vm47_vm0, %v12367_v49 }
 0xc8a   :  { %21759 = vmatprep.mubr.msk.f32.mxu0 %vm47_vm0, %v12368_v38 }
 0xc8d   :  { %21760 = vmatmul.mubr.msk.f32.gmra.mrb[88].mxu0 %vm47_vm0, %v12369_v22 }
 0xc8e   :  { %21762 = vmatprep.mubr.msk.f32.mxu0 %vm47_vm0, %v12370_v1 }
 0xc91   :  { %21763 = vmatmul.mubr.msk.f32.gmra.mrb[90].mxu0 %vm47_vm0, %v12371_v12 }
 0xc92   :  { %21765 = vmatprep.mubr.msk.f32.mxu0 %vm47_vm0, %v12372_v8 }
 0xc95   :  { %21766 = vmatmul.mubr.msk.f32.gmra.mrb[92].mxu0 %vm47_vm0, %v12373_v51 }
 0xc96   :  { %21768 = vmatprep.mubr.msk.f32.mxu0 %vm47_vm0, %v12374_v46 }
 0xc99   :  { %21769 = vmatmul.mubr.msk.f32.gmra.mrb[94].mxu0 %vm47_vm0, %v12375_v20 }
 0xc9a   :  { %21771 = vmatprep.mubr.msk.f32.mxu0 %vm47_vm0, %v12376_v48 }
 0xc9d   :  { %21772 = vmatmul.mubr.msk.f32.gmra.mrb[96].mxu0 %vm47_vm0, %v12377_v36 }
 0xc9e   :  { %21774 = vmatprep.mubr.msk.f32.mxu0 %vm47_vm0, %v12378_v6 }
 0xca1   :  { %21775 = vmatmul.mubr.msk.f32.gmra.mrb[98].mxu0 %vm47_vm0, %v12379_v24 }
 0xca2   :  { %21777 = vmatprep.mubr.msk.f32.mxu0 %vm47_vm0, %v29349_v11  ;;  %v12768_v11 = vld [vmem:[#allocation2 + $0x229] sm:$0xff] }
 0xca5   :  { %21778 = vmatmul.mubr.msk.f32.gmra.mrb[100].mxu0 %vm47_vm0, %v29353_v21 }
 0xca6   :  { %21780 = vmatprep.mubr.msk.f32.mxu0 %vm47_vm0, %v12382_v16 }
 0xca9   :  { %21781 = vmatmul.mubr.msk.f32.gmra.mrb[102].mxu0 %vm47_vm0, %v12383_v29 }
 0xcaa   :  { %21785 = vmatprep.mubr.msk.f32.mxu0 %vm47_vm0, %v31978_v5 }
 0xcad   :  { %21786 = vmatmul.mubr.msk.f32.vlgmr.msra.gmra.mrb[72].mxu0 %vm47_vm0, %v31979_v54 }
 0xcae   :  { %21788 = vmatprep.mubr.msk.f32.mxu0 %vm47_vm0, %v31980_v18 }
 0xcb1   :  { %21789 = vmatmul.mubr.msk.f32.gmra.mrb[74].mxu0 %vm47_vm0, %v31981_v30 }
 0xcb2   :  { %21791 = vmatprep.mubr.msk.f32.mxu0 %vm47_vm0, %v31982_v19 }
 0xcb5   :  { %21792 = vmatmul.mubr.msk.f32.gmra.mrb[76].mxu0 %vm47_vm0, %v31983_v25 }
 0xcb6   :  { %21794 = vmatprep.mubr.msk.f32.mxu0 %vm47_vm0, %v31984_v50 }
 0xcb9   :  { %21795 = vmatmul.mubr.msk.f32.gmra.mrb[78].mxu0 %vm47_vm0, %v31985_v14 }
 0xcba   :  { %21797 = vmatprep.mubr.msk.f32.mxu0 %vm47_vm0, %v31986_v3 }
 0xcbd   :  { %21798 = vmatmul.mubr.msk.f32.gmra.mrb[80].mxu0 %vm47_vm0, %v31987_v59 }
 0xcbe   :  { %21800 = vmatprep.mubr.msk.f32.mxu0 %vm47_vm0, %v31988_v26 }
 0xcc1   :  { %21801 = vmatmul.mubr.msk.f32.gmra.mrb[82].mxu0 %vm47_vm0, %v31989_v17 }
 0xcc2   :  { %21803 = vmatprep.mubr.msk.f32.mxu0 %vm47_vm0, %v31990_v41 }
 0xcc5   :  { %21804 = vmatmul.mubr.msk.f32.gmra.mrb[84].mxu0 %vm47_vm0, %v31991_v10 }
 0xcc6   :  { %21806 = vmatprep.mubr.msk.f32.mxu0 %vm47_vm0, %v31992_v35 }
 0xcc9   :  { %21807 = vmatmul.mubr.msk.f32.gmra.mrb[86].mxu0 %vm47_vm0, %v31993_v60 }
 0xcca   :  { %21809 = vmatprep.mubr.msk.f32.mxu0 %vm47_vm0, %v31994_v7 }
 0xccd   :  { %21810 = vmatmul.mubr.msk.f32.gmra.mrb[88].mxu0 %vm47_vm0, %v31995_v37 }
 0xcce   :  { %21812 = vmatprep.mubr.msk.f32.mxu0 %vm47_vm0, %v31996_v31 }
 0xcd1   :  { %21813 = vmatmul.mubr.msk.f32.gmra.mrb[90].mxu0 %vm47_vm0, %v31997_v57 }
 0xcd2   :  { %21815 = vmatprep.mubr.msk.f32.mxu0 %vm47_vm0, %v31998_v42 }
 0xcd5   :  { %21816 = vmatmul.mubr.msk.f32.gmra.mrb[92].mxu0 %vm47_vm0, %v31999_v39 }
 0xcd6   :  { %21818 = vmatprep.mubr.msk.f32.mxu0 %vm47_vm0, %v32000_v40 }
 0xcd9   :  { %21819 = vmatmul.mubr.msk.f32.gmra.mrb[94].mxu0 %vm47_vm0, %v29194_v44  ;;  %v12769_v44 = vld [vmem:[#allocation2 + $0x231] sm:$0xff] }
 0xcda   :  { %21821 = vmatprep.mubr.msk.f32.mxu0 %vm47_vm0, %v32001_v13 }
 0xcdd   :  { %21822 = vmatmul.mubr.msk.f32.gmra.mrb[96].mxu0 %vm47_vm0, %v29202_v0  ;;  %v29592_v0 = vld [vmem:[%s31486_s6 + $0x1] ss:$0 sm:$0xff] }
 0xcde   :  { %21824 = vmatprep.mubr.msk.f32.mxu0 %vm47_vm0, %v29206_v62 }
 0xce1   :  { %21825 = vmatmul.mubr.msk.f32.gmra.mrb[98].mxu0 %vm47_vm0, %v29210_v55  ;;  %v29597_v55 = vld [vmem:[%s31485_s5] ss:$0 sm:$0xff] }
 0xce2   :  { %21827 = vmatprep.mubr.msk.f32.mxu0 %vm47_vm0, %v29420_v33 }
 0xce5   :  { %21828 = vmatmul.mubr.msk.f32.gmra.mrb[100].mxu0 %vm47_vm0, %v29424_v56 }
 0xce6   :  { %21830 = vmatprep.mubr.msk.f32.mxu0 %vm47_vm0, %v12768_v11 }
 0xce9   :  { %21831 = vmatmul.mubr.msk.f32.gmra.mrb[102].mxu0 %vm47_vm0, %v12769_v44 }
 0xd80   :  { %v21787_v62 = vpop.f32.mrb[72].mxu0 }
 0xd81   :  { %v13125_v21 = vadd.f32 %v29597_v55, %v21787_v62  ;;  %v12933_v5 = vpop.f32.mrb[73].mxu0 }
 0xd82   :  { %v13124_v54 = vadd.f32 %v29597_v55, %v12933_v5 }
 0xd83   :  { %v29602_v18 = vadd.f32 %v29592_v0, %v13125_v21 }
 0xd84   :  { %v29605_v30 = vadd.f32 %v29592_v0, %v13124_v54  ;;  %v21790_v19 = vpop.f32.mrb[74].mxu0 }
 0xd85   :  { %v13127_v25 = vadd.f32 %v29597_v55, %v21790_v19  ;;  %v12943_v50 = vpop.f32.mrb[75].mxu0  ;;  %v13195_v14 = vsel %vm90_vm4, %v29602_v18, 0.0 }
 0xd86   :  { %v13194_v3 = vsel %vm90_vm4, %v29605_v30, 0.0  ;;  %v13126_v59 = vadd.f32 %v29597_v55, %v12943_v50 }
 0xd87   :  { %v29614_v26 = vadd.f32 %v29592_v0, %v13127_v25  ;;  %v13196_v10 = vadd.f32 %v13195_v14, %v13194_v3 }
 0xd88   :  { %v29617_v17 = vadd.f32 %v29592_v0, %v13126_v59  ;;  %v21793_v41 = vpop.f32.mrb[76].mxu0 }
 0xd89   :  { %v13129_v35 = vadd.f32 %v29597_v55, %v21793_v41  ;;  %v12953_v60 = vpop.f32.mrb[77].mxu0  ;;  %v13199_v57 = vsel %vm90_vm4, %v29614_v26, 0.0 }
 0xd8a   :  { %v13197_v7 = vsel %vm90_vm4, %v29617_v17, 0.0  ;;  %v13128_v37 = vadd.f32 %v29597_v55, %v12953_v60 }
 0xd8b   :  { %v13198_v31 = vadd.f32 %v13197_v7, %v13196_v10  ;;  %v29626_v42 = vadd.f32 %v29592_v0, %v13129_v35 }
 0xd8c   :  { %v29629_v39 = vadd.f32 %v29592_v0, %v13128_v37  ;;  %v21796_v40 = vpop.f32.mrb[78].mxu0 }
 0xd8d   :  { %v13200_v13 = vadd.f32 %v13199_v57, %v13198_v31  ;;  %v13131_v33 = vadd.f32 %v29597_v55, %v21796_v40  ;;  %v12963_v56 = vpop.f32.mrb[79].mxu0  ;;  %v13203_v2 = vsel %vm90_vm4, %v29626_v42, 0.0 }
 0xd8e   :  { %v13201_v4 = vsel %vm90_vm4, %v29629_v39, 0.0  ;;  %v13130_v47 = vadd.f32 %v29597_v55, %v12963_v56 }
 0xd8f   :  { %v13202_v61 = vadd.f32 %v13201_v4, %v13200_v13  ;;  %v29638_v34 = vadd.f32 %v29592_v0, %v13131_v33 }
 0xd90   :  { %v29641_v45 = vadd.f32 %v29592_v0, %v13130_v47  ;;  %v21799_v27 = vpop.f32.mrb[80].mxu0 }
 0xd91   :  { %v13204_v52 = vadd.f32 %v13203_v2, %v13202_v61  ;;  %v13133_v53 = vadd.f32 %v29597_v55, %v21799_v27  ;;  %v12973_v28 = vpop.f32.mrb[81].mxu0  ;;  %v13207_v63 = vsel %vm90_vm4, %v29638_v34, 0.0 }
 0xd92   :  { %v13205_v23 = vsel %vm90_vm4, %v29641_v45, 0.0  ;;  %v13132_v15 = vadd.f32 %v29597_v55, %v12973_v28 }
 0xd93   :  { %v13206_v43 = vadd.f32 %v13205_v23, %v13204_v52  ;;  %v29650_v9 = vadd.f32 %v29592_v0, %v13133_v53 }
 0xd94   :  { %v29653_v58 = vadd.f32 %v29592_v0, %v13132_v15  ;;  %v21802_v32 = vpop.f32.mrb[82].mxu0 }
 0xd95   :  { %v13208_v49 = vadd.f32 %v13207_v63, %v13206_v43  ;;  %v13135_v38 = vadd.f32 %v29597_v55, %v21802_v32  ;;  %v12983_v22 = vpop.f32.mrb[83].mxu0  ;;  %v13211_v51 = vsel %vm90_vm4, %v29650_v9, 0.0 }
 0xd96   :  { %v13209_v1 = vsel %vm90_vm4, %v29653_v58, 0.0  ;;  %v13134_v12 = vadd.f32 %v29597_v55, %v12983_v22 }
 0xd97   :  { %v13210_v8 = vadd.f32 %v13209_v1, %v13208_v49  ;;  %v29662_v46 = vadd.f32 %v29592_v0, %v13135_v38 }
 0xd98   :  { %v29665_v20 = vadd.f32 %v29592_v0, %v13134_v12  ;;  %v21805_v48 = vpop.f32.mrb[84].mxu0 }
 0xd99   :  { %v13212_v36 = vadd.f32 %v13211_v51, %v13210_v8  ;;  %v13137_v6 = vadd.f32 %v29597_v55, %v21805_v48  ;;  %v12993_v24 = vpop.f32.mrb[85].mxu0  ;;  %v13215_v44 = vsel %vm90_vm4, %v29662_v46, 0.0 }
 0xd9a   :  { %v13213_v16 = vsel %vm90_vm4, %v29665_v20, 0.0  ;;  %v13136_v29 = vadd.f32 %v29597_v55, %v12993_v24 }
 0xd9b   :  { %v13214_v11 = vadd.f32 %v13213_v16, %v13212_v36  ;;  %v29674_v62 = vadd.f32 %v29592_v0, %v13137_v6 }
 0xd9c   :  { %v29677_v21 = vadd.f32 %v29592_v0, %v13136_v29  ;;  %v21808_v5 = vpop.f32.mrb[86].mxu0 }
 0xd9d   :  { %v13216_v54 = vadd.f32 %v13215_v44, %v13214_v11  ;;  %v13139_v19 = vadd.f32 %v29597_v55, %v21808_v5  ;;  %v13003_v25 = vpop.f32.mrb[87].mxu0  ;;  %v13219_v59 = vsel %vm90_vm4, %v29674_v62, 0.0 }
 0xd9e   :  { %v13217_v50 = vsel %vm90_vm4, %v29677_v21, 0.0  ;;  %v13138_v14 = vadd.f32 %v29597_v55, %v13003_v25 }
 0xd9f   :  { %v13218_v3 = vadd.f32 %v13217_v50, %v13216_v54  ;;  %v29686_v41 = vadd.f32 %v29592_v0, %v13139_v19 }
 0xda0   :  { %v29689_v10 = vadd.f32 %v29592_v0, %v13138_v14  ;;  %v21811_v35 = vpop.f32.mrb[88].mxu0 }
 0xda1   :  { %v13220_v60 = vadd.f32 %v13219_v59, %v13218_v3  ;;  %v13141_v7 = vadd.f32 %v29597_v55, %v21811_v35  ;;  %v13013_v37 = vpop.f32.mrb[89].mxu0  ;;  %v13223_v13 = vsel %vm90_vm4, %v29686_v41, 0.0 }
 0xda2   :  { %v13221_v31 = vsel %vm90_vm4, %v29689_v10, 0.0  ;;  %v13140_v57 = vadd.f32 %v29597_v55, %v13013_v37 }
 0xda3   :  { %v13222_v40 = vadd.f32 %v13221_v31, %v13220_v60  ;;  %v29698_v33 = vadd.f32 %v29592_v0, %v13141_v7 }
 0xda4   :  { %v29701_v56 = vadd.f32 %v29592_v0, %v13140_v57  ;;  %v21814_v4 = vpop.f32.mrb[90].mxu0 }
 0xda5   :  { %v13224_v47 = vadd.f32 %v13223_v13, %v13222_v40  ;;  %v13143_v61 = vadd.f32 %v29597_v55, %v21814_v4  ;;  %v13023_v2 = vpop.f32.mrb[91].mxu0  ;;  %v13227_v28 = vsel %vm90_vm4, %v29698_v33, 0.0 }
 0xda6   :  { %v13225_v27 = vsel %vm90_vm4, %v29701_v56, 0.0  ;;  %v13142_v52 = vadd.f32 %v29597_v55, %v13023_v2 }
 0xda7   :  { %v13226_v53 = vadd.f32 %v13225_v27, %v13224_v47  ;;  %v29710_v23 = vadd.f32 %v29592_v0, %v13143_v61 }
 0xda8   :  { %v29713_v15 = vadd.f32 %v29592_v0, %v13142_v52  ;;  %v21817_v43 = vpop.f32.mrb[92].mxu0 }
 0xda9   :  { %v13228_v63 = vadd.f32 %v13227_v28, %v13226_v53  ;;  %v13145_v32 = vadd.f32 %v29597_v55, %v21817_v43  ;;  %v13033_v49 = vpop.f32.mrb[93].mxu0  ;;  %v13231_v12 = vsel %vm90_vm4, %v29710_v23, 0.0 }
 0xdaa   :  { %v13229_v38 = vsel %vm90_vm4, %v29713_v15, 0.0  ;;  %v13144_v22 = vadd.f32 %v29597_v55, %v13033_v49 }
 0xdab   :  { %v13230_v1 = vadd.f32 %v13229_v38, %v13228_v63  ;;  %v29722_v8 = vadd.f32 %v29592_v0, %v13145_v32 }
 0xdac   :  { %v29725_v51 = vadd.f32 %v29592_v0, %v13144_v22  ;;  %v21820_v48 = vpop.f32.mrb[94].mxu0 }
 0xdad   :  { %v13232_v36 = vadd.f32 %v13231_v12, %v13230_v1  ;;  %v13147_v6 = vadd.f32 %v29597_v55, %v21820_v48  ;;  %v13043_v24 = vpop.f32.mrb[95].mxu0  ;;  %v13235_v44 = vsel %vm90_vm4, %v29722_v8, 0.0 }
 0xdae   :  { %v13233_v16 = vsel %vm90_vm4, %v29725_v51, 0.0  ;;  %v13146_v29 = vadd.f32 %v29597_v55, %v13043_v24 }
 0xdaf   :  { %v13234_v11 = vadd.f32 %v13233_v16, %v13232_v36  ;;  %v29734_v5 = vadd.f32 %v29592_v0, %v13147_v6 }
 0xdb0   :  { %v29737_v54 = vadd.f32 %v29592_v0, %v13146_v29  ;;  %v21823_v19 = vpop.f32.mrb[96].mxu0 }
 0xdb1   :  { %v13236_v25 = vadd.f32 %v13235_v44, %v13234_v11  ;;  %v13149_v50 = vadd.f32 %v29597_v55, %v21823_v19  ;;  %v13053_v14 = vpop.f32.mrb[97].mxu0  ;;  %v13239_v60 = vsel %vm90_vm4, %v29734_v5, 0.0 }
 0xdb2   :  { %v13237_v3 = vsel %vm90_vm4, %v29737_v54, 0.0  ;;  %v13148_v59 = vadd.f32 %v29597_v55, %v13053_v14 }
 0xdb3   :  { %v13238_v35 = vadd.f32 %v13237_v3, %v13236_v25  ;;  %v29746_v7 = vadd.f32 %v29592_v0, %v13149_v50 }
 0xdb4   :  { %v29749_v37 = vadd.f32 %v29592_v0, %v13148_v59  ;;  %v21826_v31 = vpop.f32.mrb[98].mxu0 }
 0xdb5   :  { %v13240_v57 = vadd.f32 %v13239_v60, %v13238_v35  ;;  %v13151_v40 = vadd.f32 %v29597_v55, %v21826_v31  ;;  %v13063_v13 = vpop.f32.mrb[99].mxu0  ;;  %v13243_v2 = vsel %vm90_vm4, %v29746_v7, 0.0 }
 0xdb6   :  { %v13241_v4 = vsel %vm90_vm4, %v29749_v37, 0.0  ;;  %v13150_v47 = vadd.f32 %v29597_v55, %v13063_v13 }
 0xdb7   :  { %v13242_v61 = vadd.f32 %v13241_v4, %v13240_v57  ;;  %v29758_v27 = vadd.f32 %v29592_v0, %v13151_v40  ;;  %v32002_v4 = vld [vmem:[#allocation7_spill] sm:$0xff] }
 0xdb8   :  { %v29761_v52 = vadd.f32 %v29592_v0, %v13150_v47  ;;  %v21829_v53 = vpop.f32.mrb[100].mxu0 }
 0xdb9   :  { %v13244_v28 = vadd.f32 %v13243_v2, %v13242_v61  ;;  %v13153_v43 = vadd.f32 %v29597_v55, %v21829_v53  ;;  %v13073_v63 = vpop.f32.mrb[101].mxu0  ;;  %v13247_v22 = vsel %vm90_vm4, %v29758_v27, 0.0  ;;  %v32004_v2 = vld [vmem:[#allocation4_spill] sm:$0xff] }
 0xdba   :  { %v13245_v32 = vsel %vm90_vm4, %v29761_v52, 0.0  ;;  %v13152_v49 = vadd.f32 %v29597_v55, %v13073_v63 }
 0xdbb   :  { %v13246_v38 = vadd.f32 %v13245_v32, %v13244_v28  ;;  %v29770_v1 = vadd.f32 %v29592_v0, %v13153_v43 }
 0xdbc   :  { %v29773_v12 = vadd.f32 %v29592_v0, %v13152_v49  ;;  %v21832_v48 = vpop.f32.mrb[102].mxu0 }
 0xdbd   :  { %v13248_v36 = vadd.f32 %v13247_v22, %v13246_v38  ;;  %v13155_v6 = vadd.f32 %v29597_v55, %v21832_v48  ;;  %v13083_v24 = vpop.f32.mrb[103].mxu0  ;;  %v13251_v44 = vsel %vm90_vm4, %v29770_v1, 0.0 }
 0xdbe   :  { %v13249_v16 = vsel %vm90_vm4, %v29773_v12, 0.0  ;;  %v13154_v29 = vadd.f32 %v29597_v55, %v13083_v24 }
 0xdbf   :  { %v13250_v11 = vadd.f32 %v13249_v16, %v13248_v36  ;;  %v29782_v19 = vadd.f32 %v29592_v0, %v13155_v6 }
 0xdc0   :  { %v29785_v25 = vadd.f32 %v29592_v0, %v13154_v29  ;;  %v32003_v0 = vmov 0.0  }
 0xdc1   :  { %v13252_v50 = vadd.f32 %v13251_v44, %v13250_v11  ;;  %v13255_v59 = vsel %vm90_vm4, %v29782_v19, 0.0 }
 0xdc2   :  { %v13253_v14 = vsel %vm90_vm4, %v29785_v25, 0.0 }
 0xdc3   :  { %v13254_v3 = vadd.f32 %v13253_v14, %v13252_v50 }
 0xdc5   :  { %v13256_v35 = vadd.f32 %v13255_v59, %v13254_v3 }
 0xdc7   :  { %v13257_v55 = vrot.slane %v13256_v35, 4 }
 0xdc9   :  { %v13258_v60 = vadd.f32 %v13257_v55, %v13256_v35 }
 0xdcb   :  { %v13259_v31 = vrot.slane %v13258_v60, 2 }
 0xdcd   :  { %v13260_v57 = vadd.f32 %v13259_v31, %v13258_v60 }
 0xdcf   :  { %v13261_v40 = vrot.slane %v13260_v57, 1 }
 0xdd1   :  { %v13262_v13 = vadd.f32 %v13261_v40, %v13260_v57 }
 0xdd3   :  { %21838 = vmatmul.mubr.msk.f32.vlgmr.msra.gmra.mrb[36].mxu1 %vm90_vm4, %v13262_v13 }
 0xdd4   :  { %22412 = vmatpush3.bf16.msra.mxu1 %v32002_v4  ;;  %21844 = vmatprep.mubr.msk.f32.mxu1 %vm24290_vm1, %v32003_v0 }
 0xea6   :  { %v13332_v47 = vpop.f32.mrb[36].mxu1 }
 0xea7   :  { %v21839_v61 = vpop.f32.mrb[37].mxu1  ;;  %v29796_v53 = vrot.slane %v13332_v47, %v32004_v2 }
 0xea9   :  { %v29800_v28 = vsub.f32 %v29605_v30, %v29796_v53  ;;  %v29804_v43 = vsub.f32 %v29602_v18, %v29796_v53  ;;  %v29808_v63 = vsub.f32 %v29617_v17, %v29796_v53  ;;  %v29812_v32 = vsub.f32 %v29614_v26, %v29796_v53 }
 0xeaa   :  { %v29820_v30 = vsub.f32 %v29629_v39, %v29796_v53  ;;  %v29826_v17 = vsub.f32 %v29626_v42, %v29796_v53  ;;  %v29834_v6 = vsub.f32 %v29641_v45, %v29796_v53  ;;  %v29841_v42 = vsub.f32 %v29638_v34, %v29796_v53 }
 0xeab   :  { %v13372_v49 = vmul.f32 %v29800_v28, %v29800_v28  ;;  %v13373_v38 = vmul.f32 %v29804_v43, %v29804_v43  ;;  %v13374_v18 = vmul.f32 %v29808_v63, %v29808_v63  ;;  %v13375_v26 = vmul.f32 %v29812_v32, %v29812_v32 }
 0xeac   :  { %v13376_v39 = vmul.f32 %v29820_v30, %v29820_v30  ;;  %v13377_v29 = vmul.f32 %v29826_v17, %v29826_v17  ;;  %v29848_v45 = vsub.f32 %v29653_v58, %v29796_v53  ;;  %v13378_v50 = vmul.f32 %v29834_v6, %v29834_v6 }
 0xead   :  { %v13404_v22 = vsel %vm90_vm4, %v13372_v49, 0.0  ;;  %v13405_v48 = vsel %vm90_vm4, %v13373_v38, 0.0  ;;  %v13407_v24 = vsel %vm90_vm4, %v13374_v18, 0.0  ;;  %v13409_v11 = vsel %vm90_vm4, %v13375_v26, 0.0 }
 0xeae   :  { %v13406_v36 = vadd.f32 %v13405_v48, %v13404_v22  ;;  %v13411_v14 = vsel %vm90_vm4, %v13376_v39, 0.0  ;;  %v29855_v34 = vsub.f32 %v29650_v9, %v29796_v53  ;;  %v13379_v59 = vmul.f32 %v29841_v42, %v29841_v42 }
 0xeaf   :  { %v13413_v35 = vsel %vm90_vm4, %v13377_v29, 0.0  ;;  %v29862_v58 = vsub.f32 %v29665_v20, %v29796_v53  ;;  %v13380_v60 = vmul.f32 %v29848_v45, %v29848_v45  ;;  %v13415_v31 = vsel %vm90_vm4, %v13378_v50, 0.0 }
 0xeb0   :  { %v13408_v16 = vadd.f32 %v13407_v24, %v13406_v36  ;;  %v29869_v9 = vsub.f32 %v29662_v46, %v29796_v53  ;;  %v13381_v40 = vmul.f32 %v29855_v34, %v29855_v34  ;;  %v13417_v13 = vsel %vm90_vm4, %v13379_v59, 0.0 }
 0xeb1   :  { %v29876_v20 = vsub.f32 %v29677_v21, %v29796_v53  ;;  %v13382_v0 = vmul.f32 %v29862_v58, %v29862_v58  ;;  %v13419_v47 = vsel %vm90_vm4, %v13380_v60, 0.0  ;;  %v29883_v46 = vsub.f32 %v29674_v62, %v29796_v53 }
 0xeb2   :  { %v13410_v44 = vadd.f32 %v13409_v11, %v13408_v16  ;;  %v13383_v49 = vmul.f32 %v29869_v9, %v29869_v9  ;;  %v13421_v38 = vsel %vm90_vm4, %v13381_v40, 0.0  ;;  %v29890_v21 = vsub.f32 %v29689_v10, %v29796_v53 }
 0xeb3   :  { %v13384_v26 = vmul.f32 %v29876_v20, %v29876_v20  ;;  %v13423_v22 = vsel %vm90_vm4, %v13382_v0, 0.0  ;;  %v29897_v62 = vsub.f32 %v29686_v41, %v29796_v53  ;;  %v13385_v36 = vmul.f32 %v29883_v46, %v29883_v46 }
 0xeb4   :  { %v13412_v3 = vadd.f32 %v13411_v14, %v13410_v44  ;;  %v13425_v39 = vsel %vm90_vm4, %v13383_v49, 0.0  ;;  %v29904_v10 = vsub.f32 %v29701_v56, %v29796_v53  ;;  %v13386_v16 = vmul.f32 %v29890_v21, %v29890_v21 }
 0xeb5   :  { %v13427_v29 = vsel %vm90_vm4, %v13384_v26, 0.0  ;;  %v29911_v41 = vsub.f32 %v29698_v33, %v29796_v53  ;;  %v13387_v44 = vmul.f32 %v29897_v62, %v29897_v62  ;;  %v13429_v50 = vsel %vm90_vm4, %v13385_v36, 0.0 }
 0xeb6   :  { %v13414_v55 = vadd.f32 %v13413_v35, %v13412_v3  ;;  %v29918_v56 = vsub.f32 %v29713_v15, %v29796_v53  ;;  %v13388_v3 = vmul.f32 %v29904_v10, %v29904_v10  ;;  %v13431_v59 = vsel %vm90_vm4, %v13386_v16, 0.0 }
 0xeb7   :  { %v29925_v33 = vsub.f32 %v29710_v23, %v29796_v53  ;;  %v13433_v60 = vsel %vm90_vm4, %v13387_v44, 0.0  ;;  %v29932_v15 = vsub.f32 %v29725_v51, %v29796_v53  ;;  %v29939_v23 = vsub.f32 %v29722_v8, %v29796_v53 }
 0xeb8   :  { %v13416_v57 = vadd.f32 %v13415_v31, %v13414_v55  ;;  %v13389_v55 = vmul.f32 %v29911_v41, %v29911_v41  ;;  %v13435_v40 = vsel %vm90_vm4, %v13388_v3, 0.0  ;;  %v29946_v51 = vsub.f32 %v29737_v54, %v29796_v53 }
 0xeb9   :  { %v29953_v8 = vsub.f32 %v29734_v5, %v29796_v53  ;;  %v29960_v54 = vsub.f32 %v29749_v37, %v29796_v53  ;;  %v29967_v5 = vsub.f32 %v29746_v7, %v29796_v53  ;;  %v29974_v37 = vsub.f32 %v29761_v52, %v29796_v53 }
 0xeba   :  { %v13418_v4 = vadd.f32 %v13417_v13, %v13416_v57  ;;  %v13390_v57 = vmul.f32 %v29918_v56, %v29918_v56  ;;  %v13437_v0 = vsel %vm90_vm4, %v13389_v55, 0.0  ;;  %v29981_v7 = vsub.f32 %v29758_v27, %v29796_v53 }
 0xebb   :  { %v29988_v52 = vsub.f32 %v29773_v12, %v29796_v53  ;;  %v29995_v27 = vsub.f32 %v29770_v1, %v29796_v53  ;;  %v30002_v12 = vsub.f32 %v29785_v25, %v29796_v53  ;;  %v30009_v1 = vsub.f32 %v29782_v19, %v29796_v53 }
 0xebc   :  { %v13420_v61 = vadd.f32 %v13419_v47, %v13418_v4  ;;  %v13391_v4 = vmul.f32 %v29925_v33, %v29925_v33  ;;  %v13439_v49 = vsel %vm90_vm4, %v13390_v57, 0.0 }
 0xebd   :  { %v13402_v25 = vmul.f32 %v30002_v12, %v30002_v12 }
 0xebe   :  { %v13422_v18 = vadd.f32 %v13421_v38, %v13420_v61  ;;  %v13392_v61 = vmul.f32 %v29932_v15, %v29932_v15  ;;  %v13441_v26 = vsel %vm90_vm4, %v13391_v4, 0.0 }
 0xebf   :  { %v13463_v19 = vsel %vm90_vm4, %v13402_v25, 0.0 }
 0xec0   :  { %v13424_v48 = vadd.f32 %v13423_v22, %v13422_v18  ;;  %v13393_v18 = vmul.f32 %v29939_v23, %v29939_v23  ;;  %v13443_v36 = vsel %vm90_vm4, %v13392_v61, 0.0 }
 0xec2   :  { %v13426_v24 = vadd.f32 %v13425_v39, %v13424_v48  ;;  %v13394_v48 = vmul.f32 %v29946_v51, %v29946_v51  ;;  %v13445_v16 = vsel %vm90_vm4, %v13393_v18, 0.0 }
 0xec4   :  { %v13428_v11 = vadd.f32 %v13427_v29, %v13426_v24  ;;  %v13395_v24 = vmul.f32 %v29953_v8, %v29953_v8  ;;  %v13447_v44 = vsel %vm90_vm4, %v13394_v48, 0.0 }
 0xec6   :  { %v13430_v14 = vadd.f32 %v13429_v50, %v13428_v11  ;;  %v13396_v11 = vmul.f32 %v29960_v54, %v29960_v54  ;;  %v13449_v3 = vsel %vm90_vm4, %v13395_v24, 0.0 }
 0xec8   :  { %v13432_v35 = vadd.f32 %v13431_v59, %v13430_v14  ;;  %v13397_v14 = vmul.f32 %v29967_v5, %v29967_v5  ;;  %v13451_v55 = vsel %vm90_vm4, %v13396_v11, 0.0 }
 0xeca   :  { %v13434_v31 = vadd.f32 %v13433_v60, %v13432_v35  ;;  %v13398_v35 = vmul.f32 %v29974_v37, %v29974_v37  ;;  %v13453_v57 = vsel %vm90_vm4, %v13397_v14, 0.0  ;;  %v18721_v14 = vld [vmem:[%s31487_s10 + $0x10] sm:$0xff] }
 0xecc   :  { %v13436_v13 = vadd.f32 %v13435_v40, %v13434_v31  ;;  %v13399_v31 = vmul.f32 %v29981_v7, %v29981_v7  ;;  %v13455_v4 = vsel %vm90_vm4, %v13398_v35, 0.0  ;;  %v13937_v35 = vld [vmem:[#allocation3 + $0x8] sm:$0xff] }
 0xece   :  { %v13438_v47 = vadd.f32 %v13437_v0, %v13436_v13  ;;  %v13400_v13 = vmul.f32 %v29988_v52, %v29988_v52  ;;  %v13457_v61 = vsel %vm90_vm4, %v13399_v31, 0.0 }
 0xed0   :  { %v13440_v38 = vadd.f32 %v13439_v49, %v13438_v47  ;;  %v13401_v47 = vmul.f32 %v29995_v27, %v29995_v27 }
 0xed2   :  { %v13442_v22 = vadd.f32 %v13441_v26, %v13440_v38  ;;  %v13459_v38 = vsel %vm90_vm4, %v13400_v13, 0.0  ;;  %v13403_v26 = vmul.f32 %v30009_v1, %v30009_v1 }
 0xed4   :  { %v13444_v39 = vadd.f32 %v13443_v36, %v13442_v22  ;;  %v13461_v22 = vsel %vm90_vm4, %v13401_v47, 0.0  ;;  %v13465_v36 = vsel %vm90_vm4, %v13403_v26, 0.0 }
 0xed6   :  { %v13446_v29 = vadd.f32 %v13445_v16, %v13444_v39 }
 0xed8   :  { %v13448_v50 = vadd.f32 %v13447_v44, %v13446_v29 }
 0xeda   :  { %v13450_v59 = vadd.f32 %v13449_v3, %v13448_v50  ;;  %v18722_v3 = vld [vmem:[%s31487_s10 + $0x18] sm:$0xff] }
 0xedc   :  { %v13452_v60 = vadd.f32 %v13451_v55, %v13450_v59  ;;  %v22413_v59 = vpack.c.bf16 %v18722_v3, %v18721_v14  ;;  %v13935_v55 = vld [vmem:[%s31487_s10] sm:$0xff] }
 0xedd   :  { %v30078_v14 = vld [vmem:[%s31489_s8] ss:$0 sm:$0xff] }
 0xede   :  { %v13454_v40 = vadd.f32 %v13453_v57, %v13452_v60  ;;  %v13936_v60 = vld [vmem:[%s31487_s10 + $0x8] sm:$0xff]  ;;  %22414 = vmatprep.subr.bf16.mxu1 %v22413_v59 }
 0xedf   :  { %v22417_v31 = vpack.c.bf16 %v13936_v60, %v13935_v55 }
 0xee0   :  { %v13456_v0 = vadd.f32 %v13455_v4, %v13454_v40  ;;  %v13938_v40 = vld [vmem:[#allocation3 + $0x10] sm:$0xff] }
 0xee2   :  { %v13458_v49 = vadd.f32 %v13457_v61, %v13456_v0 }
 0xee4   :  { %v13460_v18 = vadd.f32 %v13459_v38, %v13458_v49 }
 0xee6   :  { %v13462_v48 = vadd.f32 %v13461_v22, %v13460_v18 }
 0xee8   :  { %v13464_v53 = vadd.f32 %v13463_v19, %v13462_v48 }
 0xeea   :  { %v13466_v39 = vadd.f32 %v13465_v36, %v13464_v53 }
 0xeec   :  { %v13467_v24 = vrot.slane %v13466_v39, 4 }
 0xeee   :  { %v13468_v16 = vadd.f32 %v13467_v24, %v13466_v39 }
 0xef0   :  { %v13469_v29 = vrot.slane %v13468_v16, 2 }
 0xef2   :  { %v13470_v11 = vadd.f32 %v13469_v29, %v13468_v16 }
 0xef4   :  { %v13471_v44 = vrot.slane %v13470_v11, 1 }
 0xef6   :  { %v13472_v50 = vadd.f32 %v13471_v44, %v13470_v11 }
 0xef8   :  { %21845 = vmatmul.mubr.msk.f32.vlgmr.msra.gmra.mrb[38].mxu1 %vm90_vm4, %v13472_v50 }
 0xef9   :  { %21851 = vmatprep.mubr.msk.f32.mxu1 %vm90_vm4, %v13937_v35  ;;  %22416 = vmatpush3.bf16.msra.mxu1 %v22413_v59 }
 0xefa   :  { %22418 = vmatprep.subr.bf16.mxu1 %v22417_v31 }
 0xefc   :  { %21852 = vmatmul.mubr.msk.f32.vlgmr.msra.gmra.mrb[40].mxu1 %vm90_vm4, %v13938_v40 }
 0xefd   :  { %22420 = vmatpush3.bf16.msra.mxu1 %v22417_v31 }
 0xfcb   :  { %v13542_v57 = vpop.f32.mrb[38].mxu1 }
 0xfcc   :  { %v21846_v13 = vpop.f32.mrb[39].mxu1  ;;  %v13543_v4 = vadd.f32 1e-06, %v13542_v57 }
 0xfce   :  { %24058 = vrsqrt.f32 %v13543_v4 }
 0xfd8   :  { %v24059_v0 = vpop.eup %24058 }
 0xfd9   :  { %v13550_v47 = vrot.slane %v24059_v0, %v32004_v2 }
 0xfdb   :  { %v13551_v61 = vmul.f32 %v13550_v47, %v29800_v28  ;;  %v13552_v49 = vmul.f32 %v13550_v47, %v29804_v43  ;;  %v13553_v25 = vmul.f32 %v13550_v47, %v29808_v63  ;;  %v13554_v38 = vmul.f32 %v13550_v47, %v29812_v32 }
 0xfdc   :  { %v13555_v18 = vmul.f32 %v13550_v47, %v29820_v30  ;;  %v13556_v26 = vmul.f32 %v13550_v47, %v29826_v17  ;;  %v13557_v22 = vmul.f32 %v13550_v47, %v29834_v6  ;;  %v13558_v48 = vmul.f32 %v13550_v47, %v29841_v42 }
 0xfdd   :  { %v13559_v19 = vmul.f32 %v13550_v47, %v29848_v45  ;;  %v13560_v2 = vmul.f32 %v13550_v47, %v29855_v34  ;;  %v13561_v28 = vmul.f32 %v13550_v47, %v29862_v58  ;;  %v13562_v43 = vmul.f32 %v13550_v47, %v29869_v9 }
 0xfde   :  { %v13563_v63 = vmul.f32 %v13550_v47, %v29876_v20  ;;  %v13564_v32 = vmul.f32 %v13550_v47, %v29883_v46  ;;  %v13565_v30 = vmul.f32 %v13550_v47, %v29890_v21  ;;  %v13566_v17 = vmul.f32 %v13550_v47, %v29897_v62 }
 0xfdf   :  { %v13567_v6 = vmul.f32 %v13550_v47, %v29904_v10  ;;  %v13568_v42 = vmul.f32 %v13550_v47, %v29911_v41  ;;  %v13569_v45 = vmul.f32 %v13550_v47, %v29918_v56  ;;  %v13570_v34 = vmul.f32 %v13550_v47, %v29925_v33 }
 0xfe0   :  { %v13571_v58 = vmul.f32 %v13550_v47, %v29932_v15  ;;  %v13572_v9 = vmul.f32 %v13550_v47, %v29939_v23  ;;  %v13573_v20 = vmul.f32 %v13550_v47, %v29946_v51  ;;  %v13574_v46 = vmul.f32 %v13550_v47, %v29953_v8  ;;  %v24252_v51 = vld [vmem:[%s31488_s7] ss:$0 sm:$0xff] }
 0xfe1   :  { %v13575_v21 = vmul.f32 %v13550_v47, %v29960_v54  ;;  %v13576_v62 = vmul.f32 %v13550_v47, %v29967_v5  ;;  %v13577_v10 = vmul.f32 %v13550_v47, %v29974_v37  ;;  %v13578_v41 = vmul.f32 %v13550_v47, %v29981_v7 }
 0xfe2   :  { %v13579_v56 = vmul.f32 %v13550_v47, %v29988_v52  ;;  %v13580_v33 = vmul.f32 %v13550_v47, %v29995_v27  ;;  %v13581_v15 = vmul.f32 %v13550_v47, %v30002_v12  ;;  %v13582_v23 = vmul.f32 %v13550_v47, %v30009_v1 }
 0xfe3   :  { %v13583_v8 = vmul.f32 %v24252_v51, %v13551_v61  ;;  %v13584_v54 = vmul.f32 %v24252_v51, %v13552_v49  ;;  %v13585_v53 = vmul.f32 %v24252_v51, %v13553_v25  ;;  %v13586_v5 = vmul.f32 %v24252_v51, %v13554_v38 }
 0xfe4   :  { %v13587_v36 = vmul.f32 %v24252_v51, %v13555_v18  ;;  %v13588_v37 = vmul.f32 %v24252_v51, %v13556_v26  ;;  %v13589_v39 = vmul.f32 %v24252_v51, %v13557_v22  ;;  %v13590_v7 = vmul.f32 %v24252_v51, %v13558_v48 }
 0xfe5   :  { %v13591_v24 = vmul.f32 %v24252_v51, %v13559_v19  ;;  %v13592_v52 = vmul.f32 %v24252_v51, %v13560_v2  ;;  %v13593_v16 = vmul.f32 %v24252_v51, %v13561_v28  ;;  %v13594_v27 = vmul.f32 %v24252_v51, %v13562_v43  ;;  %v18787_v43 = vld [vmem:[%s31487_s10 + $0x20] sm:$0xff] }
 0xfe6   :  { %v13595_v29 = vmul.f32 %v24252_v51, %v13563_v63  ;;  %v13596_v12 = vmul.f32 %v24252_v51, %v13564_v32  ;;  %v13597_v11 = vmul.f32 %v24252_v51, %v13565_v30  ;;  %v13598_v1 = vmul.f32 %v24252_v51, %v13566_v17  ;;  %v18788_v63 = vld [vmem:[%s31487_s10 + $0x28] sm:$0xff] }
 0xfe7   :  { %v13599_v44 = vmul.f32 %v24252_v51, %v13567_v6  ;;  %v30073_v50 = vmul.f32 %v24252_v51, %v13568_v42  ;;  %v30081_v3 = vadd.f32 %v30078_v14, %v13583_v8  ;;  %v30084_v59 = vadd.f32 %v30078_v14, %v13584_v54 }
 0xfe8   :  { %v30087_v35 = vadd.f32 %v30078_v14, %v13585_v53  ;;  %v30089_v55 = vmul.f32 %v24252_v51, %v13569_v45  ;;  %v30091_v60 = vmul.f32 %v24252_v51, %v13570_v34  ;;  %v30093_v31 = vmul.f32 %v24252_v51, %v13571_v58 }
 0xfe9   :  { %v30096_v57 = vadd.f32 %v30078_v14, %v13586_v5  ;;  %v30098_v40 = vmul.f32 %v24252_v51, %v13572_v9  ;;  %v30100_v13 = vmul.f32 %v24252_v51, %v13573_v20  ;;  %v30102_v4 = vmul.f32 %v24252_v51, %v13574_v46 }
 0xfea   :  { %v30105_v0 = vadd.f32 %v30078_v14, %v13587_v36  ;;  %v30107_v47 = vmul.f32 %v24252_v51, %v13575_v21  ;;  %v30109_v61 = vmul.f32 %v24252_v51, %v13576_v62  ;;  %v30112_v49 = vadd.f32 %v30078_v14, %v13588_v37 }
 0xfeb   :  { %v30115_v25 = vadd.f32 %v30078_v14, %v13589_v39  ;;  %v30117_v38 = vmul.f32 %v24252_v51, %v13577_v10  ;;  %v13647_v18 = vsub.f32 0.0, %v30081_v3  ;;  %v13648_v26 = vsub.f32 0.0, %v30084_v59 }
 0xfec   :  { %v13649_v22 = vsub.f32 0.0, %v30087_v35  ;;  %v30122_v48 = vmul.f32 %v24252_v51, %v13578_v41  ;;  %v30124_v19 = vmul.f32 %v24252_v51, %v13579_v56  ;;  %v30127_v2 = vadd.f32 %v30078_v14, %v13590_v7 }
 0xfed   :  { %v13650_v28 = vsub.f32 0.0, %v30096_v57  ;;  %v30136_v32 = vmul.f32 %v24252_v51, %v13580_v33  ;;  %v30138_v30 = vmul.f32 %v24252_v51, %v13581_v15  ;;  %v30141_v17 = vadd.f32 %v30078_v14, %v13591_v24 }
 0xfee   :  { %v13651_v6 = vsub.f32 0.0, %v30105_v0  ;;  %v30145_v42 = vadd.f32 %v30078_v14, %v13592_v52  ;;  %v30148_v45 = vadd.f32 %v30078_v14, %v13593_v16  ;;  %v13652_v34 = vsub.f32 0.0, %v30112_v49 }
 0xfef   :  { %v13653_v58 = vsub.f32 0.0, %v30115_v25  ;;  %v13679_v9 = vmul.f32 1.442695, %v13647_v18  ;;  %v13681_v20 = vmul.f32 1.442695, %v13648_v26  ;;  %v30152_v21 = vpack.c.bf16 %v18788_v63, %v18787_v43 }
 0xff0   :  { %v13683_v46 = vmul.f32 1.442695, %v13649_v22  ;;  %v30154_v62 = vmul.f32 %v24252_v51, %v13582_v23  ;;  %v30157_v10 = vadd.f32 %v30078_v14, %v13594_v27  ;;  %v13654_v41 = vsub.f32 0.0, %v30127_v2 }
 0xff1   :  { %32005 = vst [vmem:[#allocation47_spill] sm:$0xff] %v30152_v21  ;;  %v13685_v56 = vmul.f32 1.442695, %v13650_v28  ;;  %v30161_v33 = vadd.f32 %v30078_v14, %v13595_v29  ;;  %v13655_v15 = vsub.f32 0.0, %v30141_v17  ;;  %24060 = vpow2.f32 %v13679_v9  ;;  %22422 = vmatprep.subr.bf16.mxu1 %v30152_v21 }
 0xff2   :  { %v13687_v8 = vmul.f32 1.442695, %v13651_v6  ;;  %v30166_v54 = vadd.f32 %v30078_v14, %v13596_v12  ;;  %v13656_v23 = vsub.f32 0.0, %v30145_v42  ;;  %24062 = vpow2.f32 %v13681_v20 }
 0xff3   :  { %v13689_v51 = vmul.f32 1.442695, %v13652_v34  ;;  %v30170_v53 = vadd.f32 %v30078_v14, %v13597_v11  ;;  %v13657_v5 = vsub.f32 0.0, %v30148_v45  ;;  %24064 = vpow2.f32 %v13683_v46 }
 0xff4   :  { %v13691_v36 = vmul.f32 1.442695, %v13653_v58  ;;  %v30174_v37 = vadd.f32 %v30078_v14, %v13598_v1  ;;  %v13658_v39 = vsub.f32 0.0, %v30157_v10  ;;  %24066 = vpow2.f32 %v13685_v56 }
 0xff5   :  { %v13693_v7 = vmul.f32 1.442695, %v13654_v41  ;;  %v30178_v24 = vadd.f32 %v30078_v14, %v13599_v44  ;;  %v13659_v52 = vsub.f32 0.0, %v30161_v33  ;;  %24068 = vpow2.f32 %v13687_v8 }
 0xff6   :  { %v13695_v16 = vmul.f32 1.442695, %v13655_v15  ;;  %v30183_v27 = vadd.f32 %v30078_v14, %v30073_v50  ;;  %v13660_v29 = vsub.f32 0.0, %v30166_v54  ;;  %24070 = vpow2.f32 %v13689_v51 }
 0xff7   :  { %v13697_v12 = vmul.f32 1.442695, %v13656_v23  ;;  %v30188_v11 = vadd.f32 %v30078_v14, %v30089_v55  ;;  %v13661_v1 = vsub.f32 0.0, %v30170_v53  ;;  %24072 = vpow2.f32 %v13691_v36 }
 0xff8   :  { %v13699_v44 = vmul.f32 1.442695, %v13657_v5  ;;  %v30193_v18 = vadd.f32 %v30078_v14, %v30091_v60  ;;  %v13662_v26 = vsub.f32 0.0, %v30174_v37  ;;  %24074 = vpow2.f32 %v13693_v7 }
 0xff9   :  { %v13701_v50 = vmul.f32 1.442695, %v13658_v39  ;;  %v30198_v22 = vadd.f32 %v30078_v14, %v30093_v31  ;;  %v13663_v28 = vsub.f32 0.0, %v30178_v24  ;;  %24076 = vpow2.f32 %v13695_v16 }
 0xffa   :  { %v13703_v55 = vmul.f32 1.442695, %v13659_v52  ;;  %v30203_v43 = vadd.f32 %v30078_v14, %v30098_v40  ;;  %v13664_v63 = vsub.f32 0.0, %v30183_v27  ;;  %24078 = vpow2.f32 %v13697_v12 }
 0xffb   :  { %v13705_v60 = vmul.f32 1.442695, %v13660_v29  ;;  %v30206_v6 = vpop.eup %24060  ;;  %v30210_v34 = vadd.f32 %v30078_v14, %v30100_v13  ;;  %v13665_v31 = vsub.f32 0.0, %v30188_v11  ;;  %24080 = vpow2.f32 %v13699_v44 }
 0xffc   :  { %v13707_v58 = vmul.f32 1.442695, %v13661_v1  ;;  %v30213_v9 = vpop.eup %24062  ;;  %v30217_v40 = vadd.f32 %v30078_v14, %v30102_v4  ;;  %v13666_v20 = vsub.f32 0.0, %v30193_v18  ;;  %24082 = vpow2.f32 %v13701_v50 }
 0xffd   :  { %v13709_v46 = vmul.f32 1.442695, %v13662_v26  ;;  %v30220_v41 = vpop.eup %24064  ;;  %v30224_v13 = vadd.f32 %v30078_v14, %v30107_v47  ;;  %v13667_v56 = vsub.f32 0.0, %v30198_v22  ;;  %24084 = vpow2.f32 %v13703_v55 }
 0xffe   :  { %v13711_v15 = vmul.f32 1.442695, %v13663_v28  ;;  %v30227_v8 = vpop.eup %24066  ;;  %v30231_v4 = vadd.f32 %v30078_v14, %v30109_v61  ;;  %v13668_v23 = vsub.f32 0.0, %v30203_v43  ;;  %24086 = vpow2.f32 %v13705_v60 }
 0xfff   :  { %v13713_v51 = vmul.f32 1.442695, %v13664_v63  ;;  %v30234_v5 = vpop.eup %24068  ;;  %v30238_v47 = vadd.f32 %v30078_v14, %v30117_v38  ;;  %v13669_v36 = vsub.f32 0.0, %v30210_v34  ;;  %24088 = vpow2.f32 %v13707_v58 }
0x1000   :  { %v13715_v39 = vmul.f32 1.442695, %v13665_v31  ;;  %v30241_v7 = vpop.eup %24070  ;;  %v30245_v61 = vadd.f32 %v30078_v14, %v30122_v48  ;;  %v13670_v52 = vsub.f32 0.0, %v30217_v40  ;;  %24090 = vpow2.f32 %v13709_v46 }
0x1001   :  { %v13717_v16 = vmul.f32 1.442695, %v13666_v20  ;;  %v30248_v29 = vpop.eup %24072  ;;  %v30252_v38 = vadd.f32 %v30078_v14, %v30124_v19  ;;  %v13671_v12 = vsub.f32 0.0, %v30224_v13  ;;  %24092 = vpow2.f32 %v13711_v15 }
0x1002   :  { %v13719_v1 = vmul.f32 1.442695, %v13667_v56  ;;  %v30255_v44 = vpop.eup %24074  ;;  %v30259_v48 = vadd.f32 %v30078_v14, %v30136_v32  ;;  %v13672_v26 = vsub.f32 0.0, %v30231_v4  ;;  %24094 = vpow2.f32 %v13713_v51 }
0x1003   :  { %32006 = vst [vmem:[#allocation48_spill] sm:$0xff] %v30252_v38  ;;  %v13721_v50 = vmul.f32 1.442695, %v13668_v23  ;;  %v24077_v28 = vpop.eup %24076  ;;  %v30264_v55 = vadd.f32 %v30078_v14, %v30138_v30  ;;  %v13673_v19 = vsub.f32 0.0, %v30238_v47  ;;  %24096 = vpow2.f32 %v13715_v39 }
0x1004   :  { %32007 = vst [vmem:[#allocation49_spill] sm:$0xff] %v30259_v48  ;;  %v13723_v63 = vmul.f32 1.442695, %v13669_v36  ;;  %v24079_v60 = vpop.eup %24078  ;;  %v30269_v31 = vadd.f32 %v30078_v14, %v30154_v62  ;;  %v13674_v32 = vsub.f32 0.0, %v30245_v61  ;;  %24098 = vpow2.f32 %v13717_v16 }
0x1005   :  { %32008 = vst [vmem:[#allocation50_spill] sm:$0xff] %v30264_v55  ;;  %v13725_v58 = vmul.f32 1.442695, %v13670_v52  ;;  %v24081_v20 = vpop.eup %24080  ;;  %v13675_v46 = vsub.f32 0.0, %v30252_v38  ;;  %24100 = vpow2.f32 %v13719_v1  ;;  %v13727_v56 = vmul.f32 1.442695, %v13671_v12 }
0x1006   :  { %v24083_v30 = vpop.eup %24082  ;;  %v13676_v15 = vsub.f32 0.0, %v30259_v48  ;;  %24102 = vpow2.f32 %v13721_v50  ;;  %v13729_v23 = vmul.f32 1.442695, %v13672_v26  ;;  %v13677_v36 = vsub.f32 0.0, %v30264_v55 }
0x1007   :  { %v24085_v51 = vpop.eup %24084  ;;  %24104 = vpow2.f32 %v13723_v63  ;;  %v13731_v14 = vmul.f32 1.442695, %v13673_v19  ;;  %v13678_v39 = vsub.f32 0.0, %v30269_v31  ;;  %v13733_v52 = vmul.f32 1.442695, %v13674_v32 }
0x1008   :  { %v24087_v62 = vpop.eup %24086  ;;  %24106 = vpow2.f32 %v13725_v58  ;;  %v13735_v21 = vmul.f32 1.442695, %v13675_v46  ;;  %v13737_v12 = vmul.f32 1.442695, %v13676_v15  ;;  %v13739_v50 = vmul.f32 1.442695, %v13677_v36 }
0x1009   :  { %v24089_v16 = vpop.eup %24088  ;;  %24108 = vpow2.f32 %v13727_v56  ;;  %v13741_v48 = vmul.f32 1.442695, %v13678_v39  ;;  %v13743_v19 = vadd.f32 1.0, %v30206_v6  ;;  %v13744_v32 = vadd.f32 1.0, %v30213_v9 }
0x100a   :  { %v24091_v1 = vpop.eup %24090  ;;  %24110 = vpow2.f32 %v13729_v23  ;;  %v13745_v46 = vadd.f32 1.0, %v30220_v41  ;;  %v13746_v15 = vadd.f32 1.0, %v30227_v8  ;;  %v13747_v36 = vadd.f32 1.0, %v30234_v5 }
0x100b   :  { %v24093_v38 = vpop.eup %24092  ;;  %24112 = vpow2.f32 %v13731_v14  ;;  %v13748_v6 = vadd.f32 1.0, %v30241_v7  ;;  %v13749_v14 = vadd.f32 1.0, %v30248_v29  ;;  %v13751_v39 = vadd.f32 1.0, %v24077_v28 }
0x100c   :  { %v24095_v26 = vpop.eup %24094  ;;  %24114 = vpow2.f32 %v13733_v52  ;;  %v13752_v52 = vadd.f32 1.0, %v24079_v60  ;;  %v13754_v29 = vadd.f32 1.0, %v24083_v30  ;;  %v13756_v28 = vadd.f32 1.0, %v24087_v62 }
0x100d   :  { %v24097_v55 = vpop.eup %24096  ;;  %24116 = vpow2.f32 %v13735_v21 }
0x100e   :  { %v24099_v63 = vpop.eup %24098  ;;  %24118 = vpow2.f32 %v13737_v12  ;;  %v13753_v12 = vadd.f32 1.0, %v24081_v20 }
0x100f   :  { %v24101_v58 = vpop.eup %24100  ;;  %24120 = vpow2.f32 %v13739_v50 }
0x1010   :  { %v30279_v56 = vpop.eup %24102  ;;  %24122 = vpow2.f32 %v13741_v48  ;;  %v13750_v48 = vadd.f32 1.0, %v30255_v44  ;;  %v13755_v44 = vadd.f32 1.0, %v24085_v51  ;;  %v13760_v51 = vadd.f32 1.0, %v24095_v26 }
0x1011   :  { %v30282_v23 = vpop.eup %24104  ;;  %24124 = vrcp.f32 %v13743_v19  ;;  %v13763_v26 = vadd.f32 1.0, %v24101_v58 }
0x1012   :  { %v30285_v21 = vpop.eup %24106  ;;  %24126 = vrcp.f32 %v13744_v32 }
0x1013   :  { %v30288_v9 = vpop.eup %24108  ;;  %24128 = vrcp.f32 %v13745_v46 }
0x1014   :  { %v30291_v41 = vpop.eup %24110  ;;  %24130 = vrcp.f32 %v13746_v15  ;;  %v13757_v15 = vadd.f32 1.0, %v24089_v16  ;;  %v13761_v16 = vadd.f32 1.0, %v24097_v55 }
0x1015   :  { %v30294_v8 = vpop.eup %24112  ;;  %24132 = vrcp.f32 %v13747_v36  ;;  %v13758_v36 = vadd.f32 1.0, %v24091_v1 }
0x1016   :  { %v30296_v5 = vpop.eup %24114  ;;  %24134 = vrcp.f32 %v13748_v6 }
0x1017   :  { %v30298_v7 = vpop.eup %24116  ;;  %24136 = vrcp.f32 %v13749_v14  ;;  %v13759_v14 = vadd.f32 1.0, %v24093_v38 }
0x1018   :  { %v30300_v50 = vpop.eup %24118  ;;  %24138 = vrcp.f32 %v13750_v48 }
0x1019   :  { %v30302_v19 = vpop.eup %24120  ;;  %24140 = vrcp.f32 %v13751_v39 }
0x101a   :  { %v30304_v32 = vpop.eup %24122  ;;  %24142 = vrcp.f32 %v13752_v52  ;;  %v13762_v52 = vadd.f32 1.0, %v24099_v63 }
0x101b   :  { %v24125_v46 = vpop.eup %24124  ;;  %24144 = vrcp.f32 %v13753_v12  ;;  %v13764_v12 = vadd.f32 1.0, %v30279_v56 }
0x101c   :  { %v24127_v60 = vpop.eup %24126  ;;  %24146 = vrcp.f32 %v13754_v29  ;;  %v13839_v20 = vmul.f32 %v24125_v46, %v30081_v3  ;;  %v13768_v46 = vadd.f32 1.0, %v30291_v41 }
0x101d   :  { %v24129_v6 = vpop.eup %24128  ;;  %24148 = vrcp.f32 %v13755_v44  ;;  %v13840_v30 = vmul.f32 %v24127_v60, %v30084_v59  ;;  %v13770_v60 = vadd.f32 1.0, %v30296_v5 }
0x101e   :  { %v24131_v48 = vpop.eup %24130  ;;  %24150 = vrcp.f32 %v13756_v28  ;;  %v13841_v39 = vmul.f32 %v24129_v6, %v30087_v35  ;;  %13871 = vst.msk [vmem:[#allocation3 + $0x28] sm:$0xff] %vm90_vm4, %v13839_v20 }
0x101f   :  { %v24133_v62 = vpop.eup %24132  ;;  %24152 = vrcp.f32 %v13757_v15  ;;  %v13842_v1 = vmul.f32 %v24131_v48, %v30096_v57  ;;  %13872 = vst.msk [vmem:[#allocation3 + $0x30] sm:$0xff] %vm90_vm4, %v13840_v30  ;;  %v13773_v48 = vadd.f32 1.0, %v30302_v19 }
0x1020   :  { %v24135_v3 = vpop.eup %24134  ;;  %24154 = vrcp.f32 %v13758_v36  ;;  %v13843_v38 = vmul.f32 %v24133_v62, %v30105_v0  ;;  %13873 = vst.msk [vmem:[#allocation3 + $0x48] sm:$0xff] %vm90_vm4, %v13841_v39  ;;  %v13765_v0 = vadd.f32 1.0, %v30282_v23 }
0x1021   :  { %v24137_v59 = vpop.eup %24136  ;;  %24156 = vrcp.f32 %v13759_v14  ;;  %v13844_v35 = vmul.f32 %v24135_v3, %v30112_v49  ;;  %13874 = vst.msk [vmem:[#allocation3 + $0x50] sm:$0xff] %vm90_vm4, %v13842_v1  ;;  %v13766_v49 = vadd.f32 1.0, %v30285_v21  ;;  %v13772_v14 = vadd.f32 1.0, %v30300_v50 }
0x1022   :  { %v24139_v55 = vpop.eup %24138  ;;  %24158 = vrcp.f32 %v13760_v51  ;;  %v13845_v57 = vmul.f32 %v24137_v59, %v30115_v25  ;;  %13875 = vst.msk [vmem:[#allocation3 + $0x68] sm:$0xff] %vm90_vm4, %v13843_v38  ;;  %v13767_v25 = vadd.f32 1.0, %v30288_v9 }
0x1023   :  { %v24141_v63 = vpop.eup %24140  ;;  %24160 = vrcp.f32 %v13761_v16  ;;  %v13846_v29 = vmul.f32 %v24139_v55, %v30127_v2  ;;  %13876 = vst.msk [vmem:[#allocation3 + $0x70] sm:$0xff] %vm90_vm4, %v13844_v35 }
0x1024   :  { %v24143_v58 = vpop.eup %24142  ;;  %24162 = vrcp.f32 %v13762_v52  ;;  %v13847_v44 = vmul.f32 %v24141_v63, %v30141_v17  ;;  %13877 = vst.msk [vmem:[#allocation3 + $0x88] sm:$0xff] %vm90_vm4, %v13845_v57 }
0x1025   :  { %v24145_v56 = vpop.eup %24144  ;;  %24164 = vrcp.f32 %v13763_v26  ;;  %v13848_v28 = vmul.f32 %v24143_v58, %v30145_v42  ;;  %13878 = vst.msk [vmem:[#allocation3 + $0x90] sm:$0xff] %vm90_vm4, %v13846_v29  ;;  %v30328_v23 = vld [vmem:[#allocation3 + $0x28] sm:$0xff]  ;;  %v13769_v42 = vadd.f32 1.0, %v30294_v8  ;;  %v32009_v58 = vld [vmem:[#allocation48_spill] sm:$0xff] }
0x1026   :  { %v24147_v2 = vpop.eup %24146  ;;  %24166 = vrcp.f32 %v13764_v12  ;;  %v13849_v21 = vmul.f32 %v24145_v56, %v30148_v45  ;;  %13879 = vst.msk [vmem:[#allocation3 + $0xa8] sm:$0xff] %vm90_vm4, %v13847_v44  ;;  %21854 = vmatprep.mubr.msk.f32.mxu1 %vm90_vm4, %v30328_v23  ;;  %v30335_v17 = vld [vmem:[#allocation3 + $0x30] sm:$0xff]  ;;  %v32010_v44 = vld [vmem:[#allocation49_spill] sm:$0xff] }
0x1027   :  { %v24149_v9 = vpop.eup %24148  ;;  %24168 = vrcp.f32 %v13765_v0  ;;  %v13850_v15 = vmul.f32 %v24147_v2, %v30157_v10  ;;  %13880 = vst.msk [vmem:[#allocation3 + $0xb0] sm:$0xff] %vm90_vm4, %v13848_v28  ;;  %21855 = vmatmul.mubr.msk.f32.gmra.mrb[42].mxu1 %vm90_vm4, %v30335_v17  ;;  %v30342_v41 = vld [vmem:[#allocation3 + $0x48] sm:$0xff]  ;;  %v13771_v10 = vadd.f32 1.0, %v30298_v7 }
0x1028   :  { %v24151_v45 = vpop.eup %24150  ;;  %24170 = vrcp.f32 %v13766_v49  ;;  %v13851_v36 = vmul.f32 %v24149_v9, %v30161_v33  ;;  %13881 = vst.msk [vmem:[#allocation3 + $0xc8] sm:$0xff] %vm90_vm4, %v13849_v21  ;;  %21857 = vmatprep.mubr.msk.f32.mxu1 %vm90_vm4, %v30342_v41  ;;  %v30355_v33 = vld [vmem:[#allocation3 + $0x50] sm:$0xff] }
0x1029   :  { %v24153_v8 = vpop.eup %24152  ;;  %24172 = vrcp.f32 %v13767_v25  ;;  %v13852_v20 = vmul.f32 %v24151_v45, %v30166_v54  ;;  %13882 = vst.msk [vmem:[#allocation3 + $0xd0] sm:$0xff] %vm90_vm4, %v13850_v15  ;;  %v30362_v54 = vld [vmem:[#allocation3 + $0x68] sm:$0xff]  ;;  %v32011_v25 = vld [vmem:[#allocation50_spill] sm:$0xff] }
0x102a   :  { %v24155_v6 = vpop.eup %24154  ;;  %24174 = vrcp.f32 %v13768_v46  ;;  %v13853_v5 = vmul.f32 %v24153_v8, %v30170_v53  ;;  %13883 = vst.msk [vmem:[#allocation3 + $0xe8] sm:$0xff] %vm90_vm4, %v13851_v36  ;;  %v13774_v53 = vadd.f32 1.0, %v30304_v32  ;;  %v30373_v32 = vld [vmem:[#allocation3 + $0x70] sm:$0xff] }
0x102b   :  { %v24157_v30 = vpop.eup %24156  ;;  %24176 = vrcp.f32 %v13769_v42  ;;  %v13854_v7 = vmul.f32 %v24155_v6, %v30174_v37  ;;  %13884 = vst.msk [vmem:[#allocation3 + $0xf0] sm:$0xff] %vm90_vm4, %v13852_v20  ;;  %21858 = vmatmul.mubr.msk.f32.gmra.mrb[44].mxu1 %vm90_vm4, %v30355_v33 }
0x102c   :  { %v24159_v50 = vpop.eup %24158  ;;  %24178 = vrcp.f32 %v13770_v60  ;;  %v13855_v51 = vmul.f32 %v24157_v30, %v30178_v24  ;;  %13885 = vst.msk [vmem:[#allocation3 + $0x108] sm:$0xff] %vm90_vm4, %v13853_v5  ;;  %21860 = vmatprep.mubr.msk.f32.mxu1 %vm90_vm4, %v30362_v54  ;;  %v30389_v59 = vld [vmem:[#allocation3 + $0x90] sm:$0xff] }
0x102d   :  { %v24161_v19 = vpop.eup %24160  ;;  %24180 = vrcp.f32 %v13771_v10  ;;  %v13856_v37 = vmul.f32 %v24159_v50, %v30183_v27  ;;  %13886 = vst.msk [vmem:[#allocation3 + $0x110] sm:$0xff] %vm90_vm4, %v13854_v7  ;;  %v30379_v27 = vld [vmem:[#allocation3 + $0x88] sm:$0xff] }
0x102e   :  { %v24163_v39 = vpop.eup %24162  ;;  %24182 = vrcp.f32 %v13772_v14  ;;  %v13857_v62 = vmul.f32 %v24161_v19, %v30188_v11  ;;  %13887 = vst.msk [vmem:[#allocation3 + $0x128] sm:$0xff] %vm90_vm4, %v13855_v51  ;;  %v30395_v35 = vld [vmem:[#allocation3 + $0xa8] sm:$0xff]  ;;  %v30405_v63 = vld [vmem:[#allocation3 + $0xb0] sm:$0xff]  ;;  %v18822_v19 = vld [vmem:[%s31487_s10 + $0x38] sm:$0xff] }
0x102f   :  { %v24165_v24 = vpop.eup %24164  ;;  %24184 = vrcp.f32 %v13773_v48  ;;  %v13858_v16 = vmul.f32 %v24163_v39, %v30193_v18  ;;  %13888 = vst.msk [vmem:[#allocation3 + $0x130] sm:$0xff] %vm90_vm4, %v13856_v37  ;;  %21861 = vmatmul.mubr.msk.f32.gmra.mrb[46].mxu1 %vm90_vm4, %v30373_v32  ;;  %v30411_v29 = vld [vmem:[#allocation3 + $0xc8] sm:$0xff]  ;;  %v18821_v51 = vld [vmem:[%s31487_s10 + $0x30] sm:$0xff] }
0x1030   :  { %v24167_v1 = vpop.eup %24166  ;;  %24186 = vrcp.f32 %v13774_v53  ;;  %v13859_v3 = vmul.f32 %v24165_v24, %v30198_v22  ;;  %13889 = vst.msk [vmem:[#allocation3 + $0x148] sm:$0xff] %vm90_vm4, %v13857_v62  ;;  %21863 = vmatprep.mubr.msk.f32.mxu1 %vm90_vm4, %v30379_v27  ;;  %v30421_v2 = vld [vmem:[#allocation3 + $0xd0] sm:$0xff]  ;;  %v13903_v50 = vld [vmem:[#allocation3 + $0x7] sm:$0xff]  ;;  %v30508_v39 = vpack.c.bf16 %v18822_v19, %v18821_v51  ;;  %v32019_v24 = vld [vmem:[#allocation47_spill] sm:$0xff] }
0x1031   :  { %v24169_v11 = vpop.eup %24168  ;;  %v13860_v52 = vmul.f32 %v24167_v1, %v30203_v43  ;;  %13890 = vst.msk [vmem:[#allocation3 + $0x150] sm:$0xff] %vm90_vm4, %v13858_v16  ;;  %v30427_v21 = vld [vmem:[#allocation3 + $0xe8] sm:$0xff] }
0x1032   :  { %v24171_v18 = vpop.eup %24170  ;;  %v13861_v38 = vmul.f32 %v24169_v11, %v30210_v34  ;;  %13891 = vst.msk [vmem:[#allocation3 + $0x168] sm:$0xff] %vm90_vm4, %v13859_v3  ;;  %v30433_v9 = vld [vmem:[#allocation3 + $0xf0] sm:$0xff]  ;;  %v30511_v62 = vld [vmem:[#allocation3 + $0x27] sm:$0xff] }
0x1033   :  { %v24173_v26 = vpop.eup %24172  ;;  %v13862_v22 = vmul.f32 %v24171_v18, %v30217_v40  ;;  %13892 = vst.msk [vmem:[#allocation3 + $0x170] sm:$0xff] %vm90_vm4, %v13860_v52  ;;  %21864 = vmatmul.mubr.msk.f32.gmra.mrb[48].mxu1 %vm90_vm4, %v30389_v59  ;;  %v13904_v37 = vld [vmem:[#allocation3 + $0xf] sm:$0xff]  ;;  %v30521_v1 = vld [vmem:[#allocation3 + $0x47] sm:$0xff] }
0x1034   :  { %v24175_v43 = vpop.eup %24174  ;;  %v13863_v55 = vmul.f32 %v24173_v26, %v30224_v13  ;;  %13893 = vst.msk [vmem:[#allocation3 + $0x188] sm:$0xff] %vm90_vm4, %v13861_v38  ;;  %21866 = vmatprep.mubr.msk.f32.mxu1 %vm90_vm4, %v30395_v35  ;;  %v30441_v42 = vld [vmem:[#allocation3 + $0x110] sm:$0xff]  ;;  %v30529_v11 = vld [vmem:[#allocation3 + $0x67] sm:$0xff] }
0x1035   :  { %v24177_v34 = vpop.eup %24176  ;;  %v13864_v12 = vmul.f32 %v24175_v43, %v30231_v4  ;;  %13894 = vst.msk [vmem:[#allocation3 + $0x190] sm:$0xff] %vm90_vm4, %v13862_v22  ;;  %v30445_v15 = vld [vmem:[#allocation3 + $0x128] sm:$0xff] }
0x1036   :  { %v24179_v40 = vpop.eup %24178  ;;  %v13865_v57 = vmul.f32 %v24177_v34, %v30238_v47  ;;  %13895 = vst.msk [vmem:[#allocation3 + $0x1a8] sm:$0xff] %vm90_vm4, %v13863_v55  ;;  %v30449_v45 = vld [vmem:[#allocation3 + $0x130] sm:$0xff]  ;;  %v30537_v18 = vld [vmem:[#allocation3 + $0x87] sm:$0xff] }
0x1037   :  { %v24181_v0 = vpop.eup %24180  ;;  %v13866_v13 = vmul.f32 %v24179_v40, %v30245_v61  ;;  %13896 = vst.msk [vmem:[#allocation3 + $0x1b0] sm:$0xff] %vm90_vm4, %v13864_v12  ;;  %21867 = vmatmul.mubr.msk.f32.gmra.mrb[50].mxu1 %vm90_vm4, %v30405_v63  ;;  %v30453_v60 = vld [vmem:[#allocation3 + $0x148] sm:$0xff] }
0x1038   :  { %v24183_v4 = vpop.eup %24182  ;;  %v13867_v49 = vmul.f32 %v24181_v0, %v32009_v58  ;;  %13897 = vst.msk [vmem:[#allocation3 + $0x1c8] sm:$0xff] %vm90_vm4, %v13865_v57  ;;  %21869 = vmatprep.mubr.msk.f32.mxu1 %vm90_vm4, %v30411_v29  ;;  %v30457_v36 = vld [vmem:[#allocation3 + $0x150] sm:$0xff]  ;;  %v30545_v26 = vld [vmem:[#allocation3 + $0xa7] sm:$0xff] }
0x1039   :  { %v24185_v47 = vpop.eup %24184  ;;  %v13868_v56 = vmul.f32 %v24183_v4, %v32010_v44  ;;  %13898 = vst.msk [vmem:[#allocation3 + $0x1d0] sm:$0xff] %vm90_vm4, %v13866_v13  ;;  %v30461_v8 = vld [vmem:[#allocation3 + $0x168] sm:$0xff] }
0x103a   :  { %v24187_v61 = vpop.eup %24186  ;;  %v13869_v28 = vmul.f32 %v24185_v47, %v32011_v25  ;;  %13899 = vst.msk [vmem:[#allocation3 + $0x1e8] sm:$0xff] %vm90_vm4, %v13867_v49  ;;  %v30465_v10 = vld [vmem:[#allocation3 + $0x170] sm:$0xff]  ;;  %v30553_v43 = vld [vmem:[#allocation3 + $0xc7] sm:$0xff] }
0x103b   :  { %v13870_v46 = vmul.f32 %v24187_v61, %v30269_v31  ;;  %13900 = vst.msk [vmem:[#allocation3 + $0x1f0] sm:$0xff] %vm90_vm4, %v13868_v56  ;;  %21870 = vmatmul.mubr.msk.f32.gmra.mrb[52].mxu1 %vm90_vm4, %v30421_v2  ;;  %v30437_v31 = vld [vmem:[#allocation3 + $0x108] sm:$0xff] }
0x103c   :  { %13901 = vst.msk [vmem:[#allocation3 + $0x208] sm:$0xff] %vm90_vm4, %v13869_v28  ;;  %21872 = vmatprep.mubr.msk.f32.mxu1 %vm90_vm4, %v30427_v21  ;;  %v30469_v20 = vld [vmem:[#allocation3 + $0x188] sm:$0xff]  ;;  %v30473_v6 = vld [vmem:[#allocation3 + $0x190] sm:$0xff] }
0x103d   :  { %13902 = vst.msk [vmem:[#allocation3 + $0x210] sm:$0xff] %vm90_vm4, %v13870_v46  ;;  %32012 = vst [vmem:[#allocation51_spill] sm:$0xff] %v30473_v6  ;;  %v30477_v14 = vld [vmem:[#allocation3 + $0x1a8] sm:$0xff] }
0x103e   :  { %32013 = vst [vmem:[#allocation52_spill] sm:$0xff] %v30477_v14  ;;  %v30481_v5 = vld [vmem:[#allocation3 + $0x1b0] sm:$0xff]  ;;  %v30561_v34 = vld [vmem:[#allocation3 + $0xe7] sm:$0xff] }
0x103f   :  { %21873 = vmatmul.mubr.msk.f32.gmra.mrb[54].mxu1 %vm90_vm4, %v30433_v9  ;;  %32014 = vst [vmem:[#allocation53_spill] sm:$0xff] %v30481_v5  ;;  %v30485_v30 = vld [vmem:[#allocation3 + $0x1c8] sm:$0xff] }
0x1040   :  { %21875 = vmatprep.mubr.msk.f32.mxu1 %vm90_vm4, %v30437_v31  ;;  %32015 = vst [vmem:[#allocation54_spill] sm:$0xff] %v30485_v30  ;;  %v30489_v48 = vld [vmem:[#allocation3 + $0x1d0] sm:$0xff]  ;;  %v30569_v40 = vld [vmem:[#allocation3 + $0x107] sm:$0xff] }
0x1041   :  { %32016 = vst [vmem:[#allocation6_spill] sm:$0xff] %v30489_v48  ;;  %v30493_v7 = vld [vmem:[#allocation3 + $0x1e8] sm:$0xff] }
0x1042   :  { %32017 = vst [vmem:[#allocation17_spill] sm:$0xff] %v30493_v7  ;;  %v30497_v53 = vld [vmem:[#allocation3 + $0x1f0] sm:$0xff]  ;;  %v30577_v0 = vld [vmem:[#allocation3 + $0x127] sm:$0xff] }
0x1043   :  { %21876 = vmatmul.mubr.msk.f32.gmra.mrb[56].mxu1 %vm90_vm4, %v30441_v42  ;;  %32018 = vst [vmem:[#allocation18_spill] sm:$0xff] %v30497_v53  ;;  %v30517_v16 = vld [vmem:[#allocation3 + $0x2f] sm:$0xff]  ;;  %v30585_v4 = vld [vmem:[#allocation3 + $0x147] sm:$0xff] }
0x1044   :  { %21878 = vmatprep.mubr.msk.f32.mxu1 %vm90_vm4, %v30445_v15  ;;  %v30525_v3 = vld [vmem:[#allocation3 + $0x4f] sm:$0xff]  ;;  %v30593_v49 = vld [vmem:[#allocation3 + $0x167] sm:$0xff] }
0x1045   :  { %v30533_v52 = vld [vmem:[#allocation3 + $0x6f] sm:$0xff]  ;;  %v30601_v44 = vld [vmem:[#allocation3 + $0x187] sm:$0xff] }
0x1046   :  { %v30541_v38 = vld [vmem:[#allocation3 + $0x8f] sm:$0xff]  ;;  %v30609_v61 = vld [vmem:[#allocation3 + $0x1a7] sm:$0xff] }
0x1047   :  { %21879 = vmatmul.mubr.msk.f32.gmra.mrb[58].mxu1 %vm90_vm4, %v30449_v45  ;;  %v30549_v22 = vld [vmem:[#allocation3 + $0xaf] sm:$0xff]  ;;  %v30617_v28 = vld [vmem:[#allocation3 + $0x1c7] sm:$0xff] }
0x1048   :  { %21881 = vmatprep.mubr.msk.f32.mxu1 %vm90_vm4, %v30453_v60  ;;  %v30557_v55 = vld [vmem:[#allocation3 + $0xcf] sm:$0xff] }
0x1049   :  { %v30565_v12 = vld [vmem:[#allocation3 + $0xef] sm:$0xff] }
0x104a   :  { %v30573_v57 = vld [vmem:[#allocation3 + $0x10f] sm:$0xff] }
0x104b   :  { %21882 = vmatmul.mubr.msk.f32.gmra.mrb[60].mxu1 %vm90_vm4, %v30457_v36  ;;  %v30581_v13 = vld [vmem:[#allocation3 + $0x12f] sm:$0xff] }
0x104c   :  { %21884 = vmatprep.mubr.msk.f32.mxu1 %vm90_vm4, %v30461_v8  ;;  %v30589_v58 = vld [vmem:[#allocation3 + $0x14f] sm:$0xff] }
0x104d   :  { %v30597_v47 = vld [vmem:[#allocation3 + $0x16f] sm:$0xff] }
0x104e   :  { %v30605_v56 = vld [vmem:[#allocation3 + $0x18f] sm:$0xff] }
0x104f   :  { %21885 = vmatmul.mubr.msk.f32.gmra.mrb[62].mxu1 %vm90_vm4, %v30465_v10  ;;  %v30613_v25 = vld [vmem:[#allocation3 + $0x1af] sm:$0xff] }
0x1050   :  { %21887 = vmatprep.mubr.msk.f32.mxu1 %vm90_vm4, %v30469_v20  ;;  %v30621_v46 = vld [vmem:[#allocation3 + $0x1cf] sm:$0xff] }
0x1051   :  { %v14613_v51 = vld [vmem:[#allocation3 + $0x9] sm:$0xff] }
0x1052   :  { %v30629_v19 = vld [vmem:[#allocation3 + $0x1ef] sm:$0xff] }
0x1053   :  { %21888 = vmatmul.mubr.msk.f32.gmra.mrb[64].mxu1 %vm90_vm4, %v30473_v6 }
0x1054   :  { %21890 = vmatprep.mubr.msk.f32.mxu1 %vm90_vm4, %v30477_v14 }
0x1057   :  { %21891 = vmatmul.mubr.msk.f32.gmra.mrb[66].mxu1 %vm90_vm4, %v30481_v5 }
0x1058   :  { %21893 = vmatprep.mubr.msk.f32.mxu1 %vm90_vm4, %v30485_v30  ;;  %v30649_v30 = vld [vmem:[#allocation3 + $0x31] sm:$0xff] }
0x105b   :  { %21894 = vmatmul.mubr.msk.f32.gmra.mrb[68].mxu1 %vm90_vm4, %v30489_v48  ;;  %v30643_v48 = vld [vmem:[#allocation3 + $0x29] sm:$0xff] }
0x105c   :  { %21896 = vmatprep.mubr.msk.f32.mxu1 %vm90_vm4, %v30493_v7 }
0x105f   :  { %21897 = vmatmul.mubr.msk.f32.gmra.mrb[70].mxu1 %vm90_vm4, %v30497_v53  ;;  %v14614_v53 = vld [vmem:[#allocation3 + $0x11] sm:$0xff] }
0x1060   :  { %21903 = vmatprep.mubr.msk.f32.mxu1 %vm90_vm4, %v13903_v50  ;;  %v30625_v50 = vld [vmem:[#allocation3 + $0x1e7] sm:$0xff] }
0x1063   :  { %21904 = vmatmul.mubr.msk.f32.vlgmr.msra.gmra.mrb[40].mxu1 %vm90_vm4, %v13904_v37  ;;  %v18855_v37 = vld [vmem:[%s31487_s10 + $0x40] sm:$0xff] }
0x1064   :  { %22424 = vmatpush3.bf16.msra.mxu1 %v32019_v24  ;;  %21906 = vmatprep.mubr.msk.f32.mxu1 %vm90_vm4, %v30511_v62  ;;  %v18856_v24 = vld [vmem:[%s31487_s10 + $0x48] sm:$0xff] }
0x1065   :  { %22426 = vmatprep.subr.bf16.mxu1 %v30508_v39  ;;  %v30640_v7 = vpack.c.bf16 %v18856_v24, %v18855_v37  ;;  %v30665_v37 = vld [vmem:[#allocation3 + $0x71] sm:$0xff]  ;;  %v30669_v24 = vld [vmem:[#allocation3 + $0x89] sm:$0xff] }
0x1066   :  { %32023 = vst [vmem:[#allocation24_spill] sm:$0xff] %v30665_v37  ;;  %32024 = vst [vmem:[#allocation55_spill] sm:$0xff] %v30669_v24 }
0x1067   :  { %21907 = vmatmul.mubr.msk.f32.gmra.mrb[42].mxu1 %vm90_vm4, %v30517_v16 }
0x1068   :  { %21909 = vmatprep.mubr.msk.f32.mxu1 %vm90_vm4, %v30521_v1 }
0x106b   :  { %21910 = vmatmul.mubr.msk.f32.gmra.mrb[44].mxu1 %vm90_vm4, %v30525_v3 }
0x106c   :  { %21912 = vmatprep.mubr.msk.f32.mxu1 %vm90_vm4, %v30529_v11 }
0x106f   :  { %21913 = vmatmul.mubr.msk.f32.gmra.mrb[46].mxu1 %vm90_vm4, %v30533_v52 }
0x1070   :  { %21915 = vmatprep.mubr.msk.f32.mxu1 %vm90_vm4, %v30537_v18 }
0x1073   :  { %21916 = vmatmul.mubr.msk.f32.gmra.mrb[48].mxu1 %vm90_vm4, %v30541_v38 }
0x1074   :  { %21918 = vmatprep.mubr.msk.f32.mxu1 %vm90_vm4, %v30545_v26 }
0x1077   :  { %21919 = vmatmul.mubr.msk.f32.gmra.mrb[50].mxu1 %vm90_vm4, %v30549_v22 }
0x1078   :  { %21921 = vmatprep.mubr.msk.f32.mxu1 %vm90_vm4, %v30553_v43 }
0x107b   :  { %21922 = vmatmul.mubr.msk.f32.gmra.mrb[52].mxu1 %vm90_vm4, %v30557_v55 }
0x107c   :  { %21924 = vmatprep.mubr.msk.f32.mxu1 %vm90_vm4, %v30561_v34 }
0x107f   :  { %21925 = vmatmul.mubr.msk.f32.gmra.mrb[54].mxu1 %vm90_vm4, %v30565_v12 }
0x1080   :  { %21927 = vmatprep.mubr.msk.f32.mxu1 %vm90_vm4, %v30569_v40 }
0x1083   :  { %21928 = vmatmul.mubr.msk.f32.gmra.mrb[56].mxu1 %vm90_vm4, %v30573_v57 }
0x1084   :  { %21930 = vmatprep.mubr.msk.f32.mxu1 %vm90_vm4, %v30577_v0 }
0x1087   :  { %21931 = vmatmul.mubr.msk.f32.gmra.mrb[58].mxu1 %vm90_vm4, %v30581_v13 }
0x1088   :  { %21933 = vmatprep.mubr.msk.f32.mxu1 %vm90_vm4, %v30585_v4 }
0x108b   :  { %21934 = vmatmul.mubr.msk.f32.gmra.mrb[60].mxu1 %vm90_vm4, %v30589_v58 }
0x108c   :  { %21936 = vmatprep.mubr.msk.f32.mxu1 %vm90_vm4, %v30593_v49 }
0x108f   :  { %21937 = vmatmul.mubr.msk.f32.gmra.mrb[62].mxu1 %vm90_vm4, %v30597_v47 }
0x1090   :  { %21939 = vmatprep.mubr.msk.f32.mxu1 %vm90_vm4, %v30601_v44 }
0x1093   :  { %21940 = vmatmul.mubr.msk.f32.gmra.mrb[64].mxu1 %vm90_vm4, %v30605_v56 }
0x1094   :  { %21942 = vmatprep.mubr.msk.f32.mxu1 %vm90_vm4, %v30609_v61 }
0x1097   :  { %21943 = vmatmul.mubr.msk.f32.gmra.mrb[66].mxu1 %vm90_vm4, %v30613_v25 }
0x1098   :  { %21945 = vmatprep.mubr.msk.f32.mxu1 %vm90_vm4, %v30617_v28 }
0x109b   :  { %21946 = vmatmul.mubr.msk.f32.gmra.mrb[68].mxu1 %vm90_vm4, %v30621_v46 }
0x109c   :  { %21948 = vmatprep.mubr.msk.f32.mxu1 %vm90_vm4, %v30625_v50 }
0x109f   :  { %21949 = vmatmul.mubr.msk.f32.gmra.mrb[70].mxu1 %vm90_vm4, %v30629_v19 }
0x10a0   :  { %21955 = vmatprep.mubr.msk.f32.mxu1 %vm90_vm4, %v14613_v51  ;;  %v30653_v51 = vld [vmem:[#allocation3 + $0x49] sm:$0xff] }
0x10a1   :  { %32020 = vst [vmem:[#allocation19_spill] sm:$0xff] %v30653_v51 }
0x10a3   :  { %21956 = vmatmul.mubr.msk.f32.vlgmr.msra.gmra.mrb[40].mxu1 %vm90_vm4, %v14614_v53  ;;  %v30657_v53 = vld [vmem:[#allocation3 + $0x51] sm:$0xff] }
0x10a4   :  { %22428 = vmatpush3.bf16.msra.mxu1 %v30508_v39  ;;  %21958 = vmatprep.mubr.msk.f32.mxu1 %vm90_vm4, %v30643_v48  ;;  %32021 = vst [vmem:[#allocation20_spill] sm:$0xff] %v30657_v53  ;;  %v30661_v39 = vld [vmem:[#allocation3 + $0x69] sm:$0xff] }
0x10a5   :  { %22430 = vmatprep.subr.bf16.mxu1 %v30640_v7  ;;  %32022 = vst [vmem:[#allocation21_spill] sm:$0xff] %v30661_v39 }
0x10a7   :  { %21959 = vmatmul.mubr.msk.f32.gmra.mrb[42].mxu1 %vm90_vm4, %v30649_v30 }
0x10a8   :  { %21961 = vmatprep.mubr.msk.f32.mxu1 %vm90_vm4, %v30653_v51  ;;  %v30673_v51 = vld [vmem:[#allocation3 + $0x91] sm:$0xff] }
0x10a9   :  { %32025 = vst [vmem:[#allocation56_spill] sm:$0xff] %v30673_v51 }
0x10ab   :  { %21962 = vmatmul.mubr.msk.f32.gmra.mrb[44].mxu1 %vm90_vm4, %v30657_v53  ;;  %v30677_v53 = vld [vmem:[#allocation3 + $0xa9] sm:$0xff] }
0x10ac   :  { %21964 = vmatprep.mubr.msk.f32.mxu1 %vm90_vm4, %v30661_v39  ;;  %32026 = vst [vmem:[#allocation57_spill] sm:$0xff] %v30677_v53  ;;  %v30681_v39 = vld [vmem:[#allocation3 + $0xb1] sm:$0xff] }
0x10ad   :  { %32027 = vst [vmem:[#allocation58_spill] sm:$0xff] %v30681_v39 }
0x10af   :  { %21965 = vmatmul.mubr.msk.f32.gmra.mrb[46].mxu1 %vm90_vm4, %v30665_v37  ;;  %v30685_v37 = vld [vmem:[#allocation3 + $0xc9] sm:$0xff] }
0x10b0   :  { %21967 = vmatprep.mubr.msk.f32.mxu1 %vm90_vm4, %v30669_v24  ;;  %32028 = vst [vmem:[#allocation59_spill] sm:$0xff] %v30685_v37  ;;  %v30689_v24 = vld [vmem:[#allocation3 + $0xd1] sm:$0xff] }
0x10b1   :  { %32029 = vst [vmem:[#allocation60_spill] sm:$0xff] %v30689_v24 }
0x10b3   :  { %21968 = vmatmul.mubr.msk.f32.gmra.mrb[48].mxu1 %vm90_vm4, %v30673_v51  ;;  %v30693_v51 = vld [vmem:[#allocation3 + $0xe9] sm:$0xff] }
0x10b4   :  { %21970 = vmatprep.mubr.msk.f32.mxu1 %vm90_vm4, %v30677_v53  ;;  %32030 = vst [vmem:[#allocation26_spill] sm:$0xff] %v30693_v51  ;;  %v30697_v53 = vld [vmem:[#allocation3 + $0xf1] sm:$0xff] }
0x10b5   :  { %32031 = vst [vmem:[#allocation27_spill] sm:$0xff] %v30697_v53 }
0x10b7   :  { %21971 = vmatmul.mubr.msk.f32.gmra.mrb[50].mxu1 %vm90_vm4, %v30681_v39  ;;  %v30701_v39 = vld [vmem:[#allocation3 + $0x109] sm:$0xff] }
0x10b8   :  { %21973 = vmatprep.mubr.msk.f32.mxu1 %vm90_vm4, %v30685_v37  ;;  %32032 = vst [vmem:[#allocation28_spill] sm:$0xff] %v30701_v39  ;;  %v30705_v37 = vld [vmem:[#allocation3 + $0x111] sm:$0xff] }
0x10b9   :  { %32033 = vst [vmem:[#allocation30_spill] sm:$0xff] %v30705_v37 }
0x10bb   :  { %21974 = vmatmul.mubr.msk.f32.gmra.mrb[52].mxu1 %vm90_vm4, %v30689_v24  ;;  %v30709_v24 = vld [vmem:[#allocation3 + $0x129] sm:$0xff] }
0x10bc   :  { %21976 = vmatprep.mubr.msk.f32.mxu1 %vm90_vm4, %v30693_v51  ;;  %32034 = vst [vmem:[#allocation32_spill] sm:$0xff] %v30709_v24  ;;  %v30713_v51 = vld [vmem:[#allocation3 + $0x131] sm:$0xff] }
0x10bd   :  { %32035 = vst [vmem:[#allocation5_spill] sm:$0xff] %v30713_v51 }
0x10bf   :  { %21977 = vmatmul.mubr.msk.f32.gmra.mrb[54].mxu1 %vm90_vm4, %v30697_v53  ;;  %v30717_v53 = vld [vmem:[#allocation3 + $0x149] sm:$0xff] }
0x10c0   :  { %21979 = vmatprep.mubr.msk.f32.mxu1 %vm90_vm4, %v30701_v39  ;;  %32036 = vst [vmem:[#allocation29_spill] sm:$0xff] %v30717_v53  ;;  %v30721_v39 = vld [vmem:[#allocation3 + $0x151] sm:$0xff] }
0x10c1   :  { %32037 = vst [vmem:[#allocation31_spill] sm:$0xff] %v30721_v39 }
0x10c3   :  { %21980 = vmatmul.mubr.msk.f32.gmra.mrb[56].mxu1 %vm90_vm4, %v30705_v37  ;;  %v30725_v37 = vld [vmem:[#allocation3 + $0x169] sm:$0xff] }
0x10c4   :  { %21982 = vmatprep.mubr.msk.f32.mxu1 %vm90_vm4, %v30709_v24  ;;  %32038 = vst [vmem:[#allocation33_spill] sm:$0xff] %v30725_v37  ;;  %v30729_v24 = vld [vmem:[#allocation3 + $0x171] sm:$0xff] }
0x10c5   :  { %32039 = vst [vmem:[#allocation8_spill] sm:$0xff] %v30729_v24 }
0x10c7   :  { %21983 = vmatmul.mubr.msk.f32.gmra.mrb[58].mxu1 %vm90_vm4, %v30713_v51  ;;  %v30733_v51 = vld [vmem:[#allocation3 + $0x189] sm:$0xff] }
0x10c8   :  { %21985 = vmatprep.mubr.msk.f32.mxu1 %vm90_vm4, %v30717_v53  ;;  %32040 = vst [vmem:[#allocation9_spill] sm:$0xff] %v30733_v51  ;;  %v30737_v53 = vld [vmem:[#allocation3 + $0x191] sm:$0xff] }
0x10c9   :  { %32041 = vst [vmem:[#allocation10_spill] sm:$0xff] %v30737_v53 }
0x10cb   :  { %21986 = vmatmul.mubr.msk.f32.gmra.mrb[60].mxu1 %vm90_vm4, %v30721_v39  ;;  %v30741_v39 = vld [vmem:[#allocation3 + $0x1a9] sm:$0xff] }
0x10cc   :  { %21988 = vmatprep.mubr.msk.f32.mxu1 %vm90_vm4, %v30725_v37  ;;  %32042 = vst [vmem:[#allocation11_spill] sm:$0xff] %v30741_v39  ;;  %v30745_v37 = vld [vmem:[#allocation3 + $0x1b1] sm:$0xff] }
0x10cd   :  { %32043 = vst [vmem:[#allocation34_spill] sm:$0xff] %v30745_v37 }
0x10cf   :  { %21989 = vmatmul.mubr.msk.f32.gmra.mrb[62].mxu1 %vm90_vm4, %v30729_v24  ;;  %v30749_v24 = vld [vmem:[#allocation3 + $0x1c9] sm:$0xff] }
0x10d0   :  { %21991 = vmatprep.mubr.msk.f32.mxu1 %vm90_vm4, %v30733_v51  ;;  %32044 = vst [vmem:[#allocation35_spill] sm:$0xff] %v30749_v24  ;;  %v30753_v51 = vld [vmem:[#allocation3 + $0x1d1] sm:$0xff] }
0x10d1   :  { %32045 = vst [vmem:[#allocation36_spill] sm:$0xff] %v30753_v51 }
0x10d3   :  { %21992 = vmatmul.mubr.msk.f32.gmra.mrb[64].mxu1 %vm90_vm4, %v30737_v53  ;;  %v30757_v53 = vld [vmem:[#allocation3 + $0x1e9] sm:$0xff] }
0x10d4   :  { %21994 = vmatprep.mubr.msk.f32.mxu1 %vm90_vm4, %v30741_v39  ;;  %v30761_v39 = vld [vmem:[#allocation3 + $0x1f1] sm:$0xff] }
0x10d5   :  { %32046 = vst [vmem:[#allocation37_spill] sm:$0xff] %v30761_v39 }
0x10d7   :  { %21995 = vmatmul.mubr.msk.f32.gmra.mrb[66].mxu1 %vm90_vm4, %v30745_v37  ;;  %v18889_v37 = vld [vmem:[%s31487_s10 + $0x50] sm:$0xff] }
0x10d8   :  { %21997 = vmatprep.mubr.msk.f32.mxu1 %vm90_vm4, %v30749_v24  ;;  %v18890_v24 = vld [vmem:[%s31487_s10 + $0x58] sm:$0xff] }
0x10db   :  { %21998 = vmatmul.mubr.msk.f32.gmra.mrb[68].mxu1 %vm90_vm4, %v30753_v51  ;;  %v22433_v51 = vpack.c.bf16 %v18890_v24, %v18889_v37  ;;  %v18924_v37 = vld [vmem:[%s31487_s10 + $0x68] sm:$0xff] }
0x10dc   :  { %22000 = vmatprep.mubr.msk.f32.mxu1 %vm90_vm4, %v30757_v53 }
0x10df   :  { %22001 = vmatmul.mubr.msk.f32.gmra.mrb[70].mxu1 %vm90_vm4, %v30761_v39 }
0x10e0   :  { %22007 = vmatprep.mubr.msk.f32.mxu1 %vm90_vm4, %v30511_v62  ;;  %v30836_v62 = vld [vmem:[#allocation3 + $0x20f] sm:$0xff] }
0x10e3   :  { %22008 = vmatmul.mubr.msk.f32.vlgmr.msra.gmra.mrb[40].mxu1 %vm90_vm4, %v30517_v16  ;;  %v18923_v16 = vld [vmem:[%s31487_s10 + $0x60] sm:$0xff] }
0x10e4   :  { %22432 = vmatpush3.bf16.msra.mxu1 %v30640_v7  ;;  %22010 = vmatprep.mubr.msk.f32.mxu1 %vm90_vm4, %v30521_v1  ;;  %v30832_v7 = vld [vmem:[#allocation3 + $0x207] sm:$0xff]  ;;  %v22437_v24 = vpack.c.bf16 %v18924_v37, %v18923_v16  ;;  %v32050_v16 = vld [vmem:[#allocation18_spill] sm:$0xff] }
0x10e5   :  { %22434 = vmatprep.subr.bf16.mxu1 %v22433_v51  ;;  %v30906_v37 = vld [vmem:[#allocation3 + $0x208] sm:$0xff] }
0x10e6   :  { %32051 = vst [vmem:[#allocation38_spill] sm:$0xff] %v30906_v37 }
0x10e7   :  { %22011 = vmatmul.mubr.msk.f32.gmra.mrb[42].mxu1 %vm90_vm4, %v30525_v3 }
0x10e8   :  { %22013 = vmatprep.mubr.msk.f32.mxu1 %vm90_vm4, %v30529_v11 }
0x10eb   :  { %22014 = vmatmul.mubr.msk.f32.gmra.mrb[44].mxu1 %vm90_vm4, %v30533_v52 }
0x10ec   :  { %22016 = vmatprep.mubr.msk.f32.mxu1 %vm90_vm4, %v30537_v18 }
0x10ef   :  { %22017 = vmatmul.mubr.msk.f32.gmra.mrb[46].mxu1 %vm90_vm4, %v30541_v38 }
0x10f0   :  { %22019 = vmatprep.mubr.msk.f32.mxu1 %vm90_vm4, %v30545_v26 }
0x10f3   :  { %22020 = vmatmul.mubr.msk.f32.gmra.mrb[48].mxu1 %vm90_vm4, %v30549_v22 }
0x10f4   :  { %22022 = vmatprep.mubr.msk.f32.mxu1 %vm90_vm4, %v30553_v43 }
0x10f7   :  { %22023 = vmatmul.mubr.msk.f32.gmra.mrb[50].mxu1 %vm90_vm4, %v30557_v55 }
0x10f8   :  { %22025 = vmatprep.mubr.msk.f32.mxu1 %vm90_vm4, %v30561_v34 }
0x10fb   :  { %22026 = vmatmul.mubr.msk.f32.gmra.mrb[52].mxu1 %vm90_vm4, %v30565_v12 }
0x10fc   :  { %22028 = vmatprep.mubr.msk.f32.mxu1 %vm90_vm4, %v30569_v40 }
0x10ff   :  { %22029 = vmatmul.mubr.msk.f32.gmra.mrb[54].mxu1 %vm90_vm4, %v30573_v57 }
0x1100   :  { %22031 = vmatprep.mubr.msk.f32.mxu1 %vm90_vm4, %v30577_v0 }
0x1103   :  { %22032 = vmatmul.mubr.msk.f32.gmra.mrb[56].mxu1 %vm90_vm4, %v30581_v13 }
0x1104   :  { %22034 = vmatprep.mubr.msk.f32.mxu1 %vm90_vm4, %v30585_v4 }
0x1107   :  { %22035 = vmatmul.mubr.msk.f32.gmra.mrb[58].mxu1 %vm90_vm4, %v30589_v58 }
0x1108   :  { %22037 = vmatprep.mubr.msk.f32.mxu1 %vm90_vm4, %v30593_v49 }
0x110b   :  { %22038 = vmatmul.mubr.msk.f32.gmra.mrb[60].mxu1 %vm90_vm4, %v30597_v47 }
0x110c   :  { %22040 = vmatprep.mubr.msk.f32.mxu1 %vm90_vm4, %v30601_v44 }
0x110f   :  { %22041 = vmatmul.mubr.msk.f32.gmra.mrb[62].mxu1 %vm90_vm4, %v30605_v56 }
0x1110   :  { %22043 = vmatprep.mubr.msk.f32.mxu1 %vm90_vm4, %v30609_v61 }
0x1113   :  { %22044 = vmatmul.mubr.msk.f32.gmra.mrb[64].mxu1 %vm90_vm4, %v30613_v25 }
0x1114   :  { %22046 = vmatprep.mubr.msk.f32.mxu1 %vm90_vm4, %v30617_v28 }
0x1117   :  { %22047 = vmatmul.mubr.msk.f32.gmra.mrb[66].mxu1 %vm90_vm4, %v30621_v46 }
0x1118   :  { %22049 = vmatprep.mubr.msk.f32.mxu1 %vm90_vm4, %v30625_v50 }
0x111b   :  { %22050 = vmatmul.mubr.msk.f32.gmra.mrb[68].mxu1 %vm90_vm4, %v30629_v19 }
0x111c   :  { %22052 = vmatprep.mubr.msk.f32.mxu1 %vm90_vm4, %v30832_v7 }
0x111f   :  { %22053 = vmatmul.mubr.msk.f32.gmra.mrb[70].mxu1 %vm90_vm4, %v30836_v62 }
0x1120   :  { %22059 = vmatprep.mubr.msk.f32.mxu1 %vm90_vm4, %v30328_v23  ;;  %v32047_v23 = vld [vmem:[#allocation54_spill] sm:$0xff] }
0x1123   :  { %22060 = vmatmul.mubr.msk.f32.vlgmr.msra.gmra.mrb[40].mxu1 %vm90_vm4, %v30335_v17  ;;  %v32048_v17 = vld [vmem:[#allocation6_spill] sm:$0xff] }
0x1124   :  { %22436 = vmatpush3.bf16.msra.mxu1 %v22433_v51  ;;  %22062 = vmatprep.mubr.msk.f32.mxu1 %vm90_vm4, %v30342_v41  ;;  %v32049_v51 = vld [vmem:[#allocation17_spill] sm:$0xff] }
0x1125   :  { %22438 = vmatprep.subr.bf16.mxu1 %v22437_v24 }
0x1127   :  { %22063 = vmatmul.mubr.msk.f32.gmra.mrb[42].mxu1 %vm90_vm4, %v30355_v33 }
0x1128   :  { %22065 = vmatprep.mubr.msk.f32.mxu1 %vm90_vm4, %v30362_v54 }
0x112b   :  { %22066 = vmatmul.mubr.msk.f32.gmra.mrb[44].mxu1 %vm90_vm4, %v30373_v32 }
0x112c   :  { %22068 = vmatprep.mubr.msk.f32.mxu1 %vm90_vm4, %v30379_v27 }
0x112f   :  { %22069 = vmatmul.mubr.msk.f32.gmra.mrb[46].mxu1 %vm90_vm4, %v30389_v59 }
0x1130   :  { %22071 = vmatprep.mubr.msk.f32.mxu1 %vm90_vm4, %v30395_v35 }
0x1133   :  { %22072 = vmatmul.mubr.msk.f32.gmra.mrb[48].mxu1 %vm90_vm4, %v30405_v63 }
0x1134   :  { %22074 = vmatprep.mubr.msk.f32.mxu1 %vm90_vm4, %v30411_v29 }
0x1137   :  { %22075 = vmatmul.mubr.msk.f32.gmra.mrb[50].mxu1 %vm90_vm4, %v30421_v2 }
0x1138   :  { %22077 = vmatprep.mubr.msk.f32.mxu1 %vm90_vm4, %v30427_v21 }
0x113b   :  { %22078 = vmatmul.mubr.msk.f32.gmra.mrb[52].mxu1 %vm90_vm4, %v30433_v9 }
0x113c   :  { %22080 = vmatprep.mubr.msk.f32.mxu1 %vm90_vm4, %v30437_v31 }
0x113f   :  { %22081 = vmatmul.mubr.msk.f32.gmra.mrb[54].mxu1 %vm90_vm4, %v30441_v42 }
0x1140   :  { %22083 = vmatprep.mubr.msk.f32.mxu1 %vm90_vm4, %v30445_v15 }
0x1143   :  { %22084 = vmatmul.mubr.msk.f32.gmra.mrb[56].mxu1 %vm90_vm4, %v30449_v45 }
0x1144   :  { %22086 = vmatprep.mubr.msk.f32.mxu1 %vm90_vm4, %v30453_v60 }
0x1147   :  { %22087 = vmatmul.mubr.msk.f32.gmra.mrb[58].mxu1 %vm90_vm4, %v30457_v36 }
0x1148   :  { %22089 = vmatprep.mubr.msk.f32.mxu1 %vm90_vm4, %v30461_v8 }
0x114b   :  { %22090 = vmatmul.mubr.msk.f32.gmra.mrb[60].mxu1 %vm90_vm4, %v30465_v10 }
0x114c   :  { %22092 = vmatprep.mubr.msk.f32.mxu1 %vm90_vm4, %v30469_v20 }
0x114f   :  { %22093 = vmatmul.mubr.msk.f32.gmra.mrb[62].mxu1 %vm90_vm4, %v30473_v6  ;;  %v32056_v6 = vld [vmem:[#allocation24_spill] sm:$0xff] }
0x1150   :  { %22095 = vmatprep.mubr.msk.f32.mxu1 %vm90_vm4, %v30477_v14  ;;  %v30910_v14 = vld [vmem:[#allocation3 + $0x210] sm:$0xff] }
0x1151   :  { %32052 = vst [vmem:[#allocation41_spill] sm:$0xff] %v30910_v14 }
0x1153   :  { %22096 = vmatmul.mubr.msk.f32.gmra.mrb[64].mxu1 %vm90_vm4, %v30481_v5  ;;  %v32055_v5 = vld [vmem:[#allocation21_spill] sm:$0xff] }
0x1154   :  { %22098 = vmatprep.mubr.msk.f32.mxu1 %vm90_vm4, %v32047_v23  ;;  %v18957_v23 = vld [vmem:[%s31487_s10 + $0x70] sm:$0xff] }
0x1157   :  { %22099 = vmatmul.mubr.msk.f32.gmra.mrb[66].mxu1 %vm90_vm4, %v32048_v17  ;;  %v18958_v17 = vld [vmem:[%s31487_s10 + $0x78] sm:$0xff] }
0x1158   :  { %22101 = vmatprep.mubr.msk.f32.mxu1 %vm90_vm4, %v32049_v51  ;;  %v32054_v51 = vld [vmem:[#allocation20_spill] sm:$0xff] }
0x115b   :  { %22102 = vmatmul.mubr.msk.f32.gmra.mrb[68].mxu1 %vm90_vm4, %v32050_v16  ;;  %v22441_v16 = vpack.c.bf16 %v18958_v17, %v18957_v23  ;;  %v32061_v23 = vld [vmem:[#allocation59_spill] sm:$0xff]  ;;  %v32062_v17 = vld [vmem:[#allocation60_spill] sm:$0xff] }
0x115c   :  { %22104 = vmatprep.mubr.msk.f32.mxu1 %vm90_vm4, %v30906_v37  ;;  %v32053_v37 = vld [vmem:[#allocation19_spill] sm:$0xff] }
0x115f   :  { %22105 = vmatmul.mubr.msk.f32.gmra.mrb[70].mxu1 %vm90_vm4, %v30910_v14  ;;  %v32057_v14 = vld [vmem:[#allocation55_spill] sm:$0xff] }
0x1160   :  { %22111 = vmatprep.mubr.msk.f32.mxu1 %vm90_vm4, %v30643_v48  ;;  %v32058_v48 = vld [vmem:[#allocation56_spill] sm:$0xff] }
0x1163   :  { %22112 = vmatmul.mubr.msk.f32.vlgmr.msra.gmra.mrb[40].mxu1 %vm90_vm4, %v30649_v30  ;;  %v32059_v30 = vld [vmem:[#allocation57_spill] sm:$0xff] }
0x1164   :  { %22440 = vmatpush3.bf16.msra.mxu1 %v22437_v24  ;;  %22114 = vmatprep.mubr.msk.f32.mxu1 %vm90_vm4, %v32053_v37  ;;  %v32060_v24 = vld [vmem:[#allocation58_spill] sm:$0xff] }
0x1165   :  { %22442 = vmatprep.subr.bf16.mxu1 %v22441_v16 }
0x1167   :  { %22115 = vmatmul.mubr.msk.f32.gmra.mrb[42].mxu1 %vm90_vm4, %v32054_v51 }
0x1168   :  { %22117 = vmatprep.mubr.msk.f32.mxu1 %vm90_vm4, %v32055_v5  ;;  %v32063_v5 = vld [vmem:[#allocation26_spill] sm:$0xff] }
0x116b   :  { %22118 = vmatmul.mubr.msk.f32.gmra.mrb[44].mxu1 %vm90_vm4, %v32056_v6  ;;  %v32064_v6 = vld [vmem:[#allocation27_spill] sm:$0xff] }
0x116c   :  { %22120 = vmatprep.mubr.msk.f32.mxu1 %vm90_vm4, %v32057_v14  ;;  %v32065_v14 = vld [vmem:[#allocation28_spill] sm:$0xff] }
0x116f   :  { %22121 = vmatmul.mubr.msk.f32.gmra.mrb[46].mxu1 %vm90_vm4, %v32058_v48  ;;  %v32066_v48 = vld [vmem:[#allocation30_spill] sm:$0xff] }
0x1170   :  { %22123 = vmatprep.mubr.msk.f32.mxu1 %vm90_vm4, %v32059_v30  ;;  %v32067_v30 = vld [vmem:[#allocation32_spill] sm:$0xff] }
0x1173   :  { %22124 = vmatmul.mubr.msk.f32.gmra.mrb[48].mxu1 %vm90_vm4, %v32060_v24  ;;  %v32068_v24 = vld [vmem:[#allocation5_spill] sm:$0xff] }
0x1174   :  { %22126 = vmatprep.mubr.msk.f32.mxu1 %vm90_vm4, %v32061_v23  ;;  %v32069_v23 = vld [vmem:[#allocation29_spill] sm:$0xff] }
0x1177   :  { %22127 = vmatmul.mubr.msk.f32.gmra.mrb[50].mxu1 %vm90_vm4, %v32062_v17  ;;  %v32070_v17 = vld [vmem:[#allocation31_spill] sm:$0xff] }
0x1178   :  { %22129 = vmatprep.mubr.msk.f32.mxu1 %vm90_vm4, %v32063_v5  ;;  %v32071_v5 = vld [vmem:[#allocation33_spill] sm:$0xff] }
0x117b   :  { %22130 = vmatmul.mubr.msk.f32.gmra.mrb[52].mxu1 %vm90_vm4, %v32064_v6  ;;  %v32072_v6 = vld [vmem:[#allocation8_spill] sm:$0xff] }
0x117c   :  { %22132 = vmatprep.mubr.msk.f32.mxu1 %vm90_vm4, %v32065_v14  ;;  %v32073_v14 = vld [vmem:[#allocation9_spill] sm:$0xff] }
0x117f   :  { %22133 = vmatmul.mubr.msk.f32.gmra.mrb[54].mxu1 %vm90_vm4, %v32066_v48  ;;  %v32074_v48 = vld [vmem:[#allocation10_spill] sm:$0xff] }
0x1180   :  { %22135 = vmatprep.mubr.msk.f32.mxu1 %vm90_vm4, %v32067_v30  ;;  %v32075_v30 = vld [vmem:[#allocation11_spill] sm:$0xff] }
0x1183   :  { %22136 = vmatmul.mubr.msk.f32.gmra.mrb[56].mxu1 %vm90_vm4, %v32068_v24  ;;  %v32076_v24 = vld [vmem:[#allocation34_spill] sm:$0xff] }
0x1184   :  { %22138 = vmatprep.mubr.msk.f32.mxu1 %vm90_vm4, %v32069_v23  ;;  %v32077_v23 = vld [vmem:[#allocation35_spill] sm:$0xff] }
0x1187   :  { %22139 = vmatmul.mubr.msk.f32.gmra.mrb[58].mxu1 %vm90_vm4, %v32070_v17  ;;  %v32078_v17 = vld [vmem:[#allocation36_spill] sm:$0xff] }
0x1188   :  { %22141 = vmatprep.mubr.msk.f32.mxu1 %vm90_vm4, %v32071_v5 }
0x118b   :  { %22142 = vmatmul.mubr.msk.f32.gmra.mrb[60].mxu1 %vm90_vm4, %v32072_v6 }
0x118c   :  { %22144 = vmatprep.mubr.msk.f32.mxu1 %vm90_vm4, %v32073_v14  ;;  %v30980_v14 = vld [vmem:[#allocation3 + $0x209] sm:$0xff] }
0x118f   :  { %22145 = vmatmul.mubr.msk.f32.gmra.mrb[62].mxu1 %vm90_vm4, %v32074_v48 }
0x1190   :  { %22147 = vmatprep.mubr.msk.f32.mxu1 %vm90_vm4, %v32075_v30  ;;  %v30984_v30 = vld [vmem:[#allocation3 + $0x211] sm:$0xff] }
0x1193   :  { %22148 = vmatmul.mubr.msk.f32.gmra.mrb[64].mxu1 %vm90_vm4, %v32076_v24 }
0x1194   :  { %22150 = vmatprep.mubr.msk.f32.mxu1 %vm90_vm4, %v32077_v23  ;;  %v18991_v23 = vld [vmem:[%s31487_s10 + $0x80] sm:$0xff] }
0x1197   :  { %22151 = vmatmul.mubr.msk.f32.gmra.mrb[66].mxu1 %vm90_vm4, %v32078_v17  ;;  %v18992_v17 = vld [vmem:[%s31487_s10 + $0x88] sm:$0xff] }
0x1198   :  { %22153 = vmatprep.mubr.msk.f32.mxu1 %vm90_vm4, %v30757_v53 }
0x119b   :  { %22154 = vmatmul.mubr.msk.f32.gmra.mrb[68].mxu1 %vm90_vm4, %v30761_v39  ;;  %v22445_v39 = vpack.c.bf16 %v18992_v17, %v18991_v23  ;;  %v24280_v23 = vld [vmem:[%s31480_s0 + $0x1c8] sm:$0xff]  ;;  %v24281_v17 = vld [vmem:[%s31480_s0 + $0x1d0] sm:$0xff] }
0x119c   :  { %22156 = vmatprep.mubr.msk.f32.mxu1 %vm90_vm4, %v30980_v14 }
0x119f   :  { %22157 = vmatmul.mubr.msk.f32.gmra.mrb[70].mxu1 %vm90_vm4, %v30984_v30 }
0x11a0   :  { %22163 = vmatprep.mubr.msk.f32.mxu1 %vm90_vm4, %v30521_v1  ;;  %v16191_v1 = vld [vmem:[#allocation3 + $0x227] sm:$0xff] }
0x11a3   :  { %22164 = vmatmul.mubr.msk.f32.vlgmr.msra.gmra.mrb[40].mxu1 %vm90_vm4, %v30525_v3  ;;  %v16192_v3 = vld [vmem:[#allocation3 + $0x22f] sm:$0xff] }
0x11a4   :  { %22444 = vmatpush3.bf16.msra.mxu1 %v22441_v16  ;;  %22166 = vmatprep.mubr.msk.f32.mxu1 %vm90_vm4, %v30529_v11  ;;  %v24254_v11 = vld [vmem:[%s31490_s12] sm:$0xff] }
0x11a5   :  { %22446 = vmatprep.subr.bf16.mxu1 %v22445_v39  ;;  %v24275_v16 = vld [vmem:[%s31480_s0 + $0x1a0] sm:$0xff] }
0x11a7   :  { %22167 = vmatmul.mubr.msk.f32.gmra.mrb[42].mxu1 %vm90_vm4, %v30533_v52  ;;  %v32098_v52 = vld [vmem:[#allocation28_spill] sm:$0xff] }
0x11a8   :  { %22169 = vmatprep.mubr.msk.f32.mxu1 %vm90_vm4, %v30537_v18  ;;  %v32099_v18 = vld [vmem:[#allocation30_spill] sm:$0xff] }
0x11ab   :  { %22170 = vmatmul.mubr.msk.f32.gmra.mrb[44].mxu1 %vm90_vm4, %v30541_v38  ;;  %v32100_v38 = vld [vmem:[#allocation32_spill] sm:$0xff] }
0x11ac   :  { %22172 = vmatprep.mubr.msk.f32.mxu1 %vm90_vm4, %v30545_v26  ;;  %v32101_v26 = vld [vmem:[#allocation5_spill] sm:$0xff] }
0x11af   :  { %22173 = vmatmul.mubr.msk.f32.gmra.mrb[46].mxu1 %vm90_vm4, %v30549_v22  ;;  %v32102_v22 = vld [vmem:[#allocation29_spill] sm:$0xff] }
0x11b0   :  { %22175 = vmatprep.mubr.msk.f32.mxu1 %vm90_vm4, %v30553_v43  ;;  %v32103_v43 = vld [vmem:[#allocation31_spill] sm:$0xff] }
0x11b3   :  { %22176 = vmatmul.mubr.msk.f32.gmra.mrb[48].mxu1 %vm90_vm4, %v30557_v55  ;;  %v32104_v55 = vld [vmem:[#allocation9_spill] sm:$0xff] }
0x11b4   :  { %22178 = vmatprep.mubr.msk.f32.mxu1 %vm90_vm4, %v30561_v34  ;;  %v32105_v34 = vld [vmem:[#allocation11_spill] sm:$0xff] }
0x11b7   :  { %22179 = vmatmul.mubr.msk.f32.gmra.mrb[50].mxu1 %vm90_vm4, %v30565_v12  ;;  %v32106_v12 = vld [vmem:[#allocation35_spill] sm:$0xff] }
0x11b8   :  { %22181 = vmatprep.mubr.msk.f32.mxu1 %vm90_vm4, %v30569_v40  ;;  %v32107_v40 = vld [vmem:[#allocation36_spill] sm:$0xff] }
0x11bb   :  { %22182 = vmatmul.mubr.msk.f32.gmra.mrb[52].mxu1 %vm90_vm4, %v30573_v57  ;;  %v16966_v57 = vld [vmem:[#allocation3 + $0x231] sm:$0xff] }
0x11bc   :  { %22184 = vmatprep.mubr.msk.f32.mxu1 %vm90_vm4, %v30577_v0  ;;  %v24255_v0 = vld [vmem:[%s31480_s0 + $0x100] sm:$0xff] }
0x11bf   :  { %22185 = vmatmul.mubr.msk.f32.gmra.mrb[54].mxu1 %vm90_vm4, %v30581_v13  ;;  %v24256_v13 = vld [vmem:[%s31480_s0 + $0x108] sm:$0xff] }
0x11c0   :  { %22187 = vmatprep.mubr.msk.f32.mxu1 %vm90_vm4, %v30585_v4  ;;  %v24258_v4 = vld [vmem:[%s31480_s0 + $0x118] sm:$0xff] }
0x11c3   :  { %22188 = vmatmul.mubr.msk.f32.gmra.mrb[56].mxu1 %vm90_vm4, %v30589_v58  ;;  %v24259_v58 = vld [vmem:[%s31480_s0 + $0x120] sm:$0xff] }
0x11c4   :  { %22190 = vmatprep.mubr.msk.f32.mxu1 %vm90_vm4, %v30593_v49  ;;  %v24260_v49 = vld [vmem:[%s31480_s0 + $0x128] sm:$0xff] }
0x11c7   :  { %22191 = vmatmul.mubr.msk.f32.gmra.mrb[58].mxu1 %vm90_vm4, %v30597_v47  ;;  %v24261_v47 = vld [vmem:[%s31480_s0 + $0x130] sm:$0xff] }
0x11c8   :  { %22193 = vmatprep.mubr.msk.f32.mxu1 %vm90_vm4, %v30601_v44  ;;  %v24262_v44 = vld [vmem:[%s31480_s0 + $0x138] sm:$0xff] }
0x11cb   :  { %22194 = vmatmul.mubr.msk.f32.gmra.mrb[60].mxu1 %vm90_vm4, %v30605_v56  ;;  %v24263_v56 = vld [vmem:[%s31480_s0 + $0x140] sm:$0xff] }
0x11cc   :  { %22196 = vmatprep.mubr.msk.f32.mxu1 %vm90_vm4, %v30609_v61  ;;  %v24264_v61 = vld [vmem:[%s31480_s0 + $0x148] sm:$0xff] }
0x11cf   :  { %22197 = vmatmul.mubr.msk.f32.gmra.mrb[62].mxu1 %vm90_vm4, %v30613_v25  ;;  %v24265_v25 = vld [vmem:[%s31480_s0 + $0x150] sm:$0xff] }
0x11d0   :  { %22199 = vmatprep.mubr.msk.f32.mxu1 %vm90_vm4, %v30617_v28  ;;  %v24266_v28 = vld [vmem:[%s31480_s0 + $0x158] sm:$0xff] }
0x11d3   :  { %22200 = vmatmul.mubr.msk.f32.gmra.mrb[64].mxu1 %vm90_vm4, %v30621_v46  ;;  %v24267_v46 = vld [vmem:[%s31480_s0 + $0x160] sm:$0xff] }
0x11d4   :  { %22202 = vmatprep.mubr.msk.f32.mxu1 %vm90_vm4, %v30625_v50  ;;  %v24268_v50 = vld [vmem:[%s31480_s0 + $0x168] sm:$0xff] }
0x11d7   :  { %22203 = vmatmul.mubr.msk.f32.gmra.mrb[66].mxu1 %vm90_vm4, %v30629_v19  ;;  %v24269_v19 = vld [vmem:[%s31480_s0 + $0x170] sm:$0xff] }
0x11d8   :  { %22205 = vmatprep.mubr.msk.f32.mxu1 %vm90_vm4, %v30832_v7  ;;  %v24272_v7 = vld [vmem:[%s31480_s0 + $0x188] sm:$0xff] }
0x11db   :  { %22206 = vmatmul.mubr.msk.f32.gmra.mrb[68].mxu1 %vm90_vm4, %v30836_v62  ;;  %v24273_v62 = vld [vmem:[%s31480_s0 + $0x190] sm:$0xff] }
0x11dc   :  { %22208 = vmatprep.mubr.msk.f32.mxu1 %vm90_vm4, %v16191_v1  ;;  %v24282_v1 = vld [vmem:[%s31480_s0 + $0x1d8] sm:$0xff] }
0x11df   :  { %22209 = vmatmul.mubr.msk.f32.gmra.mrb[70].mxu1 %vm90_vm4, %v16192_v3  ;;  %v24283_v3 = vld [vmem:[%s31480_s0 + $0x1e0] sm:$0xff] }
0x11e0   :  { %22215 = vmatprep.mubr.msk.f32.mxu1 %vm90_vm4, %v30342_v41  ;;  %v32079_v41 = vld [vmem:[#allocation51_spill] sm:$0xff] }
0x11e3   :  { %22216 = vmatmul.mubr.msk.f32.vlgmr.msra.gmra.mrb[40].mxu1 %vm90_vm4, %v30355_v33  ;;  %v32080_v33 = vld [vmem:[#allocation52_spill] sm:$0xff] }
0x11e4   :  { %22448 = vmatpush3.bf16.msra.mxu1 %v22445_v39  ;;  %22218 = vmatprep.mubr.msk.f32.mxu1 %vm90_vm4, %v30362_v54  ;;  %v32081_v54 = vld [vmem:[#allocation53_spill] sm:$0xff]  ;;  %v24271_v39 = vld [vmem:[%s31480_s0 + $0x180] sm:$0xff] }
0x11e5   :  { %22315 = vmatprep.subr.mxu1 %v24254_v11 }
0x11e7   :  { %22219 = vmatmul.mubr.msk.f32.gmra.mrb[42].mxu1 %vm90_vm4, %v30373_v32  ;;  %v32082_v32 = vld [vmem:[#allocation54_spill] sm:$0xff] }
0x11e8   :  { %22221 = vmatprep.mubr.msk.f32.mxu1 %vm90_vm4, %v30379_v27  ;;  %v32083_v27 = vld [vmem:[#allocation6_spill] sm:$0xff] }
0x11eb   :  { %22222 = vmatmul.mubr.msk.f32.gmra.mrb[44].mxu1 %vm90_vm4, %v30389_v59  ;;  %v32084_v59 = vld [vmem:[#allocation17_spill] sm:$0xff] }
0x11ec   :  { %22224 = vmatprep.mubr.msk.f32.mxu1 %vm90_vm4, %v30395_v35  ;;  %v32085_v35 = vld [vmem:[#allocation18_spill] sm:$0xff] }
0x11ef   :  { %22225 = vmatmul.mubr.msk.f32.gmra.mrb[46].mxu1 %vm90_vm4, %v30405_v63  ;;  %v32086_v63 = vld [vmem:[#allocation38_spill] sm:$0xff] }
0x11f0   :  { %22227 = vmatprep.mubr.msk.f32.mxu1 %vm90_vm4, %v30411_v29  ;;  %v16578_v29 = vld [vmem:[#allocation3 + $0x228] sm:$0xff] }
0x11f3   :  { %22228 = vmatmul.mubr.msk.f32.gmra.mrb[48].mxu1 %vm90_vm4, %v30421_v2  ;;  %v32087_v2 = vld [vmem:[#allocation41_spill] sm:$0xff] }
0x11f4   :  { %22230 = vmatprep.mubr.msk.f32.mxu1 %vm90_vm4, %v30427_v21  ;;  %v16579_v21 = vld [vmem:[#allocation3 + $0x230] sm:$0xff] }
0x11f7   :  { %22231 = vmatmul.mubr.msk.f32.gmra.mrb[50].mxu1 %vm90_vm4, %v30433_v9  ;;  %v32088_v9 = vld [vmem:[#allocation21_spill] sm:$0xff] }
0x11f8   :  { %22233 = vmatprep.mubr.msk.f32.mxu1 %vm90_vm4, %v30437_v31  ;;  %v32089_v31 = vld [vmem:[#allocation24_spill] sm:$0xff] }
0x11fb   :  { %22234 = vmatmul.mubr.msk.f32.gmra.mrb[52].mxu1 %vm90_vm4, %v30441_v42  ;;  %v32090_v42 = vld [vmem:[#allocation55_spill] sm:$0xff] }
0x11fc   :  { %22236 = vmatprep.mubr.msk.f32.mxu1 %vm90_vm4, %v30445_v15  ;;  %v32091_v15 = vld [vmem:[#allocation56_spill] sm:$0xff] }
0x11ff   :  { %22237 = vmatmul.mubr.msk.f32.gmra.mrb[54].mxu1 %vm90_vm4, %v30449_v45  ;;  %v32092_v45 = vld [vmem:[#allocation57_spill] sm:$0xff] }
0x1200   :  { %22239 = vmatprep.mubr.msk.f32.mxu1 %vm90_vm4, %v30453_v60  ;;  %v32093_v60 = vld [vmem:[#allocation58_spill] sm:$0xff] }
0x1203   :  { %22240 = vmatmul.mubr.msk.f32.gmra.mrb[56].mxu1 %vm90_vm4, %v30457_v36  ;;  %v32094_v36 = vld [vmem:[#allocation59_spill] sm:$0xff] }
0x1204   :  { %22242 = vmatprep.mubr.msk.f32.mxu1 %vm90_vm4, %v30461_v8  ;;  %v32095_v8 = vld [vmem:[#allocation60_spill] sm:$0xff] }
0x1207   :  { %22243 = vmatmul.mubr.msk.f32.gmra.mrb[58].mxu1 %vm90_vm4, %v30465_v10  ;;  %v32096_v10 = vld [vmem:[#allocation26_spill] sm:$0xff] }
0x1208   :  { %22245 = vmatprep.mubr.msk.f32.mxu1 %vm90_vm4, %v30469_v20  ;;  %v32097_v20 = vld [vmem:[#allocation27_spill] sm:$0xff] }
0x120b   :  { %22246 = vmatmul.mubr.msk.f32.gmra.mrb[60].mxu1 %vm90_vm4, %v32079_v41  ;;  %v24285_v41 = vld [vmem:[%s31480_s0 + $0x1f0] sm:$0xff] }
0x120c   :  { %22248 = vmatprep.mubr.msk.f32.mxu1 %vm90_vm4, %v32080_v33  ;;  %v24286_v33 = vld [vmem:[%s31480_s0 + $0x1f8] sm:$0xff] }
0x120f   :  { %22249 = vmatmul.mubr.msk.f32.gmra.mrb[62].mxu1 %vm90_vm4, %v32081_v54  ;;  %v24287_v54 = vld [vmem:[%s31491_s11] ss:$0 sm:$0xff] }
0x1210   :  { %22251 = vmatprep.mubr.msk.f32.mxu1 %vm90_vm4, %v32082_v32  ;;  %v24288_v32 = vld [vmem:[%s31492_s13] ss:$0 sm:$0xff] }
0x1213   :  { %22252 = vmatmul.mubr.msk.f32.gmra.mrb[64].mxu1 %vm90_vm4, %v32083_v27  ;;  %v31317_v27 = vadd.f32 %v24288_v32, %v24287_v54 }
0x1214   :  { %22254 = vmatprep.mubr.msk.f32.mxu1 %vm90_vm4, %v32084_v59 }
0x1217   :  { %22255 = vmatmul.mubr.msk.f32.gmra.mrb[66].mxu1 %vm90_vm4, %v32085_v35 }
0x1218   :  { %22257 = vmatprep.mubr.msk.f32.mxu1 %vm90_vm4, %v32086_v63 }
0x121b   :  { %22258 = vmatmul.mubr.msk.f32.gmra.mrb[68].mxu1 %vm90_vm4, %v32087_v2 }
0x121c   :  { %22260 = vmatprep.mubr.msk.f32.mxu1 %vm90_vm4, %v16578_v29 }
0x121f   :  { %22261 = vmatmul.mubr.msk.f32.gmra.mrb[70].mxu1 %vm90_vm4, %v16579_v21 }
0x1220   :  { %22267 = vmatprep.mubr.msk.f32.mxu1 %vm90_vm4, %v32053_v37  ;;  %v24276_v37 = vld [vmem:[%s31480_s0 + $0x1a8] sm:$0xff] }
0x1223   :  { %22268 = vmatmul.mubr.msk.f32.vlgmr.msra.gmra.mrb[40].mxu1 %vm90_vm4, %v32054_v51  ;;  %v24274_v51 = vld [vmem:[%s31480_s0 + $0x198] sm:$0xff] }
0x1224   :  { %22316 = vmatpush3.msra.mxu1 %v24254_v11  ;;  %22270 = vmatprep.mubr.msk.f32.mxu1 %vm90_vm4, %v32088_v9  ;;  %v24284_v11 = vld [vmem:[%s31480_s0 + $0x1e8] sm:$0xff] }
0x1227   :  { %22271 = vmatmul.mubr.msk.f32.gmra.mrb[42].mxu1 %vm90_vm4, %v32089_v31 }
0x1228   :  { %22273 = vmatprep.mubr.msk.f32.mxu1 %vm90_vm4, %v32090_v42 }
0x122b   :  { %22274 = vmatmul.mubr.msk.f32.gmra.mrb[44].mxu1 %vm90_vm4, %v32091_v15 }
0x122c   :  { %22276 = vmatprep.mubr.msk.f32.mxu1 %vm90_vm4, %v32092_v45 }
0x122f   :  { %22277 = vmatmul.mubr.msk.f32.gmra.mrb[46].mxu1 %vm90_vm4, %v32093_v60 }
0x1230   :  { %22279 = vmatprep.mubr.msk.f32.mxu1 %vm90_vm4, %v32094_v36 }
0x1233   :  { %22280 = vmatmul.mubr.msk.f32.gmra.mrb[48].mxu1 %vm90_vm4, %v32095_v8 }
0x1234   :  { %22282 = vmatprep.mubr.msk.f32.mxu1 %vm90_vm4, %v32096_v10 }
0x1237   :  { %22283 = vmatmul.mubr.msk.f32.gmra.mrb[50].mxu1 %vm90_vm4, %v32097_v20 }
0x1238   :  { %22285 = vmatprep.mubr.msk.f32.mxu1 %vm90_vm4, %v32098_v52 }
0x123b   :  { %22286 = vmatmul.mubr.msk.f32.gmra.mrb[52].mxu1 %vm90_vm4, %v32099_v18 }
0x123c   :  { %22288 = vmatprep.mubr.msk.f32.mxu1 %vm90_vm4, %v32100_v38 }
0x123f   :  { %22289 = vmatmul.mubr.msk.f32.gmra.mrb[54].mxu1 %vm90_vm4, %v32101_v26 }
0x1240   :  { %22291 = vmatprep.mubr.msk.f32.mxu1 %vm90_vm4, %v32102_v22 }
0x1243   :  { %22292 = vmatmul.mubr.msk.f32.gmra.mrb[56].mxu1 %vm90_vm4, %v32103_v43 }
0x1244   :  { %22294 = vmatprep.mubr.msk.f32.mxu1 %vm90_vm4, %v32071_v5  ;;  %v16965_v5 = vld [vmem:[#allocation3 + $0x229] sm:$0xff] }
0x1247   :  { %22295 = vmatmul.mubr.msk.f32.gmra.mrb[58].mxu1 %vm90_vm4, %v32072_v6  ;;  %v32108_v6 = vld [vmem:[#allocation37_spill] sm:$0xff] }
0x1248   :  { %22297 = vmatprep.mubr.msk.f32.mxu1 %vm90_vm4, %v32104_v55 }
0x124b   :  { %22298 = vmatmul.mubr.msk.f32.gmra.mrb[60].mxu1 %vm90_vm4, %v32074_v48  ;;  %v24277_v48 = vld [vmem:[%s31480_s0 + $0x1b0] sm:$0xff] }
0x124c   :  { %22300 = vmatprep.mubr.msk.f32.mxu1 %vm90_vm4, %v32105_v34 }
0x124f   :  { %22301 = vmatmul.mubr.msk.f32.gmra.mrb[62].mxu1 %vm90_vm4, %v32076_v24  ;;  %v24279_v24 = vld [vmem:[%s31480_s0 + $0x1c0] sm:$0xff] }
0x1250   :  { %22303 = vmatprep.mubr.msk.f32.mxu1 %vm90_vm4, %v32106_v12 }
0x1253   :  { %22304 = vmatmul.mubr.msk.f32.gmra.mrb[64].mxu1 %vm90_vm4, %v32107_v40 }
0x1254   :  { %22306 = vmatprep.mubr.msk.f32.mxu1 %vm90_vm4, %v30757_v53  ;;  %v24270_v53 = vld [vmem:[%s31480_s0 + $0x178] sm:$0xff] }
0x1257   :  { %22307 = vmatmul.mubr.msk.f32.gmra.mrb[66].mxu1 %vm90_vm4, %v32108_v6 }
0x1258   :  { %22309 = vmatprep.mubr.msk.f32.mxu1 %vm90_vm4, %v30980_v14  ;;  %v24257_v14 = vld [vmem:[%s31480_s0 + $0x110] sm:$0xff] }
0x125b   :  { %22310 = vmatmul.mubr.msk.f32.gmra.mrb[68].mxu1 %vm90_vm4, %v30984_v30  ;;  %v24278_v30 = vld [vmem:[%s31480_s0 + $0x1b8] sm:$0xff] }
0x125c   :  { %22312 = vmatprep.mubr.msk.f32.mxu1 %vm90_vm4, %v16965_v5 }
0x125f   :  { %22313 = vmatmul.mubr.msk.f32.gmra.mrb[70].mxu1 %vm90_vm4, %v16966_v57 }
0x1260   :  { %22317 = vmatprep.mubr.msk.f32.mxu1 %vm47_vm0, %v24255_v0 }
0x1263   :  { %22318 = vmatmul.mubr.msk.f32.vlgmr.msra.gmra.mrb[40].mxu1 %vm47_vm0, %v24256_v13 }
0x1264   :  { %22320 = vmatprep.mubr.msk.f32.mxu1 %vm47_vm0, %v24257_v14 }
0x1267   :  { %22321 = vmatmul.mubr.msk.f32.gmra.mrb[42].mxu1 %vm47_vm0, %v24258_v4 }
0x1268   :  { %22323 = vmatprep.mubr.msk.f32.mxu1 %vm47_vm0, %v24259_v58 }
0x126b   :  { %22324 = vmatmul.mubr.msk.f32.gmra.mrb[44].mxu1 %vm47_vm0, %v24260_v49 }
0x126c   :  { %22326 = vmatprep.mubr.msk.f32.mxu1 %vm47_vm0, %v24261_v47 }
0x126f   :  { %22327 = vmatmul.mubr.msk.f32.gmra.mrb[46].mxu1 %vm47_vm0, %v24262_v44 }
0x1270   :  { %22329 = vmatprep.mubr.msk.f32.mxu1 %vm47_vm0, %v24263_v56 }
0x1273   :  { %22330 = vmatmul.mubr.msk.f32.gmra.mrb[48].mxu1 %vm47_vm0, %v24264_v61 }
0x1274   :  { %22332 = vmatprep.mubr.msk.f32.mxu1 %vm47_vm0, %v24265_v25 }
0x1277   :  { %22333 = vmatmul.mubr.msk.f32.gmra.mrb[50].mxu1 %vm47_vm0, %v24266_v28 }
0x1278   :  { %22335 = vmatprep.mubr.msk.f32.mxu1 %vm47_vm0, %v24267_v46 }
0x127b   :  { %22336 = vmatmul.mubr.msk.f32.gmra.mrb[52].mxu1 %vm47_vm0, %v24268_v50 }
0x127c   :  { %22338 = vmatprep.mubr.msk.f32.mxu1 %vm47_vm0, %v24269_v19 }
0x127f   :  { %22339 = vmatmul.mubr.msk.f32.gmra.mrb[54].mxu1 %vm47_vm0, %v24270_v53 }
0x1280   :  { %22341 = vmatprep.mubr.msk.f32.mxu1 %vm47_vm0, %v24271_v39 }
0x1283   :  { %22342 = vmatmul.mubr.msk.f32.gmra.mrb[56].mxu1 %vm47_vm0, %v24272_v7 }
0x1284   :  { %22344 = vmatprep.mubr.msk.f32.mxu1 %vm47_vm0, %v24273_v62 }
0x1287   :  { %22345 = vmatmul.mubr.msk.f32.gmra.mrb[58].mxu1 %vm47_vm0, %v24274_v51 }
0x1288   :  { %22347 = vmatprep.mubr.msk.f32.mxu1 %vm47_vm0, %v24275_v16 }
0x128b   :  { %22348 = vmatmul.mubr.msk.f32.gmra.mrb[60].mxu1 %vm47_vm0, %v24276_v37 }
0x128c   :  { %22350 = vmatprep.mubr.msk.f32.mxu1 %vm47_vm0, %v24277_v48 }
0x128f   :  { %22351 = vmatmul.mubr.msk.f32.gmra.mrb[62].mxu1 %vm47_vm0, %v24278_v30 }
0x1290   :  { %22353 = vmatprep.mubr.msk.f32.mxu1 %vm47_vm0, %v24279_v24 }
0x1293   :  { %22354 = vmatmul.mubr.msk.f32.gmra.mrb[64].mxu1 %vm47_vm0, %v24280_v23 }
0x1294   :  { %22356 = vmatprep.mubr.msk.f32.mxu1 %vm47_vm0, %v24281_v17 }
0x1297   :  { %22357 = vmatmul.mubr.msk.f32.gmra.mrb[66].mxu1 %vm47_vm0, %v24282_v1 }
0x1298   :  { %22359 = vmatprep.mubr.msk.f32.mxu1 %vm47_vm0, %v24283_v3 }
0x129b   :  { %22360 = vmatmul.mubr.msk.f32.gmra.mrb[68].mxu1 %vm47_vm0, %v24284_v11 }
0x129c   :  { %22362 = vmatprep.mubr.msk.f32.mxu1 %vm47_vm0, %v24285_v41 }
0x129f   :  { %22363 = vmatmul.mubr.msk.f32.gmra.mrb[70].mxu1 %vm47_vm0, %v24286_v33 }
0x1336   :  { %v22319_v59 = vpop.f32.mrb[40].mxu1 }
0x1337   :  { %v22546_v35 = vadd.f32 %v31317_v27, %v22319_v59  ;;  %v17516_v63 = vpop.f32.mrb[41].mxu1 }
0x1338   :  { %v22548_v29 = vadd.f32 %v31317_v27, %v17516_v63 }
0x1339   :  { %19058 = vst.msk [vmem:[%s31493_s14 + $0x108] sm:$0xff] %vm90_vm4, %v22546_v35 }
0x133a   :  { %19057 = vst.msk [vmem:[%s31493_s14 + $0x100] sm:$0xff] %vm90_vm4, %v22548_v29  ;;  %v22322_v2 = vpop.f32.mrb[42].mxu1 }
0x133b   :  { %v22550_v21 = vadd.f32 %v31317_v27, %v22322_v2  ;;  %v17526_v9 = vpop.f32.mrb[43].mxu1 }
0x133c   :  { %v22552_v31 = vadd.f32 %v31317_v27, %v17526_v9 }
0x133d   :  { %19060 = vst.msk [vmem:[%s31493_s14 + $0x118] sm:$0xff] %vm90_vm4, %v22550_v21 }
0x133e   :  { %19059 = vst.msk [vmem:[%s31493_s14 + $0x110] sm:$0xff] %vm90_vm4, %v22552_v31  ;;  %v22325_v42 = vpop.f32.mrb[44].mxu1 }
0x133f   :  { %v22554_v15 = vadd.f32 %v31317_v27, %v22325_v42  ;;  %v17536_v45 = vpop.f32.mrb[45].mxu1 }
0x1340   :  { %v22556_v60 = vadd.f32 %v31317_v27, %v17536_v45 }
0x1341   :  { %19062 = vst.msk [vmem:[%s31493_s14 + $0x128] sm:$0xff] %vm90_vm4, %v22554_v15 }
0x1342   :  { %19061 = vst.msk [vmem:[%s31493_s14 + $0x120] sm:$0xff] %vm90_vm4, %v22556_v60  ;;  %v22328_v36 = vpop.f32.mrb[46].mxu1 }
0x1343   :  { %v22558_v8 = vadd.f32 %v31317_v27, %v22328_v36  ;;  %v17546_v10 = vpop.f32.mrb[47].mxu1 }
0x1344   :  { %v22560_v20 = vadd.f32 %v31317_v27, %v17546_v10 }
0x1345   :  { %19064 = vst.msk [vmem:[%s31493_s14 + $0x138] sm:$0xff] %vm90_vm4, %v22558_v8 }
0x1346   :  { %19063 = vst.msk [vmem:[%s31493_s14 + $0x130] sm:$0xff] %vm90_vm4, %v22560_v20  ;;  %v22331_v52 = vpop.f32.mrb[48].mxu1 }
0x1347   :  { %v22562_v18 = vadd.f32 %v31317_v27, %v22331_v52  ;;  %v17556_v38 = vpop.f32.mrb[49].mxu1 }
0x1348   :  { %v22564_v26 = vadd.f32 %v31317_v27, %v17556_v38 }
0x1349   :  { %19066 = vst.msk [vmem:[%s31493_s14 + $0x148] sm:$0xff] %vm90_vm4, %v22562_v18 }
0x134a   :  { %19065 = vst.msk [vmem:[%s31493_s14 + $0x140] sm:$0xff] %vm90_vm4, %v22564_v26  ;;  %v22334_v22 = vpop.f32.mrb[50].mxu1 }
0x134b   :  { %v22566_v43 = vadd.f32 %v31317_v27, %v22334_v22  ;;  %v17566_v55 = vpop.f32.mrb[51].mxu1 }
0x134c   :  { %v22568_v34 = vadd.f32 %v31317_v27, %v17566_v55 }
0x134d   :  { %19068 = vst.msk [vmem:[%s31493_s14 + $0x158] sm:$0xff] %vm90_vm4, %v22566_v43 }
0x134e   :  { %19067 = vst.msk [vmem:[%s31493_s14 + $0x150] sm:$0xff] %vm90_vm4, %v22568_v34  ;;  %v22337_v12 = vpop.f32.mrb[52].mxu1 }
0x134f   :  { %v22570_v40 = vadd.f32 %v31317_v27, %v22337_v12  ;;  %v17576_v6 = vpop.f32.mrb[53].mxu1 }
0x1350   :  { %v22572_v5 = vadd.f32 %v31317_v27, %v17576_v6 }
0x1351   :  { %19070 = vst.msk [vmem:[%s31493_s14 + $0x168] sm:$0xff] %vm90_vm4, %v22570_v40 }
0x1352   :  { %19069 = vst.msk [vmem:[%s31493_s14 + $0x160] sm:$0xff] %vm90_vm4, %v22572_v5  ;;  %v22340_v57 = vpop.f32.mrb[54].mxu1 }
0x1353   :  { %v22574_v0 = vadd.f32 %v31317_v27, %v22340_v57  ;;  %v17586_v13 = vpop.f32.mrb[55].mxu1 }
0x1354   :  { %v22576_v14 = vadd.f32 %v31317_v27, %v17586_v13 }
0x1355   :  { %19072 = vst.msk [vmem:[%s31493_s14 + $0x178] sm:$0xff] %vm90_vm4, %v22574_v0 }
0x1356   :  { %19071 = vst.msk [vmem:[%s31493_s14 + $0x170] sm:$0xff] %vm90_vm4, %v22576_v14  ;;  %v22343_v4 = vpop.f32.mrb[56].mxu1 }
0x1357   :  { %v22578_v58 = vadd.f32 %v31317_v27, %v22343_v4  ;;  %v17596_v49 = vpop.f32.mrb[57].mxu1 }
0x1358   :  { %v22580_v47 = vadd.f32 %v31317_v27, %v17596_v49 }
0x1359   :  { %19074 = vst.msk [vmem:[%s31493_s14 + $0x188] sm:$0xff] %vm90_vm4, %v22578_v58 }
0x135a   :  { %19073 = vst.msk [vmem:[%s31493_s14 + $0x180] sm:$0xff] %vm90_vm4, %v22580_v47  ;;  %v22346_v44 = vpop.f32.mrb[58].mxu1 }
0x135b   :  { %v22582_v56 = vadd.f32 %v31317_v27, %v22346_v44  ;;  %v17606_v61 = vpop.f32.mrb[59].mxu1 }
0x135c   :  { %v22584_v25 = vadd.f32 %v31317_v27, %v17606_v61 }
0x135d   :  { %19076 = vst.msk [vmem:[%s31493_s14 + $0x198] sm:$0xff] %vm90_vm4, %v22582_v56 }
0x135e   :  { %19075 = vst.msk [vmem:[%s31493_s14 + $0x190] sm:$0xff] %vm90_vm4, %v22584_v25  ;;  %v22349_v28 = vpop.f32.mrb[60].mxu1 }
0x135f   :  { %v22586_v46 = vadd.f32 %v31317_v27, %v22349_v28  ;;  %v17616_v50 = vpop.f32.mrb[61].mxu1 }
0x1360   :  { %v22588_v19 = vadd.f32 %v31317_v27, %v17616_v50 }
0x1361   :  { %19078 = vst.msk [vmem:[%s31493_s14 + $0x1a8] sm:$0xff] %vm90_vm4, %v22586_v46 }
0x1362   :  { %19077 = vst.msk [vmem:[%s31493_s14 + $0x1a0] sm:$0xff] %vm90_vm4, %v22588_v19  ;;  %v22352_v53 = vpop.f32.mrb[62].mxu1 }
0x1363   :  { %v22590_v39 = vadd.f32 %v31317_v27, %v22352_v53  ;;  %v17626_v7 = vpop.f32.mrb[63].mxu1 }
0x1364   :  { %v22592_v62 = vadd.f32 %v31317_v27, %v17626_v7 }
0x1365   :  { %19080 = vst.msk [vmem:[%s31493_s14 + $0x1b8] sm:$0xff] %vm90_vm4, %v22590_v39 }
0x1366   :  { %19079 = vst.msk [vmem:[%s31493_s14 + $0x1b0] sm:$0xff] %vm90_vm4, %v22592_v62  ;;  %v22355_v51 = vpop.f32.mrb[64].mxu1 }
0x1367   :  { %v22594_v16 = vadd.f32 %v31317_v27, %v22355_v51  ;;  %v17636_v37 = vpop.f32.mrb[65].mxu1 }
0x1368   :  { %v22596_v48 = vadd.f32 %v31317_v27, %v17636_v37 }
0x1369   :  { %19082 = vst.msk [vmem:[%s31493_s14 + $0x1c8] sm:$0xff] %vm90_vm4, %v22594_v16 }
0x136a   :  { %19081 = vst.msk [vmem:[%s31493_s14 + $0x1c0] sm:$0xff] %vm90_vm4, %v22596_v48  ;;  %v22358_v30 = vpop.f32.mrb[66].mxu1 }
0x136b   :  { %v22598_v24 = vadd.f32 %v31317_v27, %v22358_v30  ;;  %v17646_v23 = vpop.f32.mrb[67].mxu1 }
0x136c   :  { %v22600_v17 = vadd.f32 %v31317_v27, %v17646_v23 }
0x136d   :  { %19084 = vst.msk [vmem:[%s31493_s14 + $0x1d8] sm:$0xff] %vm90_vm4, %v22598_v24 }
0x136e   :  { %19083 = vst.msk [vmem:[%s31493_s14 + $0x1d0] sm:$0xff] %vm90_vm4, %v22600_v17  ;;  %v22361_v1 = vpop.f32.mrb[68].mxu1 }
0x136f   :  { %v22602_v3 = vadd.f32 %v31317_v27, %v22361_v1  ;;  %v17656_v11 = vpop.f32.mrb[69].mxu1 }
0x1370   :  { %v22604_v41 = vadd.f32 %v31317_v27, %v17656_v11 }
0x1371   :  { %19086 = vst.msk [vmem:[%s31493_s14 + $0x1e8] sm:$0xff] %vm90_vm4, %v22602_v3 }
0x1372   :  { %19085 = vst.msk [vmem:[%s31493_s14 + $0x1e0] sm:$0xff] %vm90_vm4, %v22604_v41  ;;  %v22364_v33 = vpop.f32.mrb[70].mxu1 }
0x1373   :  { %v22606_v54 = vadd.f32 %v31317_v27, %v22364_v33  ;;  %v17666_v32 = vpop.f32.mrb[71].mxu1 }
0x1374   :  { %v22608_v59 = vadd.f32 %v31317_v27, %v17666_v32 }
0x1375   :  { %19088 = vst.msk [vmem:[%s31493_s14 + $0x1f8] sm:$0xff] %vm90_vm4, %v22606_v54 }
0x1376   :  { %19087 = vst.msk [vmem:[%s31493_s14 + $0x1f0] sm:$0xff] %vm90_vm4, %v22608_v59 }

</bundles_post_ra>
